<compile_context>
chip_gen: v5e
topology: v5e:2x2
jax: 0.10.0
libtpu: 0.0.40
codegen_flags: <defaults>
</compile_context>

<pallas_src>
import math

import jax
import jax.numpy as jnp
from jax.experimental import pallas as pl
from jax.experimental.pallas import tpu as pltpu

NB_FEATS = 5 ** 3          # 125
CIN0_PAD = 128             # first-layer input channels padded 125 -> 128
BN_EPS = 1e-5
DROPOUT = 0.3              # identity in eval mode
N_LAYERS = 12              # 6 encoder + 6 decoder

_BF = jnp.bfloat16

ENC_CHANNELS = [(NB_FEATS, 128), (128, 64), (64, 32), (32, 32), (32, 32), (32, 16)]
DEC_CHANNELS = [(16, 32), (32, 32), (32, 32), (32, 64), (64, 128), (128, NB_FEATS)]


# ---------------------------------------------------------------------------
# In-kernel helpers: all "spatial" ops are 0/1 selection-matrix matmuls so that
# only dot / iota / where / maximum / axis-0 concat are emitted.
# ---------------------------------------------------------------------------
def _band_matrix(L, delta, dtype):
    """(L, L) 0/1 matrix M with (x @ M)[:, j] = x[:, j - delta] (zero outside)."""
    r = jax.lax.broadcasted_iota(jnp.int32, (L, L), 0)
    c = jax.lax.broadcasted_iota(jnp.int32, (L, L), 1)
    return jnp.where(c == r + delta, 1.0, 0.0).astype(dtype)


def _upsample_matrix(L, dtype):
    """(L, 2L): out[:, j] = x[:, j // 2]  (nearest-neighbor upsample, scale 2)."""
    r = jax.lax.broadcasted_iota(jnp.int32, (L, 2 * L), 0)
    c = jax.lax.broadcasted_iota(jnp.int32, (L, 2 * L), 1)
    sel = jnp.logical_or(c == 2 * r, c == 2 * r + 1)
    return jnp.where(sel, 1.0, 0.0).astype(dtype)


def _pool_matrices(L, dtype):
    """(L, L//2) selectors of even / odd columns (max_pool1d kernel=2, stride=2)."""
    lo = L // 2
    r = jax.lax.broadcasted_iota(jnp.int32, (L, lo), 0)
    c = jax.lax.broadcasted_iota(jnp.int32, (L, lo), 1)
    even = jnp.where(r == 2 * c, 1.0, 0.0).astype(dtype)
    odd = jnp.where(r == 2 * c + 1, 1.0, 0.0).astype(dtype)
    return even, odd


def _replicate_pad_matrix(L, dtype):
    """(L, L+1): identity plus a duplicated last column (F.pad replicate right)."""
    r = jax.lax.broadcasted_iota(jnp.int32, (L, L + 1), 0)
    c = jax.lax.broadcasted_iota(jnp.int32, (L, L + 1), 1)
    sel = jnp.logical_or(c == r, jnp.logical_and(c == L, r == L - 1))
    return jnp.where(sel, 1.0, 0.0).astype(dtype)


def _sel_dot(x_f32, sel_bf16):
    """Exact column-selection matmul: bf16 operands, f32 accumulate."""
    return jnp.dot(x_f32.astype(_BF), sel_bf16, preferred_element_type=jnp.float32)


def _conv_bn_relu(x, w_bf16, b_f32):
    """relu(bn(conv1d(x, k=3, pad=1))) with eval-mode BN folded into w/b.

    x: (Cin, L) f32; w_bf16: (Cout, 3*Cin) bf16 laid out [tap0 | tap1 | tap2];
    b_f32: (Cout, 1) f32.  Single K = 3*Cin MXU matmul via an in-VMEM im2col slab.
    """
    _, L = x.shape
    x_bf = x.astype(_BF)
    # zero-padded taps via shift matrices: tap0 -> x[:, j-1], tap2 -> x[:, j+1]
    x_m1 = jnp.dot(x_bf, _band_matrix(L, +1, _BF), preferred_element_type=jnp.float32)
    x_p1 = jnp.dot(x_bf, _band_matrix(L, -1, _BF), preferred_element_type=jnp.float32)
    slab = jnp.concatenate([x_m1.astype(_BF), x_bf, x_p1.astype(_BF)], axis=0)
    y = jnp.dot(w_bf16, slab, preferred_element_type=jnp.float32) + b_f32
    return jnp.maximum(y, 0.0)        # dropout = identity at inference


def _max_pool1d_2(x):
    even, odd = _pool_matrices(x.shape[1], _BF)
    return jnp.maximum(_sel_dot(x, even), _sel_dot(x, odd))


def _upsample2(x):
    return _sel_dot(x, _upsample_matrix(x.shape[1], _BF))


def _replicate_pad_right(x):
    return _sel_dot(x, _replicate_pad_matrix(x.shape[1], _BF))


# ---------------------------------------------------------------------------
# The single fused kernel: whole autoencoder forward for one batch element.
# ---------------------------------------------------------------------------
def _fused_ae_kernel(x_ref, *refs):
    w_refs = refs[:N_LAYERS]
    b_refs = refs[N_LAYERS:2 * N_LAYERS]
    enc_ref = refs[2 * N_LAYERS]
    out_ref = refs[2 * N_LAYERS + 1]

    act = x_ref[...]                                   # (128, L0) f32
    # ---------------- encoder ----------------
    for i in range(6):
        act = _conv_bn_relu(act, w_refs[i][...], b_refs[i][...])
        act = _max_pool1d_2(act)
    enc_ref[...] = act                                 # (16, L0 // 64)
    # ---------------- decoder ----------------
    for i in range(6):
        act = _conv_bn_relu(act, w_refs[6 + i][...], b_refs[6 + i][...])
        act = _upsample2(act)
        if i < 3:
            act = _replicate_pad_right(act)
    out_ref[...] = act                                 # (125, L_out)


# ---------------------------------------------------------------------------
# Parameters (deterministic PyTorch-default-style init; eval-mode BN folded in)
# ---------------------------------------------------------------------------
def make_conv_bn_params(key, cin, cout, cin_pad=None):
    if cin_pad is None:
        cin_pad = cin
    kw, kb = jax.random.split(key)
    bound = 1.0 / math.sqrt(cin * 3)
    w = jax.random.uniform(kw, (cout, cin, 3), jnp.float32, -bound, bound)
    b = jax.random.uniform(kb, (cout,), jnp.float32, -bound, bound)
    # BatchNorm1d eval defaults: gamma=1, beta=0, running_mean=0, running_var=1
    scale = 1.0 / math.sqrt(1.0 + BN_EPS)
    w = w * scale
    b = b * scale
    taps = []
    for k in range(3):
        t = w[:, :, k]                                 # (Cout, Cin), tap k
        if cin_pad > cin:
            t = jnp.pad(t, ((0, 0), (0, cin_pad - cin)))
        taps.append(t)
    w_r = jnp.concatenate(taps, axis=1).astype(_BF)    # (Cout, 3*cin_pad) bf16
    return w_r, b.reshape(cout, 1).astype(jnp.float32)


def init_params(key):
    keys = jax.random.split(key, N_LAYERS)
    ws, bs = [], []
    for i, (ci, co) in enumerate(ENC_CHANNELS):
        w, b = make_conv_bn_params(keys[i], ci, co,
                                   cin_pad=CIN0_PAD if i == 0 else ci)
        ws.append(w)
        bs.append(b)
    for i, (ci, co) in enumerate(DEC_CHANNELS):
        w, b = make_conv_bn_params(keys[6 + i], ci, co)
        ws.append(w)
        bs.append(b)
    return ws, bs


# ---------------------------------------------------------------------------
# Forward (matches PhageBactAutoEncoder.forward, eval mode)
# ---------------------------------------------------------------------------
def phage_bact_autoencoder(x, params):
    """x: (N, 125, L) f32, L divisible by 64 -> (enc_x (N,16,L//64), out_x)."""
    ws, bs = params
    n, c, l0 = x.shape
    assert c == NB_FEATS
    # one-time channel pad 125 -> 128 so in-kernel im2col offsets are tile-aligned
    x_p = jnp.pad(x, ((0, 0), (0, CIN0_PAD - NB_FEATS), (0, 0)))

    l_enc = l0
    for _ in range(6):
        l_enc //= 2
    l_out = l_enc
    for i in range(6):
        l_out = 2 * l_out + (1 if i < 3 else 0)

    weight_specs = [pl.BlockSpec(w.shape, lambda i: (0, 0)) for w in ws]
    bias_specs = [pl.BlockSpec(b.shape, lambda i: (0, 0)) for b in bs]

    enc_x, out_x = pl.pallas_call(
        _fused_ae_kernel,
        grid=(n,),
        in_specs=[pl.BlockSpec((None, CIN0_PAD, l0), lambda i: (i, 0, 0))]
                 + weight_specs + bias_specs,
        out_specs=(pl.BlockSpec((None, 16, l_enc), lambda i: (i, 0, 0)),
                   pl.BlockSpec((None, NB_FEATS, l_out), lambda i: (i, 0, 0))),
        out_shape=(jax.ShapeDtypeStruct((n, 16, l_enc), jnp.float32),
                   jax.ShapeDtypeStruct((n, NB_FEATS, l_out), jnp.float32)),
        compiler_params=pltpu.CompilerParams(
            dimension_semantics=("parallel",)),
    )(x_p, *ws, *bs)
    return enc_x, out_x


if __name__ == "__main__":
    key = jax.random.PRNGKey(0)
    k_params, k_x = jax.random.split(key)
    params = init_params(k_params)

    # Small example: batch=2, channels=NB_FEATS=125, length=128
    x = jax.random.normal(k_x, (2, NB_FEATS, 128), jnp.float32)

    enc_x, out_x = jax.jit(phage_bact_autoencoder)(x, params)
    jax.block_until_ready((enc_x, out_x))

    # length 128 -> /2^6 = 2 after encoder; decoder: 2->5->11->23->46->92->184
    assert enc_x.shape == (2, 16, 2), enc_x.shape
    assert out_x.shape == (2, NB_FEATS, 184), out_x.shape
    print("KERNEL_OK")
</pallas_src>

<mosaic_0001>
module attributes {stable_mosaic.version = 11 : i64} {
  func.func @_fused_ae_kernel(%arg0: i32, %arg1: memref<1x128x128xf32, #tpu.memory_space<vmem>>, %arg2: memref<128x384xbf16, #tpu.memory_space<vmem>>, %arg3: memref<64x384xbf16, #tpu.memory_space<vmem>>, %arg4: memref<32x192xbf16, #tpu.memory_space<vmem>>, %arg5: memref<32x96xbf16, #tpu.memory_space<vmem>>, %arg6: memref<32x96xbf16, #tpu.memory_space<vmem>>, %arg7: memref<16x96xbf16, #tpu.memory_space<vmem>>, %arg8: memref<32x48xbf16, #tpu.memory_space<vmem>>, %arg9: memref<32x96xbf16, #tpu.memory_space<vmem>>, %arg10: memref<32x96xbf16, #tpu.memory_space<vmem>>, %arg11: memref<64x96xbf16, #tpu.memory_space<vmem>>, %arg12: memref<128x192xbf16, #tpu.memory_space<vmem>>, %arg13: memref<125x384xbf16, #tpu.memory_space<vmem>>, %arg14: memref<128x1xf32, #tpu.memory_space<vmem>>, %arg15: memref<64x1xf32, #tpu.memory_space<vmem>>, %arg16: memref<32x1xf32, #tpu.memory_space<vmem>>, %arg17: memref<32x1xf32, #tpu.memory_space<vmem>>, %arg18: memref<32x1xf32, #tpu.memory_space<vmem>>, %arg19: memref<16x1xf32, #tpu.memory_space<vmem>>, %arg20: memref<32x1xf32, #tpu.memory_space<vmem>>, %arg21: memref<32x1xf32, #tpu.memory_space<vmem>>, %arg22: memref<32x1xf32, #tpu.memory_space<vmem>>, %arg23: memref<64x1xf32, #tpu.memory_space<vmem>>, %arg24: memref<128x1xf32, #tpu.memory_space<vmem>>, %arg25: memref<125x1xf32, #tpu.memory_space<vmem>>, %arg26: memref<1x16x2xf32, #tpu.memory_space<vmem>>, %arg27: memref<1x125x184xf32, #tpu.memory_space<vmem>>) attributes {dimension_semantics = [#tpu.dimension_semantics<parallel>], iteration_bounds = array<i64: 2>, scalar_prefetch = 0 : i64, scratch_operands = 0 : i64, tpu.core_type = #tpu.core_type<tc>, window_params = [{transform_indices = @transform_0, window_bounds = array<i64: 1, 128, 128>}, {pipeline_mode = #tpu.pipeline_mode<synchronous>, transform_indices = @transform_1, window_bounds = array<i64: 128, 384>}, {pipeline_mode = #tpu.pipeline_mode<synchronous>, transform_indices = @transform_2, window_bounds = array<i64: 64, 384>}, {pipeline_mode = #tpu.pipeline_mode<synchronous>, transform_indices = @transform_3, window_bounds = array<i64: 32, 192>}, {pipeline_mode = #tpu.pipeline_mode<synchronous>, transform_indices = @transform_4, window_bounds = array<i64: 32, 96>}, {pipeline_mode = #tpu.pipeline_mode<synchronous>, transform_indices = @transform_5, window_bounds = array<i64: 32, 96>}, {pipeline_mode = #tpu.pipeline_mode<synchronous>, transform_indices = @transform_6, window_bounds = array<i64: 16, 96>}, {pipeline_mode = #tpu.pipeline_mode<synchronous>, transform_indices = @transform_7, window_bounds = array<i64: 32, 48>}, {pipeline_mode = #tpu.pipeline_mode<synchronous>, transform_indices = @transform_8, window_bounds = array<i64: 32, 96>}, {pipeline_mode = #tpu.pipeline_mode<synchronous>, transform_indices = @transform_9, window_bounds = array<i64: 32, 96>}, {pipeline_mode = #tpu.pipeline_mode<synchronous>, transform_indices = @transform_10, window_bounds = array<i64: 64, 96>}, {pipeline_mode = #tpu.pipeline_mode<synchronous>, transform_indices = @transform_11, window_bounds = array<i64: 128, 192>}, {pipeline_mode = #tpu.pipeline_mode<synchronous>, transform_indices = @transform_12, window_bounds = array<i64: 125, 384>}, {pipeline_mode = #tpu.pipeline_mode<synchronous>, transform_indices = @transform_13, window_bounds = array<i64: 128, 1>}, {pipeline_mode = #tpu.pipeline_mode<synchronous>, transform_indices = @transform_14, window_bounds = array<i64: 64, 1>}, {pipeline_mode = #tpu.pipeline_mode<synchronous>, transform_indices = @transform_15, window_bounds = array<i64: 32, 1>}, {pipeline_mode = #tpu.pipeline_mode<synchronous>, transform_indices = @transform_16, window_bounds = array<i64: 32, 1>}, {pipeline_mode = #tpu.pipeline_mode<synchronous>, transform_indices = @transform_17, window_bounds = array<i64: 32, 1>}, {pipeline_mode = #tpu.pipeline_mode<synchronous>, transform_indices = @transform_18, window_bounds = array<i64: 16, 1>}, {pipeline_mode = #tpu.pipeline_mode<synchronous>, transform_indices = @transform_19, window_bounds = array<i64: 32, 1>}, {pipeline_mode = #tpu.pipeline_mode<synchronous>, transform_indices = @transform_20, window_bounds = array<i64: 32, 1>}, {pipeline_mode = #tpu.pipeline_mode<synchronous>, transform_indices = @transform_21, window_bounds = array<i64: 32, 1>}, {pipeline_mode = #tpu.pipeline_mode<synchronous>, transform_indices = @transform_22, window_bounds = array<i64: 64, 1>}, {pipeline_mode = #tpu.pipeline_mode<synchronous>, transform_indices = @transform_23, window_bounds = array<i64: 128, 1>}, {pipeline_mode = #tpu.pipeline_mode<synchronous>, transform_indices = @transform_24, window_bounds = array<i64: 125, 1>}, {transform_indices = @transform_25, window_bounds = array<i64: 1, 16, 2>}, {transform_indices = @transform_26, window_bounds = array<i64: 1, 125, 184>}]} {
    %c0 = arith.constant 0 : index
    %c0_0 = arith.constant 0 : index
    %c0_1 = arith.constant 0 : index
    %0 = vector.load %arg1[%c0, %c0_0, %c0_1] : memref<1x128x128xf32, #tpu.memory_space<vmem>>, vector<1x128x128xf32>
    %1 = vector.shape_cast %0 : vector<1x128x128xf32> to vector<128x128xf32>
    %c0_2 = arith.constant 0 : index
    %c0_3 = arith.constant 0 : index
    %2 = vector.load %arg2[%c0_2, %c0_3] : memref<128x384xbf16, #tpu.memory_space<vmem>>, vector<128x384xbf16>
    %c0_4 = arith.constant 0 : index
    %c0_5 = arith.constant 0 : index
    %3 = vector.load %arg14[%c0_4, %c0_5] : memref<128x1xf32, #tpu.memory_space<vmem>>, vector<128x1xf32>
    %4 = arith.truncf %1 : vector<128x128xf32> to vector<128x128xbf16>
    %5 = tpu.iota {dimensions = array<i32: 0>} : vector<128x128xi32>
    %6 = tpu.iota {dimensions = array<i32: 1>} : vector<128x128xi32>
    %c1_i32 = arith.constant 1 : i32
    %7 = vector.broadcast %c1_i32 : i32 to vector<128x128xi32>
    %8 = arith.addi %5, %7 : vector<128x128xi32>
    %9 = arith.cmpi eq, %6, %8 : vector<128x128xi32>
    %cst = arith.constant 1.000000e+00 : f32
    %cst_6 = arith.constant 0.000000e+00 : f32
    %10 = vector.broadcast %cst : f32 to vector<128x128xf32>
    %11 = vector.broadcast %cst_6 : f32 to vector<128x128xf32>
    %12 = arith.select %9, %10, %11 : vector<128x128xi1>, vector<128x128xf32>
    %13 = arith.truncf %12 : vector<128x128xf32> to vector<128x128xbf16>
    %cst_7 = arith.constant dense<0.000000e+00> : vector<128x128xf32>
    %14 = tpu.matmul %4, %13, %cst_7 {dimension_numbers = #tpu.dot_dimension_numbers<[1], [0], [0], [1], [0, 0, 1, 1], [], []>} : vector<128x128xbf16>, vector<128x128xbf16>, vector<128x128xf32> -> vector<128x128xf32>
    %15 = tpu.iota {dimensions = array<i32: 0>} : vector<128x128xi32>
    %16 = tpu.iota {dimensions = array<i32: 1>} : vector<128x128xi32>
    %c-1_i32 = arith.constant -1 : i32
    %17 = vector.broadcast %c-1_i32 : i32 to vector<128x128xi32>
    %18 = arith.addi %15, %17 : vector<128x128xi32>
    %19 = arith.cmpi eq, %16, %18 : vector<128x128xi32>
    %cst_8 = arith.constant 1.000000e+00 : f32
    %cst_9 = arith.constant 0.000000e+00 : f32
    %20 = vector.broadcast %cst_8 : f32 to vector<128x128xf32>
    %21 = vector.broadcast %cst_9 : f32 to vector<128x128xf32>
    %22 = arith.select %19, %20, %21 : vector<128x128xi1>, vector<128x128xf32>
    %23 = arith.truncf %22 : vector<128x128xf32> to vector<128x128xbf16>
    %cst_10 = arith.constant dense<0.000000e+00> : vector<128x128xf32>
    %24 = tpu.matmul %4, %23, %cst_10 {dimension_numbers = #tpu.dot_dimension_numbers<[1], [0], [0], [1], [0, 0, 1, 1], [], []>} : vector<128x128xbf16>, vector<128x128xbf16>, vector<128x128xf32> -> vector<128x128xf32>
    %25 = arith.truncf %14 : vector<128x128xf32> to vector<128x128xbf16>
    %26 = arith.truncf %24 : vector<128x128xf32> to vector<128x128xbf16>
    %27 = tpu.concatenate %25, %4, %26 in 0 : vector<128x128xbf16>, vector<128x128xbf16>, vector<128x128xbf16> -> vector<384x128xbf16>
    %cst_11 = arith.constant dense<0.000000e+00> : vector<128x128xf32>
    %28 = tpu.matmul %2, %27, %cst_11 {dimension_numbers = #tpu.dot_dimension_numbers<[1], [0], [0], [1], [0, 0, 1, 1], [], []>} : vector<128x384xbf16>, vector<384x128xbf16>, vector<128x128xf32> -> vector<128x128xf32>
    %29 = vector.broadcast %3 : vector<128x1xf32> to vector<128x128xf32>
    %30 = arith.addf %28, %29 : vector<128x128xf32>
    %cst_12 = arith.constant 0.000000e+00 : f32
    %31 = vector.broadcast %cst_12 : f32 to vector<128x128xf32>
    %32 = arith.maximumf %30, %31 : vector<128x128xf32>
    %33 = tpu.iota {dimensions = array<i32: 0>} : vector<128x64xi32>
    %34 = tpu.iota {dimensions = array<i32: 1>} : vector<128x64xi32>
    %c2_i32 = arith.constant 2 : i32
    %35 = vector.broadcast %c2_i32 : i32 to vector<128x64xi32>
    %36 = arith.muli %35, %34 : vector<128x64xi32>
    %37 = arith.cmpi eq, %33, %36 : vector<128x64xi32>
    %cst_13 = arith.constant 1.000000e+00 : f32
    %cst_14 = arith.constant 0.000000e+00 : f32
    %38 = vector.broadcast %cst_13 : f32 to vector<128x64xf32>
    %39 = vector.broadcast %cst_14 : f32 to vector<128x64xf32>
    %40 = arith.select %37, %38, %39 : vector<128x64xi1>, vector<128x64xf32>
    %41 = arith.truncf %40 : vector<128x64xf32> to vector<128x64xbf16>
    %c2_i32_15 = arith.constant 2 : i32
    %42 = vector.broadcast %c2_i32_15 : i32 to vector<128x64xi32>
    %43 = arith.muli %42, %34 : vector<128x64xi32>
    %c1_i32_16 = arith.constant 1 : i32
    %44 = vector.broadcast %c1_i32_16 : i32 to vector<128x64xi32>
    %45 = arith.addi %43, %44 : vector<128x64xi32>
    %46 = arith.cmpi eq, %33, %45 : vector<128x64xi32>
    %cst_17 = arith.constant 1.000000e+00 : f32
    %cst_18 = arith.constant 0.000000e+00 : f32
    %47 = vector.broadcast %cst_17 : f32 to vector<128x64xf32>
    %48 = vector.broadcast %cst_18 : f32 to vector<128x64xf32>
    %49 = arith.select %46, %47, %48 : vector<128x64xi1>, vector<128x64xf32>
    %50 = arith.truncf %49 : vector<128x64xf32> to vector<128x64xbf16>
    %51 = arith.truncf %32 : vector<128x128xf32> to vector<128x128xbf16>
    %cst_19 = arith.constant dense<0.000000e+00> : vector<128x64xf32>
    %52 = tpu.matmul %51, %41, %cst_19 {dimension_numbers = #tpu.dot_dimension_numbers<[1], [0], [0], [1], [0, 0, 1, 1], [], []>} : vector<128x128xbf16>, vector<128x64xbf16>, vector<128x64xf32> -> vector<128x64xf32>
    %53 = arith.truncf %32 : vector<128x128xf32> to vector<128x128xbf16>
    %cst_20 = arith.constant dense<0.000000e+00> : vector<128x64xf32>
    %54 = tpu.matmul %53, %50, %cst_20 {dimension_numbers = #tpu.dot_dimension_numbers<[1], [0], [0], [1], [0, 0, 1, 1], [], []>} : vector<128x128xbf16>, vector<128x64xbf16>, vector<128x64xf32> -> vector<128x64xf32>
    %55 = arith.maximumf %52, %54 : vector<128x64xf32>
    %c0_21 = arith.constant 0 : index
    %c0_22 = arith.constant 0 : index
    %56 = vector.load %arg3[%c0_21, %c0_22] : memref<64x384xbf16, #tpu.memory_space<vmem>>, vector<64x384xbf16>
    %c0_23 = arith.constant 0 : index
    %c0_24 = arith.constant 0 : index
    %57 = vector.load %arg15[%c0_23, %c0_24] : memref<64x1xf32, #tpu.memory_space<vmem>>, vector<64x1xf32>
    %58 = arith.truncf %55 : vector<128x64xf32> to vector<128x64xbf16>
    %59 = tpu.iota {dimensions = array<i32: 0>} : vector<64x64xi32>
    %60 = tpu.iota {dimensions = array<i32: 1>} : vector<64x64xi32>
    %c1_i32_25 = arith.constant 1 : i32
    %61 = vector.broadcast %c1_i32_25 : i32 to vector<64x64xi32>
    %62 = arith.addi %59, %61 : vector<64x64xi32>
    %63 = arith.cmpi eq, %60, %62 : vector<64x64xi32>
    %cst_26 = arith.constant 1.000000e+00 : f32
    %cst_27 = arith.constant 0.000000e+00 : f32
    %64 = vector.broadcast %cst_26 : f32 to vector<64x64xf32>
    %65 = vector.broadcast %cst_27 : f32 to vector<64x64xf32>
    %66 = arith.select %63, %64, %65 : vector<64x64xi1>, vector<64x64xf32>
    %67 = arith.truncf %66 : vector<64x64xf32> to vector<64x64xbf16>
    %cst_28 = arith.constant dense<0.000000e+00> : vector<128x64xf32>
    %68 = tpu.matmul %58, %67, %cst_28 {dimension_numbers = #tpu.dot_dimension_numbers<[1], [0], [0], [1], [0, 0, 1, 1], [], []>} : vector<128x64xbf16>, vector<64x64xbf16>, vector<128x64xf32> -> vector<128x64xf32>
    %69 = tpu.iota {dimensions = array<i32: 0>} : vector<64x64xi32>
    %70 = tpu.iota {dimensions = array<i32: 1>} : vector<64x64xi32>
    %c-1_i32_29 = arith.constant -1 : i32
    %71 = vector.broadcast %c-1_i32_29 : i32 to vector<64x64xi32>
    %72 = arith.addi %69, %71 : vector<64x64xi32>
    %73 = arith.cmpi eq, %70, %72 : vector<64x64xi32>
    %cst_30 = arith.constant 1.000000e+00 : f32
    %cst_31 = arith.constant 0.000000e+00 : f32
    %74 = vector.broadcast %cst_30 : f32 to vector<64x64xf32>
    %75 = vector.broadcast %cst_31 : f32 to vector<64x64xf32>
    %76 = arith.select %73, %74, %75 : vector<64x64xi1>, vector<64x64xf32>
    %77 = arith.truncf %76 : vector<64x64xf32> to vector<64x64xbf16>
    %cst_32 = arith.constant dense<0.000000e+00> : vector<128x64xf32>
    %78 = tpu.matmul %58, %77, %cst_32 {dimension_numbers = #tpu.dot_dimension_numbers<[1], [0], [0], [1], [0, 0, 1, 1], [], []>} : vector<128x64xbf16>, vector<64x64xbf16>, vector<128x64xf32> -> vector<128x64xf32>
    %79 = arith.truncf %68 : vector<128x64xf32> to vector<128x64xbf16>
    %80 = arith.truncf %78 : vector<128x64xf32> to vector<128x64xbf16>
    %81 = tpu.concatenate %79, %58, %80 in 0 : vector<128x64xbf16>, vector<128x64xbf16>, vector<128x64xbf16> -> vector<384x64xbf16>
    %cst_33 = arith.constant dense<0.000000e+00> : vector<64x64xf32>
    %82 = tpu.matmul %56, %81, %cst_33 {dimension_numbers = #tpu.dot_dimension_numbers<[1], [0], [0], [1], [0, 0, 1, 1], [], []>} : vector<64x384xbf16>, vector<384x64xbf16>, vector<64x64xf32> -> vector<64x64xf32>
    %83 = vector.broadcast %57 : vector<64x1xf32> to vector<64x64xf32>
    %84 = arith.addf %82, %83 : vector<64x64xf32>
    %cst_34 = arith.constant 0.000000e+00 : f32
    %85 = vector.broadcast %cst_34 : f32 to vector<64x64xf32>
    %86 = arith.maximumf %84, %85 : vector<64x64xf32>
    %87 = tpu.iota {dimensions = array<i32: 0>} : vector<64x32xi32>
    %88 = tpu.iota {dimensions = array<i32: 1>} : vector<64x32xi32>
    %c2_i32_35 = arith.constant 2 : i32
    %89 = vector.broadcast %c2_i32_35 : i32 to vector<64x32xi32>
    %90 = arith.muli %89, %88 : vector<64x32xi32>
    %91 = arith.cmpi eq, %87, %90 : vector<64x32xi32>
    %cst_36 = arith.constant 1.000000e+00 : f32
    %cst_37 = arith.constant 0.000000e+00 : f32
    %92 = vector.broadcast %cst_36 : f32 to vector<64x32xf32>
    %93 = vector.broadcast %cst_37 : f32 to vector<64x32xf32>
    %94 = arith.select %91, %92, %93 : vector<64x32xi1>, vector<64x32xf32>
    %95 = arith.truncf %94 : vector<64x32xf32> to vector<64x32xbf16>
    %c2_i32_38 = arith.constant 2 : i32
    %96 = vector.broadcast %c2_i32_38 : i32 to vector<64x32xi32>
    %97 = arith.muli %96, %88 : vector<64x32xi32>
    %c1_i32_39 = arith.constant 1 : i32
    %98 = vector.broadcast %c1_i32_39 : i32 to vector<64x32xi32>
    %99 = arith.addi %97, %98 : vector<64x32xi32>
    %100 = arith.cmpi eq, %87, %99 : vector<64x32xi32>
    %cst_40 = arith.constant 1.000000e+00 : f32
    %cst_41 = arith.constant 0.000000e+00 : f32
    %101 = vector.broadcast %cst_40 : f32 to vector<64x32xf32>
    %102 = vector.broadcast %cst_41 : f32 to vector<64x32xf32>
    %103 = arith.select %100, %101, %102 : vector<64x32xi1>, vector<64x32xf32>
    %104 = arith.truncf %103 : vector<64x32xf32> to vector<64x32xbf16>
    %105 = arith.truncf %86 : vector<64x64xf32> to vector<64x64xbf16>
    %cst_42 = arith.constant dense<0.000000e+00> : vector<64x32xf32>
    %106 = tpu.matmul %105, %95, %cst_42 {dimension_numbers = #tpu.dot_dimension_numbers<[1], [0], [0], [1], [0, 0, 1, 1], [], []>} : vector<64x64xbf16>, vector<64x32xbf16>, vector<64x32xf32> -> vector<64x32xf32>
    %107 = arith.truncf %86 : vector<64x64xf32> to vector<64x64xbf16>
    %cst_43 = arith.constant dense<0.000000e+00> : vector<64x32xf32>
    %108 = tpu.matmul %107, %104, %cst_43 {dimension_numbers = #tpu.dot_dimension_numbers<[1], [0], [0], [1], [0, 0, 1, 1], [], []>} : vector<64x64xbf16>, vector<64x32xbf16>, vector<64x32xf32> -> vector<64x32xf32>
    %109 = arith.maximumf %106, %108 : vector<64x32xf32>
    %c0_44 = arith.constant 0 : index
    %c0_45 = arith.constant 0 : index
    %110 = vector.load %arg4[%c0_44, %c0_45] : memref<32x192xbf16, #tpu.memory_space<vmem>>, vector<32x192xbf16>
    %c0_46 = arith.constant 0 : index
    %c0_47 = arith.constant 0 : index
    %111 = vector.load %arg16[%c0_46, %c0_47] : memref<32x1xf32, #tpu.memory_space<vmem>>, vector<32x1xf32>
    %112 = arith.truncf %109 : vector<64x32xf32> to vector<64x32xbf16>
    %113 = tpu.iota {dimensions = array<i32: 0>} : vector<32x32xi32>
    %114 = tpu.iota {dimensions = array<i32: 1>} : vector<32x32xi32>
    %c1_i32_48 = arith.constant 1 : i32
    %115 = vector.broadcast %c1_i32_48 : i32 to vector<32x32xi32>
    %116 = arith.addi %113, %115 : vector<32x32xi32>
    %117 = arith.cmpi eq, %114, %116 : vector<32x32xi32>
    %cst_49 = arith.constant 1.000000e+00 : f32
    %cst_50 = arith.constant 0.000000e+00 : f32
    %118 = vector.broadcast %cst_49 : f32 to vector<32x32xf32>
    %119 = vector.broadcast %cst_50 : f32 to vector<32x32xf32>
    %120 = arith.select %117, %118, %119 : vector<32x32xi1>, vector<32x32xf32>
    %121 = arith.truncf %120 : vector<32x32xf32> to vector<32x32xbf16>
    %cst_51 = arith.constant dense<0.000000e+00> : vector<64x32xf32>
    %122 = tpu.matmul %112, %121, %cst_51 {dimension_numbers = #tpu.dot_dimension_numbers<[1], [0], [0], [1], [0, 0, 1, 1], [], []>} : vector<64x32xbf16>, vector<32x32xbf16>, vector<64x32xf32> -> vector<64x32xf32>
    %123 = tpu.iota {dimensions = array<i32: 0>} : vector<32x32xi32>
    %124 = tpu.iota {dimensions = array<i32: 1>} : vector<32x32xi32>
    %c-1_i32_52 = arith.constant -1 : i32
    %125 = vector.broadcast %c-1_i32_52 : i32 to vector<32x32xi32>
    %126 = arith.addi %123, %125 : vector<32x32xi32>
    %127 = arith.cmpi eq, %124, %126 : vector<32x32xi32>
    %cst_53 = arith.constant 1.000000e+00 : f32
    %cst_54 = arith.constant 0.000000e+00 : f32
    %128 = vector.broadcast %cst_53 : f32 to vector<32x32xf32>
    %129 = vector.broadcast %cst_54 : f32 to vector<32x32xf32>
    %130 = arith.select %127, %128, %129 : vector<32x32xi1>, vector<32x32xf32>
    %131 = arith.truncf %130 : vector<32x32xf32> to vector<32x32xbf16>
    %cst_55 = arith.constant dense<0.000000e+00> : vector<64x32xf32>
    %132 = tpu.matmul %112, %131, %cst_55 {dimension_numbers = #tpu.dot_dimension_numbers<[1], [0], [0], [1], [0, 0, 1, 1], [], []>} : vector<64x32xbf16>, vector<32x32xbf16>, vector<64x32xf32> -> vector<64x32xf32>
    %133 = arith.truncf %122 : vector<64x32xf32> to vector<64x32xbf16>
    %134 = arith.truncf %132 : vector<64x32xf32> to vector<64x32xbf16>
    %135 = tpu.concatenate %133, %112, %134 in 0 : vector<64x32xbf16>, vector<64x32xbf16>, vector<64x32xbf16> -> vector<192x32xbf16>
    %cst_56 = arith.constant dense<0.000000e+00> : vector<32x32xf32>
    %136 = tpu.matmul %110, %135, %cst_56 {dimension_numbers = #tpu.dot_dimension_numbers<[1], [0], [0], [1], [0, 0, 1, 1], [], []>} : vector<32x192xbf16>, vector<192x32xbf16>, vector<32x32xf32> -> vector<32x32xf32>
    %137 = vector.broadcast %111 : vector<32x1xf32> to vector<32x32xf32>
    %138 = arith.addf %136, %137 : vector<32x32xf32>
    %cst_57 = arith.constant 0.000000e+00 : f32
    %139 = vector.broadcast %cst_57 : f32 to vector<32x32xf32>
    %140 = arith.maximumf %138, %139 : vector<32x32xf32>
    %141 = tpu.iota {dimensions = array<i32: 0>} : vector<32x16xi32>
    %142 = tpu.iota {dimensions = array<i32: 1>} : vector<32x16xi32>
    %c2_i32_58 = arith.constant 2 : i32
    %143 = vector.broadcast %c2_i32_58 : i32 to vector<32x16xi32>
    %144 = arith.muli %143, %142 : vector<32x16xi32>
    %145 = arith.cmpi eq, %141, %144 : vector<32x16xi32>
    %cst_59 = arith.constant 1.000000e+00 : f32
    %cst_60 = arith.constant 0.000000e+00 : f32
    %146 = vector.broadcast %cst_59 : f32 to vector<32x16xf32>
    %147 = vector.broadcast %cst_60 : f32 to vector<32x16xf32>
    %148 = arith.select %145, %146, %147 : vector<32x16xi1>, vector<32x16xf32>
    %149 = arith.truncf %148 : vector<32x16xf32> to vector<32x16xbf16>
    %c2_i32_61 = arith.constant 2 : i32
    %150 = vector.broadcast %c2_i32_61 : i32 to vector<32x16xi32>
    %151 = arith.muli %150, %142 : vector<32x16xi32>
    %c1_i32_62 = arith.constant 1 : i32
    %152 = vector.broadcast %c1_i32_62 : i32 to vector<32x16xi32>
    %153 = arith.addi %151, %152 : vector<32x16xi32>
    %154 = arith.cmpi eq, %141, %153 : vector<32x16xi32>
    %cst_63 = arith.constant 1.000000e+00 : f32
    %cst_64 = arith.constant 0.000000e+00 : f32
    %155 = vector.broadcast %cst_63 : f32 to vector<32x16xf32>
    %156 = vector.broadcast %cst_64 : f32 to vector<32x16xf32>
    %157 = arith.select %154, %155, %156 : vector<32x16xi1>, vector<32x16xf32>
    %158 = arith.truncf %157 : vector<32x16xf32> to vector<32x16xbf16>
    %159 = arith.truncf %140 : vector<32x32xf32> to vector<32x32xbf16>
    %cst_65 = arith.constant dense<0.000000e+00> : vector<32x16xf32>
    %160 = tpu.matmul %159, %149, %cst_65 {dimension_numbers = #tpu.dot_dimension_numbers<[1], [0], [0], [1], [0, 0, 1, 1], [], []>} : vector<32x32xbf16>, vector<32x16xbf16>, vector<32x16xf32> -> vector<32x16xf32>
    %161 = arith.truncf %140 : vector<32x32xf32> to vector<32x32xbf16>
    %cst_66 = arith.constant dense<0.000000e+00> : vector<32x16xf32>
    %162 = tpu.matmul %161, %158, %cst_66 {dimension_numbers = #tpu.dot_dimension_numbers<[1], [0], [0], [1], [0, 0, 1, 1], [], []>} : vector<32x32xbf16>, vector<32x16xbf16>, vector<32x16xf32> -> vector<32x16xf32>
    %163 = arith.maximumf %160, %162 : vector<32x16xf32>
    %c0_67 = arith.constant 0 : index
    %c0_68 = arith.constant 0 : index
    %164 = vector.load %arg5[%c0_67, %c0_68] : memref<32x96xbf16, #tpu.memory_space<vmem>>, vector<32x96xbf16>
    %c0_69 = arith.constant 0 : index
    %c0_70 = arith.constant 0 : index
    %165 = vector.load %arg17[%c0_69, %c0_70] : memref<32x1xf32, #tpu.memory_space<vmem>>, vector<32x1xf32>
    %166 = arith.truncf %163 : vector<32x16xf32> to vector<32x16xbf16>
    %167 = tpu.iota {dimensions = array<i32: 0>} : vector<16x16xi32>
    %168 = tpu.iota {dimensions = array<i32: 1>} : vector<16x16xi32>
    %c1_i32_71 = arith.constant 1 : i32
    %169 = vector.broadcast %c1_i32_71 : i32 to vector<16x16xi32>
    %170 = arith.addi %167, %169 : vector<16x16xi32>
    %171 = arith.cmpi eq, %168, %170 : vector<16x16xi32>
    %cst_72 = arith.constant 1.000000e+00 : f32
    %cst_73 = arith.constant 0.000000e+00 : f32
    %172 = vector.broadcast %cst_72 : f32 to vector<16x16xf32>
    %173 = vector.broadcast %cst_73 : f32 to vector<16x16xf32>
    %174 = arith.select %171, %172, %173 : vector<16x16xi1>, vector<16x16xf32>
    %175 = arith.truncf %174 : vector<16x16xf32> to vector<16x16xbf16>
    %cst_74 = arith.constant dense<0.000000e+00> : vector<32x16xf32>
    %176 = tpu.matmul %166, %175, %cst_74 {dimension_numbers = #tpu.dot_dimension_numbers<[1], [0], [0], [1], [0, 0, 1, 1], [], []>} : vector<32x16xbf16>, vector<16x16xbf16>, vector<32x16xf32> -> vector<32x16xf32>
    %177 = tpu.iota {dimensions = array<i32: 0>} : vector<16x16xi32>
    %178 = tpu.iota {dimensions = array<i32: 1>} : vector<16x16xi32>
    %c-1_i32_75 = arith.constant -1 : i32
    %179 = vector.broadcast %c-1_i32_75 : i32 to vector<16x16xi32>
    %180 = arith.addi %177, %179 : vector<16x16xi32>
    %181 = arith.cmpi eq, %178, %180 : vector<16x16xi32>
    %cst_76 = arith.constant 1.000000e+00 : f32
    %cst_77 = arith.constant 0.000000e+00 : f32
    %182 = vector.broadcast %cst_76 : f32 to vector<16x16xf32>
    %183 = vector.broadcast %cst_77 : f32 to vector<16x16xf32>
    %184 = arith.select %181, %182, %183 : vector<16x16xi1>, vector<16x16xf32>
    %185 = arith.truncf %184 : vector<16x16xf32> to vector<16x16xbf16>
    %cst_78 = arith.constant dense<0.000000e+00> : vector<32x16xf32>
    %186 = tpu.matmul %166, %185, %cst_78 {dimension_numbers = #tpu.dot_dimension_numbers<[1], [0], [0], [1], [0, 0, 1, 1], [], []>} : vector<32x16xbf16>, vector<16x16xbf16>, vector<32x16xf32> -> vector<32x16xf32>
    %187 = arith.truncf %176 : vector<32x16xf32> to vector<32x16xbf16>
    %188 = arith.truncf %186 : vector<32x16xf32> to vector<32x16xbf16>
    %189 = tpu.concatenate %187, %166, %188 in 0 : vector<32x16xbf16>, vector<32x16xbf16>, vector<32x16xbf16> -> vector<96x16xbf16>
    %cst_79 = arith.constant dense<0.000000e+00> : vector<32x16xf32>
    %190 = tpu.matmul %164, %189, %cst_79 {dimension_numbers = #tpu.dot_dimension_numbers<[1], [0], [0], [1], [0, 0, 1, 1], [], []>} : vector<32x96xbf16>, vector<96x16xbf16>, vector<32x16xf32> -> vector<32x16xf32>
    %191 = vector.broadcast %165 : vector<32x1xf32> to vector<32x16xf32>
    %192 = arith.addf %190, %191 : vector<32x16xf32>
    %cst_80 = arith.constant 0.000000e+00 : f32
    %193 = vector.broadcast %cst_80 : f32 to vector<32x16xf32>
    %194 = arith.maximumf %192, %193 : vector<32x16xf32>
    %195 = tpu.iota {dimensions = array<i32: 0>} : vector<16x8xi32>
    %196 = tpu.iota {dimensions = array<i32: 1>} : vector<16x8xi32>
    %c2_i32_81 = arith.constant 2 : i32
    %197 = vector.broadcast %c2_i32_81 : i32 to vector<16x8xi32>
    %198 = arith.muli %197, %196 : vector<16x8xi32>
    %199 = arith.cmpi eq, %195, %198 : vector<16x8xi32>
    %cst_82 = arith.constant 1.000000e+00 : f32
    %cst_83 = arith.constant 0.000000e+00 : f32
    %200 = vector.broadcast %cst_82 : f32 to vector<16x8xf32>
    %201 = vector.broadcast %cst_83 : f32 to vector<16x8xf32>
    %202 = arith.select %199, %200, %201 : vector<16x8xi1>, vector<16x8xf32>
    %203 = arith.truncf %202 : vector<16x8xf32> to vector<16x8xbf16>
    %c2_i32_84 = arith.constant 2 : i32
    %204 = vector.broadcast %c2_i32_84 : i32 to vector<16x8xi32>
    %205 = arith.muli %204, %196 : vector<16x8xi32>
    %c1_i32_85 = arith.constant 1 : i32
    %206 = vector.broadcast %c1_i32_85 : i32 to vector<16x8xi32>
    %207 = arith.addi %205, %206 : vector<16x8xi32>
    %208 = arith.cmpi eq, %195, %207 : vector<16x8xi32>
    %cst_86 = arith.constant 1.000000e+00 : f32
    %cst_87 = arith.constant 0.000000e+00 : f32
    %209 = vector.broadcast %cst_86 : f32 to vector<16x8xf32>
    %210 = vector.broadcast %cst_87 : f32 to vector<16x8xf32>
    %211 = arith.select %208, %209, %210 : vector<16x8xi1>, vector<16x8xf32>
    %212 = arith.truncf %211 : vector<16x8xf32> to vector<16x8xbf16>
    %213 = arith.truncf %194 : vector<32x16xf32> to vector<32x16xbf16>
    %cst_88 = arith.constant dense<0.000000e+00> : vector<32x8xf32>
    %214 = tpu.matmul %213, %203, %cst_88 {dimension_numbers = #tpu.dot_dimension_numbers<[1], [0], [0], [1], [0, 0, 1, 1], [], []>} : vector<32x16xbf16>, vector<16x8xbf16>, vector<32x8xf32> -> vector<32x8xf32>
    %215 = arith.truncf %194 : vector<32x16xf32> to vector<32x16xbf16>
    %cst_89 = arith.constant dense<0.000000e+00> : vector<32x8xf32>
    %216 = tpu.matmul %215, %212, %cst_89 {dimension_numbers = #tpu.dot_dimension_numbers<[1], [0], [0], [1], [0, 0, 1, 1], [], []>} : vector<32x16xbf16>, vector<16x8xbf16>, vector<32x8xf32> -> vector<32x8xf32>
    %217 = arith.maximumf %214, %216 : vector<32x8xf32>
    %c0_90 = arith.constant 0 : index
    %c0_91 = arith.constant 0 : index
    %218 = vector.load %arg6[%c0_90, %c0_91] : memref<32x96xbf16, #tpu.memory_space<vmem>>, vector<32x96xbf16>
    %c0_92 = arith.constant 0 : index
    %c0_93 = arith.constant 0 : index
    %219 = vector.load %arg18[%c0_92, %c0_93] : memref<32x1xf32, #tpu.memory_space<vmem>>, vector<32x1xf32>
    %220 = arith.truncf %217 : vector<32x8xf32> to vector<32x8xbf16>
    %221 = tpu.iota {dimensions = array<i32: 0>} : vector<8x8xi32>
    %222 = tpu.iota {dimensions = array<i32: 1>} : vector<8x8xi32>
    %c1_i32_94 = arith.constant 1 : i32
    %223 = vector.broadcast %c1_i32_94 : i32 to vector<8x8xi32>
    %224 = arith.addi %221, %223 : vector<8x8xi32>
    %225 = arith.cmpi eq, %222, %224 : vector<8x8xi32>
    %cst_95 = arith.constant 1.000000e+00 : f32
    %cst_96 = arith.constant 0.000000e+00 : f32
    %226 = vector.broadcast %cst_95 : f32 to vector<8x8xf32>
    %227 = vector.broadcast %cst_96 : f32 to vector<8x8xf32>
    %228 = arith.select %225, %226, %227 : vector<8x8xi1>, vector<8x8xf32>
    %229 = arith.truncf %228 : vector<8x8xf32> to vector<8x8xbf16>
    %cst_97 = arith.constant dense<0.000000e+00> : vector<32x8xf32>
    %230 = tpu.matmul %220, %229, %cst_97 {dimension_numbers = #tpu.dot_dimension_numbers<[1], [0], [0], [1], [0, 0, 1, 1], [], []>} : vector<32x8xbf16>, vector<8x8xbf16>, vector<32x8xf32> -> vector<32x8xf32>
    %231 = tpu.iota {dimensions = array<i32: 0>} : vector<8x8xi32>
    %232 = tpu.iota {dimensions = array<i32: 1>} : vector<8x8xi32>
    %c-1_i32_98 = arith.constant -1 : i32
    %233 = vector.broadcast %c-1_i32_98 : i32 to vector<8x8xi32>
    %234 = arith.addi %231, %233 : vector<8x8xi32>
    %235 = arith.cmpi eq, %232, %234 : vector<8x8xi32>
    %cst_99 = arith.constant 1.000000e+00 : f32
    %cst_100 = arith.constant 0.000000e+00 : f32
    %236 = vector.broadcast %cst_99 : f32 to vector<8x8xf32>
    %237 = vector.broadcast %cst_100 : f32 to vector<8x8xf32>
    %238 = arith.select %235, %236, %237 : vector<8x8xi1>, vector<8x8xf32>
    %239 = arith.truncf %238 : vector<8x8xf32> to vector<8x8xbf16>
    %cst_101 = arith.constant dense<0.000000e+00> : vector<32x8xf32>
    %240 = tpu.matmul %220, %239, %cst_101 {dimension_numbers = #tpu.dot_dimension_numbers<[1], [0], [0], [1], [0, 0, 1, 1], [], []>} : vector<32x8xbf16>, vector<8x8xbf16>, vector<32x8xf32> -> vector<32x8xf32>
    %241 = arith.truncf %230 : vector<32x8xf32> to vector<32x8xbf16>
    %242 = arith.truncf %240 : vector<32x8xf32> to vector<32x8xbf16>
    %243 = tpu.concatenate %241, %220, %242 in 0 : vector<32x8xbf16>, vector<32x8xbf16>, vector<32x8xbf16> -> vector<96x8xbf16>
    %cst_102 = arith.constant dense<0.000000e+00> : vector<32x8xf32>
    %244 = tpu.matmul %218, %243, %cst_102 {dimension_numbers = #tpu.dot_dimension_numbers<[1], [0], [0], [1], [0, 0, 1, 1], [], []>} : vector<32x96xbf16>, vector<96x8xbf16>, vector<32x8xf32> -> vector<32x8xf32>
    %245 = vector.broadcast %219 : vector<32x1xf32> to vector<32x8xf32>
    %246 = arith.addf %244, %245 : vector<32x8xf32>
    %cst_103 = arith.constant 0.000000e+00 : f32
    %247 = vector.broadcast %cst_103 : f32 to vector<32x8xf32>
    %248 = arith.maximumf %246, %247 : vector<32x8xf32>
    %249 = tpu.iota {dimensions = array<i32: 0>} : vector<8x4xi32>
    %250 = tpu.iota {dimensions = array<i32: 1>} : vector<8x4xi32>
    %c2_i32_104 = arith.constant 2 : i32
    %251 = vector.broadcast %c2_i32_104 : i32 to vector<8x4xi32>
    %252 = arith.muli %251, %250 : vector<8x4xi32>
    %253 = arith.cmpi eq, %249, %252 : vector<8x4xi32>
    %cst_105 = arith.constant 1.000000e+00 : f32
    %cst_106 = arith.constant 0.000000e+00 : f32
    %254 = vector.broadcast %cst_105 : f32 to vector<8x4xf32>
    %255 = vector.broadcast %cst_106 : f32 to vector<8x4xf32>
    %256 = arith.select %253, %254, %255 : vector<8x4xi1>, vector<8x4xf32>
    %257 = arith.truncf %256 : vector<8x4xf32> to vector<8x4xbf16>
    %c2_i32_107 = arith.constant 2 : i32
    %258 = vector.broadcast %c2_i32_107 : i32 to vector<8x4xi32>
    %259 = arith.muli %258, %250 : vector<8x4xi32>
    %c1_i32_108 = arith.constant 1 : i32
    %260 = vector.broadcast %c1_i32_108 : i32 to vector<8x4xi32>
    %261 = arith.addi %259, %260 : vector<8x4xi32>
    %262 = arith.cmpi eq, %249, %261 : vector<8x4xi32>
    %cst_109 = arith.constant 1.000000e+00 : f32
    %cst_110 = arith.constant 0.000000e+00 : f32
    %263 = vector.broadcast %cst_109 : f32 to vector<8x4xf32>
    %264 = vector.broadcast %cst_110 : f32 to vector<8x4xf32>
    %265 = arith.select %262, %263, %264 : vector<8x4xi1>, vector<8x4xf32>
    %266 = arith.truncf %265 : vector<8x4xf32> to vector<8x4xbf16>
    %267 = arith.truncf %248 : vector<32x8xf32> to vector<32x8xbf16>
    %cst_111 = arith.constant dense<0.000000e+00> : vector<32x4xf32>
    %268 = tpu.matmul %267, %257, %cst_111 {dimension_numbers = #tpu.dot_dimension_numbers<[1], [0], [0], [1], [0, 0, 1, 1], [], []>} : vector<32x8xbf16>, vector<8x4xbf16>, vector<32x4xf32> -> vector<32x4xf32>
    %269 = arith.truncf %248 : vector<32x8xf32> to vector<32x8xbf16>
    %cst_112 = arith.constant dense<0.000000e+00> : vector<32x4xf32>
    %270 = tpu.matmul %269, %266, %cst_112 {dimension_numbers = #tpu.dot_dimension_numbers<[1], [0], [0], [1], [0, 0, 1, 1], [], []>} : vector<32x8xbf16>, vector<8x4xbf16>, vector<32x4xf32> -> vector<32x4xf32>
    %271 = arith.maximumf %268, %270 : vector<32x4xf32>
    %c0_113 = arith.constant 0 : index
    %c0_114 = arith.constant 0 : index
    %272 = vector.load %arg7[%c0_113, %c0_114] : memref<16x96xbf16, #tpu.memory_space<vmem>>, vector<16x96xbf16>
    %c0_115 = arith.constant 0 : index
    %c0_116 = arith.constant 0 : index
    %273 = vector.load %arg19[%c0_115, %c0_116] : memref<16x1xf32, #tpu.memory_space<vmem>>, vector<16x1xf32>
    %274 = arith.truncf %271 : vector<32x4xf32> to vector<32x4xbf16>
    %275 = tpu.iota {dimensions = array<i32: 0>} : vector<4x4xi32>
    %276 = tpu.iota {dimensions = array<i32: 1>} : vector<4x4xi32>
    %c1_i32_117 = arith.constant 1 : i32
    %277 = vector.broadcast %c1_i32_117 : i32 to vector<4x4xi32>
    %278 = arith.addi %275, %277 : vector<4x4xi32>
    %279 = arith.cmpi eq, %276, %278 : vector<4x4xi32>
    %cst_118 = arith.constant 1.000000e+00 : f32
    %cst_119 = arith.constant 0.000000e+00 : f32
    %280 = vector.broadcast %cst_118 : f32 to vector<4x4xf32>
    %281 = vector.broadcast %cst_119 : f32 to vector<4x4xf32>
    %282 = arith.select %279, %280, %281 : vector<4x4xi1>, vector<4x4xf32>
    %283 = arith.truncf %282 : vector<4x4xf32> to vector<4x4xbf16>
    %cst_120 = arith.constant dense<0.000000e+00> : vector<32x4xf32>
    %284 = tpu.matmul %274, %283, %cst_120 {dimension_numbers = #tpu.dot_dimension_numbers<[1], [0], [0], [1], [0, 0, 1, 1], [], []>} : vector<32x4xbf16>, vector<4x4xbf16>, vector<32x4xf32> -> vector<32x4xf32>
    %285 = tpu.iota {dimensions = array<i32: 0>} : vector<4x4xi32>
    %286 = tpu.iota {dimensions = array<i32: 1>} : vector<4x4xi32>
    %c-1_i32_121 = arith.constant -1 : i32
    %287 = vector.broadcast %c-1_i32_121 : i32 to vector<4x4xi32>
    %288 = arith.addi %285, %287 : vector<4x4xi32>
    %289 = arith.cmpi eq, %286, %288 : vector<4x4xi32>
    %cst_122 = arith.constant 1.000000e+00 : f32
    %cst_123 = arith.constant 0.000000e+00 : f32
    %290 = vector.broadcast %cst_122 : f32 to vector<4x4xf32>
    %291 = vector.broadcast %cst_123 : f32 to vector<4x4xf32>
    %292 = arith.select %289, %290, %291 : vector<4x4xi1>, vector<4x4xf32>
    %293 = arith.truncf %292 : vector<4x4xf32> to vector<4x4xbf16>
    %cst_124 = arith.constant dense<0.000000e+00> : vector<32x4xf32>
    %294 = tpu.matmul %274, %293, %cst_124 {dimension_numbers = #tpu.dot_dimension_numbers<[1], [0], [0], [1], [0, 0, 1, 1], [], []>} : vector<32x4xbf16>, vector<4x4xbf16>, vector<32x4xf32> -> vector<32x4xf32>
    %295 = arith.truncf %284 : vector<32x4xf32> to vector<32x4xbf16>
    %296 = arith.truncf %294 : vector<32x4xf32> to vector<32x4xbf16>
    %297 = tpu.concatenate %295, %274, %296 in 0 : vector<32x4xbf16>, vector<32x4xbf16>, vector<32x4xbf16> -> vector<96x4xbf16>
    %cst_125 = arith.constant dense<0.000000e+00> : vector<16x4xf32>
    %298 = tpu.matmul %272, %297, %cst_125 {dimension_numbers = #tpu.dot_dimension_numbers<[1], [0], [0], [1], [0, 0, 1, 1], [], []>} : vector<16x96xbf16>, vector<96x4xbf16>, vector<16x4xf32> -> vector<16x4xf32>
    %299 = vector.broadcast %273 : vector<16x1xf32> to vector<16x4xf32>
    %300 = arith.addf %298, %299 : vector<16x4xf32>
    %cst_126 = arith.constant 0.000000e+00 : f32
    %301 = vector.broadcast %cst_126 : f32 to vector<16x4xf32>
    %302 = arith.maximumf %300, %301 : vector<16x4xf32>
    %303 = tpu.iota {dimensions = array<i32: 0>} : vector<4x2xi32>
    %304 = tpu.iota {dimensions = array<i32: 1>} : vector<4x2xi32>
    %c2_i32_127 = arith.constant 2 : i32
    %305 = vector.broadcast %c2_i32_127 : i32 to vector<4x2xi32>
    %306 = arith.muli %305, %304 : vector<4x2xi32>
    %307 = arith.cmpi eq, %303, %306 : vector<4x2xi32>
    %cst_128 = arith.constant 1.000000e+00 : f32
    %cst_129 = arith.constant 0.000000e+00 : f32
    %308 = vector.broadcast %cst_128 : f32 to vector<4x2xf32>
    %309 = vector.broadcast %cst_129 : f32 to vector<4x2xf32>
    %310 = arith.select %307, %308, %309 : vector<4x2xi1>, vector<4x2xf32>
    %311 = arith.truncf %310 : vector<4x2xf32> to vector<4x2xbf16>
    %c2_i32_130 = arith.constant 2 : i32
    %312 = vector.broadcast %c2_i32_130 : i32 to vector<4x2xi32>
    %313 = arith.muli %312, %304 : vector<4x2xi32>
    %c1_i32_131 = arith.constant 1 : i32
    %314 = vector.broadcast %c1_i32_131 : i32 to vector<4x2xi32>
    %315 = arith.addi %313, %314 : vector<4x2xi32>
    %316 = arith.cmpi eq, %303, %315 : vector<4x2xi32>
    %cst_132 = arith.constant 1.000000e+00 : f32
    %cst_133 = arith.constant 0.000000e+00 : f32
    %317 = vector.broadcast %cst_132 : f32 to vector<4x2xf32>
    %318 = vector.broadcast %cst_133 : f32 to vector<4x2xf32>
    %319 = arith.select %316, %317, %318 : vector<4x2xi1>, vector<4x2xf32>
    %320 = arith.truncf %319 : vector<4x2xf32> to vector<4x2xbf16>
    %321 = arith.truncf %302 : vector<16x4xf32> to vector<16x4xbf16>
    %cst_134 = arith.constant dense<0.000000e+00> : vector<16x2xf32>
    %322 = tpu.matmul %321, %311, %cst_134 {dimension_numbers = #tpu.dot_dimension_numbers<[1], [0], [0], [1], [0, 0, 1, 1], [], []>} : vector<16x4xbf16>, vector<4x2xbf16>, vector<16x2xf32> -> vector<16x2xf32>
    %323 = arith.truncf %302 : vector<16x4xf32> to vector<16x4xbf16>
    %cst_135 = arith.constant dense<0.000000e+00> : vector<16x2xf32>
    %324 = tpu.matmul %323, %320, %cst_135 {dimension_numbers = #tpu.dot_dimension_numbers<[1], [0], [0], [1], [0, 0, 1, 1], [], []>} : vector<16x4xbf16>, vector<4x2xbf16>, vector<16x2xf32> -> vector<16x2xf32>
    %325 = arith.maximumf %322, %324 : vector<16x2xf32>
    %c0_136 = arith.constant 0 : index
    %c0_137 = arith.constant 0 : index
    %c0_138 = arith.constant 0 : index
    %326 = vector.load %arg26[%c0_136, %c0_137, %c0_138] : memref<1x16x2xf32, #tpu.memory_space<vmem>>, vector<1x16x2xf32>
    %327 = vector.shape_cast %326 : vector<1x16x2xf32> to vector<16x2xf32>
    %328 = vector.shape_cast %325 : vector<16x2xf32> to vector<1x16x2xf32>
    tpu.vector_store %arg26[%c0_136, %c0_137, %c0_138], %328 {strides = array<i32>} : memref<1x16x2xf32, #tpu.memory_space<vmem>>, vector<1x16x2xf32>,
    %c0_139 = arith.constant 0 : index
    %c0_140 = arith.constant 0 : index
    %329 = vector.load %arg8[%c0_139, %c0_140] : memref<32x48xbf16, #tpu.memory_space<vmem>>, vector<32x48xbf16>
    %c0_141 = arith.constant 0 : index
    %c0_142 = arith.constant 0 : index
    %330 = vector.load %arg20[%c0_141, %c0_142] : memref<32x1xf32, #tpu.memory_space<vmem>>, vector<32x1xf32>
    %331 = arith.truncf %325 : vector<16x2xf32> to vector<16x2xbf16>
    %332 = tpu.iota {dimensions = array<i32: 0>} : vector<2x2xi32>
    %333 = tpu.iota {dimensions = array<i32: 1>} : vector<2x2xi32>
    %c1_i32_143 = arith.constant 1 : i32
    %334 = vector.broadcast %c1_i32_143 : i32 to vector<2x2xi32>
    %335 = arith.addi %332, %334 : vector<2x2xi32>
    %336 = arith.cmpi eq, %333, %335 : vector<2x2xi32>
    %cst_144 = arith.constant 1.000000e+00 : f32
    %cst_145 = arith.constant 0.000000e+00 : f32
    %337 = vector.broadcast %cst_144 : f32 to vector<2x2xf32>
    %338 = vector.broadcast %cst_145 : f32 to vector<2x2xf32>
    %339 = arith.select %336, %337, %338 : vector<2x2xi1>, vector<2x2xf32>
    %340 = arith.truncf %339 : vector<2x2xf32> to vector<2x2xbf16>
    %cst_146 = arith.constant dense<0.000000e+00> : vector<16x2xf32>
    %341 = tpu.matmul %331, %340, %cst_146 {dimension_numbers = #tpu.dot_dimension_numbers<[1], [0], [0], [1], [0, 0, 1, 1], [], []>} : vector<16x2xbf16>, vector<2x2xbf16>, vector<16x2xf32> -> vector<16x2xf32>
    %342 = tpu.iota {dimensions = array<i32: 0>} : vector<2x2xi32>
    %343 = tpu.iota {dimensions = array<i32: 1>} : vector<2x2xi32>
    %c-1_i32_147 = arith.constant -1 : i32
    %344 = vector.broadcast %c-1_i32_147 : i32 to vector<2x2xi32>
    %345 = arith.addi %342, %344 : vector<2x2xi32>
    %346 = arith.cmpi eq, %343, %345 : vector<2x2xi32>
    %cst_148 = arith.constant 1.000000e+00 : f32
    %cst_149 = arith.constant 0.000000e+00 : f32
    %347 = vector.broadcast %cst_148 : f32 to vector<2x2xf32>
    %348 = vector.broadcast %cst_149 : f32 to vector<2x2xf32>
    %349 = arith.select %346, %347, %348 : vector<2x2xi1>, vector<2x2xf32>
    %350 = arith.truncf %349 : vector<2x2xf32> to vector<2x2xbf16>
    %cst_150 = arith.constant dense<0.000000e+00> : vector<16x2xf32>
    %351 = tpu.matmul %331, %350, %cst_150 {dimension_numbers = #tpu.dot_dimension_numbers<[1], [0], [0], [1], [0, 0, 1, 1], [], []>} : vector<16x2xbf16>, vector<2x2xbf16>, vector<16x2xf32> -> vector<16x2xf32>
    %352 = arith.truncf %341 : vector<16x2xf32> to vector<16x2xbf16>
    %353 = arith.truncf %351 : vector<16x2xf32> to vector<16x2xbf16>
    %354 = tpu.concatenate %352, %331, %353 in 0 : vector<16x2xbf16>, vector<16x2xbf16>, vector<16x2xbf16> -> vector<48x2xbf16>
    %cst_151 = arith.constant dense<0.000000e+00> : vector<32x2xf32>
    %355 = tpu.matmul %329, %354, %cst_151 {dimension_numbers = #tpu.dot_dimension_numbers<[1], [0], [0], [1], [0, 0, 1, 1], [], []>} : vector<32x48xbf16>, vector<48x2xbf16>, vector<32x2xf32> -> vector<32x2xf32>
    %356 = vector.broadcast %330 : vector<32x1xf32> to vector<32x2xf32>
    %357 = arith.addf %355, %356 : vector<32x2xf32>
    %cst_152 = arith.constant 0.000000e+00 : f32
    %358 = vector.broadcast %cst_152 : f32 to vector<32x2xf32>
    %359 = arith.maximumf %357, %358 : vector<32x2xf32>
    %360 = tpu.iota {dimensions = array<i32: 0>} : vector<2x4xi32>
    %361 = tpu.iota {dimensions = array<i32: 1>} : vector<2x4xi32>
    %c2_i32_153 = arith.constant 2 : i32
    %362 = vector.broadcast %c2_i32_153 : i32 to vector<2x4xi32>
    %363 = arith.muli %362, %360 : vector<2x4xi32>
    %364 = arith.cmpi eq, %361, %363 : vector<2x4xi32>
    %c2_i32_154 = arith.constant 2 : i32
    %365 = vector.broadcast %c2_i32_154 : i32 to vector<2x4xi32>
    %366 = arith.muli %365, %360 : vector<2x4xi32>
    %c1_i32_155 = arith.constant 1 : i32
    %367 = vector.broadcast %c1_i32_155 : i32 to vector<2x4xi32>
    %368 = arith.addi %366, %367 : vector<2x4xi32>
    %369 = arith.cmpi eq, %361, %368 : vector<2x4xi32>
    %370 = arith.ori %364, %369 : vector<2x4xi1>
    %cst_156 = arith.constant 1.000000e+00 : f32
    %cst_157 = arith.constant 0.000000e+00 : f32
    %371 = vector.broadcast %cst_156 : f32 to vector<2x4xf32>
    %372 = vector.broadcast %cst_157 : f32 to vector<2x4xf32>
    %373 = arith.select %370, %371, %372 : vector<2x4xi1>, vector<2x4xf32>
    %374 = arith.truncf %373 : vector<2x4xf32> to vector<2x4xbf16>
    %375 = arith.truncf %359 : vector<32x2xf32> to vector<32x2xbf16>
    %cst_158 = arith.constant dense<0.000000e+00> : vector<32x4xf32>
    %376 = tpu.matmul %375, %374, %cst_158 {dimension_numbers = #tpu.dot_dimension_numbers<[1], [0], [0], [1], [0, 0, 1, 1], [], []>} : vector<32x2xbf16>, vector<2x4xbf16>, vector<32x4xf32> -> vector<32x4xf32>
    %377 = tpu.iota {dimensions = array<i32: 0>} : vector<4x5xi32>
    %378 = tpu.iota {dimensions = array<i32: 1>} : vector<4x5xi32>
    %379 = arith.cmpi eq, %378, %377 : vector<4x5xi32>
    %c4_i32 = arith.constant 4 : i32
    %380 = vector.broadcast %c4_i32 : i32 to vector<4x5xi32>
    %381 = arith.cmpi eq, %378, %380 : vector<4x5xi32>
    %c3_i32 = arith.constant 3 : i32
    %382 = vector.broadcast %c3_i32 : i32 to vector<4x5xi32>
    %383 = arith.cmpi eq, %377, %382 : vector<4x5xi32>
    %384 = arith.andi %381, %383 : vector<4x5xi1>
    %385 = arith.ori %379, %384 : vector<4x5xi1>
    %cst_159 = arith.constant 1.000000e+00 : f32
    %cst_160 = arith.constant 0.000000e+00 : f32
    %386 = vector.broadcast %cst_159 : f32 to vector<4x5xf32>
    %387 = vector.broadcast %cst_160 : f32 to vector<4x5xf32>
    %388 = arith.select %385, %386, %387 : vector<4x5xi1>, vector<4x5xf32>
    %389 = arith.truncf %388 : vector<4x5xf32> to vector<4x5xbf16>
    %390 = arith.truncf %376 : vector<32x4xf32> to vector<32x4xbf16>
    %cst_161 = arith.constant dense<0.000000e+00> : vector<32x5xf32>
    %391 = tpu.matmul %390, %389, %cst_161 {dimension_numbers = #tpu.dot_dimension_numbers<[1], [0], [0], [1], [0, 0, 1, 1], [], []>} : vector<32x4xbf16>, vector<4x5xbf16>, vector<32x5xf32> -> vector<32x5xf32>
    %c0_162 = arith.constant 0 : index
    %c0_163 = arith.constant 0 : index
    %392 = vector.load %arg9[%c0_162, %c0_163] : memref<32x96xbf16, #tpu.memory_space<vmem>>, vector<32x96xbf16>
    %c0_164 = arith.constant 0 : index
    %c0_165 = arith.constant 0 : index
    %393 = vector.load %arg21[%c0_164, %c0_165] : memref<32x1xf32, #tpu.memory_space<vmem>>, vector<32x1xf32>
    %394 = arith.truncf %391 : vector<32x5xf32> to vector<32x5xbf16>
    %395 = tpu.iota {dimensions = array<i32: 0>} : vector<5x5xi32>
    %396 = tpu.iota {dimensions = array<i32: 1>} : vector<5x5xi32>
    %c1_i32_166 = arith.constant 1 : i32
    %397 = vector.broadcast %c1_i32_166 : i32 to vector<5x5xi32>
    %398 = arith.addi %395, %397 : vector<5x5xi32>
    %399 = arith.cmpi eq, %396, %398 : vector<5x5xi32>
    %cst_167 = arith.constant 1.000000e+00 : f32
    %cst_168 = arith.constant 0.000000e+00 : f32
    %400 = vector.broadcast %cst_167 : f32 to vector<5x5xf32>
    %401 = vector.broadcast %cst_168 : f32 to vector<5x5xf32>
    %402 = arith.select %399, %400, %401 : vector<5x5xi1>, vector<5x5xf32>
    %403 = arith.truncf %402 : vector<5x5xf32> to vector<5x5xbf16>
    %cst_169 = arith.constant dense<0.000000e+00> : vector<32x5xf32>
    %404 = tpu.matmul %394, %403, %cst_169 {dimension_numbers = #tpu.dot_dimension_numbers<[1], [0], [0], [1], [0, 0, 1, 1], [], []>} : vector<32x5xbf16>, vector<5x5xbf16>, vector<32x5xf32> -> vector<32x5xf32>
    %405 = tpu.iota {dimensions = array<i32: 0>} : vector<5x5xi32>
    %406 = tpu.iota {dimensions = array<i32: 1>} : vector<5x5xi32>
    %c-1_i32_170 = arith.constant -1 : i32
    %407 = vector.broadcast %c-1_i32_170 : i32 to vector<5x5xi32>
    %408 = arith.addi %405, %407 : vector<5x5xi32>
    %409 = arith.cmpi eq, %406, %408 : vector<5x5xi32>
    %cst_171 = arith.constant 1.000000e+00 : f32
    %cst_172 = arith.constant 0.000000e+00 : f32
    %410 = vector.broadcast %cst_171 : f32 to vector<5x5xf32>
    %411 = vector.broadcast %cst_172 : f32 to vector<5x5xf32>
    %412 = arith.select %409, %410, %411 : vector<5x5xi1>, vector<5x5xf32>
    %413 = arith.truncf %412 : vector<5x5xf32> to vector<5x5xbf16>
    %cst_173 = arith.constant dense<0.000000e+00> : vector<32x5xf32>
    %414 = tpu.matmul %394, %413, %cst_173 {dimension_numbers = #tpu.dot_dimension_numbers<[1], [0], [0], [1], [0, 0, 1, 1], [], []>} : vector<32x5xbf16>, vector<5x5xbf16>, vector<32x5xf32> -> vector<32x5xf32>
    %415 = arith.truncf %404 : vector<32x5xf32> to vector<32x5xbf16>
    %416 = arith.truncf %414 : vector<32x5xf32> to vector<32x5xbf16>
    %417 = tpu.concatenate %415, %394, %416 in 0 : vector<32x5xbf16>, vector<32x5xbf16>, vector<32x5xbf16> -> vector<96x5xbf16>
    %cst_174 = arith.constant dense<0.000000e+00> : vector<32x5xf32>
    %418 = tpu.matmul %392, %417, %cst_174 {dimension_numbers = #tpu.dot_dimension_numbers<[1], [0], [0], [1], [0, 0, 1, 1], [], []>} : vector<32x96xbf16>, vector<96x5xbf16>, vector<32x5xf32> -> vector<32x5xf32>
    %419 = vector.broadcast %393 : vector<32x1xf32> to vector<32x5xf32>
    %420 = arith.addf %418, %419 : vector<32x5xf32>
    %cst_175 = arith.constant 0.000000e+00 : f32
    %421 = vector.broadcast %cst_175 : f32 to vector<32x5xf32>
    %422 = arith.maximumf %420, %421 : vector<32x5xf32>
    %423 = tpu.iota {dimensions = array<i32: 0>} : vector<5x10xi32>
    %424 = tpu.iota {dimensions = array<i32: 1>} : vector<5x10xi32>
    %c2_i32_176 = arith.constant 2 : i32
    %425 = vector.broadcast %c2_i32_176 : i32 to vector<5x10xi32>
    %426 = arith.muli %425, %423 : vector<5x10xi32>
    %427 = arith.cmpi eq, %424, %426 : vector<5x10xi32>
    %c2_i32_177 = arith.constant 2 : i32
    %428 = vector.broadcast %c2_i32_177 : i32 to vector<5x10xi32>
    %429 = arith.muli %428, %423 : vector<5x10xi32>
    %c1_i32_178 = arith.constant 1 : i32
    %430 = vector.broadcast %c1_i32_178 : i32 to vector<5x10xi32>
    %431 = arith.addi %429, %430 : vector<5x10xi32>
    %432 = arith.cmpi eq, %424, %431 : vector<5x10xi32>
    %433 = arith.ori %427, %432 : vector<5x10xi1>
    %cst_179 = arith.constant 1.000000e+00 : f32
    %cst_180 = arith.constant 0.000000e+00 : f32
    %434 = vector.broadcast %cst_179 : f32 to vector<5x10xf32>
    %435 = vector.broadcast %cst_180 : f32 to vector<5x10xf32>
    %436 = arith.select %433, %434, %435 : vector<5x10xi1>, vector<5x10xf32>
    %437 = arith.truncf %436 : vector<5x10xf32> to vector<5x10xbf16>
    %438 = arith.truncf %422 : vector<32x5xf32> to vector<32x5xbf16>
    %cst_181 = arith.constant dense<0.000000e+00> : vector<32x10xf32>
    %439 = tpu.matmul %438, %437, %cst_181 {dimension_numbers = #tpu.dot_dimension_numbers<[1], [0], [0], [1], [0, 0, 1, 1], [], []>} : vector<32x5xbf16>, vector<5x10xbf16>, vector<32x10xf32> -> vector<32x10xf32>
    %440 = tpu.iota {dimensions = array<i32: 0>} : vector<10x11xi32>
    %441 = tpu.iota {dimensions = array<i32: 1>} : vector<10x11xi32>
    %442 = arith.cmpi eq, %441, %440 : vector<10x11xi32>
    %c10_i32 = arith.constant 10 : i32
    %443 = vector.broadcast %c10_i32 : i32 to vector<10x11xi32>
    %444 = arith.cmpi eq, %441, %443 : vector<10x11xi32>
    %c9_i32 = arith.constant 9 : i32
    %445 = vector.broadcast %c9_i32 : i32 to vector<10x11xi32>
    %446 = arith.cmpi eq, %440, %445 : vector<10x11xi32>
    %447 = arith.andi %444, %446 : vector<10x11xi1>
    %448 = arith.ori %442, %447 : vector<10x11xi1>
    %cst_182 = arith.constant 1.000000e+00 : f32
    %cst_183 = arith.constant 0.000000e+00 : f32
    %449 = vector.broadcast %cst_182 : f32 to vector<10x11xf32>
    %450 = vector.broadcast %cst_183 : f32 to vector<10x11xf32>
    %451 = arith.select %448, %449, %450 : vector<10x11xi1>, vector<10x11xf32>
    %452 = arith.truncf %451 : vector<10x11xf32> to vector<10x11xbf16>
    %453 = arith.truncf %439 : vector<32x10xf32> to vector<32x10xbf16>
    %cst_184 = arith.constant dense<0.000000e+00> : vector<32x11xf32>
    %454 = tpu.matmul %453, %452, %cst_184 {dimension_numbers = #tpu.dot_dimension_numbers<[1], [0], [0], [1], [0, 0, 1, 1], [], []>} : vector<32x10xbf16>, vector<10x11xbf16>, vector<32x11xf32> -> vector<32x11xf32>
    %c0_185 = arith.constant 0 : index
    %c0_186 = arith.constant 0 : index
    %455 = vector.load %arg10[%c0_185, %c0_186] : memref<32x96xbf16, #tpu.memory_space<vmem>>, vector<32x96xbf16>
    %c0_187 = arith.constant 0 : index
    %c0_188 = arith.constant 0 : index
    %456 = vector.load %arg22[%c0_187, %c0_188] : memref<32x1xf32, #tpu.memory_space<vmem>>, vector<32x1xf32>
    %457 = arith.truncf %454 : vector<32x11xf32> to vector<32x11xbf16>
    %458 = tpu.iota {dimensions = array<i32: 0>} : vector<11x11xi32>
    %459 = tpu.iota {dimensions = array<i32: 1>} : vector<11x11xi32>
    %c1_i32_189 = arith.constant 1 : i32
    %460 = vector.broadcast %c1_i32_189 : i32 to vector<11x11xi32>
    %461 = arith.addi %458, %460 : vector<11x11xi32>
    %462 = arith.cmpi eq, %459, %461 : vector<11x11xi32>
    %cst_190 = arith.constant 1.000000e+00 : f32
    %cst_191 = arith.constant 0.000000e+00 : f32
    %463 = vector.broadcast %cst_190 : f32 to vector<11x11xf32>
    %464 = vector.broadcast %cst_191 : f32 to vector<11x11xf32>
    %465 = arith.select %462, %463, %464 : vector<11x11xi1>, vector<11x11xf32>
    %466 = arith.truncf %465 : vector<11x11xf32> to vector<11x11xbf16>
    %cst_192 = arith.constant dense<0.000000e+00> : vector<32x11xf32>
    %467 = tpu.matmul %457, %466, %cst_192 {dimension_numbers = #tpu.dot_dimension_numbers<[1], [0], [0], [1], [0, 0, 1, 1], [], []>} : vector<32x11xbf16>, vector<11x11xbf16>, vector<32x11xf32> -> vector<32x11xf32>
    %468 = tpu.iota {dimensions = array<i32: 0>} : vector<11x11xi32>
    %469 = tpu.iota {dimensions = array<i32: 1>} : vector<11x11xi32>
    %c-1_i32_193 = arith.constant -1 : i32
    %470 = vector.broadcast %c-1_i32_193 : i32 to vector<11x11xi32>
    %471 = arith.addi %468, %470 : vector<11x11xi32>
    %472 = arith.cmpi eq, %469, %471 : vector<11x11xi32>
    %cst_194 = arith.constant 1.000000e+00 : f32
    %cst_195 = arith.constant 0.000000e+00 : f32
    %473 = vector.broadcast %cst_194 : f32 to vector<11x11xf32>
    %474 = vector.broadcast %cst_195 : f32 to vector<11x11xf32>
    %475 = arith.select %472, %473, %474 : vector<11x11xi1>, vector<11x11xf32>
    %476 = arith.truncf %475 : vector<11x11xf32> to vector<11x11xbf16>
    %cst_196 = arith.constant dense<0.000000e+00> : vector<32x11xf32>
    %477 = tpu.matmul %457, %476, %cst_196 {dimension_numbers = #tpu.dot_dimension_numbers<[1], [0], [0], [1], [0, 0, 1, 1], [], []>} : vector<32x11xbf16>, vector<11x11xbf16>, vector<32x11xf32> -> vector<32x11xf32>
    %478 = arith.truncf %467 : vector<32x11xf32> to vector<32x11xbf16>
    %479 = arith.truncf %477 : vector<32x11xf32> to vector<32x11xbf16>
    %480 = tpu.concatenate %478, %457, %479 in 0 : vector<32x11xbf16>, vector<32x11xbf16>, vector<32x11xbf16> -> vector<96x11xbf16>
    %cst_197 = arith.constant dense<0.000000e+00> : vector<32x11xf32>
    %481 = tpu.matmul %455, %480, %cst_197 {dimension_numbers = #tpu.dot_dimension_numbers<[1], [0], [0], [1], [0, 0, 1, 1], [], []>} : vector<32x96xbf16>, vector<96x11xbf16>, vector<32x11xf32> -> vector<32x11xf32>
    %482 = vector.broadcast %456 : vector<32x1xf32> to vector<32x11xf32>
    %483 = arith.addf %481, %482 : vector<32x11xf32>
    %cst_198 = arith.constant 0.000000e+00 : f32
    %484 = vector.broadcast %cst_198 : f32 to vector<32x11xf32>
    %485 = arith.maximumf %483, %484 : vector<32x11xf32>
    %486 = tpu.iota {dimensions = array<i32: 0>} : vector<11x22xi32>
    %487 = tpu.iota {dimensions = array<i32: 1>} : vector<11x22xi32>
    %c2_i32_199 = arith.constant 2 : i32
    %488 = vector.broadcast %c2_i32_199 : i32 to vector<11x22xi32>
    %489 = arith.muli %488, %486 : vector<11x22xi32>
    %490 = arith.cmpi eq, %487, %489 : vector<11x22xi32>
    %c2_i32_200 = arith.constant 2 : i32
    %491 = vector.broadcast %c2_i32_200 : i32 to vector<11x22xi32>
    %492 = arith.muli %491, %486 : vector<11x22xi32>
    %c1_i32_201 = arith.constant 1 : i32
    %493 = vector.broadcast %c1_i32_201 : i32 to vector<11x22xi32>
    %494 = arith.addi %492, %493 : vector<11x22xi32>
    %495 = arith.cmpi eq, %487, %494 : vector<11x22xi32>
    %496 = arith.ori %490, %495 : vector<11x22xi1>
    %cst_202 = arith.constant 1.000000e+00 : f32
    %cst_203 = arith.constant 0.000000e+00 : f32
    %497 = vector.broadcast %cst_202 : f32 to vector<11x22xf32>
    %498 = vector.broadcast %cst_203 : f32 to vector<11x22xf32>
    %499 = arith.select %496, %497, %498 : vector<11x22xi1>, vector<11x22xf32>
    %500 = arith.truncf %499 : vector<11x22xf32> to vector<11x22xbf16>
    %501 = arith.truncf %485 : vector<32x11xf32> to vector<32x11xbf16>
    %cst_204 = arith.constant dense<0.000000e+00> : vector<32x22xf32>
    %502 = tpu.matmul %501, %500, %cst_204 {dimension_numbers = #tpu.dot_dimension_numbers<[1], [0], [0], [1], [0, 0, 1, 1], [], []>} : vector<32x11xbf16>, vector<11x22xbf16>, vector<32x22xf32> -> vector<32x22xf32>
    %503 = tpu.iota {dimensions = array<i32: 0>} : vector<22x23xi32>
    %504 = tpu.iota {dimensions = array<i32: 1>} : vector<22x23xi32>
    %505 = arith.cmpi eq, %504, %503 : vector<22x23xi32>
    %c22_i32 = arith.constant 22 : i32
    %506 = vector.broadcast %c22_i32 : i32 to vector<22x23xi32>
    %507 = arith.cmpi eq, %504, %506 : vector<22x23xi32>
    %c21_i32 = arith.constant 21 : i32
    %508 = vector.broadcast %c21_i32 : i32 to vector<22x23xi32>
    %509 = arith.cmpi eq, %503, %508 : vector<22x23xi32>
    %510 = arith.andi %507, %509 : vector<22x23xi1>
    %511 = arith.ori %505, %510 : vector<22x23xi1>
    %cst_205 = arith.constant 1.000000e+00 : f32
    %cst_206 = arith.constant 0.000000e+00 : f32
    %512 = vector.broadcast %cst_205 : f32 to vector<22x23xf32>
    %513 = vector.broadcast %cst_206 : f32 to vector<22x23xf32>
    %514 = arith.select %511, %512, %513 : vector<22x23xi1>, vector<22x23xf32>
    %515 = arith.truncf %514 : vector<22x23xf32> to vector<22x23xbf16>
    %516 = arith.truncf %502 : vector<32x22xf32> to vector<32x22xbf16>
    %cst_207 = arith.constant dense<0.000000e+00> : vector<32x23xf32>
    %517 = tpu.matmul %516, %515, %cst_207 {dimension_numbers = #tpu.dot_dimension_numbers<[1], [0], [0], [1], [0, 0, 1, 1], [], []>} : vector<32x22xbf16>, vector<22x23xbf16>, vector<32x23xf32> -> vector<32x23xf32>
    %c0_208 = arith.constant 0 : index
    %c0_209 = arith.constant 0 : index
    %518 = vector.load %arg11[%c0_208, %c0_209] : memref<64x96xbf16, #tpu.memory_space<vmem>>, vector<64x96xbf16>
    %c0_210 = arith.constant 0 : index
    %c0_211 = arith.constant 0 : index
    %519 = vector.load %arg23[%c0_210, %c0_211] : memref<64x1xf32, #tpu.memory_space<vmem>>, vector<64x1xf32>
    %520 = arith.truncf %517 : vector<32x23xf32> to vector<32x23xbf16>
    %521 = tpu.iota {dimensions = array<i32: 0>} : vector<23x23xi32>
    %522 = tpu.iota {dimensions = array<i32: 1>} : vector<23x23xi32>
    %c1_i32_212 = arith.constant 1 : i32
    %523 = vector.broadcast %c1_i32_212 : i32 to vector<23x23xi32>
    %524 = arith.addi %521, %523 : vector<23x23xi32>
    %525 = arith.cmpi eq, %522, %524 : vector<23x23xi32>
    %cst_213 = arith.constant 1.000000e+00 : f32
    %cst_214 = arith.constant 0.000000e+00 : f32
    %526 = vector.broadcast %cst_213 : f32 to vector<23x23xf32>
    %527 = vector.broadcast %cst_214 : f32 to vector<23x23xf32>
    %528 = arith.select %525, %526, %527 : vector<23x23xi1>, vector<23x23xf32>
    %529 = arith.truncf %528 : vector<23x23xf32> to vector<23x23xbf16>
    %cst_215 = arith.constant dense<0.000000e+00> : vector<32x23xf32>
    %530 = tpu.matmul %520, %529, %cst_215 {dimension_numbers = #tpu.dot_dimension_numbers<[1], [0], [0], [1], [0, 0, 1, 1], [], []>} : vector<32x23xbf16>, vector<23x23xbf16>, vector<32x23xf32> -> vector<32x23xf32>
    %531 = tpu.iota {dimensions = array<i32: 0>} : vector<23x23xi32>
    %532 = tpu.iota {dimensions = array<i32: 1>} : vector<23x23xi32>
    %c-1_i32_216 = arith.constant -1 : i32
    %533 = vector.broadcast %c-1_i32_216 : i32 to vector<23x23xi32>
    %534 = arith.addi %531, %533 : vector<23x23xi32>
    %535 = arith.cmpi eq, %532, %534 : vector<23x23xi32>
    %cst_217 = arith.constant 1.000000e+00 : f32
    %cst_218 = arith.constant 0.000000e+00 : f32
    %536 = vector.broadcast %cst_217 : f32 to vector<23x23xf32>
    %537 = vector.broadcast %cst_218 : f32 to vector<23x23xf32>
    %538 = arith.select %535, %536, %537 : vector<23x23xi1>, vector<23x23xf32>
    %539 = arith.truncf %538 : vector<23x23xf32> to vector<23x23xbf16>
    %cst_219 = arith.constant dense<0.000000e+00> : vector<32x23xf32>
    %540 = tpu.matmul %520, %539, %cst_219 {dimension_numbers = #tpu.dot_dimension_numbers<[1], [0], [0], [1], [0, 0, 1, 1], [], []>} : vector<32x23xbf16>, vector<23x23xbf16>, vector<32x23xf32> -> vector<32x23xf32>
    %541 = arith.truncf %530 : vector<32x23xf32> to vector<32x23xbf16>
    %542 = arith.truncf %540 : vector<32x23xf32> to vector<32x23xbf16>
    %543 = tpu.concatenate %541, %520, %542 in 0 : vector<32x23xbf16>, vector<32x23xbf16>, vector<32x23xbf16> -> vector<96x23xbf16>
    %cst_220 = arith.constant dense<0.000000e+00> : vector<64x23xf32>
    %544 = tpu.matmul %518, %543, %cst_220 {dimension_numbers = #tpu.dot_dimension_numbers<[1], [0], [0], [1], [0, 0, 1, 1], [], []>} : vector<64x96xbf16>, vector<96x23xbf16>, vector<64x23xf32> -> vector<64x23xf32>
    %545 = vector.broadcast %519 : vector<64x1xf32> to vector<64x23xf32>
    %546 = arith.addf %544, %545 : vector<64x23xf32>
    %cst_221 = arith.constant 0.000000e+00 : f32
    %547 = vector.broadcast %cst_221 : f32 to vector<64x23xf32>
    %548 = arith.maximumf %546, %547 : vector<64x23xf32>
    %549 = tpu.iota {dimensions = array<i32: 0>} : vector<23x46xi32>
    %550 = tpu.iota {dimensions = array<i32: 1>} : vector<23x46xi32>
    %c2_i32_222 = arith.constant 2 : i32
    %551 = vector.broadcast %c2_i32_222 : i32 to vector<23x46xi32>
    %552 = arith.muli %551, %549 : vector<23x46xi32>
    %553 = arith.cmpi eq, %550, %552 : vector<23x46xi32>
    %c2_i32_223 = arith.constant 2 : i32
    %554 = vector.broadcast %c2_i32_223 : i32 to vector<23x46xi32>
    %555 = arith.muli %554, %549 : vector<23x46xi32>
    %c1_i32_224 = arith.constant 1 : i32
    %556 = vector.broadcast %c1_i32_224 : i32 to vector<23x46xi32>
    %557 = arith.addi %555, %556 : vector<23x46xi32>
    %558 = arith.cmpi eq, %550, %557 : vector<23x46xi32>
    %559 = arith.ori %553, %558 : vector<23x46xi1>
    %cst_225 = arith.constant 1.000000e+00 : f32
    %cst_226 = arith.constant 0.000000e+00 : f32
    %560 = vector.broadcast %cst_225 : f32 to vector<23x46xf32>
    %561 = vector.broadcast %cst_226 : f32 to vector<23x46xf32>
    %562 = arith.select %559, %560, %561 : vector<23x46xi1>, vector<23x46xf32>
    %563 = arith.truncf %562 : vector<23x46xf32> to vector<23x46xbf16>
    %564 = arith.truncf %548 : vector<64x23xf32> to vector<64x23xbf16>
    %cst_227 = arith.constant dense<0.000000e+00> : vector<64x46xf32>
    %565 = tpu.matmul %564, %563, %cst_227 {dimension_numbers = #tpu.dot_dimension_numbers<[1], [0], [0], [1], [0, 0, 1, 1], [], []>} : vector<64x23xbf16>, vector<23x46xbf16>, vector<64x46xf32> -> vector<64x46xf32>
    %c0_228 = arith.constant 0 : index
    %c0_229 = arith.constant 0 : index
    %566 = vector.load %arg12[%c0_228, %c0_229] : memref<128x192xbf16, #tpu.memory_space<vmem>>, vector<128x192xbf16>
    %c0_230 = arith.constant 0 : index
    %c0_231 = arith.constant 0 : index
    %567 = vector.load %arg24[%c0_230, %c0_231] : memref<128x1xf32, #tpu.memory_space<vmem>>, vector<128x1xf32>
    %568 = arith.truncf %565 : vector<64x46xf32> to vector<64x46xbf16>
    %569 = tpu.iota {dimensions = array<i32: 0>} : vector<46x46xi32>
    %570 = tpu.iota {dimensions = array<i32: 1>} : vector<46x46xi32>
    %c1_i32_232 = arith.constant 1 : i32
    %571 = vector.broadcast %c1_i32_232 : i32 to vector<46x46xi32>
    %572 = arith.addi %569, %571 : vector<46x46xi32>
    %573 = arith.cmpi eq, %570, %572 : vector<46x46xi32>
    %cst_233 = arith.constant 1.000000e+00 : f32
    %cst_234 = arith.constant 0.000000e+00 : f32
    %574 = vector.broadcast %cst_233 : f32 to vector<46x46xf32>
    %575 = vector.broadcast %cst_234 : f32 to vector<46x46xf32>
    %576 = arith.select %573, %574, %575 : vector<46x46xi1>, vector<46x46xf32>
    %577 = arith.truncf %576 : vector<46x46xf32> to vector<46x46xbf16>
    %cst_235 = arith.constant dense<0.000000e+00> : vector<64x46xf32>
    %578 = tpu.matmul %568, %577, %cst_235 {dimension_numbers = #tpu.dot_dimension_numbers<[1], [0], [0], [1], [0, 0, 1, 1], [], []>} : vector<64x46xbf16>, vector<46x46xbf16>, vector<64x46xf32> -> vector<64x46xf32>
    %579 = tpu.iota {dimensions = array<i32: 0>} : vector<46x46xi32>
    %580 = tpu.iota {dimensions = array<i32: 1>} : vector<46x46xi32>
    %c-1_i32_236 = arith.constant -1 : i32
    %581 = vector.broadcast %c-1_i32_236 : i32 to vector<46x46xi32>
    %582 = arith.addi %579, %581 : vector<46x46xi32>
    %583 = arith.cmpi eq, %580, %582 : vector<46x46xi32>
    %cst_237 = arith.constant 1.000000e+00 : f32
    %cst_238 = arith.constant 0.000000e+00 : f32
    %584 = vector.broadcast %cst_237 : f32 to vector<46x46xf32>
    %585 = vector.broadcast %cst_238 : f32 to vector<46x46xf32>
    %586 = arith.select %583, %584, %585 : vector<46x46xi1>, vector<46x46xf32>
    %587 = arith.truncf %586 : vector<46x46xf32> to vector<46x46xbf16>
    %cst_239 = arith.constant dense<0.000000e+00> : vector<64x46xf32>
    %588 = tpu.matmul %568, %587, %cst_239 {dimension_numbers = #tpu.dot_dimension_numbers<[1], [0], [0], [1], [0, 0, 1, 1], [], []>} : vector<64x46xbf16>, vector<46x46xbf16>, vector<64x46xf32> -> vector<64x46xf32>
    %589 = arith.truncf %578 : vector<64x46xf32> to vector<64x46xbf16>
    %590 = arith.truncf %588 : vector<64x46xf32> to vector<64x46xbf16>
    %591 = tpu.concatenate %589, %568, %590 in 0 : vector<64x46xbf16>, vector<64x46xbf16>, vector<64x46xbf16> -> vector<192x46xbf16>
    %cst_240 = arith.constant dense<0.000000e+00> : vector<128x46xf32>
    %592 = tpu.matmul %566, %591, %cst_240 {dimension_numbers = #tpu.dot_dimension_numbers<[1], [0], [0], [1], [0, 0, 1, 1], [], []>} : vector<128x192xbf16>, vector<192x46xbf16>, vector<128x46xf32> -> vector<128x46xf32>
    %593 = vector.broadcast %567 : vector<128x1xf32> to vector<128x46xf32>
    %594 = arith.addf %592, %593 : vector<128x46xf32>
    %cst_241 = arith.constant 0.000000e+00 : f32
    %595 = vector.broadcast %cst_241 : f32 to vector<128x46xf32>
    %596 = arith.maximumf %594, %595 : vector<128x46xf32>
    %597 = tpu.iota {dimensions = array<i32: 0>} : vector<46x92xi32>
    %598 = tpu.iota {dimensions = array<i32: 1>} : vector<46x92xi32>
    %c2_i32_242 = arith.constant 2 : i32
    %599 = vector.broadcast %c2_i32_242 : i32 to vector<46x92xi32>
    %600 = arith.muli %599, %597 : vector<46x92xi32>
    %601 = arith.cmpi eq, %598, %600 : vector<46x92xi32>
    %c2_i32_243 = arith.constant 2 : i32
    %602 = vector.broadcast %c2_i32_243 : i32 to vector<46x92xi32>
    %603 = arith.muli %602, %597 : vector<46x92xi32>
    %c1_i32_244 = arith.constant 1 : i32
    %604 = vector.broadcast %c1_i32_244 : i32 to vector<46x92xi32>
    %605 = arith.addi %603, %604 : vector<46x92xi32>
    %606 = arith.cmpi eq, %598, %605 : vector<46x92xi32>
    %607 = arith.ori %601, %606 : vector<46x92xi1>
    %cst_245 = arith.constant 1.000000e+00 : f32
    %cst_246 = arith.constant 0.000000e+00 : f32
    %608 = vector.broadcast %cst_245 : f32 to vector<46x92xf32>
    %609 = vector.broadcast %cst_246 : f32 to vector<46x92xf32>
    %610 = arith.select %607, %608, %609 : vector<46x92xi1>, vector<46x92xf32>
    %611 = arith.truncf %610 : vector<46x92xf32> to vector<46x92xbf16>
    %612 = arith.truncf %596 : vector<128x46xf32> to vector<128x46xbf16>
    %cst_247 = arith.constant dense<0.000000e+00> : vector<128x92xf32>
    %613 = tpu.matmul %612, %611, %cst_247 {dimension_numbers = #tpu.dot_dimension_numbers<[1], [0], [0], [1], [0, 0, 1, 1], [], []>} : vector<128x46xbf16>, vector<46x92xbf16>, vector<128x92xf32> -> vector<128x92xf32>
    %c0_248 = arith.constant 0 : index
    %c0_249 = arith.constant 0 : index
    %614 = vector.load %arg13[%c0_248, %c0_249] : memref<125x384xbf16, #tpu.memory_space<vmem>>, vector<125x384xbf16>
    %c0_250 = arith.constant 0 : index
    %c0_251 = arith.constant 0 : index
    %615 = vector.load %arg25[%c0_250, %c0_251] : memref<125x1xf32, #tpu.memory_space<vmem>>, vector<125x1xf32>
    %616 = arith.truncf %613 : vector<128x92xf32> to vector<128x92xbf16>
    %617 = tpu.iota {dimensions = array<i32: 0>} : vector<92x92xi32>
    %618 = tpu.iota {dimensions = array<i32: 1>} : vector<92x92xi32>
    %c1_i32_252 = arith.constant 1 : i32
    %619 = vector.broadcast %c1_i32_252 : i32 to vector<92x92xi32>
    %620 = arith.addi %617, %619 : vector<92x92xi32>
    %621 = arith.cmpi eq, %618, %620 : vector<92x92xi32>
    %cst_253 = arith.constant 1.000000e+00 : f32
    %cst_254 = arith.constant 0.000000e+00 : f32
    %622 = vector.broadcast %cst_253 : f32 to vector<92x92xf32>
    %623 = vector.broadcast %cst_254 : f32 to vector<92x92xf32>
    %624 = arith.select %621, %622, %623 : vector<92x92xi1>, vector<92x92xf32>
    %625 = arith.truncf %624 : vector<92x92xf32> to vector<92x92xbf16>
    %cst_255 = arith.constant dense<0.000000e+00> : vector<128x92xf32>
    %626 = tpu.matmul %616, %625, %cst_255 {dimension_numbers = #tpu.dot_dimension_numbers<[1], [0], [0], [1], [0, 0, 1, 1], [], []>} : vector<128x92xbf16>, vector<92x92xbf16>, vector<128x92xf32> -> vector<128x92xf32>
    %627 = tpu.iota {dimensions = array<i32: 0>} : vector<92x92xi32>
    %628 = tpu.iota {dimensions = array<i32: 1>} : vector<92x92xi32>
    %c-1_i32_256 = arith.constant -1 : i32
    %629 = vector.broadcast %c-1_i32_256 : i32 to vector<92x92xi32>
    %630 = arith.addi %627, %629 : vector<92x92xi32>
    %631 = arith.cmpi eq, %628, %630 : vector<92x92xi32>
    %cst_257 = arith.constant 1.000000e+00 : f32
    %cst_258 = arith.constant 0.000000e+00 : f32
    %632 = vector.broadcast %cst_257 : f32 to vector<92x92xf32>
    %633 = vector.broadcast %cst_258 : f32 to vector<92x92xf32>
    %634 = arith.select %631, %632, %633 : vector<92x92xi1>, vector<92x92xf32>
    %635 = arith.truncf %634 : vector<92x92xf32> to vector<92x92xbf16>
    %cst_259 = arith.constant dense<0.000000e+00> : vector<128x92xf32>
    %636 = tpu.matmul %616, %635, %cst_259 {dimension_numbers = #tpu.dot_dimension_numbers<[1], [0], [0], [1], [0, 0, 1, 1], [], []>} : vector<128x92xbf16>, vector<92x92xbf16>, vector<128x92xf32> -> vector<128x92xf32>
    %637 = arith.truncf %626 : vector<128x92xf32> to vector<128x92xbf16>
    %638 = arith.truncf %636 : vector<128x92xf32> to vector<128x92xbf16>
    %639 = tpu.concatenate %637, %616, %638 in 0 : vector<128x92xbf16>, vector<128x92xbf16>, vector<128x92xbf16> -> vector<384x92xbf16>
    %cst_260 = arith.constant dense<0.000000e+00> : vector<125x92xf32>
    %640 = tpu.matmul %614, %639, %cst_260 {dimension_numbers = #tpu.dot_dimension_numbers<[1], [0], [0], [1], [0, 0, 1, 1], [], []>} : vector<125x384xbf16>, vector<384x92xbf16>, vector<125x92xf32> -> vector<125x92xf32>
    %641 = vector.broadcast %615 : vector<125x1xf32> to vector<125x92xf32>
    %642 = arith.addf %640, %641 : vector<125x92xf32>
    %cst_261 = arith.constant 0.000000e+00 : f32
    %643 = vector.broadcast %cst_261 : f32 to vector<125x92xf32>
    %644 = arith.maximumf %642, %643 : vector<125x92xf32>
    %645 = tpu.iota {dimensions = array<i32: 0>} : vector<92x184xi32>
    %646 = tpu.iota {dimensions = array<i32: 1>} : vector<92x184xi32>
    %c2_i32_262 = arith.constant 2 : i32
    %647 = vector.broadcast %c2_i32_262 : i32 to vector<92x184xi32>
    %648 = arith.muli %647, %645 : vector<92x184xi32>
    %649 = arith.cmpi eq, %646, %648 : vector<92x184xi32>
    %c2_i32_263 = arith.constant 2 : i32
    %650 = vector.broadcast %c2_i32_263 : i32 to vector<92x184xi32>
    %651 = arith.muli %650, %645 : vector<92x184xi32>
    %c1_i32_264 = arith.constant 1 : i32
    %652 = vector.broadcast %c1_i32_264 : i32 to vector<92x184xi32>
    %653 = arith.addi %651, %652 : vector<92x184xi32>
    %654 = arith.cmpi eq, %646, %653 : vector<92x184xi32>
    %655 = arith.ori %649, %654 : vector<92x184xi1>
    %cst_265 = arith.constant 1.000000e+00 : f32
    %cst_266 = arith.constant 0.000000e+00 : f32
    %656 = vector.broadcast %cst_265 : f32 to vector<92x184xf32>
    %657 = vector.broadcast %cst_266 : f32 to vector<92x184xf32>
    %658 = arith.select %655, %656, %657 : vector<92x184xi1>, vector<92x184xf32>
    %659 = arith.truncf %658 : vector<92x184xf32> to vector<92x184xbf16>
    %660 = arith.truncf %644 : vector<125x92xf32> to vector<125x92xbf16>
    %cst_267 = arith.constant dense<0.000000e+00> : vector<125x184xf32>
    %661 = tpu.matmul %660, %659, %cst_267 {dimension_numbers = #tpu.dot_dimension_numbers<[1], [0], [0], [1], [0, 0, 1, 1], [], []>} : vector<125x92xbf16>, vector<92x184xbf16>, vector<125x184xf32> -> vector<125x184xf32>
    %c0_268 = arith.constant 0 : index
    %c0_269 = arith.constant 0 : index
    %c0_270 = arith.constant 0 : index
    %662 = vector.load %arg27[%c0_268, %c0_269, %c0_270] : memref<1x125x184xf32, #tpu.memory_space<vmem>>, vector<1x125x184xf32>
    %663 = vector.shape_cast %662 : vector<1x125x184xf32> to vector<125x184xf32>
    %664 = vector.shape_cast %661 : vector<125x184xf32> to vector<1x125x184xf32>
    tpu.vector_store %arg27[%c0_268, %c0_269, %c0_270], %664 {strides = array<i32>} : memref<1x125x184xf32, #tpu.memory_space<vmem>>, vector<1x125x184xf32>,
    return
  }
  func.func @transform_0(%arg0: i32) -> (i32, i32, i32) {
    %c0_i32 = arith.constant 0 : i32
    %c0_i32_0 = arith.constant 0 : i32
    %c0_i32_1 = arith.constant 0 : i32
    return %arg0, %c0_i32, %c0_i32_0 : i32, i32, i32
  }
  func.func @transform_1(%arg0: i32) -> (i32, i32) {
    %c0_i32 = arith.constant 0 : i32
    %c0_i32_0 = arith.constant 0 : i32
    %c0_i32_1 = arith.constant 0 : i32
    return %c0_i32, %c0_i32_0 : i32, i32
  }
  func.func @transform_2(%arg0: i32) -> (i32, i32) {
    %c0_i32 = arith.constant 0 : i32
    %c0_i32_0 = arith.constant 0 : i32
    %c0_i32_1 = arith.constant 0 : i32
    return %c0_i32, %c0_i32_0 : i32, i32
  }
  func.func @transform_3(%arg0: i32) -> (i32, i32) {
    %c0_i32 = arith.constant 0 : i32
    %c0_i32_0 = arith.constant 0 : i32
    %c0_i32_1 = arith.constant 0 : i32
    return %c0_i32, %c0_i32_0 : i32, i32
  }
  func.func @transform_4(%arg0: i32) -> (i32, i32) {
    %c0_i32 = arith.constant 0 : i32
    %c0_i32_0 = arith.constant 0 : i32
    %c0_i32_1 = arith.constant 0 : i32
    return %c0_i32, %c0_i32_0 : i32, i32
  }
  func.func @transform_5(%arg0: i32) -> (i32, i32) {
    %c0_i32 = arith.constant 0 : i32
    %c0_i32_0 = arith.constant 0 : i32
    %c0_i32_1 = arith.constant 0 : i32
    return %c0_i32, %c0_i32_0 : i32, i32
  }
  func.func @transform_6(%arg0: i32) -> (i32, i32) {
    %c0_i32 = arith.constant 0 : i32
    %c0_i32_0 = arith.constant 0 : i32
    %c0_i32_1 = arith.constant 0 : i32
    return %c0_i32, %c0_i32_0 : i32, i32
  }
  func.func @transform_7(%arg0: i32) -> (i32, i32) {
    %c0_i32 = arith.constant 0 : i32
    %c0_i32_0 = arith.constant 0 : i32
    %c0_i32_1 = arith.constant 0 : i32
    return %c0_i32, %c0_i32_0 : i32, i32
  }
  func.func @transform_8(%arg0: i32) -> (i32, i32) {
    %c0_i32 = arith.constant 0 : i32
    %c0_i32_0 = arith.constant 0 : i32
    %c0_i32_1 = arith.constant 0 : i32
    return %c0_i32, %c0_i32_0 : i32, i32
  }
  func.func @transform_9(%arg0: i32) -> (i32, i32) {
    %c0_i32 = arith.constant 0 : i32
    %c0_i32_0 = arith.constant 0 : i32
    %c0_i32_1 = arith.constant 0 : i32
    return %c0_i32, %c0_i32_0 : i32, i32
  }
  func.func @transform_10(%arg0: i32) -> (i32, i32) {
    %c0_i32 = arith.constant 0 : i32
    %c0_i32_0 = arith.constant 0 : i32
    %c0_i32_1 = arith.constant 0 : i32
    return %c0_i32, %c0_i32_0 : i32, i32
  }
  func.func @transform_11(%arg0: i32) -> (i32, i32) {
    %c0_i32 = arith.constant 0 : i32
    %c0_i32_0 = arith.constant 0 : i32
    %c0_i32_1 = arith.constant 0 : i32
    return %c0_i32, %c0_i32_0 : i32, i32
  }
  func.func @transform_12(%arg0: i32) -> (i32, i32) {
    %c0_i32 = arith.constant 0 : i32
    %c0_i32_0 = arith.constant 0 : i32
    %c0_i32_1 = arith.constant 0 : i32
    return %c0_i32, %c0_i32_0 : i32, i32
  }
  func.func @transform_13(%arg0: i32) -> (i32, i32) {
    %c0_i32 = arith.constant 0 : i32
    %c0_i32_0 = arith.constant 0 : i32
    %c0_i32_1 = arith.constant 0 : i32
    return %c0_i32, %c0_i32_0 : i32, i32
  }
  func.func @transform_14(%arg0: i32) -> (i32, i32) {
    %c0_i32 = arith.constant 0 : i32
    %c0_i32_0 = arith.constant 0 : i32
    %c0_i32_1 = arith.constant 0 : i32
    return %c0_i32, %c0_i32_0 : i32, i32
  }
  func.func @transform_15(%arg0: i32) -> (i32, i32) {
    %c0_i32 = arith.constant 0 : i32
    %c0_i32_0 = arith.constant 0 : i32
    %c0_i32_1 = arith.constant 0 : i32
    return %c0_i32, %c0_i32_0 : i32, i32
  }
  func.func @transform_16(%arg0: i32) -> (i32, i32) {
    %c0_i32 = arith.constant 0 : i32
    %c0_i32_0 = arith.constant 0 : i32
    %c0_i32_1 = arith.constant 0 : i32
    return %c0_i32, %c0_i32_0 : i32, i32
  }
  func.func @transform_17(%arg0: i32) -> (i32, i32) {
    %c0_i32 = arith.constant 0 : i32
    %c0_i32_0 = arith.constant 0 : i32
    %c0_i32_1 = arith.constant 0 : i32
    return %c0_i32, %c0_i32_0 : i32, i32
  }
  func.func @transform_18(%arg0: i32) -> (i32, i32) {
    %c0_i32 = arith.constant 0 : i32
    %c0_i32_0 = arith.constant 0 : i32
    %c0_i32_1 = arith.constant 0 : i32
    return %c0_i32, %c0_i32_0 : i32, i32
  }
  func.func @transform_19(%arg0: i32) -> (i32, i32) {
    %c0_i32 = arith.constant 0 : i32
    %c0_i32_0 = arith.constant 0 : i32
    %c0_i32_1 = arith.constant 0 : i32
    return %c0_i32, %c0_i32_0 : i32, i32
  }
  func.func @transform_20(%arg0: i32) -> (i32, i32) {
    %c0_i32 = arith.constant 0 : i32
    %c0_i32_0 = arith.constant 0 : i32
    %c0_i32_1 = arith.constant 0 : i32
    return %c0_i32, %c0_i32_0 : i32, i32
  }
  func.func @transform_21(%arg0: i32) -> (i32, i32) {
    %c0_i32 = arith.constant 0 : i32
    %c0_i32_0 = arith.constant 0 : i32
    %c0_i32_1 = arith.constant 0 : i32
    return %c0_i32, %c0_i32_0 : i32, i32
  }
  func.func @transform_22(%arg0: i32) -> (i32, i32) {
    %c0_i32 = arith.constant 0 : i32
    %c0_i32_0 = arith.constant 0 : i32
    %c0_i32_1 = arith.constant 0 : i32
    return %c0_i32, %c0_i32_0 : i32, i32
  }
  func.func @transform_23(%arg0: i32) -> (i32, i32) {
    %c0_i32 = arith.constant 0 : i32
    %c0_i32_0 = arith.constant 0 : i32
    %c0_i32_1 = arith.constant 0 : i32
    return %c0_i32, %c0_i32_0 : i32, i32
  }
  func.func @transform_24(%arg0: i32) -> (i32, i32) {
    %c0_i32 = arith.constant 0 : i32
    %c0_i32_0 = arith.constant 0 : i32
    %c0_i32_1 = arith.constant 0 : i32
    return %c0_i32, %c0_i32_0 : i32, i32
  }
  func.func @transform_25(%arg0: i32) -> (i32, i32, i32) {
    %c0_i32 = arith.constant 0 : i32
    %c0_i32_0 = arith.constant 0 : i32
    %c0_i32_1 = arith.constant 0 : i32
    return %arg0, %c0_i32, %c0_i32_0 : i32, i32, i32
  }
  func.func @transform_26(%arg0: i32) -> (i32, i32, i32) {
    %c0_i32 = arith.constant 0 : i32
    %c0_i32_0 = arith.constant 0 : i32
    %c0_i32_1 = arith.constant 0 : i32
    return %arg0, %c0_i32, %c0_i32_0 : i32, i32, i32
  }
}

</mosaic_0001>

<bundles_post_ra>
// kernel: phage_bact_autoencoder.1
= control target key start
LH: loop header
LB: loop body
LE: loop exit
PB: predicated region body
PF: predicated region fallthrough
CT: control target
= control target key end

     0   :  { %s7091_s27 = smov 0   ;;  %s9415_s0 = inlined_call_operand.vmem [shape: f32[2,128,128], index: 0, kind: input, shape index: {}]   ;;  %s9416_s1 = inlined_call_operand.vmem [shape: bf16[128,384], index: 1, kind: input, shape index: {}]   ;;  %s9417_s2 = inlined_call_operand.vmem [shape: bf16[64,384], index: 2, kind: input, shape index: {}]   ;;  %s9418_s3 = inlined_call_operand.vmem [shape: bf16[32,192], index: 3, kind: input, shape index: {}]   ;;  %s9419_s4 = inlined_call_operand.vmem [shape: bf16[32,96], index: 4, kind: input, shape index: {}]   ;;  %s9420_s5 = inlined_call_operand.vmem [shape: bf16[32,96], index: 5, kind: input, shape index: {}]   ;;  %s9421_s6 = inlined_call_operand.vmem [shape: bf16[16,96], index: 6, kind: input, shape index: {}]   ;;  %s9422_s7 = inlined_call_operand.vmem [shape: bf16[32,48], index: 7, kind: input, shape index: {}]   ;;  %s9423_s8 = inlined_call_operand.vmem [shape: bf16[32,96], index: 8, kind: input, shape index: {}]   ;;  %s9424_s9 = inlined_call_operand.vmem [shape: bf16[32,96], index: 9, kind: input, shape index: {}]   ;;  %s9425_s10 = inlined_call_operand.vmem [shape: bf16[64,96], index: 10, kind: input, shape index: {}]   ;;  %s9426_s11 = inlined_call_operand.vmem [shape: bf16[128,192], index: 11, kind: input, shape index: {}]   ;;  %s9427_s12 = inlined_call_operand.vmem [shape: bf16[125,384], index: 12, kind: input, shape index: {}]   ;;  %s9428_s13 = inlined_call_operand.vmem [shape: f32[128,1], index: 13, kind: input, shape index: {}]   ;;  %s9429_s14 = inlined_call_operand.vmem [shape: f32[64,1], index: 14, kind: input, shape index: {}]   ;;  %s9430_s15 = inlined_call_operand.vmem [shape: f32[32,1], index: 15, kind: input, shape index: {}]   ;;  %s9431_s16 = inlined_call_operand.vmem [shape: f32[32,1], index: 16, kind: input, shape index: {}]   ;;  %s9432_s17 = inlined_call_operand.vmem [shape: f32[32,1], index: 17, kind: input, shape index: {}]   ;;  %s9433_s18 = inlined_call_operand.vmem [shape: f32[16,1], index: 18, kind: input, shape index: {}]   ;;  %s9434_s19 = inlined_call_operand.vmem [shape: f32[32,1], index: 19, kind: input, shape index: {}]   ;;  %s9435_s20 = inlined_call_operand.vmem [shape: f32[32,1], index: 20, kind: input, shape index: {}]   ;;  %s9436_s21 = inlined_call_operand.vmem [shape: f32[32,1], index: 21, kind: input, shape index: {}]   ;;  %s9437_s22 = inlined_call_operand.vmem [shape: f32[64,1], index: 22, kind: input, shape index: {}]   ;;  %s9438_s23 = inlined_call_operand.vmem [shape: f32[128,1], index: 23, kind: input, shape index: {}]   ;;  %s9439_s24 = inlined_call_operand.vmem [shape: f32[125,1], index: 24, kind: input, shape index: {}]   ;;  %s9440_s25 = inlined_call_operand.vmem [shape: f32[2,16,2], index: 25, kind: output, shape index: {0}]   ;;  %s9441_s26 = inlined_call_operand.vmem [shape: f32[2,125,184], index: 26, kind: output, shape index: {1}]  }
   0x1   :  { %9527 = sst [smem:[#allocation34_spill]] %s9415_s0 }
   0x2   :  { %9528 = sst [smem:[#allocation35_spill]] %s9416_s1 }
   0x3   :  { %9529 = sst [smem:[#allocation36_spill]] %s9417_s2 }
   0x4   :  { %9530 = sst [smem:[#allocation37_spill]] %s9418_s3 }
   0x5   :  { %9531 = sst [smem:[#allocation38_spill]] %s9419_s4 }
   0x6   :  { %9532 = sst [smem:[#allocation39_spill]] %s9420_s5 }
   0x7   :  { %9533 = sst [smem:[#allocation40_spill]] %s9421_s6 }
   0x8   :  { %9534 = sst [smem:[#allocation41_spill]] %s9422_s7 }
   0x9   :  { %9535 = sst [smem:[#allocation42_spill]] %s9423_s8 }
   0xa   :  { %9536 = sst [smem:[#allocation43_spill]] %s9424_s9 }
   0xb   :  { %9537 = sst [smem:[#allocation44_spill]] %s9425_s10 }
   0xc LB: > { %s6081_s3 = sadd.s32 4294967295, %s6950_s27   ;;  %p6085_p0 = scmp.ge.s32.totalorder %s6950_s27, 1  ;;  %s6950_s27 = sphi %s7091_s27, %s37_s27  }
   0xd   : > { %p715_p1 = scmp.lt.s32.totalorder %s6950_s27, 3 }
   0xf   : > { %p716_p2 = pnand %p6085_p0, %p715_p1 }
  0x11   : > { %719 = sbr.rel (%p716_p2) target bundleno = 6513 (0x1971), region = 120 }
  0x16   : > { %v886_v0 = vlaneseq  ;;  %v9457_v19 = vmov 1.0|1.0   ;;  %p7151_p3 = scmp.lt.s32.totalorder %s6081_s3, 1  ;;  %v9455_v30 = vmov 0.0   ;;  %v9558_v47 = vmov 0  ;;  %s9569_s29 = sld [smem:[#allocation34_spill]] }
  0x17   : > { %v9562_v49 = vmov 0  ;;  %v9571_v55 = vmov 0  ;;  %v9574_v57 = vmov 0  ;;  %v9591_v39 = vmov 0  ;;  %s9599_s9 = sld [smem:[#allocation35_spill]] }
  0x18   : > { %v7099_v1 = vshrl.u32 %v886_v0, 7  ;;  %v7101_v2 = vand.u32 127, %v886_v0  ;;  %s9740_s3 = smov (!%p7151_p3, %s6081_s3), 1  ;;  %s9616_s10 = sld [smem:[#allocation36_spill]] }
  0x19   : > { %s6815_s28 = sshll.u32 %s9740_s3, 7  ;;  %s9617_s8 = sld [smem:[#allocation37_spill]] }
  0x1a   : > { %v7104_v3 = vadd.s32 112, %v7099_v1  ;;  %v7107_v4 = vadd.s32 120, %v7099_v1  ;;  %v7110_v5 = vadd.s32 96, %v7099_v1  ;;  %v7113_v6 = vadd.s32 104, %v7099_v1  ;;  %s9618_s6 = sld [smem:[#allocation38_spill]]  ;;  %s6816_s7 = sshll.u32 %s9740_s3, 4 }
  0x1b   : > { %v7116_v7 = vadd.s32 80, %v7099_v1  ;;  %v7119_v8 = vadd.s32 88, %v7099_v1  ;;  %v7122_v9 = vadd.s32 64, %v7099_v1  ;;  %v7125_v10 = vadd.s32 72, %v7099_v1  ;;  %s9625_s1 = sld [smem:[#allocation40_spill]]  ;;  %s799_s30 = scalar_lea.vmem %s9440_s25, %s6816_s7 }
  0x1c   : > { %v919_v11 = vadd.s32 1, %v7104_v3  ;;  %v920_v12 = vadd.s32 1, %v7107_v4  ;;  %v1072_v13 = vadd.s32 4294967295, %v7104_v3  ;;  %v1073_v14 = vadd.s32 4294967295, %v7107_v4  ;;  %s7299_s0 = scalar_lea.vmem %s9569_s29, %s6815_s28  ;;  %s9624_s29 = sld [smem:[#allocation39_spill]] }
  0x1d   : > { %9538 = vst [vmem:[#allocation2_spill] sm:$0xff] %v7116_v7  ;;  %v917_v15 = vadd.s32 1, %v7110_v5  ;;  %v918_v16 = vadd.s32 1, %v7113_v6  ;;  %v1070_v17 = vadd.s32 4294967295, %v7110_v5  ;;  %v1071_v18 = vadd.s32 4294967295, %v7113_v6  ;;  %v806_v59 = vld [vmem:[%s7299_s0] sm:$0xff] }
  0x1e   : > { %9539 = vst [vmem:[#allocation3_spill] sm:$0xff] %v7119_v8  ;;  %vm935_vm0 = vcmp.eq.s32.totalorder %v7101_v2, %v919_v11  ;;  %vm936_vm1 = vcmp.eq.s32.totalorder %v7101_v2, %v920_v12  ;;  %vm1088_vm2 = vcmp.eq.s32.totalorder %v7101_v2, %v1072_v13  ;;  %vm1089_vm3 = vcmp.eq.s32.totalorder %v7101_v2, %v1073_v14  ;;  %v807_v62 = vld [vmem:[%s7299_s0 + $0x8] sm:$0xff]  ;;  %v816_v63 = vld [vmem:[%s7299_s0 + $0x50] sm:$0xff]  ;;  %v817_v0 = vld [vmem:[%s7299_s0 + $0x58] sm:$0xff]  ;;  %s9636_s28 = sld [smem:[#allocation43_spill]] }
  0x1f   : > { %9540 = vst [vmem:[#allocation4_spill] sm:$0xff] %v7122_v9  ;;  %vm6092_vm4 = vmpackc.low %vm936_vm1, %vm935_vm0  ;;  %vm933_vm5 = vcmp.eq.s32.totalorder %v7101_v2, %v917_v15  ;;  %vm934_vm6 = vcmp.eq.s32.totalorder %v7101_v2, %v918_v16  ;;  %vm1086_vm7 = vcmp.eq.s32.totalorder %v7101_v2, %v1070_v17  ;;  %vm1087_vm8 = vcmp.eq.s32.totalorder %v7101_v2, %v1071_v18  ;;  %v814_v15 = vld [vmem:[%s7299_s0 + $0x40] sm:$0xff]  ;;  %v815_v16 = vld [vmem:[%s7299_s0 + $0x48] sm:$0xff]  ;;  %s9647_s7 = sld [smem:[#allocation44_spill]] }
  0x20   : > { %9541 = vst [vmem:[#allocation5_spill] sm:$0xff] %v7125_v10  ;;  %6093 = vmatpush.bf16.msk.msra.mxu0 %vm6092_vm4, %v9457_v19  ;;  %6913 = vmatpush.bf16.msk.msra.mxu3 %vm6092_vm4, %v9457_v19  ;;  %vm6108_vm9 = vmpackc.low %vm1089_vm3, %vm1088_vm2  ;;  %v915_v20 = vadd.s32 1, %v7116_v7  ;;  %v916_v21 = vadd.s32 1, %v7119_v8  ;;  %v1068_v22 = vadd.s32 4294967295, %v7116_v7  ;;  %v1069_v23 = vadd.s32 4294967295, %v7119_v8 }
  0x21   : > { %6921 = vmatpush.bf16.msk.msra.mxu2 %vm6108_vm9, %v9457_v19  ;;  %vm7156_vm10 = vmpackc.low %vm934_vm6, %vm933_vm5  ;;  %v913_v25 = vadd.s32 1, %v7122_v9  ;;  %v914_v26 = vadd.s32 1, %v7125_v10  ;;  %v1066_v27 = vadd.s32 4294967295, %v7122_v9  ;;  %v1067_v28 = vadd.s32 4294967295, %v7125_v10  ;;  %6109 = vmatpush.bf16.msk.msra.mxu1 %vm6108_vm9, %v9457_v19 }
  0x22   : > { %vm7169_vm11 = vmpackc.low %vm1087_vm8, %vm1086_vm7  ;;  %vm931_vm12 = vcmp.eq.s32.totalorder %v7101_v2, %v915_v20  ;;  %vm932_vm13 = vcmp.eq.s32.totalorder %v7101_v2, %v916_v21  ;;  %vm1084_vm14 = vcmp.eq.s32.totalorder %v7101_v2, %v1068_v22  ;;  %vm1085_vm15 = vcmp.eq.s32.totalorder %v7101_v2, %v1069_v23  ;;  %v854_v22 = vld [vmem:[%s9428_s13] sm:$0xff] }
  0x23   : > { %v7180_v31 = vsel %vm931_vm12, 1.0, %v9455_v30  ;;  %v7185_v32 = vsel %vm932_vm13, 1.0, %v9455_v30  ;;  %v7190_v33 = vsel %vm1084_vm14, 1.0, %v9455_v30  ;;  %v7195_v34 = vsel %vm1085_vm15, 1.0, %v9455_v30  ;;  %vm6096_vm0 = vmpackc.low %vm932_vm13, %vm931_vm12 }
  0x24   : > { %9547 = vst [vmem:[#allocation6_spill] sm:$0xff] %v7180_v31  ;;  %6095 = vmatpush.bf16.msk.msra.mxu0 %vm7156_vm10, %v9457_v19  ;;  %6914 = vmatpush.bf16.msk.msra.mxu3 %vm7156_vm10, %v9457_v19  ;;  %v7208_v37 = vadd.s32 48, %v7099_v1  ;;  %vm929_vm1 = vcmp.eq.s32.totalorder %v7101_v2, %v913_v25  ;;  %vm930_vm2 = vcmp.eq.s32.totalorder %v7101_v2, %v914_v26  ;;  %v7226_v38 = vadd.s32 56, %v7099_v1  ;;  %vm7235_vm3 = vmpackc.low %vm1085_vm15, %vm1084_vm14  ;;  %v856_v26 = vld [vmem:[%s9428_s13 + $0x10] sm:$0xff]  ;;  %v4416_v31 = vld [vmem:[%s9438_s23 + $0x58] sm:$0xff] }
  0x25   : > { %9548 = vst [vmem:[#allocation7_spill] sm:$0xff] %v7185_v32  ;;  %6922 = vmatpush.bf16.msk.msra.mxu2 %vm7169_vm11, %v9457_v19  ;;  %6111 = vmatpush.bf16.msk.msra.mxu1 %vm7169_vm11, %v9457_v19  ;;  %vm1082_vm4 = vcmp.eq.s32.totalorder %v7101_v2, %v1066_v27  ;;  %v7242_v41 = vadd.s32 32, %v7099_v1  ;;  %v7245_v42 = vadd.s32 40, %v7099_v1  ;;  %vm1083_vm5 = vcmp.eq.s32.totalorder %v7101_v2, %v1067_v28  ;;  %vm7264_vm6 = vmpackc.low %vm930_vm2, %vm929_vm1 }
  0x26   : > { %9549 = vst [vmem:[#allocation8_spill] sm:$0xff] %v7190_v33  ;;  %v911_v40 = vadd.s32 1, %v7208_v37  ;;  %v912_v43 = vadd.s32 1, %v7226_v38  ;;  %v1064_v44 = vadd.s32 4294967295, %v7208_v37  ;;  %v1065_v45 = vadd.s32 4294967295, %v7226_v38  ;;  %vm7276_vm7 = vmpackc.low %vm1083_vm5, %vm1082_vm4 }
  0x27   : > { %9550 = vst [vmem:[#allocation9_spill] sm:$0xff] %v7195_v34  ;;  %v7254_v46 = vadd.s32 16, %v7099_v1  ;;  %v9559_v47 = vsel %vm7264_vm6, 4294967295, %v9558_v47  ;;  %v7269_v48 = vadd.s32 24, %v7099_v1  ;;  %v9563_v49 = vsel %vm7276_vm7, 4294967295, %v9562_v49 }
  0x28   : > { %9551 = vst [vmem:[#allocation10_spill] sm:$0xff] %v7208_v37  ;;  %6097 = vmatpush.bf16.msk.msra.mxu0 %vm6096_vm0, %v9457_v19  ;;  %6915 = vmatpush.bf16.msk.msra.mxu3 %vm6096_vm0, %v9457_v19  ;;  %vm927_vm8 = vcmp.eq.s32.totalorder %v7101_v2, %v911_v40  ;;  %vm928_vm9 = vcmp.eq.s32.totalorder %v7101_v2, %v912_v43  ;;  %v7283_v50 = vadd.s32 1, %v7242_v41  ;;  %v7286_v51 = vadd.s32 1, %v7245_v42 }
  0x29   : > { %9552 = vst [vmem:[#allocation11_spill] sm:$0xff] %v7226_v38  ;;  %6923 = vmatpush.bf16.msk.msra.mxu2 %vm7235_vm3, %v9457_v19  ;;  %6113 = vmatpush.bf16.msk.msra.mxu1 %vm7235_vm3, %v9457_v19  ;;  %vm1080_vm10 = vcmp.eq.s32.totalorder %v7101_v2, %v1064_v44  ;;  %vm1081_vm11 = vcmp.eq.s32.totalorder %v7101_v2, %v1065_v45  ;;  %v7291_v52 = vadd.s32 4294967295, %v7242_v41  ;;  %v7294_v53 = vadd.s32 4294967295, %v7245_v42  ;;  %vm7313_vm12 = vmpackc.low %vm928_vm9, %vm927_vm8 }
  0x2a   : > { %9555 = vst [vmem:[#allocation12_spill] sm:$0xff] %v7242_v41  ;;  %v7308_v54 = vadd.s32 1, %v7254_v46  ;;  %v9572_v55 = vsel %vm7313_vm12, 4294967295, %v9571_v55  ;;  %v908_v56 = vadd.s32 1, %v7269_v48  ;;  %vm7321_vm13 = vmpackc.low %vm1081_vm11, %vm1080_vm10  ;;  %vm9454_vm14 = vcmp.eq.s32.totalorder %v7101_v2, %v7283_v50 }
  0x2b   : > { %9556 = vst [vmem:[#allocation13_spill] sm:$0xff] %v7245_v42  ;;  %v9575_v57 = vsel %vm7321_vm13, 4294967295, %v9574_v57  ;;  %vm9453_vm15 = vcmp.eq.s32.totalorder %v7101_v2, %v7286_v51  ;;  %v7330_v58 = vadd.s32 8, %v7099_v1  ;;  %vm9452_vm0 = vcmp.eq.s32.totalorder %v7101_v2, %v7291_v52 }
  0x2c   : > { %9557 = vst [vmem:[#allocation14_spill] sm:$0xff] %v7254_v46  ;;  %6099 = vmatpush.bf16.msk.msra.mxu0 %vm7264_vm6, %v9457_v19  ;;  %6916 = vmatpush.bf16.msk.msra.mxu3 %vm7264_vm6, %v9457_v19  ;;  %vm9451_vm1 = vcmp.eq.s32.totalorder %v7101_v2, %v7294_v53  ;;  %v7338_v60 = vadd.s32 4294967295, %v7254_v46  ;;  %v1061_v61 = vadd.s32 4294967295, %v7269_v48  ;;  %vm9478_vm2 = vcmp.eq.s32.totalorder %v7101_v2, %v7308_v54  ;;  %vm7361_vm3 = vmpackc.low %vm9453_vm15, %vm9454_vm14 }
  0x2d   : > { %9560 = vst [vmem:[#allocation15_spill] sm:$0xff] %v9559_v47  ;;  %6924 = vmatpush.bf16.msk.msra.mxu2 %vm7276_vm7, %v9457_v19  ;;  %6115 = vmatpush.bf16.msk.msra.mxu1 %vm7276_vm7, %v9457_v19  ;;  %v9579_v11 = vmov 0  ;;  %vm924_vm4 = vcmp.eq.s32.totalorder %v7101_v2, %v908_v56  ;;  %v7367_v12 = vadd.s32 1, %v7099_v1  ;;  %v7370_v13 = vadd.s32 4294967295, %v7099_v1  ;;  %vm7383_vm5 = vmpackc.low %vm9451_vm1, %vm9452_vm0  ;;  %v818_v56 = vld [vmem:[%s7299_s0 + $0x60] sm:$0xff]  ;;  %v4117_v47 = vld [vmem:[%s9437_s22 + $0x18] sm:$0xff] }
  0x2e   : > { %9561 = vst [vmem:[#allocation16_spill] sm:$0xff] %v7269_v48  ;;  %v9580_v11 = vsel %vm7361_vm3, 4294967295, %v9579_v11  ;;  %v870_v14 = vpack.c.bf16 %v806_v59, %v806_v59  ;;  %v9584_v17 = vmov 0  ;;  %v7388_v18 = vadd.s32 1, %v7330_v58  ;;  %vm7416_vm10 = vmpackc.low %vm924_vm4, %vm9478_vm2  ;;  %v819_v59 = vld [vmem:[%s7299_s0 + $0x68] sm:$0xff] }
  0x2f   : > { %9564 = vst [vmem:[#allocation17_spill] sm:$0xff] %v9563_v49  ;;  %v9585_v17 = vsel %vm7383_vm5, 4294967295, %v9584_v17  ;;  %v871_v20 = vpack.c.bf16 %v807_v62, %v807_v62  ;;  %v880_v21 = vpack.c.bf16 %v816_v63, %v816_v63  ;;  %vm9477_vm8 = vcmp.eq.s32.totalorder %v7101_v2, %v7338_v60 }
  0x30   : > { %9565 = vst [vmem:[#allocation18_spill] sm:$0xff] %v7283_v50  ;;  %6101 = vmatpush.bf16.msk.msra.mxu0 %vm7313_vm12, %v9457_v19  ;;  %6917 = vmatpush.bf16.msk.msra.mxu3 %vm7313_vm12, %v9457_v19  ;;  %vm1077_vm9 = vcmp.eq.s32.totalorder %v7101_v2, %v1061_v61  ;;  %v7397_v23 = vadd.s32 4294967295, %v7330_v58  ;;  %v881_v24 = vpack.c.bf16 %v817_v0, %v817_v0  ;;  %v6954_v25 = vmov 0   ;;  %v820_v0 = vld [vmem:[%s7299_s0 + $0x70] sm:$0xff] }
  0x31   : > { %9566 = vst [vmem:[#allocation19_spill] sm:$0xff] %v7286_v51  ;;  %6925 = vmatpush.bf16.msk.msra.mxu2 %vm7321_vm13, %v9457_v19  ;;  %6117 = vmatpush.bf16.msk.msra.mxu1 %vm7321_vm13, %v9457_v19  ;;  %v878_v27 = vpack.c.bf16 %v814_v15, %v814_v15  ;;  %v879_v28 = vpack.c.bf16 %v815_v16, %v815_v16  ;;  %vm7423_vm11 = vmpackc.low %vm1077_vm9, %vm9477_vm8  ;;  %v977_v40 = vunpack.c.l.b16 %v870_v14  ;;  %v978_v43 = vunpack.c.l.b16 %v871_v20  ;;  %v821_v14 = vld [vmem:[%s7299_s0 + $0x78] sm:$0xff]  ;;  %v855_v16 = vld [vmem:[%s9428_s13 + $0x8] sm:$0xff] }
  0x32   : > { %9567 = vst [vmem:[#allocation20_spill] sm:$0xff] %v7291_v52  ;;  %6941 = vset.pattern.permute.xlu0 %v6954_v25  ;;  %6942 = vset.pattern.permute.xlu1 %v6954_v25  ;;  %v9592_v39 = vsel %vm7423_vm11, 4294967295, %v9591_v39  ;;  %vm9482_vm1 = vcmp.eq.s32.totalorder %v7101_v2, %v7367_v12  ;;  %vm9480_vm0 = vcmp.eq.s32.totalorder %v7101_v2, %v7388_v18  ;;  %v987_v44 = vunpack.c.l.b16 %v880_v21 }
  0x33   : > { %9568 = vst [vmem:[#allocation21_spill] sm:$0xff] %v7294_v53  ;;  %1293 = vperm.xlu0 %6941, %v854_v22   ;;  %vm9481_vm4 = vcmp.eq.s32.totalorder %v7101_v2, %v7370_v13  ;;  %1303 = vperm.xlu1 %6942, %v856_v26   ;;  %vm9479_vm9 = vcmp.eq.s32.totalorder %v7101_v2, %v7397_v23  ;;  %v988_v45 = vunpack.c.l.b16 %v881_v24  ;;  %v985_v61 = vunpack.c.l.b16 %v878_v27  ;;  %vm7455_vm15 = vmpackc.low %vm9480_vm0, %vm9482_vm1  ;;  %v857_v27 = vld [vmem:[%s9428_s13 + $0x18] sm:$0xff] }
  0x34   : > { %9570 = vst [vmem:[#allocation22_spill] sm:$0xff] %v7308_v54  ;;  %6103 = vmatpush.bf16.msk.msra.mxu0 %vm7361_vm3, %v9457_v19  ;;  %6918 = vmatpush.bf16.msk.msra.mxu3 %vm7361_vm3, %v9457_v19  ;;  %v986_v62 = vunpack.c.l.b16 %v879_v28  ;;  %vm7467_vm14 = vmpackc.low %vm9479_vm9, %vm9481_vm4  ;;  %v882_v20 = vpack.c.bf16 %v818_v56, %v818_v56  ;;  %v883_v21 = vpack.c.bf16 %v819_v59, %v819_v59  ;;  %v808_v59 = vld [vmem:[%s7299_s0 + $0x10] sm:$0xff] }
  0x35   : > { %9573 = vst [vmem:[#allocation23_spill] sm:$0xff] %v9572_v55  ;;  %6926 = vmatpush.bf16.msk.msra.mxu2 %vm7383_vm5, %v9457_v19  ;;  %6119 = vmatpush.bf16.msk.msra.mxu1 %vm7383_vm5, %v9457_v19  ;;  %v884_v22 = vpack.c.bf16 %v820_v0, %v820_v0  ;;  %v885_v24 = vpack.c.bf16 %v821_v14, %v821_v14  ;;  %v860_v0 = vld [vmem:[%s9428_s13 + $0x30] sm:$0xff] }
  0x36   : > { %9576 = vst [vmem:[#allocation24_spill] sm:$0xff] %v9575_v57  ;;  %6943 = vset.pattern.permute.xlu2 %v6954_v25  ;;  %v7477_v25 = vpack.c.b16 %v978_v43, %v977_v40  ;;  %v998_v26 = vpack.c.b16 %v988_v45, %v987_v44  ;;  %v7488_v28 = vpack.c.b16 %v986_v62, %v985_v61  ;;  %v989_v43 = vunpack.c.l.b16 %v882_v20  ;;  %v809_v61 = vld [vmem:[%s7299_s0 + $0x18] sm:$0xff] }
  0x37   : > { %9577 = vst [vmem:[#allocation25_spill] sm:$0xff] %v7330_v58  ;;  %v991_v56 = vunpack.c.l.b16 %v884_v22  ;;  %v992_v40 = vunpack.c.l.b16 %v885_v24  ;;  %v990_v44 = vunpack.c.l.b16 %v883_v21  ;;  %v872_v14 = vpack.c.bf16 %v808_v59, %v808_v59  ;;  %v861_v20 = vld [vmem:[%s9428_s13 + $0x38] sm:$0xff]  ;;  %v812_v21 = vld [vmem:[%s7299_s0 + $0x30] sm:$0xff]  ;;  %v863_v59 = vld [vmem:[%s9428_s13 + $0x48] sm:$0xff] }
  0x38   : > { %9578 = vst [vmem:[#allocation26_spill] sm:$0xff] %v7338_v60  ;;  %6105 = vmatpush.bf16.msk.msra.mxu0 %vm7416_vm10, %v9457_v19  ;;  %6919 = vmatpush.bf16.msk.msra.mxu3 %vm7416_vm10, %v9457_v19  ;;  %v813_v22 = vld [vmem:[%s7299_s0 + $0x38] sm:$0xff]  ;;  %v876_v24 = vpack.c.bf16 %v812_v21, %v812_v21  ;;  %v858_v21 = vld [vmem:[%s9428_s13 + $0x20] sm:$0xff] }
  0x39   : > { %9581 = vst [vmem:[#allocation27_spill] sm:$0xff] %v9580_v11  ;;  %6927 = vmatpush.bf16.msk.msra.mxu2 %vm7423_vm11, %v9457_v19  ;;  %6121 = vmatpush.bf16.msk.msra.mxu1 %vm7423_vm11, %v9457_v19  ;;  %v7496_v45 = vpack.c.b16 %v992_v40, %v991_v56  ;;  %v999_v62 = vpack.c.b16 %v990_v44, %v989_v43  ;;  %v979_v56 = vunpack.c.l.b16 %v872_v14  ;;  %v810_v43 = vld [vmem:[%s7299_s0 + $0x20] sm:$0xff]  ;;  %v811_v44 = vld [vmem:[%s7299_s0 + $0x28] sm:$0xff]  ;;  %s9626_s0 = sld [smem:[#allocation41_spill]] }
  0x3a   : > { %9582 = vst [vmem:[#allocation28_spill] sm:$0xff] %v7367_v12  ;;  %v875_v35 = vpack.c.bf16 %v811_v44, %v811_v44  ;;  %v983_v36 = vunpack.c.l.b16 %v876_v24  ;;  %1313 = vperm.xlu2 %6943, %v858_v21   ;;  %v866_v24 = vld [vmem:[%s9428_s13 + $0x60] sm:$0xff] }
  0x3b   : > { %9583 = vst [vmem:[#allocation29_spill] sm:$0xff] %v7370_v13  ;;  %1298 = vperm.xlu0 %6941, %v855_v16   ;;  %1308 = vperm.xlu1 %6942, %v857_v27   ;;  %v873_v16 = vpack.c.bf16 %v809_v61, %v809_v61  ;;  %v877_v27 = vpack.c.bf16 %v813_v22, %v813_v22  ;;  %v2490_v44 = vld [vmem:[%s9430_s15] sm:$0xff] }
  0x3c   : > { %9586 = vst [vmem:[#allocation30_spill] sm:$0xff] %v9585_v17  ;;  %6107 = vmatpush.bf16.msk.msra.mxu0 %vm7455_vm15, %v9457_v19  ;;  %6920 = vmatpush.bf16.msk.msra.mxu3 %vm7455_vm15, %v9457_v19  ;;  %v874_v61 = vpack.c.bf16 %v810_v43, %v810_v43  ;;  %v865_v43 = vld [vmem:[%s9428_s13 + $0x58] sm:$0xff]  ;;  %v1886_v21 = vld [vmem:[%s9429_s14 + $0x20] sm:$0xff] }
  0x3d   : > { %9587 = vst [vmem:[#allocation31_spill] sm:$0xff] %v7388_v18  ;;  %6928 = vmatpush.bf16.msk.msra.mxu2 %vm7467_vm14, %v9457_v19  ;;  %6123 = vmatpush.bf16.msk.msra.mxu1 %vm7467_vm14, %v9457_v19  ;;  %v980_v40 = vunpack.c.l.b16 %v873_v16  ;;  %v984_v30 = vunpack.c.l.b16 %v877_v27  ;;  %v982_v16 = vunpack.c.l.b16 %v875_v35  ;;  %v867_v35 = vld [vmem:[%s9428_s13 + $0x68] sm:$0xff]  ;;  %v1885_v27 = vld [vmem:[%s9429_s14 + $0x18] sm:$0xff] }
  0x3e   : > { %9588 = vst [vmem:[#allocation32_spill] sm:$0xff] %v7397_v23  ;;  %v981_v14 = vunpack.c.l.b16 %v874_v61  ;;  %v868_v61 = vld [vmem:[%s9428_s13 + $0x70] sm:$0xff] }
  0x3f   : > { %9593 = vst [vmem:[#allocation33_spill] sm:$0xff] %v9592_v39  ;;  %1017 = vmatmul.bf16.vlgmr.msra.gmra.mxu0 %v7477_v25  ;;  %1042 = vmatmul.bf16.vlgmr.msra.gmra.mxu3 %v998_v26  ;;  %v994_v19 = vpack.c.b16 %v980_v40, %v979_v56  ;;  %v862_v56 = vld [vmem:[%s9428_s13 + $0x40] sm:$0xff]  ;;  %v1888_v40 = vld [vmem:[%s9429_s14 + $0x30] sm:$0xff] }
  0x40   : > { %1142 = vmatmul.bf16.vlgmr.msra.gmra.mxu2 %v7488_v28  ;;  %1548 = vmatpush.bf16.msrb.mxu3 %v7496_v45  ;;  %v995_v22 = vpack.c.b16 %v982_v16, %v981_v14  ;;  %v1883_v14 = vld [vmem:[%s9429_s14 + $0x8] sm:$0xff]  ;;  %v2803_v16 = vld [vmem:[%s9431_s16 + $0x10] sm:$0xff] }
  0x41   : > { %1122 = vmatmul.bf16.vlgmr.msra.gmra.mxu1 %v7477_v25 }
  0x43   : > { %1323 = vperm.xlu0 %6941, %v860_v0   ;;  %1328 = vperm.xlu1 %6942, %v861_v20   ;;  %v864_v0 = vld [vmem:[%s9428_s13 + $0x50] sm:$0xff]  ;;  %v996_v20 = vpack.c.b16 %v984_v30, %v983_v36  ;;  %v869_v30 = vld [vmem:[%s9428_s13 + $0x78] sm:$0xff]  ;;  %v1882_v36 = vld [vmem:[%s9429_s14] sm:$0xff] }
  0x44   : > { %1549 = vmatpush.bf16.msrb.mxu3 %v999_v62 }
  0x48   : > { %1550 = vmatpush.bf16.msrb.mxu3 %v998_v26 }
  0x4b   : > { %1338 = vperm.xlu0 %6941, %v863_v59   ;;  %1343 = vperm.xlu1 %6942, %v864_v0   ;;  %v2491_v59 = vld [vmem:[%s9430_s15 + $0x8] sm:$0xff]  ;;  %v2801_v0 = vld [vmem:[%s9431_s16] sm:$0xff] }
  0x4c   : > { %1551 = vmatpush.bf16.msrb.mxu3 %v7488_v28 }
  0x4f   : > { %1022 = vmatmul.bf16.gmra.mxu0 %v994_v19  ;;  %1047 = vmatmul.bf16.gmra.mxu3 %v999_v62 }
  0x50   : > { %1147 = vmatmul.bf16.gmra.mxu2 %v998_v26  ;;  %1552 = vmatpush.bf16.msrb.mxu3 %v996_v20  ;;  %v9598_v26 = vmov 1.0|1.0  }
  0x51   : > { %1127 = vmatmul.bf16.gmra.mxu1 %v994_v19 }
  0x53   : > { %1353 = vperm.xlu0 %6941, %v866_v24   ;;  %1358 = vperm.xlu1 %6942, %v867_v35   ;;  %v1889_v24 = vld [vmem:[%s9429_s14 + $0x38] sm:$0xff]  ;;  %v3237_v35 = vld [vmem:[%s9433_s18] sm:$0xff] }
  0x54   : > { %1553 = vmatpush.bf16.msrb.mxu3 %v995_v22 }
  0x58   : > { %1554 = vmatpush.bf16.msrb.mxu3 %v994_v19  ;;  %v859_v19 = vld [vmem:[%s9428_s13 + $0x28] sm:$0xff] }
  0x59   : > { %1318 = vperm.xlu2 %6943, %v859_v19   ;;  %v2492_v19 = vld [vmem:[%s9430_s15 + $0x10] sm:$0xff] }
  0x5b   : > { %1368 = vperm.xlu0 %6941, %v869_v30   ;;  %2207 = vperm.xlu1 %6942, %v1882_v36   ;;  %v3238_v30 = vld [vmem:[%s9433_s18 + $0x8] sm:$0xff] }
  0x5c   : > { %1555 = vmatpush.bf16.msrb.mxu3 %v7477_v25  ;;  %v1884_v25 = vld [vmem:[%s9429_s14 + $0x10] sm:$0xff]  ;;  %v3417_v36 = vld [vmem:[%s9434_s19 + $0x8] sm:$0xff] }
  0x5f   : > { %1027 = vmatmul.bf16.gmra.mxu0 %v995_v22  ;;  %1052 = vmatmul.bf16.gmra.mxu3 %v7496_v45 }
  0x60   : > { %6253 = vmatpush.bf16.msk.msra.mxu3 %vm7313_vm12, %v9598_v26  ;;  %1152 = vmatmul.bf16.gmra.mxu2 %v999_v62  ;;  %v1887_v62 = vld [vmem:[%s9429_s14 + $0x28] sm:$0xff] }
  0x61   : > { %1132 = vmatmul.bf16.gmra.mxu1 %v995_v22  ;;  %1333 = vperm.xlu2 %6943, %v862_v56   ;;  %v3014_v22 = vld [vmem:[%s9432_s17 + $0x10] sm:$0xff]  ;;  %v2802_v56 = vld [vmem:[%s9431_s16 + $0x8] sm:$0xff] }
  0x63   : > { %2217 = vperm.xlu0 %6941, %v1884_v25   ;;  %2222 = vperm.xlu1 %6942, %v1885_v27   ;;  %v3418_v25 = vld [vmem:[%s9434_s19 + $0x10] sm:$0xff]  ;;  %v3618_v27 = vld [vmem:[%s9435_s20] sm:$0xff] }
  0x64   : > { %6255 = vmatpush.bf16.msk.msra.mxu3 %vm7361_vm3, %v9598_v26 }
  0x68   : > { %6257 = vmatpush.bf16.msk.msra.mxu3 %vm7416_vm10, %v9598_v26 }
  0x69   : > { %1348 = vperm.xlu2 %6943, %v865_v43   ;;  %v3012_v43 = vld [vmem:[%s9432_s17] sm:$0xff] }
  0x6b   : > { %2232 = vperm.xlu0 %6941, %v1887_v62   ;;  %2237 = vperm.xlu1 %6942, %v1888_v40   ;;  %v3619_v62 = vld [vmem:[%s9435_s20 + $0x8] sm:$0xff]  ;;  %v3621_v40 = vld [vmem:[%s9435_s20 + $0x18] sm:$0xff] }
  0x6c   : > { %6259 = vmatpush.bf16.msk.msra.mxu3 %vm7455_vm15, %v9598_v26 }
  0x6f   : > { %1032 = vmatmul.bf16.gmra.mxu0 %v996_v20 }
  0x70   : > { %1157 = vmatmul.bf16.gmra.mxu2 %v7496_v45  ;;  %v2493_v45 = vld [vmem:[%s9430_s15 + $0x18] sm:$0xff] }
  0x71   : > { %1137 = vmatmul.bf16.gmra.mxu1 %v996_v20  ;;  %1363 = vperm.xlu2 %6943, %v868_v61   ;;  %v2804_v20 = vld [vmem:[%s9431_s16 + $0x18] sm:$0xff] }
  0x72   : > { %v3015_v61 = vld [vmem:[%s9432_s17 + $0x18] sm:$0xff] }
  0x73   : > { %2663 = vperm.xlu0 %6941, %v2490_v44   ;;  %2668 = vperm.xlu1 %6942, %v2491_v59   ;;  %v3857_v44 = vld [vmem:[%s9436_s21] sm:$0xff]  ;;  %v3859_v59 = vld [vmem:[%s9436_s21 + $0x10] sm:$0xff] }
  0x79   : > { %2212 = vperm.xlu2 %6943, %v1883_v14  }
  0x7b   : > { %2678 = vperm.xlu0 %6941, %v2493_v45   ;;  %2900 = vperm.xlu1 %6942, %v2801_v0   ;;  %v3860_v45 = vld [vmem:[%s9436_s21 + $0x18] sm:$0xff]  ;;  %v4115_v0 = vld [vmem:[%s9437_s22 + $0x8] sm:$0xff] }
  0x7f   : > { %1037 = vmatmul.bf16.gmra.mxu0 %v7488_v28  ;;  %v3013_v28 = vld [vmem:[%s9432_s17 + $0x8] sm:$0xff] }
  0x81   : > { %2227 = vperm.xlu2 %6943, %v1886_v21   ;;  %v4116_v21 = vld [vmem:[%s9437_s22 + $0x10] sm:$0xff] }
  0x83   : > { %2910 = vperm.xlu0 %6941, %v2803_v16   ;;  %2915 = vperm.xlu1 %6942, %v2804_v20   ;;  %v3416_v20 = vld [vmem:[%s9434_s19] sm:$0xff] }
  0x89   : > { %2242 = vperm.xlu2 %6943, %v1889_v24  }
  0x8b   : > { %3125 = vperm.xlu0 %6941, %v3013_v28   ;;  %3130 = vperm.xlu1 %6942, %v3014_v22   ;;  %v4118_v22 = vld [vmem:[%s9437_s22 + $0x20] sm:$0xff] }
  0x91   : > { %2673 = vperm.xlu2 %6943, %v2492_v19   ;;  %v4119_v19 = vld [vmem:[%s9437_s22 + $0x28] sm:$0xff] }
  0x93   : > { %3339 = vperm.xlu0 %6941, %v3237_v35   ;;  %3344 = vperm.xlu1 %6942, %v3238_v30  }
  0x99   : > { %2905 = vperm.xlu2 %6943, %v2802_v56  }
  0x9b   : > { %3487 = vperm.xlu0 %6941, %v3417_v36   ;;  %3492 = vperm.xlu1 %6942, %v3418_v25   ;;  %v3419_v36 = vld [vmem:[%s9434_s19 + $0x18] sm:$0xff] }
  0xa1   : > { %3120 = vperm.xlu2 %6943, %v3012_v43   ;;  %v4405_v43 = vld [vmem:[%s9438_s23] sm:$0xff] }
  0xa3   : > { %3724 = vperm.xlu0 %6941, %v3618_v27   ;;  %3729 = vperm.xlu1 %6942, %v3619_v62   ;;  %v4121_v27 = vld [vmem:[%s9437_s22 + $0x38] sm:$0xff] }
  0xa9   : > { %3135 = vperm.xlu2 %6943, %v3015_v61   ;;  %v4407_v61 = vld [vmem:[%s9438_s23 + $0x10] sm:$0xff] }
  0xab   : > { %3739 = vperm.xlu0 %6941, %v3621_v40   ;;  %3965 = vperm.xlu1 %6942, %v3857_v44   ;;  %v3620_v40 = vld [vmem:[%s9435_s20 + $0x10] sm:$0xff] }
  0xb1   : > { %3482 = vperm.xlu2 %6943, %v3416_v20   ;;  %v3858_v20 = vld [vmem:[%s9436_s21 + $0x8] sm:$0xff] }
  0xb3   : > { %3975 = vperm.xlu0 %6941, %v3859_v59   ;;  %3980 = vperm.xlu1 %6942, %v3860_v45  }
  0xb9   : > { %3497 = vperm.xlu2 %6943, %v3419_v36   ;;  %v4410_v36 = vld [vmem:[%s9438_s23 + $0x28] sm:$0xff] }
  0xbb   : > { %4232 = vperm.xlu0 %6941, %v4115_v0   ;;  %4237 = vperm.xlu1 %6942, %v4116_v21   ;;  %v4408_v21 = vld [vmem:[%s9438_s23 + $0x18] sm:$0xff] }
  0xbc   : > { %v7654_v14 = vpop.f32.mrf.mxu0 }
  0xbe   : > { %v7656_v16 = vpop.f32.mrf.mxu1 }
  0xc1   : > { %3734 = vperm.xlu2 %6943, %v3620_v40  }
  0xc2   : > { %v7664_v28 = vpop.f32.mrf.mxu3 }
  0xc3   : > { %v7669_v24 = vpop.f32.mrf.mxu2  ;;  %4247 = vperm.xlu0 %6941, %v4118_v22   ;;  %4252 = vperm.xlu1 %6942, %v4119_v19   ;;  %v1173_v51 = vpack.c.bf16 %v7664_v28, %v7664_v28 }
  0xc4   : > { %v7671_v35 = vpop.f32.mrf.mxu0 }
  0xc5   : > { %v1221_v28 = vunpack.c.l.b16 %v1173_v51  ;;  %v6818_v51 = vld [vmem:[%s9599_s9 + $0x4] sm:$0xf] }
  0xc6   : > { %v7673_v30 = vpop.f32.mrf.mxu1 }
  0xc9   : > { %3970 = vperm.xlu2 %6943, %v3858_v20  }
  0xca   : > { %v7681_v25 = vpop.f32.mrf.mxu3 }
  0xcb   : > { %v7686_v56 = vpop.f32.mrf.mxu2  ;;  %4262 = vperm.xlu0 %6941, %v4121_v27   ;;  %4597 = vperm.xlu1 %6942, %v4405_v43   ;;  %v4114_v43 = vld [vmem:[%s9437_s22] sm:$0xff] }
  0xcc   : > { %v7688_v62 = vpop.f32.mrf.mxu0 }
  0xce   : > { %v7696_v44 = vpop.f32.mrf.mxu1 }
  0xd1   : > { %4227 = vperm.xlu2 %6943, %v4114_v43   ;;  %v4414_v43 = vld [vmem:[%s9438_s23 + $0x48] sm:$0xff] }
  0xd2   : > { %v1048_v59 = vpop.f32.mrf.mxu3 }
  0xd3   : > { %v7701_v45 = vpop.f32.mrf.mxu2  ;;  %4607 = vperm.xlu0 %6941, %v4407_v61   ;;  %4612 = vperm.xlu1 %6942, %v4408_v21   ;;  %v4411_v61 = vld [vmem:[%s9438_s23 + $0x30] sm:$0xff]  ;;  %v4413_v21 = vld [vmem:[%s9438_s23 + $0x40] sm:$0xff]  ;;  %v1175_v32 = vpack.c.bf16 %v1048_v59, %v1048_v59 }
  0xd4   : > { %v7703_v0 = vpop.f32.mrf.mxu0 }
  0xd5   : > { %v1223_v59 = vunpack.c.l.b16 %v1175_v32  ;;  %v4406_v32 = vld [vmem:[%s9438_s23 + $0x8] sm:$0xff] }
  0xd6   : > { %v7716_v27 = vpop.f32.mrf.mxu1 }
  0xd9   : > { %4242 = vperm.xlu2 %6943, %v4117_v47   ;;  %v4120_v47 = vld [vmem:[%s9437_s22 + $0x30] sm:$0xff] }
  0xda   : > { %v1050_v22 = vpop.f32.mrf.mxu3 }
  0xdb   : > { %v7714_v19 = vpop.f32.mrf.mxu2  ;;  %4622 = vperm.xlu0 %6941, %v4410_v36   ;;  %4627 = vperm.xlu1 %6942, %v4411_v61   ;;  %v1176_v33 = vpack.c.bf16 %v1050_v22, %v1050_v22 }
  0xdc   : > { %v7718_v40 = vpop.f32.mrf.mxu0 }
  0xdd   : > { %v1224_v22 = vunpack.c.l.b16 %v1176_v33  ;;  %v4420_v33 = vld [vmem:[%s9438_s23 + $0x78] sm:$0xff] }
  0xde   : > { %v7733_v36 = vpop.f32.mrf.mxu1 }
  0xdf   : > { %v1233_v54 = vpack.c.b16 %v1224_v22, %v1223_v59 }
  0xe1   : > { %4257 = vperm.xlu2 %6943, %v4120_v47  }
  0xe2   : > { %v1053_v20 = vpop.f32.mrf.mxu3 }
  0xe3   : > { %v7729_v11 = vpop.f32.mrf.mxu2  ;;  %4637 = vperm.xlu0 %6941, %v4413_v21   ;;  %v1177_v49 = vpack.c.bf16 %v1053_v20, %v1053_v20  ;;  %4642 = vperm.xlu1 %6942, %v4414_v43   ;;  %v4417_v43 = vld [vmem:[%s9438_s23 + $0x60] sm:$0xff] }
  0xe4   : > { %v7731_v55 = vpop.f32.mrf.mxu0  ;;  %v1191_v59 = vpack.c.bf16 %v7729_v11, %v7729_v11  ;;  %v1190_v11 = vpack.c.bf16 %v7714_v19, %v7714_v19  ;;  %v6140_v19 = vld [vmem:[%s9599_s9 + $0x24] sm:$0xf0] }
  0xe5   : > { %v1225_v34 = vunpack.c.l.b16 %v1177_v49  ;;  %v1174_v49 = vpack.c.bf16 %v7681_v25, %v7681_v25 }
  0xe6   : > { %v7756_v50 = vpop.f32.mrf.mxu1 }
  0xe9   : > { %4602 = vperm.xlu2 %6943, %v4406_v32   ;;  %v5023_v32 = vld [vmem:[%s9439_s24 + $0x10] sm:$0xff] }
  0xea   : > { %v1055_v61 = vpop.f32.mrf.mxu3 }
  0xeb   : > { %v1178_v21 = vpack.c.bf16 %v1055_v61, %v1055_v61  ;;  %v1155_v20 = vpop.f32.mrf.mxu2  ;;  %4652 = vperm.xlu0 %6941, %v4416_v31   ;;  %4657 = vperm.xlu1 %6942, %v4417_v43   ;;  %v4419_v31 = vld [vmem:[%s9438_s23 + $0x70] sm:$0xff]  ;;  %v5022_v43 = vld [vmem:[%s9439_s24 + $0x8] sm:$0xff] }
  0xec   : > { %v7744_v53 = vpop.f32.mrf.mxu0  ;;  %v1192_v22 = vpack.c.bf16 %v1155_v20, %v1155_v20  ;;  %v1271_v20 = vunpack.c.l.b16 %v1191_v59 }
  0xed   : > { %v1226_v52 = vunpack.c.l.b16 %v1178_v21  ;;  %v1222_v21 = vunpack.c.l.b16 %v1174_v49 }
  0xee   : > { %v1138_v47 = vpop.f32.mrf.mxu1 }
  0xef   : > { %v1234_v61 = vpack.c.b16 %v1226_v52, %v1225_v34  ;;  %v1232_v34 = vpack.c.b16 %v1222_v21, %v1221_v28  ;;  %v6128_v52 = vld [vmem:[%s9599_s9 + $0xc] sm:$0xf0]  ;;  %v4409_v21 = vld [vmem:[%s9438_s23 + $0x20] sm:$0xff] }
  0xf1   : > { %1499 = vmatpush.bf16.msrb.mxu2 %v1234_v61  ;;  %4617 = vperm.xlu2 %6943, %v4409_v21   ;;  %v5026_v21 = vld [vmem:[%s9439_s24 + $0x28] sm:$0xff] }
  0xf3   : > { %v1158_v60 = vpop.f32.mrf.mxu2  ;;  %4667 = vperm.xlu0 %6941, %v4419_v31   ;;  %4672 = vperm.xlu1 %6942, %v4420_v33   ;;  %v1189_v33 = vpack.c.bf16 %v7701_v45, %v7701_v45  ;;  %v6821_v45 = vld [vmem:[%s9599_s9 + $0x1c] sm:$0xf] }
  0xf4   : > { %v7761_v23 = vpop.f32.mrf.mxu0  ;;  %v1193_v25 = vpack.c.bf16 %v1158_v60, %v1158_v60 }
  0xf5   : > { %1500 = vmatpush.bf16.msrb.mxu2 %v1233_v54  ;;  %v6131_v54 = vor.u32 %v6818_v51, %v6128_v52  ;;  %v5025_v52 = vld [vmem:[%s9439_s24 + $0x20] sm:$0xff]  ;;  %v1269_v59 = vunpack.c.l.b16 %v1189_v33  ;;  %v6143_v33 = vor.u32 %v6821_v45, %v6140_v19  ;;  %v1166_v19 = vpack.c.bf16 %v7703_v0, %v7703_v0 }
  0xf6   : > { %v1273_v61 = vunpack.c.l.b16 %v1193_v25  ;;  %v1187_v25 = vpack.c.bf16 %v7669_v24, %v7669_v24  ;;  %v1170_v24 = vpack.c.bf16 %v7761_v23, %v7761_v23  ;;  %v1181_v0 = vpack.c.bf16 %v7696_v44, %v7696_v44 }
  0xf7   : > { %1556 = vmatmul.bf16.vlgmr.msrb.gmra.mxu3 %v6131_v54  ;;  %v1163_v44 = vpack.c.bf16 %v7654_v14, %v7654_v14 }
  0xf8   : > { %v1267_v23 = vunpack.c.l.b16 %v1187_v25  ;;  %v1218_v18 = vunpack.c.l.b16 %v1170_v24  ;;  %v1164_v24 = vpack.c.bf16 %v7671_v35, %v7671_v35  ;;  %v6152_v35 = vld [vmem:[%s9599_s9 + $0x3c] sm:$0xf0] }
  0xf9   : > { %1501 = vmatpush.bf16.msrb.mxu2 %v1232_v34  ;;  %v1272_v34 = vunpack.c.l.b16 %v1192_v22  ;;  %v1270_v22 = vunpack.c.l.b16 %v1190_v11  ;;  %v1169_v11 = vpack.c.bf16 %v7744_v53, %v7744_v53  ;;  %v1167_v53 = vpack.c.bf16 %v7718_v40, %v7718_v40  ;;  %v4415_v40 = vld [vmem:[%s9438_s23 + $0x50] sm:$0xff] }
  0xfa   : > { %v1212_v14 = vunpack.c.l.b16 %v1164_v24  ;;  %v6146_v24 = vld [vmem:[%s9599_s9 + $0x20] sm:$0xf] }
  0xfb   : > { %v1160_v49 = vpop.f32.mrf.mxu2  ;;  %5365 = vperm.xlu0 %6941, %v5022_v43   ;;  %5370 = vperm.xlu1 %6942, %v5023_v32   ;;  %v1140_v43 = vpop.f32.mrf.mxu1  ;;  %v1185_v32 = vpack.c.bf16 %v1138_v47, %v1138_v47  ;;  %v1217_v25 = vunpack.c.l.b16 %v1169_v11 }
  0xfc   : > { %v1194_v31 = vpack.c.bf16 %v1160_v49, %v1160_v49  ;;  %v1038_v28 = vpop.f32.mrf.mxu0  ;;  %v1188_v49 = vpack.c.bf16 %v7686_v56, %v7686_v56  ;;  %v1186_v56 = vpack.c.bf16 %v1140_v43, %v1140_v43  ;;  %v5028_v43 = vld [vmem:[%s9439_s24 + $0x38] sm:$0xff] }
  0xfd   : > { %v1171_v54 = vpack.c.bf16 %v1038_v28, %v1038_v28  ;;  %v1265_v12 = vunpack.c.l.b16 %v1185_v32  ;;  %v6824_v32 = vld [vmem:[%s9599_s9 + $0x34] sm:$0xf] }
  0xfe   : > { %v1274_v60 = vunpack.c.l.b16 %v1194_v31  ;;  %v1281_v31 = vpack.c.b16 %v1272_v34, %v1271_v20  ;;  %v1266_v47 = vunpack.c.l.b16 %v1186_v56  ;;  %v1180_v56 = vpack.c.bf16 %v7673_v30, %v7673_v30  ;;  %v6126_v30 = vld [vmem:[%s9599_s9] sm:$0xf] }
  0xff   : > { %v1219_v20 = vunpack.c.l.b16 %v1171_v54  ;;  %v1183_v54 = vpack.c.bf16 %v7733_v36, %v7733_v36  ;;  %v1215_v36 = vunpack.c.l.b16 %v1167_v53 }
 0x100   : > { %v1282_v51 = vpack.c.b16 %v1274_v60, %v1273_v61  ;;  %v4412_v60 = vld [vmem:[%s9438_s23 + $0x38] sm:$0xff] }
 0x101   : > { %4632 = vperm.xlu2 %6943, %v4412_v60  }
 0x102   : > { %1597 = vmatpush.bf16.msrb.mxu0 %v1282_v51  ;;  %v1268_v51 = vunpack.c.l.b16 %v1188_v49 }
 0x103   : > { %5380 = vperm.xlu0 %6941, %v5025_v52   ;;  %v1280_v52 = vpack.c.b16 %v1270_v22, %v1269_v59  ;;  %5385 = vperm.xlu1 %6942, %v5026_v21   ;;  %v1230_v59 = vpack.c.b16 %v1218_v18, %v1217_v25  ;;  %v1278_v22 = vpack.c.b16 %v1266_v47, %v1265_v12  ;;  %v1263_v12 = vunpack.c.l.b16 %v1183_v54 }
 0x104   : > { %v1040_v61 = vpop.f32.mrf.mxu0  ;;  %v1279_v45 = vpack.c.b16 %v1268_v51, %v1267_v23  ;;  %v1182_v18 = vpack.c.bf16 %v7716_v27, %v7716_v27  ;;  %v1179_v27 = vpack.c.bf16 %v7656_v16, %v7656_v16  ;;  %v4418_v16 = vld [vmem:[%s9438_s23 + $0x68] sm:$0xff]  ;;  %v5032_v23 = vld [vmem:[%s9439_s24 + $0x58] sm:$0xff]  ;;  %v6155_v51 = vor.u32 %v6824_v32, %v6152_v35  ;;  %v6150_v35 = vld [vmem:[%s9599_s9 + $0x30] sm:$0xf] }
 0x105   : > { %v1172_v28 = vpack.c.bf16 %v1040_v61, %v1040_v61  ;;  %v1168_v61 = vpack.c.bf16 %v7731_v55, %v7731_v55  ;;  %v1184_v55 = vpack.c.bf16 %v7756_v50, %v7756_v50  ;;  %v1165_v50 = vpack.c.bf16 %v7688_v62, %v7688_v62  ;;  %v5031_v62 = vld [vmem:[%s9439_s24 + $0x50] sm:$0xff] }
 0x106   : > { %1598 = vmatpush.bf16.msrb.mxu0 %v1281_v31  ;;  %v1262_v11 = vunpack.c.l.b16 %v1182_v18  ;;  %v1259_v47 = vunpack.c.l.b16 %v1179_v27  ;;  %v6138_v18 = vld [vmem:[%s9599_s9 + $0x18] sm:$0xf]  ;;  %v5030_v27 = vld [vmem:[%s9439_s24 + $0x48] sm:$0xff] }
 0x107   : > { %v1220_v34 = vunpack.c.l.b16 %v1172_v28  ;;  %1561 = vmatmul.bf16.gmra.mxu3 %v6143_v33  ;;  %v1216_v49 = vunpack.c.l.b16 %v1168_v61  ;;  %v1264_v31 = vunpack.c.l.b16 %v1184_v55  ;;  %v1214_v28 = vunpack.c.l.b16 %v1166_v19  ;;  %v6819_v61 = vld [vmem:[%s9599_s9 + $0x8] sm:$0xf0]  ;;  %v6134_v55 = vld [vmem:[%s9599_s9 + $0x8] sm:$0xf] }
 0x108   : > { %v1213_v21 = vunpack.c.l.b16 %v1165_v50  ;;  %v1261_v33 = vunpack.c.l.b16 %v1181_v0  ;;  %v6127_v54 = vor.u32 %v6819_v61, %v6126_v30  ;;  %v5034_v19 = vld [vmem:[%s9439_s24 + $0x68] sm:$0xff]  ;;  %v6164_v50 = vld [vmem:[%s9599_s9 + $0x54] sm:$0xf0]  ;;  %v6828_v61 = vld [vmem:[%s9599_s9 + $0x50] sm:$0xf0] }
 0x109   : > { %v1231_v13 = vpack.c.b16 %v1220_v34, %v1219_v20  ;;  %4647 = vperm.xlu2 %6943, %v4415_v40   ;;  %v1229_v60 = vpack.c.b16 %v1216_v49, %v1215_v36  ;;  %v1277_v20 = vpack.c.b16 %v1264_v31, %v1263_v12  ;;  %v5035_v40 = vld [vmem:[%s9439_s24 + $0x70] sm:$0xff]  ;;  %v5024_v36 = vld [vmem:[%s9439_s24 + $0x18] sm:$0xff]  ;;  %v6822_v12 = vld [vmem:[%s9599_s9 + $0x20] sm:$0xf0] }
 0x10a   : > { %1599 = vmatpush.bf16.msrb.mxu0 %v1280_v52  ;;  %v1228_v34 = vpack.c.b16 %v1214_v28, %v1213_v21  ;;  %v1211_v52 = vunpack.c.l.b16 %v1163_v44  ;;  %v1276_v53 = vpack.c.b16 %v1262_v11, %v1261_v33  ;;  %v6139_v31 = vor.u32 %v6822_v12, %v6138_v18  ;;  %v6823_v28 = vld [vmem:[%s9599_s9 + $0x28] sm:$0xf0]  ;;  %v6830_v44 = vld [vmem:[%s9599_s9 + $0x64] sm:$0xf]  ;;  %v6176_v21 = vld [vmem:[%s9599_s9 + $0x6c] sm:$0xf0] }
 0x10b   : > { %1502 = vmatpush.bf16.msrb.mxu2 %v1231_v13  ;;  %5395 = vperm.xlu0 %6941, %v5028_v43   ;;  %v5029_v13 = vld [vmem:[%s9439_s24 + $0x40] sm:$0xff]  ;;  %v1260_v43 = vunpack.c.l.b16 %v1180_v56  ;;  %v6179_v32 = vor.u32 %v6830_v44, %v6176_v21  ;;  %v6825_v56 = vld [vmem:[%s9599_s9 + $0x38] sm:$0xf0]  ;;  %v6158_v11 = vld [vmem:[%s9599_s9 + $0x38] sm:$0xf] }
 0x10c   : > { %5400 = vperm.xlu1 %6942, %v5029_v13   ;;  %v1227_v25 = vpack.c.b16 %v1212_v14, %v1211_v52  ;;  %v6827_v13 = vld [vmem:[%s9599_s9 + $0x4c] sm:$0xf]  ;;  %v6151_v33 = vor.u32 %v6825_v56, %v6150_v35  ;;  %v6162_v30 = vld [vmem:[%s9599_s9 + $0x48] sm:$0xf]  ;;  %v6186_v18 = vld [vmem:[%s9599_s9 + $0x78] sm:$0xf] }
 0x10d   : > { %v1275_v49 = vpack.c.b16 %v1260_v43, %v1259_v47  ;;  %v6167_v0 = vor.u32 %v6827_v13, %v6164_v50  ;;  %v6163_v47 = vor.u32 %v6828_v61, %v6162_v30  ;;  %v6170_v43 = vld [vmem:[%s9599_s9 + $0x50] sm:$0xf]  ;;  %v6839_v50 = vld [vmem:[%s9599_s9 + $0xac] sm:$0xf]  ;;  %v6834_v12 = vld [vmem:[%s9599_s9 + $0x80] sm:$0xf0] }
 0x10e   : > { %1600 = vmatpush.bf16.msrb.mxu0 %v1279_v45  ;;  %v6820_v45 = vld [vmem:[%s9599_s9 + $0x10] sm:$0xf0]  ;;  %v6198_v21 = vld [vmem:[%s9599_s9 + $0x90] sm:$0xf]  ;;  %v6306_v35 = vld [vmem:[%s9616_s10 + $0x20] sm:$0xf] }
 0x10f   : > { %1503 = vmatpush.bf16.msrb.mxu2 %v1230_v59  ;;  %v6135_v59 = vor.u32 %v6820_v45, %v6134_v55  ;;  %v6200_v55 = vld [vmem:[%s9599_s9 + $0x9c] sm:$0xf0]  ;;  %v6382_v30 = vld [vmem:[%s9617_s8 + $0x10] sm:$0xf] }
 0x111   : > { %4662 = vperm.xlu2 %6943, %v4418_v16   ;;  %v6833_v16 = vld [vmem:[%s9599_s9 + $0x7c] sm:$0xf] }
 0x112   : > { %1601 = vmatpush.bf16.msrb.mxu0 %v1278_v22  ;;  %v5021_v22 = vld [vmem:[%s9439_s24] sm:$0xff] }
 0x113   : > { %1504 = vmatpush.bf16.msrb.mxu2 %v1229_v60  ;;  %5410 = vperm.xlu0 %6941, %v5031_v62   ;;  %v6147_v60 = vor.u32 %v6823_v28, %v6146_v24  ;;  %v5027_v62 = vld [vmem:[%s9439_s24 + $0x30] sm:$0xff]  ;;  %v6194_v24 = vld [vmem:[%s9599_s9 + $0x80] sm:$0xf]  ;;  %v6835_v28 = vld [vmem:[%s9599_s9 + $0x88] sm:$0xf0] }
 0x114   : > { %5415 = vperm.xlu1 %6942, %v5032_v23   ;;  %v6188_v23 = vld [vmem:[%s9599_s9 + $0x84] sm:$0xf0] }
 0x115   : > { %v6191_v52 = vor.u32 %v6833_v16, %v6188_v23  ;;  %v6841_v16 = vld [vmem:[%s9599_s9 + $0xb8] sm:$0xf0] }
 0x116   : > { %1602 = vmatpush.bf16.msrb.mxu0 %v1277_v20  ;;  %v6826_v20 = vld [vmem:[%s9599_s9 + $0x40] sm:$0xf0] }
 0x117   : > { %1505 = vmatpush.bf16.msrb.mxu2 %v1228_v34  ;;  %1566 = vmatmul.bf16.gmra.mxu3 %v6155_v51  ;;  %v6159_v14 = vor.u32 %v6826_v20, %v6158_v11  ;;  %v5033_v34 = vld [vmem:[%s9439_s24 + $0x60] sm:$0xff]  ;;  %v5036_v51 = vld [vmem:[%s9439_s24 + $0x78] sm:$0x1f]  ;;  %v6840_v11 = vld [vmem:[%s9599_s9 + $0xb0] sm:$0xf0] }
 0x118   : > { %v6846_v20 = vld [vmem:[%s9616_s10 + $0x20] sm:$0xf0] }
 0x119   : > { %5360 = vperm.xlu2 %6943, %v5021_v22   ;;  %v6182_v22 = vld [vmem:[%s9599_s9 + $0x68] sm:$0xf] }
 0x11a   : > { %1603 = vmatpush.bf16.msrb.mxu0 %v1276_v53  ;;  %v6829_v53 = vld [vmem:[%s9599_s9 + $0x58] sm:$0xf0] }
 0x11b   : > { %1506 = vmatpush.bf16.msrb.mxu2 %v1227_v25  ;;  %5425 = vperm.xlu0 %6941, %v5034_v19   ;;  %v6171_v25 = vor.u32 %v6829_v53, %v6170_v43  ;;  %v6174_v19 = vld [vmem:[%s9599_s9 + $0x60] sm:$0xf]  ;;  %v6857_v43 = vld [vmem:[%s9617_s8 + $0x14] sm:$0xf0] }
 0x11c   : > { %5430 = vperm.xlu1 %6942, %v5035_v40   ;;  %v6832_v40 = vld [vmem:[%s9599_s9 + $0x70] sm:$0xf0] }
 0x11d   : > { %v6183_v13 = vor.u32 %v6832_v40, %v6182_v22 }
 0x11e   : > { %1604 = vmatpush.bf16.msrb.mxu0 %v1275_v49  ;;  %1507 = vmatmul.bf16.vlgmr.msrb.gmra.mxu2 %v6127_v54  ;;  %v6836_v54 = vld [vmem:[%s9599_s9 + $0x94] sm:$0xf]  ;;  %v6831_v49 = vld [vmem:[%s9599_s9 + $0x68] sm:$0xf0] }
 0x11f   : > { %v6203_v45 = vor.u32 %v6836_v54, %v6200_v55  ;;  %v1294_v54 = vpop.permute.xlu0 %1293 }
 0x121   : > { %1605 = vmatmul.bf16.vlgmr.msrb.gmra.mxu0 %v6135_v59  ;;  %5375 = vperm.xlu2 %6943, %v5024_v36   ;;  %v6175_v59 = vor.u32 %v6831_v49, %v6174_v19  ;;  %v6212_v36 = vld [vmem:[%s9599_s9 + $0xb4] sm:$0xf0] }
 0x122   : > { %6269 = vmatpush.bf16.msk.msra.mxu0 %vm7321_vm13, %v9598_v26 }
 0x126   : > { %6271 = vmatpush.bf16.msk.msra.mxu0 %vm7383_vm5, %v9598_v26 }
 0x127   : > { %1571 = vmatmul.bf16.gmra.mxu3 %v6167_v0  ;;  %v6215_v0 = vor.u32 %v6839_v50, %v6212_v36  ;;  %v1299_v22 = vpop.permute.xlu0 %1298 }
 0x129   : > { %5390 = vperm.xlu2 %6943, %v5027_v62   ;;  %v8006_v62 = vmul.u32 2, %v7101_v2 }
 0x12a   : > { %6273 = vmatpush.bf16.msk.msra.mxu0 %vm7423_vm11, %v9598_v26 }
 0x12b   : > { %vm1677_vm8 = vcmp.eq.s32.totalorder %v7104_v3, %v8006_v62  ;;  %vm1678_vm2 = vcmp.eq.s32.totalorder %v7107_v4, %v8006_v62  ;;  %v8013_v44 = vadd.s32 1, %v8006_v62  ;;  %vm1675_vm9 = vcmp.eq.s32.totalorder %v7110_v5, %v8006_v62 }
 0x12c   : > { %vm6220_vm0 = vmpackc.low %vm1678_vm2, %vm1677_vm8  ;;  %vm1676_vm4 = vcmp.eq.s32.totalorder %v7113_v6, %v8006_v62  ;;  %vm1672_vm8 = vcmp.eq.s32.totalorder %v7125_v10, %v8006_v62  ;;  %vm1664_vm6 = vcmp.eq.s32.totalorder %v7330_v58, %v8006_v62 }
 0x12d   : > { %6221 = vmatpush.bf16.msk.msrb.mxu1 %vm6220_vm0, %v9598_v26  ;;  %vm1718_vm1 = vcmp.eq.s32.totalorder %v7104_v3, %v8013_v44  ;;  %vm1719_vm5 = vcmp.eq.s32.totalorder %v7107_v4, %v8013_v44  ;;  %vm6222_vm3 = vmpackc.low %vm1676_vm4, %vm1675_vm9  ;;  %vm1716_vm13 = vcmp.eq.s32.totalorder %v7110_v5, %v8013_v44  ;;  %vm1717_vm12 = vcmp.eq.s32.totalorder %v7113_v6, %v8013_v44  ;;  %v6837_v3 = vld [vmem:[%s9599_s9 + $0x98] sm:$0xf0]  ;;  %v6206_v5 = vld [vmem:[%s9599_s9 + $0x98] sm:$0xf] }
 0x12e   : > { %6275 = vmatpush.bf16.msk.msra.mxu0 %vm7467_vm14, %v9598_v26  ;;  %1512 = vmatmul.bf16.gmra.mxu2 %v6139_v31  ;;  %v6187_v31 = vor.u32 %v6834_v12, %v6186_v18  ;;  %vm6236_vm7 = vmpackc.low %vm1719_vm5, %vm1718_vm1  ;;  %v6199_v4 = vor.u32 %v6837_v3, %v6198_v21  ;;  %v6838_v6 = vld [vmem:[%s9599_s9 + $0xa0] sm:$0xf0]  ;;  %vm1674_vm1 = vcmp.eq.s32.totalorder %v7119_v8, %v8006_v62 }
 0x12f   : > { %6237 = vmatpush.bf16.msk.msra.mxu2 %vm6236_vm7, %v9598_v26  ;;  %vm6238_vm0 = vmpackc.low %vm1717_vm12, %vm1716_vm13  ;;  %vm1673_vm7 = vcmp.eq.s32.totalorder %v7116_v7, %v8006_v62  ;;  %vm1714_vm12 = vcmp.eq.s32.totalorder %v7116_v7, %v8013_v44  ;;  %vm1715_vm13 = vcmp.eq.s32.totalorder %v7119_v8, %v8013_v44  ;;  %vm1671_vm5 = vcmp.eq.s32.totalorder %v7122_v9, %v8006_v62 }
 0x130   : > { %vm6224_vm2 = vmpackc.low %vm1674_vm1, %vm1673_vm7  ;;  %vm1712_vm9 = vcmp.eq.s32.totalorder %v7122_v9, %v8013_v44  ;;  %vm1669_vm1 = vcmp.eq.s32.totalorder %v7208_v37, %v8006_v62 }
 0x131   : > { %1610 = vmatmul.bf16.gmra.mxu0 %v6147_v60  ;;  %5405 = vperm.xlu2 %6943, %v5030_v27   ;;  %v6195_v60 = vor.u32 %v6835_v28, %v6194_v24  ;;  %v6207_v27 = vor.u32 %v6838_v6, %v6206_v5  ;;  %vm6226_vm4 = vmpackc.low %vm1672_vm8, %vm1671_vm5  ;;  %vm1667_vm8 = vcmp.eq.s32.totalorder %v7242_v41, %v8006_v62 }
 0x132   : > { %6365 = vmatpush.bf16.msk.msrb.mxu0 %vm7423_vm11, %v9598_v26  ;;  %6223 = vmatpush.bf16.msk.msrb.mxu1 %vm6222_vm3, %v9598_v26  ;;  %vm6240_vm3 = vmpackc.low %vm1715_vm13, %vm1714_vm12  ;;  %vm1670_vm12 = vcmp.eq.s32.totalorder %v7226_v38, %v8006_v62  ;;  %vm1710_vm13 = vcmp.eq.s32.totalorder %v7208_v37, %v8013_v44 }
 0x133   : > { %6239 = vmatpush.bf16.msk.msra.mxu2 %vm6238_vm0, %v9598_v26  ;;  %vm1713_vm0 = vcmp.eq.s32.totalorder %v7125_v10, %v8013_v44 }
 0x134   : > { %vm6242_vm7 = vmpackc.low %vm1713_vm0, %vm1712_vm9  ;;  %vm1708_vm9 = vcmp.eq.s32.totalorder %v7242_v41, %v8013_v44  ;;  %vm1709_vm0 = vcmp.eq.s32.totalorder %v7245_v42, %v8013_v44 }
 0x136   : > { %6367 = vmatpush.bf16.msk.msrb.mxu0 %vm7467_vm14, %v9598_v26  ;;  %6225 = vmatpush.bf16.msk.msrb.mxu1 %vm6224_vm2, %v9598_v26  ;;  %vm1711_vm2 = vcmp.eq.s32.totalorder %v7226_v38, %v8013_v44 }
 0x137   : > { %1576 = vmatmul.bf16.gmra.mxu3 %v6179_v32  ;;  %6241 = vmatpush.bf16.msk.msra.mxu2 %vm6240_vm3, %v9598_v26  ;;  %vm8071_vm3 = vmpackc.low %vm1670_vm12, %vm1669_vm1  ;;  %vm1665_vm12 = vcmp.eq.s32.totalorder %v7254_v46, %v8006_v62 }
 0x138   : > { %vm8078_vm5 = vmpackc.low %vm1711_vm2, %vm1710_vm13  ;;  %vm1666_vm13 = vcmp.eq.s32.totalorder %v7269_v48, %v8006_v62  ;;  %vm1706_vm2 = vcmp.eq.s32.totalorder %v7254_v46, %v8013_v44 }
 0x139   : > { %5420 = vperm.xlu2 %6943, %v5033_v34   ;;  %v6218_v34 = vld [vmem:[%s9599_s9 + $0xb0] sm:$0xf]  ;;  %vm8112_vm1 = vmpackc.low %vm1709_vm0, %vm1708_vm9  ;;  %vm1663_vm0 = vcmp.eq.s32.totalorder %v7099_v1, %v8006_v62 }
 0x13a   : > { %6227 = vmatpush.bf16.msk.msrb.mxu1 %vm6226_vm4, %v9598_v26  ;;  %vm1668_vm4 = vcmp.eq.s32.totalorder %v7245_v42, %v8006_v62 }
 0x13b   : > { %6243 = vmatpush.bf16.msk.msra.mxu2 %vm6242_vm7, %v9598_v26  ;;  %vm8099_vm7 = vmpackc.low %vm1668_vm4, %vm1667_vm8  ;;  %vm1707_vm8 = vcmp.eq.s32.totalorder %v7269_v48, %v8013_v44 }
 0x13c   : > { %vm8127_vm4 = vmpackc.low %vm1666_vm13, %vm1665_vm12  ;;  %vm1704_vm13 = vcmp.eq.s32.totalorder %v7099_v1, %v8013_v44 }
 0x13d   : > { %vm8134_vm9 = vmpackc.low %vm1707_vm8, %vm1706_vm2  ;;  %vm1705_vm2 = vcmp.eq.s32.totalorder %v7330_v58, %v8013_v44 }
 0x13e   : > { %1517 = vmatmul.bf16.gmra.mxu2 %v6151_v33  ;;  %6229 = vmatpush.bf16.msk.msrb.mxu1 %vm8071_vm3, %v9598_v26  ;;  %v6210_v33 = vld [vmem:[%s9599_s9 + $0xa8] sm:$0xf]  ;;  %vm8148_vm12 = vmpackc.low %vm1664_vm6, %vm1663_vm0  ;;  %vm9506_vm6 = vcmask 523264  }
 0x13f   : > { %6245 = vmatpush.bf16.msk.msra.mxu2 %vm8078_vm5, %v9598_v26  ;;  %vm8159_vm8 = vmpackc.low %vm1705_vm2, %vm1704_vm13  ;;  %vm3430_vm2 = vcmask 1040384  }
 0x141   : > { %1615 = vmatmul.bf16.gmra.mxu0 %v6159_v14  ;;  %5435 = vperm.xlu2 %6943, %v5036_v51   ;;  %v6211_v14 = vor.u32 %v6840_v11, %v6210_v33  ;;  %v6219_v51 = vor.u32 %v6841_v16, %v6218_v34 }
 0x142   : > { %6231 = vmatpush.bf16.msk.msrb.mxu1 %vm8099_vm7, %v9598_v26 }
 0x143   : > { %6247 = vmatpush.bf16.msk.msra.mxu2 %vm8112_vm1, %v9598_v26 }
 0x146   : > { %6233 = vmatpush.bf16.msk.msrb.mxu1 %vm8127_vm4, %v9598_v26 }
 0x147   : > { %1581 = vmatmul.bf16.gmra.mxu3 %v6191_v52  ;;  %6249 = vmatpush.bf16.msk.msra.mxu2 %vm8134_vm9, %v9598_v26  ;;  %v6318_v52 = vld [vmem:[%s9616_s10 + $0x38] sm:$0xf] }
 0x14a   : > { %6235 = vmatpush.bf16.msk.msrb.mxu1 %vm8148_vm12, %v9598_v26 }
 0x14b   : > { %6251 = vmatpush.bf16.msk.msra.mxu2 %vm8159_vm8, %v9598_v26 }
 0x14e   : > { %1522 = vmatmul.bf16.gmra.mxu2 %v6163_v47 }
 0x151   : > { %1620 = vmatmul.bf16.gmra.mxu0 %v6171_v25 }
 0x157   : > { %1586 = vmatmul.bf16.gmra.mxu3 %v6203_v45 }
 0x15e   : > { %1527 = vmatmul.bf16.gmra.mxu2 %v6175_v59 }
 0x161   : > { %1625 = vmatmul.bf16.gmra.mxu0 %v6183_v13 }
 0x167   : > { %1591 = vmatmul.bf16.gmra.mxu3 %v6215_v0 }
 0x16e   : > { %1532 = vmatmul.bf16.gmra.mxu2 %v6187_v31  ;;  %v1304_v31 = vpop.permute.xlu1 %1303 }
 0x171   : > { %1630 = vmatmul.bf16.gmra.mxu0 %v6195_v60 }
 0x17a   : > { %v1557_v32 = vpop.f32.mrf.mxu3 }
 0x17e   : > { %1537 = vmatmul.bf16.gmra.mxu2 %v6199_v4 }
 0x181   : > { %1635 = vmatmul.bf16.gmra.mxu0 %v6207_v27  ;;  %v1309_v27 = vpop.permute.xlu1 %1308 }
 0x182   : > { %v1559_v61 = vpop.f32.mrf.mxu3 }
 0x18a   : > { %v1562_v53 = vpop.f32.mrf.mxu3 }
 0x18e   : > { %1542 = vmatmul.bf16.gmra.mxu2 %v6211_v14 }
 0x191   : > { %1640 = vmatmul.bf16.gmra.mxu0 %v6219_v51  ;;  %v1314_v51 = vpop.permute.xlu2 %1313 }
 0x192   : > { %v1564_v45 = vpop.f32.mrf.mxu3 }
 0x19a   : > { %v1567_v0 = vpop.f32.mrf.mxu3 }
 0x19e   : > { %v1606_v25 = vpop.f32.mrf.mxu0 }
 0x1a1   : > { %v1508_v55 = vpop.f32.mrf.mxu2 }
 0x1a2   : > { %v1509_v19 = vadd.f32 %v1508_v55, %v1294_v54  ;;  %v1569_v5 = vpop.f32.mrf.mxu3 }
 0x1a4   : > { %v1558_v59 = vadd.f32 %v1557_v32, %v1509_v19 }
 0x1a6   : > { %v1608_v49 = vpop.f32.mrf.mxu0  ;;  %v1607_v50 = vadd.f32 %v1606_v25, %v1558_v59 }
 0x1a8   : > { %v1646_v24 = vmax.f32 %v1607_v50, 0.0 }
 0x1a9   : > { %v1510_v40 = vpop.f32.mrf.mxu2 }
 0x1aa   : > { %v1511_v13 = vadd.f32 %v1510_v40, %v1299_v22  ;;  %v1572_v55 = vpop.f32.mrf.mxu3  ;;  %v1319_v40 = vpop.permute.xlu2 %1318 }
 0x1ac   : > { %v1560_v36 = vadd.f32 %v1559_v61, %v1511_v13 }
 0x1ae   : > { %v1609_v18 = vadd.f32 %v1608_v49, %v1560_v36  ;;  %v1611_v12 = vpop.f32.mrf.mxu0 }
 0x1b0   : > { %v1647_v28 = vmax.f32 %v1609_v18, 0.0 }
 0x1b1   : > { %v1513_v60 = vpop.f32.mrf.mxu2 }
 0x1b2   : > { %v1744_v21 = vpack.c.bf16 %v1647_v28, %v1646_v24  ;;  %v1514_v3 = vadd.f32 %v1513_v60, %v1304_v31  ;;  %v1574_v50 = vpop.f32.mrf.mxu3 }
 0x1b4   : > { %1760 = vmatmul.bf16.vlgmr.msrb.gmra.mxu1 %v1744_v21  ;;  %1809 = vmatmul.bf16.vlgmr.msra.gmra.mxu2 %v1744_v21  ;;  %v1563_v6 = vadd.f32 %v1562_v53, %v1514_v3  ;;  %v1324_v21 = vpop.permute.xlu0 %1323 }
 0x1b6   : > { %v1613_v4 = vpop.f32.mrf.mxu0  ;;  %v1612_v14 = vadd.f32 %v1611_v12, %v1563_v6 }
 0x1b8   : > { %v1648_v61 = vmax.f32 %v1612_v14, 0.0 }
 0x1b9   : > { %v1515_v32 = vpop.f32.mrf.mxu2 }
 0x1ba   : > { %v1516_v33 = vadd.f32 %v1515_v32, %v1309_v27 }
 0x1bc   : > { %v1565_v11 = vadd.f32 %v1564_v45, %v1516_v33 }
 0x1be   : > { %v1616_v34 = vpop.f32.mrf.mxu0  ;;  %v1614_v16 = vadd.f32 %v1613_v4, %v1565_v11  ;;  %v1577_v4 = vpop.f32.mrf.mxu3 }
 0x1c0   : > { %v1649_v25 = vmax.f32 %v1614_v16, 0.0 }
 0x1c1   : > { %v1518_v54 = vpop.f32.mrf.mxu2 }
 0x1c2   : > { %v1745_v19 = vpack.c.bf16 %v1649_v25, %v1648_v61  ;;  %v1519_v49 = vadd.f32 %v1518_v54, %v1314_v51 }
 0x1c4   : > { %1765 = vmatmul.bf16.gmra.mxu1 %v1745_v19  ;;  %1814 = vmatmul.bf16.gmra.mxu2 %v1745_v19  ;;  %v1568_v22 = vadd.f32 %v1567_v0, %v1519_v49  ;;  %v1329_v0 = vpop.permute.xlu1 %1328  ;;  %v1334_v19 = vpop.permute.xlu2 %1333 }
 0x1c6   : > { %v1618_v59 = vpop.f32.mrf.mxu0  ;;  %v1617_v45 = vadd.f32 %v1616_v34, %v1568_v22  ;;  %v1579_v16 = vpop.f32.mrf.mxu3 }
 0x1c7   : > { %v1339_v22 = vpop.permute.xlu0 %1338 }
 0x1c8   : > { %v1650_v31 = vmax.f32 %v1617_v45, 0.0 }
 0x1c9   : > { %v1520_v53 = vpop.f32.mrf.mxu2 }
 0x1ca   : > { %v1521_v13 = vadd.f32 %v1520_v53, %v1319_v40 }
 0x1cc   : > { %v1570_v36 = vadd.f32 %v1569_v5, %v1521_v13 }
 0x1ce   : > { %v1621_v18 = vpop.f32.mrf.mxu0  ;;  %v1619_v12 = vadd.f32 %v1618_v59, %v1570_v36  ;;  %v1582_v53 = vpop.f32.mrf.mxu3 }
 0x1d0   : > { %v1651_v24 = vmax.f32 %v1619_v12, 0.0 }
 0x1d1   : > { %v1523_v28 = vpop.f32.mrf.mxu2 }
 0x1d2   : > { %v1746_v60 = vpack.c.bf16 %v1651_v24, %v1650_v31  ;;  %v1524_v3 = vadd.f32 %v1523_v28, %v1324_v21 }
 0x1d4   : > { %1770 = vmatmul.bf16.gmra.mxu1 %v1746_v60  ;;  %1819 = vmatmul.bf16.gmra.mxu2 %v1746_v60  ;;  %v1573_v27 = vadd.f32 %v1572_v55, %v1524_v3  ;;  %v1344_v60 = vpop.permute.xlu1 %1343 }
 0x1d6   : > { %v1623_v6 = vpop.f32.mrf.mxu0  ;;  %v1622_v14 = vadd.f32 %v1621_v18, %v1573_v27  ;;  %v1584_v21 = vpop.f32.mrf.mxu3 }
 0x1d8   : > { %v1652_v51 = vmax.f32 %v1622_v14, 0.0 }
 0x1d9   : > { %v1525_v32 = vpop.f32.mrf.mxu2 }
 0x1da   : > { %v1526_v33 = vadd.f32 %v1525_v32, %v1329_v0  ;;  %v1349_v0 = vpop.permute.xlu2 %1348 }
 0x1dc   : > { %v1575_v11 = vadd.f32 %v1574_v50, %v1526_v33 }
 0x1de   : > { %v1626_v5 = vpop.f32.mrf.mxu0  ;;  %v1624_v34 = vadd.f32 %v1623_v6, %v1575_v11  ;;  %v1587_v14 = vpop.f32.mrf.mxu3 }
 0x1e0   : > { %v1653_v61 = vmax.f32 %v1624_v34, 0.0 }
 0x1e1   : > { %v1528_v25 = vpop.f32.mrf.mxu2 }
 0x1e2   : > { %v1747_v54 = vpack.c.bf16 %v1653_v61, %v1652_v51  ;;  %v1529_v49 = vadd.f32 %v1528_v25, %v1334_v19 }
 0x1e4   : > { %1775 = vmatmul.bf16.gmra.mxu1 %v1747_v54  ;;  %1824 = vmatmul.bf16.gmra.mxu2 %v1747_v54  ;;  %v1578_v40 = vadd.f32 %v1577_v4, %v1529_v49  ;;  %v1354_v54 = vpop.permute.xlu0 %1353 }
 0x1e6   : > { %v1628_v59 = vpop.f32.mrf.mxu0  ;;  %v1627_v50 = vadd.f32 %v1626_v5, %v1578_v40  ;;  %v1589_v49 = vpop.f32.mrf.mxu3 }
 0x1e8   : > { %v1654_v12 = vmax.f32 %v1627_v50, 0.0 }
 0x1e9   : > { %v1530_v55 = vpop.f32.mrf.mxu2 }
 0x1ea   : > { %v1531_v13 = vadd.f32 %v1530_v55, %v1339_v22 }
 0x1ec   : > { %v1580_v36 = vadd.f32 %v1579_v16, %v1531_v13 }
 0x1ee   : > { %v1631_v45 = vpop.f32.mrf.mxu0  ;;  %v1629_v18 = vadd.f32 %v1628_v59, %v1580_v36  ;;  %v1359_v59 = vpop.permute.xlu1 %1358 }
 0x1f0   : > { %v1655_v31 = vmax.f32 %v1629_v18, 0.0 }
 0x1f1   : > { %v1533_v24 = vpop.f32.mrf.mxu2 }
 0x1f2   : > { %v1748_v28 = vpack.c.bf16 %v1655_v31, %v1654_v12  ;;  %v1534_v3 = vadd.f32 %v1533_v24, %v1344_v60  ;;  %v1592_v12 = vpop.f32.mrf.mxu3 }
 0x1f4   : > { %1780 = vmatmul.bf16.gmra.mxu1 %v1748_v28  ;;  %1829 = vmatmul.bf16.gmra.mxu2 %v1748_v28  ;;  %v1583_v27 = vadd.f32 %v1582_v53, %v1534_v3  ;;  %v1364_v28 = vpop.permute.xlu2 %1363 }
 0x1f6   : > { %v1633_v6 = vpop.f32.mrf.mxu0  ;;  %v1632_v11 = vadd.f32 %v1631_v45, %v1583_v27 }
 0x1f8   : > { %v1656_v16 = vmax.f32 %v1632_v11, 0.0 }
 0x1f9   : > { %v1535_v4 = vpop.f32.mrf.mxu2 }
 0x1fa   : > { %v1536_v32 = vadd.f32 %v1535_v4, %v1349_v0  ;;  %v1594_v4 = vpop.f32.mrf.mxu3 }
 0x1fc   : > { %v1585_v33 = vadd.f32 %v1584_v21, %v1536_v32 }
 0x1fe   : > { %v1634_v5 = vadd.f32 %v1633_v6, %v1585_v33  ;;  %v1636_v34 = vpop.f32.mrf.mxu0  ;;  %v1369_v6 = vpop.permute.xlu0 %1368 }
 0x200   : > { %v1657_v51 = vmax.f32 %v1634_v5, 0.0 }
 0x201   : > { %v1538_v61 = vpop.f32.mrf.mxu2 }
 0x202   : > { %v1749_v25 = vpack.c.bf16 %v1657_v51, %v1656_v16  ;;  %v1539_v19 = vadd.f32 %v1538_v61, %v1354_v54 }
 0x204   : > { %1785 = vmatmul.bf16.gmra.mxu1 %v1749_v25  ;;  %1834 = vmatmul.bf16.gmra.mxu2 %v1749_v25  ;;  %v1588_v22 = vadd.f32 %v1587_v14, %v1539_v19 }
 0x206   : > { %v1638_v40 = vpop.f32.mrf.mxu0  ;;  %v1637_v36 = vadd.f32 %v1636_v34, %v1588_v22 }
 0x208   : > { %v1658_v45 = vmax.f32 %v1637_v36, 0.0 }
 0x209   : > { %v1540_v55 = vpop.f32.mrf.mxu2 }
 0x20a   : > { %v1541_v53 = vadd.f32 %v1540_v55, %v1359_v59 }
 0x20c   : > { %v1590_v13 = vadd.f32 %v1589_v49, %v1541_v53 }
 0x20e   : > { %v1639_v50 = vadd.f32 %v1638_v40, %v1590_v13  ;;  %v1641_v60 = vpop.f32.mrf.mxu0 }
 0x210   : > { %v1659_v18 = vmax.f32 %v1639_v50, 0.0 }
 0x211   : > { %v1543_v31 = vpop.f32.mrf.mxu2 }
 0x212   : > { %v1750_v24 = vpack.c.bf16 %v1659_v18, %v1658_v45  ;;  %v1544_v21 = vadd.f32 %v1543_v31, %v1364_v28 }
 0x214   : > { %1790 = vmatmul.bf16.gmra.mxu1 %v1750_v24  ;;  %1839 = vmatmul.bf16.gmra.mxu2 %v1750_v24  ;;  %v1593_v3 = vadd.f32 %v1592_v12, %v1544_v21 }
 0x216   : > { %v1642_v33 = vadd.f32 %v1641_v60, %v1593_v3  ;;  %v1643_v11 = vpop.f32.mrf.mxu0 }
 0x218   : > { %v1660_v5 = vmax.f32 %v1642_v33, 0.0 }
 0x219   : > { %v1545_v27 = vpop.f32.mrf.mxu2 }
 0x21a   : > { %v1546_v0 = vadd.f32 %v1545_v27, %v1369_v6 }
 0x21c   : > { %v1595_v32 = vadd.f32 %v1594_v4, %v1546_v0 }
 0x21e   : > { %v1644_v14 = vadd.f32 %v1643_v11, %v1595_v32 }
 0x220   : > { %v1661_v34 = vmax.f32 %v1644_v14, 0.0 }
 0x222   : > { %v1751_v16 = vpack.c.bf16 %v1661_v34, %v1660_v5 }
 0x224   : > { %1795 = vmatmul.bf16.gmra.mxu1 %v1751_v16  ;;  %1844 = vmatmul.bf16.gmra.mxu2 %v1751_v16 }
 0x231   : > { %v1761_v51 = vpop.f32.mrf.mxu1 }
 0x237   : > { %v1810_v61 = vpop.f32.mrf.mxu2 }
 0x238   : > { %v1850_v54 = vmax.f32 %v1761_v51, %v1810_v61 }
 0x239   : > { %v1763_v25 = vpop.f32.mrf.mxu1 }
 0x23a   : > { %v1890_v49 = vpack.c.bf16 %v1850_v54, %v1850_v54 }
 0x23c   : > { %v1922_v55 = vunpack.c.l.b16 %v1890_v49 }
 0x23f   : > { %v1812_v19 = vpop.f32.mrf.mxu2 }
 0x240   : > { %v1851_v59 = vmax.f32 %v1763_v25, %v1812_v19 }
 0x241   : > { %v1766_v22 = vpop.f32.mrf.mxu1 }
 0x242   : > { %v1891_v40 = vpack.c.bf16 %v1851_v59, %v1851_v59 }
 0x244   : > { %v1923_v53 = vunpack.c.l.b16 %v1891_v40 }
 0x246   : > { %v8169_v13 = vpack.c.b16 %v1923_v53, %v1922_v55 }
 0x247   : > { %v1815_v36 = vpop.f32.mrf.mxu2 }
 0x248   : > { %6260 = vmatmul.msk.bf16.vlgmr.msra.gmra.mxu3 %vm9506_vm6, %v8169_v13  ;;  %6276 = vmatmul.msk.bf16.vlgmr.msra.gmra.mxu0 %vm9506_vm6, %v8169_v13  ;;  %v1852_v45 = vmax.f32 %v1766_v22, %v1815_v36 }
 0x249   : > { %v1768_v50 = vpop.f32.mrf.mxu1 }
 0x24a   : > { %v1892_v12 = vpack.c.bf16 %v1852_v45, %v1852_v45 }
 0x24c   : > { %v1924_v60 = vunpack.c.l.b16 %v1892_v12 }
 0x24f   : > { %v1817_v18 = vpop.f32.mrf.mxu2 }
 0x250   : > { %v1853_v31 = vmax.f32 %v1768_v50, %v1817_v18 }
 0x251   : > { %v1771_v24 = vpop.f32.mrf.mxu1 }
 0x252   : > { %v1893_v28 = vpack.c.bf16 %v1853_v31, %v1853_v31 }
 0x254   : > { %v1925_v21 = vunpack.c.l.b16 %v1893_v28 }
 0x256   : > { %v8175_v3 = vpack.c.b16 %v1925_v21, %v1924_v60 }
 0x257   : > { %v1820_v6 = vpop.f32.mrf.mxu2 }
 0x258   : > { %6261 = vmatmul.msk.bf16.gmra.mxu3 %vm9506_vm6, %v8175_v3  ;;  %6277 = vmatmul.msk.bf16.gmra.mxu0 %vm9506_vm6, %v8175_v3  ;;  %v1854_v0 = vmax.f32 %v1771_v24, %v1820_v6 }
 0x259   : > { %v1773_v27 = vpop.f32.mrf.mxu1 }
 0x25a   : > { %v1894_v32 = vpack.c.bf16 %v1854_v0, %v1854_v0 }
 0x25c   : > { %v1926_v5 = vunpack.c.l.b16 %v1894_v32 }
 0x25f   : > { %v1822_v4 = vpop.f32.mrf.mxu2 }
 0x260   : > { %v1855_v33 = vmax.f32 %v1773_v27, %v1822_v4 }
 0x261   : > { %v1776_v11 = vpop.f32.mrf.mxu1 }
 0x262   : > { %v1895_v14 = vpack.c.bf16 %v1855_v33, %v1855_v33 }
 0x264   : > { %v1927_v34 = vunpack.c.l.b16 %v1895_v14 }
 0x266   : > { %v8181_v16 = vpack.c.b16 %v1927_v34, %v1926_v5 }
 0x267   : > { %v1825_v51 = vpop.f32.mrf.mxu2 }
 0x268   : > { %6262 = vmatmul.msk.bf16.gmra.mxu3 %vm9506_vm6, %v8181_v16  ;;  %6278 = vmatmul.msk.bf16.gmra.mxu0 %vm9506_vm6, %v8181_v16  ;;  %v1856_v25 = vmax.f32 %v1776_v11, %v1825_v51 }
 0x269   : > { %v1778_v61 = vpop.f32.mrf.mxu1 }
 0x26a   : > { %v1896_v19 = vpack.c.bf16 %v1856_v25, %v1856_v25 }
 0x26c   : > { %v1928_v40 = vunpack.c.l.b16 %v1896_v19 }
 0x26f   : > { %v1827_v54 = vpop.f32.mrf.mxu2 }
 0x270   : > { %v1857_v49 = vmax.f32 %v1778_v61, %v1827_v54 }
 0x271   : > { %v1781_v59 = vpop.f32.mrf.mxu1 }
 0x272   : > { %v1897_v22 = vpack.c.bf16 %v1857_v49, %v1857_v49 }
 0x274   : > { %v1929_v55 = vunpack.c.l.b16 %v1897_v22 }
 0x276   : > { %v1941_v53 = vpack.c.b16 %v1929_v55, %v1928_v40 }
 0x277   : > { %v1830_v36 = vpop.f32.mrf.mxu2 }
 0x278   : > { %6263 = vmatmul.msk.bf16.gmra.mxu3 %vm9506_vm6, %v1941_v53  ;;  %6279 = vmatmul.msk.bf16.gmra.mxu0 %vm9506_vm6, %v1941_v53  ;;  %v1858_v45 = vmax.f32 %v1781_v59, %v1830_v36 }
 0x279   : > { %v1783_v50 = vpop.f32.mrf.mxu1 }
 0x27a   : > { %v1898_v12 = vpack.c.bf16 %v1858_v45, %v1858_v45 }
 0x27c   : > { %v1930_v60 = vunpack.c.l.b16 %v1898_v12 }
 0x27f   : > { %v1832_v18 = vpop.f32.mrf.mxu2 }
 0x280   : > { %v1859_v31 = vmax.f32 %v1783_v50, %v1832_v18 }
 0x281   : > { %v1786_v24 = vpop.f32.mrf.mxu1 }
 0x282   : > { %v1899_v28 = vpack.c.bf16 %v1859_v31, %v1859_v31 }
 0x284   : > { %v1931_v21 = vunpack.c.l.b16 %v1899_v28 }
 0x286   : > { %v1942_v6 = vpack.c.b16 %v1931_v21, %v1930_v60 }
 0x287   : > { %v1835_v27 = vpop.f32.mrf.mxu2 }
 0x288   : > { %6264 = vmatmul.msk.bf16.gmra.mxu3 %vm9506_vm6, %v1942_v6  ;;  %6280 = vmatmul.msk.bf16.gmra.mxu0 %vm9506_vm6, %v1942_v6  ;;  %v1860_v4 = vmax.f32 %v1786_v24, %v1835_v27 }
 0x289   : > { %v1788_v0 = vpop.f32.mrf.mxu1 }
 0x28a   : > { %v1900_v33 = vpack.c.bf16 %v1860_v4, %v1860_v4 }
 0x28c   : > { %v1932_v34 = vunpack.c.l.b16 %v1900_v33 }
 0x28f   : > { %v1837_v32 = vpop.f32.mrf.mxu2 }
 0x290   : > { %v1861_v11 = vmax.f32 %v1788_v0, %v1837_v32 }
 0x291   : > { %v1791_v14 = vpop.f32.mrf.mxu1 }
 0x292   : > { %v1901_v5 = vpack.c.bf16 %v1861_v11, %v1861_v11 }
 0x294   : > { %v1933_v51 = vunpack.c.l.b16 %v1901_v5 }
 0x296   : > { %v1943_v61 = vpack.c.b16 %v1933_v51, %v1932_v34 }
 0x297   : > { %v1840_v25 = vpop.f32.mrf.mxu2 }
 0x298   : > { %6265 = vmatmul.msk.bf16.gmra.mxu3 %vm9506_vm6, %v1943_v61  ;;  %6281 = vmatmul.msk.bf16.gmra.mxu0 %vm9506_vm6, %v1943_v61  ;;  %v1862_v19 = vmax.f32 %v1791_v14, %v1840_v25 }
 0x299   : > { %v1793_v54 = vpop.f32.mrf.mxu1 }
 0x29a   : > { %v1902_v59 = vpack.c.bf16 %v1862_v19, %v1862_v19 }
 0x29c   : > { %v1934_v55 = vunpack.c.l.b16 %v1902_v59 }
 0x29f   : > { %v1842_v49 = vpop.f32.mrf.mxu2 }
 0x2a0   : > { %v1863_v22 = vmax.f32 %v1793_v54, %v1842_v49 }
 0x2a1   : > { %v1796_v50 = vpop.f32.mrf.mxu1 }
 0x2a2   : > { %v1903_v40 = vpack.c.bf16 %v1863_v22, %v1863_v22 }
 0x2a4   : > { %v1935_v36 = vunpack.c.l.b16 %v1903_v40 }
 0x2a6   : > { %v1944_v45 = vpack.c.b16 %v1935_v36, %v1934_v55 }
 0x2a7   : > { %v1845_v18 = vpop.f32.mrf.mxu2 }
 0x2a8   : > { %6266 = vmatmul.msk.bf16.gmra.mxu3 %vm9506_vm6, %v1944_v45  ;;  %6282 = vmatmul.msk.bf16.gmra.mxu0 %vm9506_vm6, %v1944_v45  ;;  %v1864_v12 = vmax.f32 %v1796_v50, %v1845_v18 }
 0x2a9   : > { %v1798_v31 = vpop.f32.mrf.mxu1 }
 0x2aa   : > { %v1904_v28 = vpack.c.bf16 %v1864_v12, %v1864_v12 }
 0x2ac   : > { %v1936_v27 = vunpack.c.l.b16 %v1904_v28  ;;  %v6842_v28 = vld [vmem:[%s9616_s10 + $0x4] sm:$0xf] }
 0x2af   : > { %v1847_v24 = vpop.f32.mrf.mxu2 }
 0x2b0   : > { %v1865_v60 = vmax.f32 %v1798_v31, %v1847_v24 }
 0x2b2   : > { %v1905_v21 = vpack.c.bf16 %v1865_v60, %v1865_v60  ;;  %v6288_v60 = vld [vmem:[%s9616_s10 + $0xc] sm:$0xf0] }
 0x2b4   : > { %v1937_v0 = vunpack.c.l.b16 %v1905_v21 }
 0x2b6   : > { %v1945_v4 = vpack.c.b16 %v1937_v0, %v1936_v27  ;;  %v6291_v27 = vor.u32 %v6842_v28, %v6288_v60 }
 0x2b8   : > { %6267 = vmatmul.msk.bf16.gmra.mxu3 %vm9506_vm6, %v1945_v4  ;;  %6283 = vmatmul.msk.bf16.gmra.mxu0 %vm9506_vm6, %v1945_v4 }
 0x2b9   : > { %2338 = vmatpush.bf16.msrb.mxu2 %v1945_v4 }
 0x2bd   : > { %2339 = vmatpush.bf16.msrb.mxu2 %v1944_v45 }
 0x2c1   : > { %2340 = vmatpush.bf16.msrb.mxu2 %v1943_v61 }
 0x2c5   : > { %2341 = vmatpush.bf16.msrb.mxu2 %v1942_v6  ;;  %v8197_v32 = vpop.f32.mrf.mxu0 }
 0x2c9   : > { %2342 = vmatpush.bf16.msrb.mxu2 %v1941_v53 }
 0x2cb   : > { %v8199_v33 = vpop.f32.mrf.mxu3 }
 0x2cd   : > { %2343 = vmatpush.bf16.msrb.mxu2 %v8181_v16  ;;  %v8202_v11 = vpop.f32.mrf.mxu0 }
 0x2d1   : > { %2344 = vmatpush.bf16.msrb.mxu2 %v8175_v3 }
 0x2d3   : > { %v8205_v14 = vpop.f32.mrf.mxu3 }
 0x2d5   : > { %2345 = vmatpush.bf16.msrb.mxu2 %v8169_v13  ;;  %v8208_v5 = vpop.f32.mrf.mxu0 }
 0x2d8   : > { %2346 = vmatmul.bf16.vlgmr.msrb.gmra.mxu2 %v6291_v27 }
 0x2d9   : > { %6345 = vmatpush.bf16.msk.msra.mxu2 %vm8078_vm5, %v9598_v26  ;;  %vm2819_vm5 = vcmask 130048  }
 0x2db   : > { %v8216_v53 = vpop.f32.mrf.mxu3 }
 0x2dd   : > { %6347 = vmatpush.bf16.msk.msra.mxu2 %vm8112_vm1, %v9598_v26  ;;  %v8218_v16 = vpop.f32.mrf.mxu0 }
 0x2e1   : > { %6349 = vmatpush.bf16.msk.msra.mxu2 %vm8134_vm9, %v9598_v26 }
 0x2e3   : > { %v8226_v13 = vpop.f32.mrf.mxu3 }
 0x2e5   : > { %6351 = vmatpush.bf16.msk.msra.mxu2 %vm8159_vm8, %v9598_v26  ;;  %v8228_v56 = vpop.f32.mrf.mxu0 }
 0x2eb   : > { %v8230_v3 = vpop.f32.mrf.mxu3 }
 0x2ed   : > { %v8232_v23 = vpop.f32.mrf.mxu0 }
 0x2f3   : > { %v8234_v6 = vpop.f32.mrf.mxu3 }
 0x2f5   : > { %v8236_v34 = vpop.f32.mrf.mxu0 }
 0x2fb   : > { %v8238_v51 = vpop.f32.mrf.mxu3 }
 0x2fd   : > { %v8240_v61 = vpop.f32.mrf.mxu0 }
 0x303   : > { %v8242_v25 = vpop.f32.mrf.mxu3 }
 0x305   : > { %v2049_v54 = vpop.f32.mrf.mxu0 }
 0x306   : > { %v2093_v27 = vpack.c.bf16 %v2049_v54, %v2049_v54 }
 0x30b   : > { %v8244_v19 = vpop.f32.mrf.mxu3 }
 0x30d   : > { %v2051_v49 = vpop.f32.mrf.mxu0 }
 0x30e   : > { %v2094_v58 = vpack.c.bf16 %v2051_v49, %v2051_v49  ;;  %v2077_v49 = vpack.c.bf16 %v8244_v19, %v8244_v19  ;;  %v2075_v19 = vpack.c.bf16 %v8238_v51, %v8238_v51  ;;  %v2073_v51 = vpack.c.bf16 %v8230_v3, %v8230_v3  ;;  %v6312_v3 = vld [vmem:[%s9616_s10 + $0x3c] sm:$0xf0] }
 0x313   : > { %v8246_v59 = vpop.f32.mrf.mxu3 }
 0x315   : > { %v2054_v22 = vpop.f32.mrf.mxu0 }
 0x316   : > { %v2095_v42 = vpack.c.bf16 %v2054_v22, %v2054_v22 }
 0x31b   : > { %v2005_v40 = vpop.f32.mrf.mxu3 }
 0x31d   : > { %v2056_v55 = vpop.f32.mrf.mxu0 }
 0x31e   : > { %v2096_v8 = vpack.c.bf16 %v2056_v55, %v2056_v55 }
 0x323   : > { %v2007_v36 = vpop.f32.mrf.mxu3 }
 0x325   : > { %v2059_v50 = vpop.f32.mrf.mxu0 }
 0x326   : > { %v2097_v37 = vpack.c.bf16 %v2059_v50, %v2059_v50  ;;  %v2183_v50 = vunpack.c.l.b16 %v2095_v42 }
 0x328   : > { %v2185_v41 = vunpack.c.l.b16 %v2097_v37  ;;  %v6845_v37 = vld [vmem:[%s9616_s10 + $0x1c] sm:$0xf] }
 0x32b   : > { %v2010_v45 = vpop.f32.mrf.mxu3 }
 0x32c   : > { %v2081_v28 = vpack.c.bf16 %v2010_v45, %v2010_v45 }
 0x32d   : > { %v2061_v18 = vpop.f32.mrf.mxu0 }
 0x32e   : > { %v2098_v4 = vpack.c.bf16 %v2061_v18, %v2061_v18 }
 0x330   : > { %v2186_v7 = vunpack.c.l.b16 %v2098_v4  ;;  %v2125_v4 = vunpack.c.l.b16 %v2077_v49 }
 0x333   : > { %v2012_v12 = vpop.f32.mrf.mxu3 }
 0x334   : > { %v2082_v39 = vpack.c.bf16 %v2012_v12, %v2012_v12 }
 0x335   : > { %v2064_v31 = vpop.f32.mrf.mxu0 }
 0x336   : > { %v2099_v21 = vpack.c.bf16 %v2064_v31, %v2064_v31  ;;  %v2184_v31 = vunpack.c.l.b16 %v2096_v8  ;;  %v6300_v8 = vld [vmem:[%s9616_s10 + $0x24] sm:$0xf0] }
 0x337   : > { %v6303_v42 = vor.u32 %v6845_v37, %v6300_v8 }
 0x338   : > { %v2187_v10 = vunpack.c.l.b16 %v2099_v21  ;;  %v2080_v21 = vpack.c.bf16 %v2007_v36, %v2007_v36 }
 0x339   : > { %2351 = vmatmul.bf16.gmra.mxu2 %v6303_v42  ;;  %v6294_v42 = vld [vmem:[%s9616_s10 + $0x8] sm:$0xf] }
 0x33b   : > { %v2015_v24 = vpop.f32.mrf.mxu3 }
 0x33c   : > { %v2083_v17 = vpack.c.bf16 %v2015_v24, %v2015_v24 }
 0x33d   : > { %v2066_v0 = vpop.f32.mrf.mxu0 }
 0x33e   : > { %v2100_v38 = vpack.c.bf16 %v2066_v0, %v2066_v0  ;;  %v2131_v60 = vunpack.c.l.b16 %v2083_v17  ;;  %v2195_v0 = vpack.c.b16 %v2186_v7, %v2185_v41  ;;  %v2129_v7 = vunpack.c.l.b16 %v2081_v28 }
 0x33f   : > { %v2194_v41 = vpack.c.b16 %v2184_v31, %v2183_v50  ;;  %v2128_v17 = vunpack.c.l.b16 %v2080_v21 }
 0x340   : > { %v2188_v9 = vunpack.c.l.b16 %v2100_v38  ;;  %v2130_v38 = vunpack.c.l.b16 %v2082_v39 }
 0x342   : > { %v2196_v57 = vpack.c.b16 %v2188_v9, %v2187_v10  ;;  %v2092_v9 = vpack.c.bf16 %v8240_v61, %v8240_v61  ;;  %v2182_v10 = vunpack.c.l.b16 %v2094_v58  ;;  %v2078_v58 = vpack.c.bf16 %v8246_v59, %v8246_v59 }
 0x343   : > { %v2017_v48 = vpop.f32.mrf.mxu3  ;;  %v2139_v39 = vpack.c.b16 %v2130_v38, %v2129_v7  ;;  %v2090_v61 = vpack.c.bf16 %v8232_v23, %v8232_v23  ;;  %v2076_v59 = vpack.c.bf16 %v8242_v25, %v8242_v25  ;;  %v2088_v23 = vpack.c.bf16 %v8218_v16, %v8218_v16 }
 0x344   : > { %v2084_v46 = vpack.c.bf16 %v2017_v48, %v2017_v48  ;;  %2367 = vmatpush.bf16.msrb.mxu3 %v2196_v57  ;;  %v2091_v48 = vpack.c.bf16 %v8236_v34, %v8236_v34  ;;  %v2181_v57 = vunpack.c.l.b16 %v2093_v27  ;;  %v2180_v54 = vunpack.c.l.b16 %v2092_v9 }
 0x345   : > { %v2089_v34 = vpack.c.bf16 %v8228_v56, %v8228_v56  ;;  %v2126_v45 = vunpack.c.l.b16 %v2078_v58  ;;  %v2178_v24 = vunpack.c.l.b16 %v2090_v61  ;;  %v2087_v56 = vpack.c.bf16 %v8208_v5, %v8208_v5 }
 0x346   : > { %v2132_v18 = vunpack.c.l.b16 %v2084_v46  ;;  %v2079_v46 = vpack.c.bf16 %v2005_v40, %v2005_v40  ;;  %v2193_v40 = vpack.c.b16 %v2182_v10, %v2181_v57  ;;  %v2179_v36 = vunpack.c.l.b16 %v2091_v48  ;;  %v6844_v48 = vld [vmem:[%s9616_s10 + $0x10] sm:$0xf0] }
 0x347   : > { %v2177_v28 = vunpack.c.l.b16 %v2089_v34  ;;  %v2074_v25 = vpack.c.bf16 %v8234_v6, %v8234_v6  ;;  %v2086_v16 = vpack.c.bf16 %v8202_v11, %v8202_v11  ;;  %v2123_v27 = vunpack.c.l.b16 %v2075_v19  ;;  %v6848_v11 = vld [vmem:[%s9616_s10 + $0x34] sm:$0xf]  ;;  %v6324_v34 = vld [vmem:[%s9616_s10 + $0x54] sm:$0xf0] }
 0x348   : > { %v2140_v55 = vpack.c.b16 %v2132_v18, %v2131_v60  ;;  %2368 = vmatpush.bf16.msrb.mxu3 %v2195_v0  ;;  %v2127_v22 = vunpack.c.l.b16 %v2079_v46  ;;  %v2192_v31 = vpack.c.b16 %v2180_v54, %v2179_v36  ;;  %v2124_v60 = vunpack.c.l.b16 %v2076_v59  ;;  %v6286_v54 = vld [vmem:[%s9616_s10] sm:$0xf]  ;;  %v6847_v59 = vld [vmem:[%s9616_s10 + $0x28] sm:$0xf0] }
 0x349   : > { %v2137_v18 = vpack.c.b16 %v2126_v45, %v2125_v4  ;;  %v2176_v0 = vunpack.c.l.b16 %v2088_v23  ;;  %v2191_v50 = vpack.c.b16 %v2178_v24, %v2177_v28  ;;  %v2085_v5 = vpack.c.bf16 %v8197_v32, %v8197_v32  ;;  %v6850_v24 = vld [vmem:[%s9616_s10 + $0x40] sm:$0xf0]  ;;  %v6310_v4 = vld [vmem:[%s9616_s10 + $0x30] sm:$0xf] }
 0x34a   : > { %2309 = vmatpush.bf16.msra.mxu1 %v2140_v55  ;;  %v2138_v12 = vpack.c.b16 %v2128_v17, %v2127_v22  ;;  %v2175_v21 = vunpack.c.l.b16 %v2087_v56  ;;  %v2072_v6 = vpack.c.bf16 %v8226_v13, %v8226_v13  ;;  %v2122_v38 = vunpack.c.l.b16 %v2074_v25  ;;  %v6330_v28 = vld [vmem:[%s9616_s10 + $0x50] sm:$0xf]  ;;  %v6853_v25 = vld [vmem:[%s9616_s10 + $0x58] sm:$0xf0] }
 0x34b   : > { %v2136_v55 = vpack.c.b16 %v2124_v60, %v2123_v27  ;;  %v2174_v9 = vunpack.c.l.b16 %v2086_v16  ;;  %v2071_v10 = vpack.c.bf16 %v8216_v53, %v8216_v53  ;;  %v2121_v32 = vunpack.c.l.b16 %v2073_v51  ;;  %v6852_v16 = vld [vmem:[%s9616_s10 + $0x50] sm:$0xf0] }
 0x34c   : > { %2369 = vmatpush.bf16.msrb.mxu3 %v2194_v41  ;;  %v2190_v37 = vpack.c.b16 %v2176_v0, %v2175_v21  ;;  %v6315_v8 = vor.u32 %v6848_v11, %v6312_v3  ;;  %v2173_v13 = vunpack.c.l.b16 %v2085_v5  ;;  %v2070_v46 = vpack.c.bf16 %v8205_v14, %v8205_v14  ;;  %v2208_v21 = vpop.permute.xlu1 %2207 }
 0x34d   : > { %v2120_v7 = vunpack.c.l.b16 %v2072_v6  ;;  %v2135_v41 = vpack.c.b16 %v2122_v38, %v2121_v32  ;;  %v2069_v53 = vpack.c.bf16 %v8199_v33, %v8199_v33  ;;  %v2119_v57 = vunpack.c.l.b16 %v2071_v10  ;;  %v6843_v33 = vld [vmem:[%s9616_s10 + $0x8] sm:$0xf0]  ;;  %v2213_v38 = vpop.permute.xlu2 %2212 }
 0x34e   : > { %2310 = vmatpush.bf16.msra.mxu1 %v2139_v39  ;;  %v2189_v58 = vpack.c.b16 %v2174_v9, %v2173_v13  ;;  %2356 = vmatmul.bf16.gmra.mxu2 %v6315_v8  ;;  %v6295_v17 = vor.u32 %v6844_v48, %v6294_v42  ;;  %v2118_v14 = vunpack.c.l.b16 %v2070_v46  ;;  %v6287_v22 = vor.u32 %v6843_v33, %v6286_v54  ;;  %v2218_v48 = vpop.permute.xlu0 %2217 }
 0x34f   : > { %v2134_v39 = vpack.c.b16 %v2120_v7, %v2119_v57  ;;  %v2117_v61 = vunpack.c.l.b16 %v2069_v53  ;;  %v6307_v45 = vor.u32 %v6847_v59, %v6306_v35  ;;  %v6319_v19 = vor.u32 %v6850_v24, %v6318_v52 }
 0x350   : > { %2370 = vmatpush.bf16.msrb.mxu3 %v2193_v40  ;;  %v6851_v40 = vld [vmem:[%s9616_s10 + $0x4c] sm:$0xf]  ;;  %v6331_v60 = vor.u32 %v6853_v25, %v6330_v28 }
 0x351   : > { %v2133_v49 = vpack.c.b16 %v2118_v14, %v2117_v61  ;;  %v6327_v36 = vor.u32 %v6851_v40, %v6324_v34 }
 0x352   : > { %2311 = vmatpush.bf16.msra.mxu1 %v2138_v12  ;;  %v6298_v12 = vld [vmem:[%s9616_s10 + $0x18] sm:$0xf] }
 0x353   : > { %v6299_v23 = vor.u32 %v6846_v20, %v6298_v12 }
 0x354   : > { %2371 = vmatpush.bf16.msrb.mxu3 %v2192_v31  ;;  %v6849_v31 = vld [vmem:[%s9616_s10 + $0x38] sm:$0xf0] }
 0x355   : > { %v6311_v56 = vor.u32 %v6849_v31, %v6310_v4 }
 0x356   : > { %2312 = vmatpush.bf16.msra.mxu1 %v2137_v18  ;;  %v6322_v18 = vld [vmem:[%s9616_s10 + $0x48] sm:$0xf] }
 0x357   : > { %v6323_v0 = vor.u32 %v6852_v16, %v6322_v18 }
 0x358   : > { %2372 = vmatpush.bf16.msrb.mxu3 %v2191_v50 }
 0x35a   : > { %2313 = vmatpush.bf16.msra.mxu1 %v2136_v55 }
 0x35b   : > { %v2347_v51 = vpop.f32.mrf.mxu2 }
 0x35c   : > { %2373 = vmatpush.bf16.msrb.mxu3 %v2190_v37 }
 0x35e   : > { %2314 = vmatpush.bf16.msra.mxu1 %v2135_v41  ;;  %2361 = vmatmul.bf16.gmra.mxu2 %v6327_v36 }
 0x360   : > { %2374 = vmatpush.bf16.msrb.mxu3 %v2189_v58  ;;  %v2223_v58 = vpop.permute.xlu1 %2222 }
 0x362   : > { %2315 = vmatpush.bf16.msra.mxu1 %v2134_v39 }
 0x363   : > { %2375 = vmatmul.bf16.vlgmr.msrb.gmra.mxu3 %v6295_v17  ;;  %v2349_v27 = vpop.f32.mrf.mxu2 }
 0x364   : > { %6357 = vmatpush.bf16.msk.msra.mxu3 %vm7416_vm10, %v9598_v26 }
 0x366   : > { %2316 = vmatpush.bf16.msra.mxu1 %v2133_v49 }
 0x368   : > { %6359 = vmatpush.bf16.msk.msra.mxu3 %vm7455_vm15, %v9598_v26 }
 0x369   : > { %2317 = vmatmul.bf16.vlgmr.msra.gmra.mxu1 %v6287_v22 }
 0x36a   : > { %6333 = vmatpush.bf16.msk.msrb.mxu1 %vm8071_vm3, %v9598_v26  ;;  %vm2522_vm3 = vcmask 261120  }
 0x36c   : > { %6391 = vmatpush.bf16.msk.msrb.mxu3 %vm8127_vm4, %v9598_v26 }
 0x36e   : > { %6335 = vmatpush.bf16.msk.msrb.mxu1 %vm8099_vm7, %v9598_v26  ;;  %vm9508_vm7 = vcmask 785408  }
 0x370   : > { %6393 = vmatpush.bf16.msk.msrb.mxu3 %vm8148_vm12, %v9598_v26 }
 0x372   : > { %6337 = vmatpush.bf16.msk.msrb.mxu1 %vm8127_vm4, %v9598_v26 }
 0x373   : > { %2380 = vmatmul.bf16.gmra.mxu3 %v6307_v45  ;;  %v2228_v45 = vpop.permute.xlu2 %2227 }
 0x376   : > { %6339 = vmatpush.bf16.msk.msrb.mxu1 %vm8148_vm12, %v9598_v26 }
 0x379   : > { %2322 = vmatmul.bf16.gmra.mxu1 %v6299_v23  ;;  %v2233_v23 = vpop.permute.xlu0 %2232 }
 0x383   : > { %2385 = vmatmul.bf16.gmra.mxu3 %v6319_v19 }
 0x389   : > { %2327 = vmatmul.bf16.gmra.mxu1 %v6311_v56 }
 0x393   : > { %2390 = vmatmul.bf16.gmra.mxu3 %v6331_v60 }
 0x399   : > { %2332 = vmatmul.bf16.gmra.mxu1 %v6323_v0 }
 0x3bc   : > { %v2352_v9 = vpop.f32.mrf.mxu2 }
 0x3c4   : > { %v2354_v53 = vpop.f32.mrf.mxu2 }
 0x3d1   : > { %v2357_v49 = vpop.f32.mrf.mxu2 }
 0x3d9   : > { %v2359_v20 = vpop.f32.mrf.mxu2 }
 0x3e1   : > { %v2362_v18 = vpop.f32.mrf.mxu2 }
 0x3e6   : > { %v2318_v50 = vpop.f32.mrf.mxu1  ;;  %v2376_v5 = vpop.f32.mrf.mxu3 }
 0x3e7   : > { %v2319_v6 = vadd.f32 %v2318_v50, %v2208_v21  ;;  %v2243_v21 = vpop.permute.xlu2 %2242 }
 0x3e9   : > { %v2348_v55 = vadd.f32 %v2347_v51, %v2319_v6  ;;  %v2238_v51 = vpop.permute.xlu1 %2237 }
 0x3eb   : > { %v2377_v32 = vadd.f32 %v2376_v5, %v2348_v55  ;;  %v2364_v55 = vpop.f32.mrf.mxu2 }
 0x3ed   : > { %v2396_v13 = vmax.f32 %v2377_v32, 0.0 }
 0x3ee   : > { %v2320_v11 = vpop.f32.mrf.mxu1  ;;  %v2378_v3 = vpop.f32.mrf.mxu3 }
 0x3ef   : > { %v2321_v10 = vadd.f32 %v2320_v11, %v2213_v38 }
 0x3f1   : > { %v2350_v37 = vadd.f32 %v2349_v27, %v2321_v10 }
 0x3f3   : > { %v2379_v8 = vadd.f32 %v2378_v3, %v2350_v37 }
 0x3f5   : > { %v2397_v46 = vmax.f32 %v2379_v8, 0.0 }
 0x3f6   : > { %v2323_v7 = vpop.f32.mrf.mxu1  ;;  %v2381_v41 = vpop.f32.mrf.mxu3 }
 0x3f7   : > { %v2404_v42 = vpack.c.bf16 %v2397_v46, %v2396_v13  ;;  %v2324_v57 = vadd.f32 %v2323_v7, %v2218_v48 }
 0x3f9   : > { %6340 = vmatmul.msk.bf16.vlgmr.msrb.gmra.mxu1 %vm9506_vm6, %v2404_v42  ;;  %6352 = vmatmul.msk.bf16.vlgmr.msra.gmra.mxu2 %vm9506_vm6, %v2404_v42  ;;  %v2353_v17 = vadd.f32 %v2352_v9, %v2324_v57 }
 0x3fb   : > { %v2382_v54 = vadd.f32 %v2381_v41, %v2353_v17 }
 0x3fd   : > { %v2398_v40 = vmax.f32 %v2382_v54, 0.0 }
 0x3fe   : > { %v2325_v14 = vpop.f32.mrf.mxu1  ;;  %v2383_v39 = vpop.f32.mrf.mxu3 }
 0x3ff   : > { %v2326_v61 = vadd.f32 %v2325_v14, %v2223_v58 }
 0x401   : > { %v2355_v33 = vadd.f32 %v2354_v53, %v2326_v61 }
 0x403   : > { %v2384_v22 = vadd.f32 %v2383_v39, %v2355_v33 }
 0x405   : > { %v2399_v34 = vmax.f32 %v2384_v22, 0.0 }
 0x406   : > { %v2328_v36 = vpop.f32.mrf.mxu1  ;;  %v2386_v35 = vpop.f32.mrf.mxu3 }
 0x407   : > { %v2405_v59 = vpack.c.bf16 %v2399_v34, %v2398_v40  ;;  %v2329_v12 = vadd.f32 %v2328_v36, %v2228_v45 }
 0x409   : > { %6341 = vmatmul.msk.bf16.gmra.mxu1 %vm9506_vm6, %v2405_v59  ;;  %6353 = vmatmul.msk.bf16.gmra.mxu2 %vm9506_vm6, %v2405_v59  ;;  %v2358_v52 = vadd.f32 %v2357_v49, %v2329_v12 }
 0x40b   : > { %v2387_v31 = vadd.f32 %v2386_v35, %v2358_v52 }
 0x40d   : > { %v2400_v25 = vmax.f32 %v2387_v31, 0.0 }
 0x40e   : > { %v2330_v24 = vpop.f32.mrf.mxu1  ;;  %v2388_v19 = vpop.f32.mrf.mxu3 }
 0x40f   : > { %v2331_v4 = vadd.f32 %v2330_v24, %v2233_v23 }
 0x411   : > { %v2360_v56 = vadd.f32 %v2359_v20, %v2331_v4 }
 0x413   : > { %v2389_v28 = vadd.f32 %v2388_v19, %v2360_v56 }
 0x415   : > { %v2401_v60 = vmax.f32 %v2389_v28, 0.0 }
 0x416   : > { %v2333_v16 = vpop.f32.mrf.mxu1  ;;  %v2391_v27 = vpop.f32.mrf.mxu3 }
 0x417   : > { %v2406_v0 = vpack.c.bf16 %v2401_v60, %v2400_v25  ;;  %v2334_v50 = vadd.f32 %v2333_v16, %v2238_v51 }
 0x419   : > { %6342 = vmatmul.msk.bf16.gmra.mxu1 %vm9506_vm6, %v2406_v0  ;;  %6354 = vmatmul.msk.bf16.gmra.mxu2 %vm9506_vm6, %v2406_v0  ;;  %v2363_v5 = vadd.f32 %v2362_v18, %v2334_v50 }
 0x41b   : > { %v2392_v9 = vadd.f32 %v2391_v27, %v2363_v5 }
 0x41d   : > { %v2402_v32 = vmax.f32 %v2392_v9, 0.0 }
 0x41e   : > { %v2335_v6 = vpop.f32.mrf.mxu1  ;;  %v2393_v3 = vpop.f32.mrf.mxu3 }
 0x41f   : > { %v2336_v38 = vadd.f32 %v2335_v6, %v2243_v21 }
 0x421   : > { %v2365_v11 = vadd.f32 %v2364_v55, %v2336_v38 }
 0x423   : > { %v2394_v10 = vadd.f32 %v2393_v3, %v2365_v11 }
 0x425   : > { %v2403_v37 = vmax.f32 %v2394_v10, 0.0 }
 0x427   : > { %v2407_v8 = vpack.c.bf16 %v2403_v37, %v2402_v32 }
 0x429   : > { %6343 = vmatmul.msk.bf16.gmra.mxu1 %vm9506_vm6, %v2407_v8  ;;  %6355 = vmatmul.msk.bf16.gmra.mxu2 %vm9506_vm6, %v2407_v8 }
 0x476   : > { %v2429_v13 = vpop.f32.mrf.mxu1 }
 0x47c   : > { %v2458_v46 = vpop.f32.mrf.mxu2 }
 0x47d   : > { %v2478_v41 = vmax.f32 %v2429_v13, %v2458_v46 }
 0x47e   : > { %v2431_v7 = vpop.f32.mrf.mxu1 }
 0x47f   : > { %v2494_v48 = vpack.c.bf16 %v2478_v41, %v2478_v41 }
 0x481   : > { %v2510_v17 = vunpack.c.l.b16 %v2494_v48 }
 0x484   : > { %v2460_v42 = vpop.f32.mrf.mxu2 }
 0x485   : > { %v2479_v53 = vmax.f32 %v2431_v7, %v2460_v42 }
 0x486   : > { %v2434_v57 = vpop.f32.mrf.mxu1 }
 0x487   : > { %v2495_v58 = vpack.c.bf16 %v2479_v53, %v2479_v53 }
 0x489   : > { %v2511_v14 = vunpack.c.l.b16 %v2495_v58 }
 0x48b   : > { %v2518_v39 = vpack.c.b16 %v2511_v14, %v2510_v17 }
 0x48c   : > { %v2463_v61 = vpop.f32.mrf.mxu2 }
 0x48d   : > { %6360 = vmatmul.msk.bf16.vlgmr.msra.gmra.mxu3 %vm2522_vm3, %v2518_v39  ;;  %6368 = vmatmul.msk.bf16.vlgmr.msrb.gmra.mxu0 %vm2522_vm3, %v2518_v39  ;;  %v2480_v33 = vmax.f32 %v2434_v57, %v2463_v61 }
 0x48e   : > { %v2436_v54 = vpop.f32.mrf.mxu1  ;;  %6407 = vmatpush.bf16.msk.msra.mxu3 %vm7467_vm14, %v9598_v26 }
 0x48f   : > { %v2496_v22 = vpack.c.bf16 %v2480_v33, %v2480_v33 }
 0x491   : > { %v2512_v35 = vunpack.c.l.b16 %v2496_v22 }
 0x494   : > { %v2465_v49 = vpop.f32.mrf.mxu2 }
 0x495   : > { %v2481_v40 = vmax.f32 %v2436_v54, %v2465_v49 }
 0x496   : > { %v2439_v34 = vpop.f32.mrf.mxu1 }
 0x497   : > { %v2497_v36 = vpack.c.bf16 %v2481_v40, %v2481_v40 }
 0x499   : > { %v2513_v59 = vunpack.c.l.b16 %v2497_v36 }
 0x49b   : > { %v2519_v45 = vpack.c.b16 %v2513_v59, %v2512_v35 }
 0x49c   : > { %v2468_v12 = vpop.f32.mrf.mxu2 }
 0x49d   : > { %6361 = vmatmul.msk.bf16.gmra.mxu3 %vm2522_vm3, %v2519_v45  ;;  %6369 = vmatmul.msk.bf16.gmra.mxu0 %vm2522_vm3, %v2519_v45  ;;  %v2482_v23 = vmax.f32 %v2439_v34, %v2468_v12 }
 0x49e   : > { %v2441_v20 = vpop.f32.mrf.mxu1 }
 0x49f   : > { %v2498_v24 = vpack.c.bf16 %v2482_v23, %v2482_v23 }
 0x4a1   : > { %v2514_v31 = vunpack.c.l.b16 %v2498_v24 }
 0x4a4   : > { %v2470_v52 = vpop.f32.mrf.mxu2 }
 0x4a5   : > { %v2483_v19 = vmax.f32 %v2441_v20, %v2470_v52 }
 0x4a6   : > { %v2444_v28 = vpop.f32.mrf.mxu1 }
 0x4a7   : > { %v2499_v4 = vpack.c.bf16 %v2483_v19, %v2483_v19 }
 0x4a9   : > { %v2515_v56 = vunpack.c.l.b16 %v2499_v4 }
 0x4ab   : > { %v2520_v25 = vpack.c.b16 %v2515_v56, %v2514_v31 }
 0x4ac   : > { %v2473_v60 = vpop.f32.mrf.mxu2 }
 0x4ad   : > { %6362 = vmatmul.msk.bf16.gmra.mxu3 %vm2522_vm3, %v2520_v25  ;;  %6370 = vmatmul.msk.bf16.gmra.mxu0 %vm2522_vm3, %v2520_v25  ;;  %v2484_v18 = vmax.f32 %v2444_v28, %v2473_v60 }
 0x4ae   : > { %v2446_v16 = vpop.f32.mrf.mxu1 }
 0x4af   : > { %v2500_v51 = vpack.c.bf16 %v2484_v18, %v2484_v18 }
 0x4b1   : > { %v2516_v5 = vunpack.c.l.b16 %v2500_v51 }
 0x4b4   : > { %v2475_v0 = vpop.f32.mrf.mxu2 }
 0x4b5   : > { %v2485_v27 = vmax.f32 %v2446_v16, %v2475_v0 }
 0x4b7   : > { %v2501_v50 = vpack.c.bf16 %v2485_v27, %v2485_v27 }
 0x4b9   : > { %v2517_v21 = vunpack.c.l.b16 %v2501_v50  ;;  %v6854_v50 = vld [vmem:[%s9617_s8 + $0x4] sm:$0xf] }
 0x4bb   : > { %v2521_v6 = vpack.c.b16 %v2517_v21, %v2516_v5  ;;  %v6376_v5 = vld [vmem:[%s9617_s8 + $0x8] sm:$0xf0] }
 0x4bd   : > { %6363 = vmatmul.msk.bf16.gmra.mxu3 %vm2522_vm3, %v2521_v6  ;;  %6371 = vmatmul.msk.bf16.gmra.mxu0 %vm2522_vm3, %v2521_v6 }
 0x4be   : > { %2705 = vmatpush.bf16.msra.mxu1 %v2521_v6 }
 0x4c2   : > { %2706 = vmatpush.bf16.msra.mxu1 %v2520_v25 }
 0x4c6   : > { %2707 = vmatpush.bf16.msra.mxu1 %v2519_v45 }
 0x4ca   : > { %2708 = vmatpush.bf16.msra.mxu1 %v2518_v39 }
 0x50a   : > { %v2573_v38 = vpop.f32.mrf.mxu0 }
 0x50b   : > { %v2601_v24 = vpack.c.bf16 %v2573_v38, %v2573_v38 }
 0x50d   : > { %v2645_v16 = vunpack.c.l.b16 %v2601_v24 }
 0x510   : > { %v8399_v55 = vpop.f32.mrf.mxu3 }
 0x511   : > { %v2593_v21 = vpack.c.bf16 %v8399_v55, %v8399_v55  ;;  %v6855_v55 = vld [vmem:[%s9617_s8 + $0x4] sm:$0xf0] }
 0x512   : > { %v2575_v9 = vpop.f32.mrf.mxu0 }
 0x513   : > { %v2602_v59 = vpack.c.bf16 %v2575_v9, %v2575_v9  ;;  %v6379_v9 = vor.u32 %v6854_v50, %v6376_v5 }
 0x515   : > { %v2646_v28 = vunpack.c.l.b16 %v2602_v59 }
 0x517   : > { %v2653_v38 = vpack.c.b16 %v2646_v28, %v2645_v16 }
 0x518   : > { %v2546_v11 = vpop.f32.mrf.mxu3 }
 0x519   : > { %v2594_v0 = vpack.c.bf16 %v2546_v11, %v2546_v11 }
 0x51a   : > { %v2578_v3 = vpop.f32.mrf.mxu0 }
 0x51b   : > { %v2603_v40 = vpack.c.bf16 %v2578_v3, %v2578_v3  ;;  %v2618_v3 = vunpack.c.l.b16 %v2594_v0 }
 0x51d   : > { %v2647_v19 = vunpack.c.l.b16 %v2603_v40 }
 0x520   : > { %v2549_v10 = vpop.f32.mrf.mxu3 }
 0x521   : > { %v2595_v25 = vpack.c.bf16 %v2549_v10, %v2549_v10  ;;  %v2617_v10 = vunpack.c.l.b16 %v2593_v21 }
 0x522   : > { %v2580_v32 = vpop.f32.mrf.mxu0 }
 0x523   : > { %v2604_v61 = vpack.c.bf16 %v2580_v32, %v2580_v32  ;;  %v2619_v6 = vunpack.c.l.b16 %v2595_v25  ;;  %v6374_v32 = vld [vmem:[%s9617_s8] sm:$0xf] }
 0x525   : > { %v2648_v45 = vunpack.c.l.b16 %v2604_v61 }
 0x527   : > { %v2654_v18 = vpack.c.b16 %v2648_v45, %v2647_v19 }
 0x528   : > { %v2551_v37 = vpop.f32.mrf.mxu3 }
 0x529   : > { %v2596_v4 = vpack.c.bf16 %v2551_v37, %v2551_v37  ;;  %v2625_v37 = vpack.c.b16 %v2618_v3, %v2617_v10 }
 0x52a   : > { %v2583_v8 = vpop.f32.mrf.mxu0 }
 0x52b   : > { %v2605_v17 = vpack.c.bf16 %v2583_v8, %v2583_v8  ;;  %v2620_v51 = vunpack.c.l.b16 %v2596_v4  ;;  %v6375_v8 = vor.u32 %v6855_v55, %v6374_v32 }
 0x52d   : > { %v2649_v34 = vunpack.c.l.b16 %v2605_v17  ;;  %v2626_v11 = vpack.c.b16 %v2620_v51, %v2619_v6 }
 0x530   : > { %v2554_v13 = vpop.f32.mrf.mxu3 }
 0x531   : > { %v2597_v12 = vpack.c.bf16 %v2554_v13, %v2554_v13  ;;  %v6856_v13 = vld [vmem:[%s9617_s8 + $0x14] sm:$0xf] }
 0x532   : > { %v2585_v46 = vpop.f32.mrf.mxu0 }
 0x533   : > { %v2606_v57 = vpack.c.bf16 %v2585_v46, %v2585_v46  ;;  %v2621_v60 = vunpack.c.l.b16 %v2597_v12  ;;  %v6384_v46 = vld [vmem:[%s9617_s8 + $0x18] sm:$0xf0]  ;;  %s6817_s8 = sshll.u32 %s9740_s3, 8 }
 0x535   : > { %v2650_v54 = vunpack.c.l.b16 %v2606_v57 }
 0x537   : > { %v2655_v52 = vpack.c.b16 %v2650_v54, %v2649_v34  ;;  %v2674_v34 = vpop.permute.xlu2 %2673 }
 0x538   : > { %v2556_v7 = vpop.f32.mrf.mxu3 }
 0x539   : > { %v2598_v36 = vpack.c.bf16 %v2556_v7, %v2556_v7  ;;  %v6387_v7 = vor.u32 %v6856_v13, %v6384_v46 }
 0x53a   : > { %v2588_v41 = vpop.f32.mrf.mxu0 }
 0x53b   : > { %v2607_v48 = vpack.c.bf16 %v2588_v41, %v2588_v41  ;;  %v2622_v31 = vunpack.c.l.b16 %v2598_v36  ;;  %v6383_v41 = vor.u32 %v6857_v43, %v6382_v30 }
 0x53d   : > { %v2651_v14 = vunpack.c.l.b16 %v2607_v48  ;;  %v2627_v27 = vpack.c.b16 %v2622_v31, %v2621_v60 }
 0x540   : > { %v2559_v42 = vpop.f32.mrf.mxu3 }
 0x541   : > { %v2599_v33 = vpack.c.bf16 %v2559_v42, %v2559_v42 }
 0x542   : > { %v2590_v53 = vpop.f32.mrf.mxu0 }
 0x543   : > { %v2608_v58 = vpack.c.bf16 %v2590_v53, %v2590_v53  ;;  %v2623_v20 = vunpack.c.l.b16 %v2599_v33  ;;  %v2664_v53 = vpop.permute.xlu0 %2663 }
 0x545   : > { %v2652_v39 = vunpack.c.l.b16 %v2608_v58  ;;  %v2669_v58 = vpop.permute.xlu1 %2668 }
 0x547   : > { %v2656_v49 = vpack.c.b16 %v2652_v39, %v2651_v14 }
 0x548   : > { %v2561_v22 = vpop.f32.mrf.mxu3 }
 0x549   : > { %v2600_v35 = vpack.c.bf16 %v2561_v22, %v2561_v22  ;;  %2728 = vmatpush.bf16.msrb.mxu2 %v2656_v49 }
 0x54b   : > { %v2624_v23 = vunpack.c.l.b16 %v2600_v35  ;;  %v2679_v35 = vpop.permute.xlu0 %2678 }
 0x54d   : > { %2729 = vmatpush.bf16.msrb.mxu2 %v2655_v52  ;;  %v2628_v56 = vpack.c.b16 %v2624_v23, %v2623_v20 }
 0x54f   : > { %2709 = vmatpush.bf16.msra.mxu1 %v2628_v56 }
 0x551   : > { %2730 = vmatpush.bf16.msrb.mxu2 %v2654_v18 }
 0x553   : > { %2710 = vmatpush.bf16.msra.mxu1 %v2627_v27 }
 0x555   : > { %2731 = vmatpush.bf16.msrb.mxu2 %v2653_v38 }
 0x557   : > { %2711 = vmatpush.bf16.msra.mxu1 %v2626_v11 }
 0x558   : > { %6388 = vmatmul.msk.bf16.vlgmr.msrb.gmra.mxu2 %vm9506_vm6, %v6379_v9 }
 0x559   : > { %6403 = vmatpush.bf16.msk.msra.mxu2 %vm7455_vm15, %v9598_v26 }
 0x55b   : > { %2712 = vmatpush.bf16.msra.mxu1 %v2625_v37 }
 0x55d   : > { %6425 = vmatpush.bf16.msk.msrb.mxu2 %vm8159_vm8, %v9598_v26 }
 0x55e   : > { %2713 = vmatmul.bf16.vlgmr.msra.gmra.mxu1 %v6375_v8 }
 0x55f   : > { %6397 = vmatpush.bf16.msk.msrb.mxu1 %vm8134_vm9, %v9598_v26  ;;  %vm9509_vm9 = vcmask 1043456  }
 0x563   : > { %6399 = vmatpush.bf16.msk.msrb.mxu1 %vm8159_vm8, %v9598_v26  ;;  %vm3409_vm8 = vcmask 15360  }
 0x567   : > { %6421 = vmatpush.bf16.msk.msra.mxu1 %vm8148_vm12, %v9598_v26  ;;  %vm3031_vm12 = vcmask 64512  }
 0x568   : > { %6389 = vmatmul.msk.bf16.gmra.mxu2 %vm9506_vm6, %v6387_v7  ;;  %vm3823_vm6 = vcmask 80896  }
 0x56e   : > { %2718 = vmatmul.bf16.gmra.mxu1 %v6383_v41 }
 0x5db   : > { %v2714_v42 = vpop.f32.mrf.mxu1  ;;  %v2733_v48 = vpop.f32.mrf.mxu2 }
 0x5dc   : > { %v2715_v57 = vadd.f32 %v2714_v42, %v2664_v53 }
 0x5de   : > { %v2734_v14 = vadd.f32 %v2733_v48, %v2715_v57 }
 0x5e0   : > { %v2743_v54 = vmax.f32 %v2734_v14, 0.0 }
 0x5e3   : > { %v2716_v47 = vpop.f32.mrf.mxu1  ;;  %v2735_v17 = vpop.f32.mrf.mxu2 }
 0x5e4   : > { %v2717_v39 = vadd.f32 %v2716_v47, %v2669_v58 }
 0x5e6   : > { %v2736_v61 = vadd.f32 %v2735_v17, %v2717_v39 }
 0x5e8   : > { %v2744_v33 = vmax.f32 %v2736_v61, 0.0 }
 0x5ea   : > { %v2747_v49 = vpack.c.bf16 %v2744_v33, %v2743_v54 }
 0x5eb   : > { %v2719_v22 = vpop.f32.mrf.mxu1  ;;  %v2738_v40 = vpop.f32.mrf.mxu2 }
 0x5ec   : > { %6394 = vmatmul.msk.bf16.vlgmr.msrb.gmra.mxu3 %vm2522_vm3, %v2747_v49  ;;  %6400 = vmatmul.msk.bf16.vlgmr.msrb.gmra.mxu1 %vm2522_vm3, %v2747_v49  ;;  %v2720_v36 = vadd.f32 %v2719_v22, %v2674_v34 }
 0x5ee   : > { %v2739_v45 = vadd.f32 %v2738_v40, %v2720_v36 }
 0x5f0   : > { %v2745_v52 = vmax.f32 %v2739_v45, 0.0 }
 0x5f3   : > { %v2721_v59 = vpop.f32.mrf.mxu1  ;;  %v2740_v20 = vpop.f32.mrf.mxu2 }
 0x5f4   : > { %v2722_v12 = vadd.f32 %v2721_v59, %v2679_v35 }
 0x5f6   : > { %v2741_v23 = vadd.f32 %v2740_v20, %v2722_v12  ;;  %v6858_v12 = vld [vmem:[%s9618_s6] sm:$0xff]  ;;  %v6859_v20 = vld [vmem:[%s9618_s6 + $0x8] sm:$0xff] }
 0x5f8   : > { %v2746_v24 = vmax.f32 %v2741_v23, 0.0 }
 0x5fa   : > { %v2748_v19 = vpack.c.bf16 %v2746_v24, %v2745_v52  ;;  %v2901_v52 = vpop.permute.xlu1 %2900 }
 0x5fc   : > { %6395 = vmatmul.msk.bf16.gmra.mxu3 %vm2522_vm3, %v2748_v19  ;;  %6401 = vmatmul.msk.bf16.gmra.mxu1 %vm2522_vm3, %v2748_v19  ;;  %v2906_v19 = vpop.permute.xlu2 %2905  ;;  %vm3510_vm3 = vcmask 392192  }
 0x604   : > { %v3121_v62 = vpop.permute.xlu2 %3120 }
 0x669   : > { %v2783_v4 = vpop.f32.mrf.mxu1 }
 0x66f   : > { %v2764_v31 = vpop.f32.mrf.mxu3 }
 0x670   : > { %v2793_v28 = vmax.f32 %v2764_v31, %v2783_v4 }
 0x671   : > { %v2785_v56 = vpop.f32.mrf.mxu1 }
 0x672   : > { %v2805_v60 = vpack.c.bf16 %v2793_v28, %v2793_v28 }
 0x674   : > { %v2813_v0 = vunpack.c.l.b16 %v2805_v60 }
 0x677   : > { %v2766_v25 = vpop.f32.mrf.mxu3 }
 0x678   : > { %v2794_v18 = vmax.f32 %v2766_v25, %v2785_v56 }
 0x679   : > { %v2788_v27 = vpop.f32.mrf.mxu1 }
 0x67a   : > { %v2806_v16 = vpack.c.bf16 %v2794_v18, %v2794_v18  ;;  %v2911_v18 = vpop.permute.xlu0 %2910 }
 0x67c   : > { %v2814_v51 = vunpack.c.l.b16 %v2806_v16 }
 0x67e   : > { %v2817_v50 = vpack.c.b16 %v2814_v51, %v2813_v0  ;;  %v2916_v0 = vpop.permute.xlu1 %2915 }
 0x67f   : > { %v2769_v5 = vpop.f32.mrf.mxu3 }
 0x680   : > { %6404 = vmatmul.msk.bf16.vlgmr.msra.gmra.mxu2 %vm2819_vm5, %v2817_v50  ;;  %6408 = vmatmul.msk.bf16.vlgmr.msra.gmra.mxu3 %vm2819_vm5, %v2817_v50  ;;  %v2795_v21 = vmax.f32 %v2769_v5, %v2788_v27 }
 0x681   : > { %v2790_v6 = vpop.f32.mrf.mxu1 }
 0x682   : > { %v2807_v9 = vpack.c.bf16 %v2795_v21, %v2795_v21 }
 0x684   : > { %v2815_v10 = vunpack.c.l.b16 %v2807_v9 }
 0x687   : > { %v2771_v38 = vpop.f32.mrf.mxu3 }
 0x688   : > { %v2796_v3 = vmax.f32 %v2771_v38, %v2790_v6  ;;  %v9619_v6 = vmov 0.0   ;;  %v9620_v38 = vld [vmem:[#allocation28_spill] sm:$0xff] }
 0x689   : > { %vm9621_vm1 = vcmp.eq.s32.totalorder %v7101_v2, %v9620_v38 }
 0x68a   : > { %v2808_v11 = vpack.c.bf16 %v2796_v3, %v2796_v3  ;;  %v8468_v9 = vsel %vm9621_vm1, 1.0, %v9619_v6  ;;  %v9622_v3 = vld [vmem:[#allocation29_spill] sm:$0xff] }
 0x68b   : > { %vm9623_vm4 = vcmp.eq.s32.totalorder %v7101_v2, %v9622_v3 }
 0x68c   : > { %v2816_v32 = vunpack.c.l.b16 %v2808_v11  ;;  %v8474_v11 = vsel %vm9623_vm4, 1.0, %v9619_v6 }
 0x68e   : > { %v2818_v55 = vpack.c.b16 %v2816_v32, %v2815_v10  ;;  %v8478_v10 = vpack.c.bf16 %v8468_v9, %v8468_v9  ;;  %v8482_v32 = vpack.c.bf16 %v8474_v11, %v8474_v11 }
 0x690   : > { %6405 = vmatmul.msk.bf16.gmra.mxu2 %vm2819_vm5, %v2818_v55  ;;  %6409 = vmatmul.msk.bf16.gmra.mxu3 %vm2819_vm5, %v2818_v55 }
 0x703   : > { %v2854_v37 = vpop.f32.mrf.mxu3  ;;  %v2835_v8 = vpop.f32.mrf.mxu2 }
 0x704   : > { %v2868_v53 = vpack.c.bf16 %v2854_v37, %v2854_v37  ;;  %v2864_v40 = vpack.c.bf16 %v2835_v8, %v2835_v8  ;;  %v3063_v37 = vsel %vm9509_vm9, %v8482_v32, 0 }
 0x706   : > { %v2890_v14 = vunpack.c.l.b16 %v2868_v53  ;;  %v2876_v59 = vunpack.c.l.b16 %v2864_v40 }
 0x70b   : > { %v2856_v13 = vpop.f32.mrf.mxu3  ;;  %v2837_v46 = vpop.f32.mrf.mxu2 }
 0x70c   : > { %v2869_v42 = vpack.c.bf16 %v2856_v13, %v2856_v13  ;;  %v2865_v49 = vpack.c.bf16 %v2837_v46, %v2837_v46 }
 0x70e   : > { %v2891_v47 = vunpack.c.l.b16 %v2869_v42  ;;  %v2877_v36 = vunpack.c.l.b16 %v2865_v49 }
 0x710   : > { %v2894_v39 = vpack.c.b16 %v2891_v47, %v2890_v14  ;;  %v2880_v45 = vpack.c.b16 %v2877_v36, %v2876_v59 }
 0x713   : > { %v2859_v7 = vpop.f32.mrf.mxu3  ;;  %v2840_v43 = vpop.f32.mrf.mxu2 }
 0x714   : > { %v2870_v30 = vpack.c.bf16 %v2859_v7, %v2859_v7  ;;  %v2866_v33 = vpack.c.bf16 %v2840_v43, %v2840_v43 }
 0x716   : > { %v2892_v57 = vunpack.c.l.b16 %v2870_v30  ;;  %v2878_v34 = vunpack.c.l.b16 %v2866_v33 }
 0x71b   : > { %v2861_v41 = vpop.f32.mrf.mxu3  ;;  %v2842_v61 = vpop.f32.mrf.mxu2 }
 0x71c   : > { %v2871_v48 = vpack.c.bf16 %v2861_v41, %v2861_v41  ;;  %v2867_v54 = vpack.c.bf16 %v2842_v61, %v2842_v61 }
 0x71e   : > { %v2893_v58 = vunpack.c.l.b16 %v2871_v48  ;;  %v2879_v22 = vunpack.c.l.b16 %v2867_v54 }
 0x720   : > { %v2895_v17 = vpack.c.b16 %v2893_v58, %v2892_v57  ;;  %v2881_v35 = vpack.c.b16 %v2879_v22, %v2878_v34 }
 0x722   : > { %2937 = vmatpush.bf16.msra.mxu0 %v2895_v17 }
 0x726   : > { %2938 = vmatpush.bf16.msra.mxu0 %v2894_v39 }
 0x72a   : > { %2939 = vmatpush.bf16.msra.mxu0 %v2818_v55  ;;  %v3040_v55 = vsel %vm9509_vm9, %v8478_v10, 0 }
 0x72b   : > { %3049 = vmatpush.bf16.msrb.mxu3 %v3040_v55 }
 0x72e   : > { %2940 = vmatpush.bf16.msra.mxu0 %v2817_v50 }
 0x732   : > { %2941 = vmatpush.bf16.msra.mxu0 %v2881_v35 }
 0x736   : > { %2942 = vmatpush.bf16.msra.mxu0 %v2880_v45 }
 0x739   : > { %6418 = vmatmul.msk.bf16.vlgmr.msra.gmra.mxu0 %vm9508_vm7, %v6858_v12 }
 0x73a   : > { %3072 = vmatpush.bf16.msrb.mxu0 %v3063_v37  ;;  %v6860_v37 = vld [vmem:[%s9624_s29] sm:$0xff] }
 0x749   : > { %6419 = vmatmul.msk.bf16.gmra.mxu0 %vm9508_vm7, %v6859_v20 }
 0x7b6   : > { %v2944_v23 = vpop.f32.mrf.mxu0 }
 0x7b7   : > { %v2945_v24 = vadd.f32 %v2944_v23, %v2901_v52 }
 0x7b9   : > { %v2954_v56 = vmax.f32 %v2945_v24, 0.0 }
 0x7be   : > { %v2946_v4 = vpop.f32.mrf.mxu0 }
 0x7bf   : > { %v2947_v31 = vadd.f32 %v2946_v4, %v2906_v19 }
 0x7c1   : > { %v2955_v28 = vmax.f32 %v2947_v31, 0.0 }
 0x7c3   : > { %v2958_v25 = vpack.c.bf16 %v2955_v28, %v2954_v56 }
 0x7c5   : > { %6422 = vmatmul.msk.bf16.vlgmr.msra.gmra.mxu1 %vm2819_vm5, %v2958_v25  ;;  %6426 = vmatmul.msk.bf16.vlgmr.msrb.gmra.mxu2 %vm2819_vm5, %v2958_v25 }
 0x7c6   : > { %v2949_v60 = vpop.f32.mrf.mxu0 }
 0x7c7   : > { %v2950_v16 = vadd.f32 %v2949_v60, %v2911_v18 }
 0x7c9   : > { %v2956_v50 = vmax.f32 %v2950_v16, 0.0 }
 0x7ce   : > { %v2951_v51 = vpop.f32.mrf.mxu0 }
 0x7cf   : > { %v2952_v27 = vadd.f32 %v2951_v51, %v2916_v0 }
 0x7d1   : > { %v2957_v5 = vmax.f32 %v2952_v27, 0.0 }
 0x7d3   : > { %v2959_v21 = vpack.c.bf16 %v2957_v5, %v2956_v50 }
 0x7d5   : > { %6423 = vmatmul.msk.bf16.gmra.mxu1 %vm2819_vm5, %v2959_v21  ;;  %6427 = vmatmul.msk.bf16.gmra.mxu2 %vm2819_vm5, %v2959_v21 }
 0x842   : > { %v2975_v8 = vpop.f32.mrf.mxu1 }
 0x848   : > { %v2994_v13 = vpop.f32.mrf.mxu2 }
 0x849   : > { %v3004_v7 = vmax.f32 %v2975_v8, %v2994_v13  ;;  %v6861_v8 = vld [vmem:[%s9624_s29 + $0x8] sm:$0xff]  ;;  %v1679_v13 = vsel %vm1663_vm0, 1.0, %v9619_v6  ;;  %vm3260_vm0 = vcmask 1041408  }
 0x84a   : > { %v2977_v46 = vpop.f32.mrf.mxu1 }
 0x84b   : > { %v3016_v43 = vpack.c.bf16 %v3004_v7, %v3004_v7  ;;  %v8508_v7 = vpack.c.bf16 %v1679_v13, %v1679_v13 }
 0x84d   : > { %v3025_v48 = vunpack.c.l.b16 %v3016_v43  ;;  %v3188_v43 = vsel %vm9509_vm9, %v8508_v7, 0 }
 0x84e   : > { %3197 = vmatpush.bf16.msra.mxu2 %v3188_v43 }
 0x850   : > { %v2996_v30 = vpop.f32.mrf.mxu2 }
 0x851   : > { %v3005_v41 = vmax.f32 %v2977_v46, %v2996_v30  ;;  %v1720_v46 = vsel %vm1704_vm13, 1.0, %v9619_v6  ;;  %vm3253_vm13 = vcmask 31744  }
 0x852   : > { %v2980_v57 = vpop.f32.mrf.mxu1  ;;  %v8510_v30 = vpack.c.bf16 %v1720_v46, %v1720_v46 }
 0x853   : > { %v3017_v42 = vpack.c.bf16 %v3005_v41, %v3005_v41 }
 0x854   : > { %v3210_v41 = vsel %vm9509_vm9, %v8510_v30, 0  ;;  %vm4077_vm9 = vcmask 179200  }
 0x855   : > { %v3026_v53 = vunpack.c.l.b16 %v3017_v42  ;;  %3219 = vmatpush.bf16.msra.mxu3 %v3210_v41 }
 0x857   : > { %v3029_v58 = vpack.c.b16 %v3026_v53, %v3025_v48  ;;  %v3126_v53 = vpop.permute.xlu0 %3125 }
 0x858   : > { %v2999_v47 = vpop.f32.mrf.mxu2 }
 0x859   : > { %6428 = vmatmul.msk.bf16.vlgmr.msrb.gmra.mxu3 %vm3031_vm12, %v3029_v58  ;;  %6430 = vmatmul.msk.bf16.vlgmr.msrb.gmra.mxu0 %vm3031_vm12, %v3029_v58  ;;  %v3006_v17 = vmax.f32 %v2980_v57, %v2999_v47 }
 0x85a   : > { %v2982_v14 = vpop.f32.mrf.mxu1 }
 0x85b   : > { %v3018_v61 = vpack.c.bf16 %v3006_v17, %v3006_v17 }
 0x85d   : > { %v3027_v49 = vunpack.c.l.b16 %v3018_v61 }
 0x860   : > { %v3001_v39 = vpop.f32.mrf.mxu2 }
 0x861   : > { %v3007_v54 = vmax.f32 %v2982_v14, %v3001_v39  ;;  %v3131_v39 = vpop.permute.xlu1 %3130 }
 0x863   : > { %v3019_v33 = vpack.c.bf16 %v3007_v54, %v3007_v54  ;;  %v3136_v54 = vpop.permute.xlu2 %3135 }
 0x865   : > { %v3028_v22 = vunpack.c.l.b16 %v3019_v33 }
 0x867   : > { %v3030_v40 = vpack.c.b16 %v3028_v22, %v3027_v49 }
 0x869   : > { %6429 = vmatmul.msk.bf16.gmra.mxu3 %vm3031_vm12, %v3030_v40  ;;  %6431 = vmatmul.msk.bf16.gmra.mxu0 %vm3031_vm12, %v3030_v40 }
 0x8d6   : > { %v3074_v34 = vpop.f32.mrf.mxu0 }
 0x8d7   : > { %v3088_v19 = vpack.c.bf16 %v3074_v34, %v3074_v34 }
 0x8d9   : > { %v3110_v25 = vunpack.c.l.b16 %v3088_v19 }
 0x8dc   : > { %v3051_v36 = vpop.f32.mrf.mxu3 }
 0x8dd   : > { %v3084_v50 = vpack.c.bf16 %v3051_v36, %v3051_v36  ;;  %v3261_v36 = vsel %vm3260_vm0, %v8478_v10, 0 }
 0x8de   : > { %v3076_v35 = vpop.f32.mrf.mxu0  ;;  %3270 = vmatpush.bf16.msra.mxu0 %v3261_v36 }
 0x8df   : > { %v3089_v52 = vpack.c.bf16 %v3076_v35, %v3076_v35  ;;  %v3096_v3 = vunpack.c.l.b16 %v3084_v50  ;;  %v3282_v35 = vsel %vm3260_vm0, %v8482_v32, 0 }
 0x8e1   : > { %v3111_v56 = vunpack.c.l.b16 %v3089_v52 }
 0x8e3   : > { %v3114_v60 = vpack.c.b16 %v3111_v56, %v3110_v25 }
 0x8e4   : > { %v3053_v59 = vpop.f32.mrf.mxu3 }
 0x8e5   : > { %v3085_v51 = vpack.c.bf16 %v3053_v59, %v3053_v59 }
 0x8e6   : > { %v3079_v45 = vpop.f32.mrf.mxu0 }
 0x8e7   : > { %v3090_v12 = vpack.c.bf16 %v3079_v45, %v3079_v45  ;;  %v3097_v21 = vunpack.c.l.b16 %v3085_v51 }
 0x8e9   : > { %v3112_v4 = vunpack.c.l.b16 %v3090_v12  ;;  %v3100_v55 = vpack.c.b16 %v3097_v21, %v3096_v3 }
 0x8ec   : > { %v3056_v20 = vpop.f32.mrf.mxu3 }
 0x8ed   : > { %v3086_v0 = vpack.c.bf16 %v3056_v20, %v3056_v20 }
 0x8ee   : > { %v3081_v23 = vpop.f32.mrf.mxu0 }
 0x8ef   : > { %v3091_v24 = vpack.c.bf16 %v3081_v23, %v3081_v23  ;;  %v3098_v5 = vunpack.c.l.b16 %v3086_v0 }
 0x8f1   : > { %v3113_v31 = vunpack.c.l.b16 %v3091_v24 }
 0x8f3   : > { %v3115_v28 = vpack.c.b16 %v3113_v31, %v3112_v4 }
 0x8f4   : > { %v3058_v18 = vpop.f32.mrf.mxu3 }
 0x8f5   : > { %3156 = vmatpush.bf16.msrb.mxu1 %v3115_v28  ;;  %v3087_v16 = vpack.c.bf16 %v3058_v18, %v3058_v18 }
 0x8f7   : > { %v3099_v27 = vunpack.c.l.b16 %v3087_v16 }
 0x8f9   : > { %3157 = vmatpush.bf16.msrb.mxu1 %v3114_v60  ;;  %v3101_v38 = vpack.c.b16 %v3099_v27, %v3098_v5 }
 0x8fd   : > { %3158 = vmatpush.bf16.msrb.mxu1 %v3030_v40 }
 0x901   : > { %3159 = vmatpush.bf16.msrb.mxu1 %v3029_v58 }
 0x905   : > { %3160 = vmatpush.bf16.msrb.mxu1 %v3101_v38 }
 0x909   : > { %3161 = vmatpush.bf16.msrb.mxu1 %v3100_v55 }
 0x90c   : > { %6440 = vmatmul.msk.bf16.vlgmr.msrb.gmra.mxu1 %vm9508_vm7, %v6860_v37 }
 0x90d   : > { %3291 = vmatpush.bf16.msra.mxu1 %v3282_v35  ;;  %v6862_v35 = vld [vmem:[%s9625_s1] sm:$0xff] }
 0x91c   : > { %6441 = vmatmul.msk.bf16.gmra.mxu1 %vm9508_vm7, %v6861_v8 }
 0x989   : > { %v3163_v42 = vpop.f32.mrf.mxu1 }
 0x98a   : > { %v3164_v48 = vadd.f32 %v3163_v42, %v3121_v62 }
 0x98c   : > { %v3173_v44 = vmax.f32 %v3164_v48, 0.0 }
 0x991   : > { %v3165_v57 = vpop.f32.mrf.mxu1 }
 0x992   : > { %v3166_v58 = vadd.f32 %v3165_v57, %v3126_v53 }
 0x994   : > { %v3174_v47 = vmax.f32 %v3166_v58, 0.0 }
 0x996   : > { %v3179_v17 = vpack.c.bf16 %v3174_v47, %v3173_v44 }
 0x998   : > { %6442 = vmatmul.msk.bf16.vlgmr.msra.gmra.mxu2 %vm3031_vm12, %v3179_v17  ;;  %6444 = vmatmul.msk.bf16.vlgmr.msra.gmra.mxu3 %vm3031_vm12, %v3179_v17 }
 0x999   : > { %v3168_v14 = vpop.f32.mrf.mxu1 }
 0x99a   : > { %v3169_v61 = vadd.f32 %v3168_v14, %v3131_v39 }
 0x99c   : > { %v3175_v22 = vmax.f32 %v3169_v61, 0.0 }
 0x9a1   : > { %v3170_v33 = vpop.f32.mrf.mxu1 }
 0x9a2   : > { %v3171_v49 = vadd.f32 %v3170_v33, %v3136_v54 }
 0x9a4   : > { %v3176_v40 = vmax.f32 %v3171_v49, 0.0 }
 0x9a6   : > { %v3180_v34 = vpack.c.bf16 %v3176_v40, %v3175_v22 }
 0x9a8   : > { %6443 = vmatmul.msk.bf16.gmra.mxu2 %vm3031_vm12, %v3180_v34  ;;  %6445 = vmatmul.msk.bf16.gmra.mxu3 %vm3031_vm12, %v3180_v34  ;;  %vm3578_vm12 = vcmp.eq.s32.totalorder %v7101_v2, 4 }
 0xa1b   : > { %v3199_v59 = vpop.f32.mrf.mxu2  ;;  %v3221_v45 = vpop.f32.mrf.mxu3 }
 0xa1c   : > { %v3231_v12 = vmax.f32 %v3199_v59, %v3221_v45  ;;  %v3375_v59 = vsel %vm3260_vm0, %v8508_v7, 0  ;;  %v3391_v45 = vsel %vm3260_vm0, %v8510_v30, 0  ;;  %v3431_v7 = vsel %vm3430_vm2, %v8478_v10, 0 }
 0xa1d   : > { %3384 = vmatpush.bf16.msrb.mxu3 %v3375_v59  ;;  %v3447_v30 = vsel %vm3430_vm2, %v8482_v32, 0 }
 0xa1e   : > { %v3239_v52 = vpack.c.bf16 %v3231_v12, %v3231_v12  ;;  %3456 = vmatpush.bf16.msrb.mxu0 %v3447_v30 }
 0xa20   : > { %v3247_v4 = vunpack.c.l.b16 %v3239_v52  ;;  %v3345_v52 = vpop.permute.xlu1 %3344 }
 0xa21   : > { %3440 = vmatpush.bf16.msra.mxu3 %v3431_v7 }
 0xa23   : > { %v3201_v20 = vpop.f32.mrf.mxu2  ;;  %v3223_v23 = vpop.f32.mrf.mxu3 }
 0xa24   : > { %v3232_v24 = vmax.f32 %v3201_v20, %v3223_v23  ;;  %v3340_v20 = vpop.permute.xlu0 %3339 }
 0xa26   : > { %v3240_v19 = vpack.c.bf16 %v3232_v24, %v3232_v24 }
 0xa28   : > { %v3248_v31 = vunpack.c.l.b16 %v3240_v19 }
 0xa2a   : > { %v3251_v56 = vpack.c.b16 %v3248_v31, %v3247_v4 }
 0xa2b   : > { %v3204_v28 = vpop.f32.mrf.mxu2  ;;  %v3226_v25 = vpop.f32.mrf.mxu3 }
 0xa2c   : > { %6446 = vmatmul.msk.bf16.vlgmr.msra.gmra.mxu0 %vm3253_vm13, %v3251_v56  ;;  %6448 = vmatmul.msk.bf16.vlgmr.msra.gmra.mxu1 %vm3253_vm13, %v3251_v56  ;;  %v3233_v60 = vmax.f32 %v3204_v28, %v3226_v25 }
 0xa2e   : > { %v3241_v0 = vpack.c.bf16 %v3233_v60, %v3233_v60 }
 0xa30   : > { %v3249_v50 = vunpack.c.l.b16 %v3241_v0 }
 0xa33   : > { %v3206_v18 = vpop.f32.mrf.mxu2  ;;  %v3228_v16 = vpop.f32.mrf.mxu3 }
 0xa34   : > { %v3234_v51 = vmax.f32 %v3206_v18, %v3228_v16 }
 0xa36   : > { %v3242_v27 = vpack.c.bf16 %v3234_v51, %v3234_v51 }
 0xa38   : > { %v3250_v5 = vunpack.c.l.b16 %v3242_v27 }
 0xa3a   : > { %v3252_v21 = vpack.c.b16 %v3250_v5, %v3249_v50 }
 0xa3c   : > { %6447 = vmatmul.msk.bf16.gmra.mxu0 %vm3253_vm13, %v3252_v21  ;;  %6449 = vmatmul.msk.bf16.gmra.mxu1 %vm3253_vm13, %v3252_v21 }
 0xaa9   : > { %v3293_v38 = vpop.f32.mrf.mxu1  ;;  %v3272_v3 = vpop.f32.mrf.mxu0 }
 0xaaa   : > { %v3307_v62 = vpack.c.bf16 %v3293_v38, %v3293_v38  ;;  %v3303_v33 = vpack.c.bf16 %v3272_v3, %v3272_v3 }
 0xaac   : > { %v3329_v44 = vunpack.c.l.b16 %v3307_v62  ;;  %v3315_v34 = vunpack.c.l.b16 %v3303_v33 }
 0xab1   : > { %v3295_v55 = vpop.f32.mrf.mxu1  ;;  %v3274_v37 = vpop.f32.mrf.mxu0 }
 0xab2   : > { %v3308_v41 = vpack.c.bf16 %v3295_v55, %v3295_v55  ;;  %v3304_v61 = vpack.c.bf16 %v3274_v37, %v3274_v37 }
 0xab4   : > { %v3330_v57 = vunpack.c.l.b16 %v3308_v41  ;;  %v3316_v22 = vunpack.c.l.b16 %v3304_v61 }
 0xab6   : > { %v3333_v47 = vpack.c.b16 %v3330_v57, %v3329_v44  ;;  %v3319_v36 = vpack.c.b16 %v3316_v22, %v3315_v34  ;;  %v6864_v44 = vld [vmem:[%s9626_s0 + $0x8] sm:$0xff] }
 0xab9   : > { %v3298_v8 = vpop.f32.mrf.mxu1  ;;  %v3277_v46 = vpop.f32.mrf.mxu0 }
 0xaba   : > { %v3309_v13 = vpack.c.bf16 %v3298_v8, %v3298_v8  ;;  %v3305_v39 = vpack.c.bf16 %v3277_v46, %v3277_v46 }
 0xabc   : > { %v3331_v48 = vunpack.c.l.b16 %v3309_v13  ;;  %v3317_v49 = vunpack.c.l.b16 %v3305_v39 }
 0xac1   : > { %v3300_v43 = vpop.f32.mrf.mxu1  ;;  %v3279_v17 = vpop.f32.mrf.mxu0 }
 0xac2   : > { %v3310_v42 = vpack.c.bf16 %v3300_v43, %v3300_v43  ;;  %v3306_v14 = vpack.c.bf16 %v3279_v17, %v3279_v17 }
 0xac4   : > { %v3332_v53 = vunpack.c.l.b16 %v3310_v42  ;;  %v3318_v54 = vunpack.c.l.b16 %v3306_v14 }
 0xac6   : > { %v3334_v58 = vpack.c.b16 %v3332_v53, %v3331_v48  ;;  %v3320_v40 = vpack.c.b16 %v3318_v54, %v3317_v49  ;;  %v3483_v49 = vpop.permute.xlu2 %3482 }
 0xac8   : > { %3357 = vmatpush.bf16.msrb.mxu2 %v3334_v58  ;;  %v6863_v58 = vld [vmem:[%s9626_s0] sm:$0xff]  ;;  %s9363_s0 = scalar_lea.vmem %s9441_s26, %s6817_s8 }
 0xacc   : > { %3358 = vmatpush.bf16.msrb.mxu2 %v3333_v47  ;;  %v8557_v47 = vmul.u32 2, %v7099_v1 }
 0xace   : > { %v8560_v17 = vadd.s32 1, %v8557_v47  ;;  %vm3541_vm5 = vcmp.eq.s32.totalorder %v7101_v2, %v8557_v47 }
 0xad0   : > { %3359 = vmatpush.bf16.msrb.mxu2 %v3252_v21  ;;  %9627 = vst [vmem:[#allocation28_spill] sm:$0xff] %v8560_v17  ;;  %vm3543_vm1 = vcmp.eq.s32.totalorder %v7101_v2, %v8560_v17 }
 0xad1   : > { %vm8566_vm4 = vmor %vm3541_vm5, %vm3543_vm1 }
 0xad2   : > { %v8573_v39 = vsel %vm8566_vm4, 1.0, %v9619_v6 }
 0xad3   : > { %v8577_v61 = vpack.c.bf16 %v8573_v39, %v8573_v39 }
 0xad4   : > { %3360 = vmatpush.bf16.msrb.mxu2 %v3251_v56 }
 0xad5   : > { %v3556_v54 = vsel %vm3430_vm2, %v8577_v61, 0  ;;  %vm3579_vm2 = vcmp.eq.s32.totalorder %v7099_v1, 3 }
 0xad6   : > { %vm3580_vm5 = vmand %vm3578_vm12, %vm3579_vm2 }
 0xad8   : > { %3361 = vmatpush.bf16.msrb.mxu2 %v3320_v40  ;;  %v3488_v40 = vpop.permute.xlu0 %3487 }
 0xadc   : > { %3362 = vmatpush.bf16.msrb.mxu2 %v3319_v36 }
 0xadf   : > { %6454 = vmatmul.msk.bf16.vlgmr.msrb.gmra.mxu2 %vm9508_vm7, %v6862_v35 }
 0xae0   : > { %3400 = vmatpush.bf16.msra.mxu2 %v3391_v45 }
 0xae4   : > { %3565 = vmatpush.bf16.msrb.mxu2 %v3556_v54 }
 0xb62   : > { %v3364_v12 = vpop.f32.mrf.mxu2 }
 0xb63   : > { %v3365_v23 = vadd.f32 %v3364_v12, %v3340_v20  ;;  %v3493_v20 = vpop.permute.xlu1 %3492 }
 0xb65   : > { %v3369_v4 = vmax.f32 %v3365_v23, 0.0 }
 0xb6a   : > { %v3366_v24 = vpop.f32.mrf.mxu2 }
 0xb6b   : > { %v3367_v19 = vadd.f32 %v3366_v24, %v3345_v52  ;;  %v3498_v52 = vpop.permute.xlu2 %3497 }
 0xb6d   : > { %v3370_v31 = vmax.f32 %v3367_v19, 0.0 }
 0xb6f   : > { %v3371_v56 = vpack.c.bf16 %v3370_v31, %v3369_v4 }
 0xb71   : > { %6455 = vmatmul.msk.bf16.vlgmr.msrb.gmra.mxu3 %vm3253_vm13, %v3371_v56  ;;  %6456 = vmatmul.msk.bf16.vlgmr.msra.gmra.mxu2 %vm3253_vm13, %v3371_v56 }
 0xbf4   : > { %v3386_v28 = vpop.f32.mrf.mxu3  ;;  %v3402_v25 = vpop.f32.mrf.mxu2 }
 0xbf5   : > { %v3407_v60 = vmax.f32 %v3386_v28, %v3402_v25 }
 0xbf7   : > { %3410 = vst.msk [vmem:[%s799_s30] sm:$0xff] %vm3409_vm8, %v3407_v60  ;;  %v3420_v0 = vpack.c.bf16 %v3407_v60, %v3407_v60 }
 0xbf9   : > { %v3424_v50 = vunpack.c.l.b16 %v3420_v0 }
 0xbfc   : > { %v3388_v18 = vpop.f32.mrf.mxu3  ;;  %v3404_v16 = vpop.f32.mrf.mxu2 }
 0xbfd   : > { %v3408_v51 = vmax.f32 %v3388_v18, %v3404_v16 }
 0xbff   : > { %3411 = vst.msk [vmem:[%s799_s30 + $0x8] sm:$0xff] %vm3409_vm8, %v3408_v51  ;;  %v3421_v27 = vpack.c.bf16 %v3408_v51, %v3408_v51  ;;  %s9630_s30 = sld [smem:[#allocation42_spill]] }
 0xc01   : > { %v3425_v5 = vunpack.c.l.b16 %v3421_v27  ;;  %v6955_v27 = vmov 65535  }
 0xc03   : > { %v3426_v21 = vpack.c.b16 %v3425_v5, %v3424_v50  ;;  %v3644_v50 = vsel %vm3260_vm0, 4294967295, %v6955_v27 }
 0xc05   : > { %6457 = vmatmul.msk.bf16.vlgmr.msra.gmra.mxu3 %vm3409_vm8, %v3426_v21  ;;  %6458 = vmatmul.msk.bf16.vlgmr.msrb.gmra.mxu0 %vm3409_vm8, %v3426_v21 }
 0xc82   : > { %v3458_v38 = vpop.f32.mrf.mxu0 }
 0xc83   : > { %v3465_v55 = vpack.c.bf16 %v3458_v38, %v3458_v38 }
 0xc85   : > { %v3476_v13 = vunpack.c.l.b16 %v3465_v55 }
 0xc88   : > { %v3442_v3 = vpop.f32.mrf.mxu3 }
 0xc89   : > { %v3463_v42 = vpack.c.bf16 %v3442_v3, %v3442_v3 }
 0xc8a   : > { %v3460_v37 = vpop.f32.mrf.mxu0 }
 0xc8b   : > { %v3466_v8 = vpack.c.bf16 %v3460_v37, %v3460_v37  ;;  %v3469_v53 = vunpack.c.l.b16 %v3463_v42 }
 0xc8d   : > { %v3477_v46 = vunpack.c.l.b16 %v3466_v8 }
 0xc8f   : > { %v3478_v43 = vpack.c.b16 %v3477_v46, %v3476_v13 }
 0xc90   : > { %v3444_v41 = vpop.f32.mrf.mxu3 }
 0xc91   : > { %v3464_v62 = vpack.c.bf16 %v3444_v41, %v3444_v41  ;;  %3522 = vmatpush.bf16.msrb.mxu1 %v3478_v43 }
 0xc93   : > { %v3470_v48 = vunpack.c.l.b16 %v3464_v62 }
 0xc95   : > { %3523 = vmatpush.bf16.msrb.mxu1 %v3426_v21  ;;  %v3471_v57 = vpack.c.b16 %v3470_v48, %v3469_v53 }
 0xc99   : > { %3524 = vmatpush.bf16.msrb.mxu1 %v3471_v57 }
 0xc9c   : > { %6467 = vmatmul.msk.bf16.vlgmr.msrb.gmra.mxu1 %vm3510_vm3, %v6863_v58 }
 0xcac   : > { %6468 = vmatmul.msk.bf16.gmra.mxu1 %vm3510_vm3, %v6864_v44  ;;  %vm3577_vm3 = vcmp.eq.s32.totalorder %v7101_v2, %v7099_v1 }
 0xcad   : > { %vm3581_vm1 = vmor %vm3577_vm3, %vm3580_vm5 }
 0xcae   : > { %v3582_v7 = vsel %vm3581_vm1, 1.0, %v9619_v6 }
 0xcaf   : > { %v3583_v30 = vpack.c.bf16 %v3582_v7, %v3582_v7 }
 0xcb1   : > { %v3593_v28 = vsel %vm3260_vm0, %v3583_v30, 0  ;;  %vm3811_vm0 = vcmp.eq.s32.totalorder %v7101_v2, 10 }
 0xcb2   : > { %3602 = vmatpush.bf16.msrb.mxu3 %v3593_v28 }
 0xd19   : > { %v3526_v33 = vpop.f32.mrf.mxu1 }
 0xd1a   : > { %v3527_v22 = vadd.f32 %v3526_v33, %v3483_v49 }
 0xd1c   : > { %v3536_v35 = vmax.f32 %v3527_v22, 0.0 }
 0xd21   : > { %v3528_v34 = vpop.f32.mrf.mxu1 }
 0xd22   : > { %v3529_v36 = vadd.f32 %v3528_v34, %v3488_v40 }
 0xd24   : > { %v3537_v59 = vmax.f32 %v3529_v36, 0.0 }
 0xd26   : > { %v3547_v45 = vpack.c.bf16 %v3537_v59, %v3536_v35 }
 0xd28   : > { %6469 = vmatmul.msk.bf16.vlgmr.msrb.gmra.mxu2 %vm3409_vm8, %v3547_v45 }
 0xd29   : > { %v3531_v12 = vpop.f32.mrf.mxu1 }
 0xd2a   : > { %v3532_v23 = vadd.f32 %v3531_v12, %v3493_v20 }
 0xd2c   : > { %v3538_v4 = vmax.f32 %v3532_v23, 0.0 }
 0xd31   : > { %v3533_v24 = vpop.f32.mrf.mxu1 }
 0xd32   : > { %v3534_v19 = vadd.f32 %v3533_v24, %v3498_v52 }
 0xd34   : > { %v3539_v31 = vmax.f32 %v3534_v19, 0.0 }
 0xd36   : > { %v3548_v56 = vpack.c.bf16 %v3539_v31, %v3538_v4 }
 0xd38   : > { %6470 = vmatmul.msk.bf16.gmra.mxu2 %vm3409_vm8, %v3548_v56  ;;  %vm3643_vm8 = vcmask 1042432  }
 0xd39   : > { %v8597_v5 = vsel %vm3643_vm8, %v3644_v50, 0 }
 0xd3a   : > { %v3646_v21 = vand.u32 %v8597_v5, %v8478_v10  ;;  %v3667_v38 = vand.u32 %v8597_v5, %v8482_v32 }
 0xd3c   : > { %3655 = vmatpush.bf16.msra.mxu0 %v3646_v21  ;;  %3676 = vmatpush.bf16.msra.mxu1 %v3667_v38  ;;  %v3725_v21 = vpop.permute.xlu0 %3724 }
 0xdab   : > { %v3567_v25 = vpop.f32.mrf.mxu2 }
 0xdb3   : > { %v3569_v60 = vpop.f32.mrf.mxu2 }
 0xdb4   : > { %v3584_v18 = vpack.c.bf16 %v3569_v60, %v3567_v25 }
 0xdb6   : > { %6471 = vmatmul.msk.bf16.vlgmr.msrb.gmra.mxu3 %vm3253_vm13, %v3584_v18 }
 0xdbb   : > { %v3572_v16 = vpop.f32.mrf.mxu2 }
 0xdc3   : > { %v3574_v0 = vpop.f32.mrf.mxu2 }
 0xdc4   : > { %v3585_v51 = vpack.c.bf16 %v3574_v0, %v3572_v16  ;;  %v6865_v16 = vld [vmem:[%s9630_s30] sm:$0xff]  ;;  %v6866_v0 = vld [vmem:[%s9630_s30 + $0x8] sm:$0xff] }
 0xdc6   : > { %6472 = vmatmul.msk.bf16.gmra.mxu3 %vm3253_vm13, %v3585_v51  ;;  %vm3636_vm13 = vcmask 39936   ;;  %v3789_v51 = vand.u32 %v8597_v5, %v8577_v61 }
 0xdc8   : > { %3798 = vmatpush.bf16.msra.mxu3 %v3789_v51 }
 0xe39   : > { %v3604_v3 = vpop.f32.mrf.mxu3 }
 0xe3a   : > { %v3622_v55 = vpack.c.bf16 %v3604_v3, %v3604_v3  ;;  %v3730_v3 = vpop.permute.xlu1 %3729 }
 0xe3c   : > { %v3630_v13 = vunpack.c.l.b16 %v3622_v55 }
 0xe41   : > { %v3606_v37 = vpop.f32.mrf.mxu3 }
 0xe42   : > { %v3623_v8 = vpack.c.bf16 %v3606_v37, %v3606_v37 }
 0xe44   : > { %v3631_v46 = vunpack.c.l.b16 %v3623_v8 }
 0xe46   : > { %v3634_v43 = vpack.c.b16 %v3631_v46, %v3630_v13 }
 0xe48   : > { %6473 = vmatmul.msk.bf16.vlgmr.msra.gmra.mxu0 %vm3636_vm13, %v3634_v43  ;;  %6475 = vmatmul.msk.bf16.vlgmr.msra.gmra.mxu1 %vm3636_vm13, %v3634_v43 }
 0xe49   : > { %v3609_v41 = vpop.f32.mrf.mxu3 }
 0xe4a   : > { %v3624_v42 = vpack.c.bf16 %v3609_v41, %v3609_v41  ;;  %v3735_v41 = vpop.permute.xlu2 %3734 }
 0xe4c   : > { %v3632_v48 = vunpack.c.l.b16 %v3624_v42 }
 0xe51   : > { %v3611_v10 = vpop.f32.mrf.mxu3 }
 0xe52   : > { %v3625_v62 = vpack.c.bf16 %v3611_v10, %v3611_v10  ;;  %v3740_v10 = vpop.permute.xlu0 %3739 }
 0xe54   : > { %v3633_v32 = vunpack.c.l.b16 %v3625_v62 }
 0xe56   : > { %v3635_v53 = vpack.c.b16 %v3633_v32, %v3632_v48 }
 0xe58   : > { %6474 = vmatmul.msk.bf16.gmra.mxu0 %vm3636_vm13, %v3635_v53  ;;  %6476 = vmatmul.msk.bf16.gmra.mxu1 %vm3636_vm13, %v3635_v53 }
 0xec5   : > { %v3678_v57 = vpop.f32.mrf.mxu1  ;;  %v3657_v58 = vpop.f32.mrf.mxu0 }
 0xec6   : > { %v3692_v35 = vpack.c.bf16 %v3678_v57, %v3678_v57  ;;  %v3688_v7 = vpack.c.bf16 %v3657_v58, %v3657_v58  ;;  %v3818_v57 = vsel %vm3577_vm3, 1.0, %v9619_v6 }
 0xec8   : > { %v3714_v23 = vunpack.c.l.b16 %v3692_v35  ;;  %v3700_v60 = vunpack.c.l.b16 %v3688_v7 }
 0xecd   : > { %v3680_v44 = vpop.f32.mrf.mxu1  ;;  %v3659_v54 = vpop.f32.mrf.mxu0 }
 0xece   : > { %v3693_v34 = vpack.c.bf16 %v3680_v44, %v3680_v44  ;;  %v3689_v31 = vpack.c.bf16 %v3659_v54, %v3659_v54 }
 0xed0   : > { %v3715_v12 = vunpack.c.l.b16 %v3693_v34  ;;  %v3701_v28 = vunpack.c.l.b16 %v3689_v31 }
 0xed2   : > { %v3718_v52 = vpack.c.b16 %v3715_v12, %v3714_v23  ;;  %v3704_v18 = vpack.c.b16 %v3701_v28, %v3700_v60 }
 0xed5   : > { %v3683_v33 = vpop.f32.mrf.mxu1  ;;  %v3662_v22 = vpop.f32.mrf.mxu0 }
 0xed6   : > { %v3694_v49 = vpack.c.bf16 %v3683_v33, %v3683_v33  ;;  %v3690_v4 = vpack.c.bf16 %v3662_v22, %v3662_v22 }
 0xed8   : > { %v3716_v59 = vunpack.c.l.b16 %v3694_v49  ;;  %v3702_v30 = vunpack.c.l.b16 %v3690_v4 }
 0xedd   : > { %v3685_v40 = vpop.f32.mrf.mxu1  ;;  %v3664_v24 = vpop.f32.mrf.mxu0 }
 0xede   : > { %v3695_v36 = vpack.c.bf16 %v3685_v40, %v3685_v40  ;;  %v3691_v19 = vpack.c.bf16 %v3664_v24, %v3664_v24 }
 0xee0   : > { %v3717_v45 = vunpack.c.l.b16 %v3695_v36  ;;  %v3703_v56 = vunpack.c.l.b16 %v3691_v19 }
 0xee2   : > { %v3719_v20 = vpack.c.b16 %v3717_v45, %v3716_v59  ;;  %v3705_v25 = vpack.c.b16 %v3703_v56, %v3702_v30  ;;  %v9632_v45 = vld [vmem:[#allocation31_spill] sm:$0xff] }
 0xee4   : > { %3760 = vmatpush.bf16.msra.mxu2 %v3719_v20  ;;  %v9634_v20 = vld [vmem:[#allocation32_spill] sm:$0xff] }
 0xee8   : > { %3761 = vmatpush.bf16.msra.mxu2 %v3718_v52 }
 0xeec   : > { %3762 = vmatpush.bf16.msra.mxu2 %v3635_v53  ;;  %v9631_v53 = vld [vmem:[#allocation25_spill] sm:$0xff] }
 0xeed   : > { %vm3813_vm12 = vcmp.eq.s32.totalorder %v9631_v53, 9  ;;  %vm3810_vm2 = vcmp.eq.s32.totalorder %v7101_v2, %v9631_v53 }
 0xeee   : > { %vm3815_vm5 = vmand %vm3811_vm0, %vm3813_vm12  ;;  %vm9507_vm0 = vcmask 1045504   ;;  %vm9633_vm12 = vcmp.eq.s32.totalorder %v7101_v2, %v9632_v45  ;;  %v6867_v45 = vld [vmem:[%s9636_s28] sm:$0xff] }
 0xeef   : > { %vm3817_vm1 = vmor %vm3810_vm2, %vm3815_vm5  ;;  %v938_v12 = vsel %vm9633_vm12, 1.0, %v9619_v6  ;;  %vm9635_vm5 = vcmp.eq.s32.totalorder %v7101_v2, %v9634_v20  ;;  %v8660_v20 = vmul.u32 2, %v9631_v53  ;;  %v9644_v53 = vld [vmem:[#allocation26_spill] sm:$0xff] }
 0xef0   : > { %3763 = vmatpush.bf16.msra.mxu2 %v3634_v43  ;;  %v3819_v58 = vsel %vm3817_vm1, 1.0, %v9619_v6  ;;  %v1091_v23 = vsel %vm9635_vm5, 1.0, %v9619_v6  ;;  %v953_v52 = vpack.c.bf16 %v938_v12, %v8468_v9  ;;  %v6868_v12 = vld [vmem:[%s9636_s28 + $0x8] sm:$0xff]  ;;  %vm4060_vm5 = vcmp.eq.s32.totalorder %v7101_v2, 22 }
 0xef1   : > { %v3820_v44 = vpack.c.bf16 %v3819_v58, %v3818_v57  ;;  %v1106_v24 = vpack.c.bf16 %v1091_v23, %v8474_v11  ;;  %9637 = vst [vmem:[#allocation29_spill] sm:$0xff] %v8660_v20  ;;  %v8663_v23 = vadd.s32 1, %v8660_v20  ;;  %vm4023_vm1 = vcmp.eq.s32.totalorder %v7101_v2, %v8660_v20 }
 0xef3   : > { %9638 = vst [vmem:[#allocation25_spill] sm:$0xff] %v8663_v23 }
 0xef4   : > { %3764 = vmatpush.bf16.msra.mxu2 %v3705_v25 }
 0xef8   : > { %3765 = vmatpush.bf16.msra.mxu2 %v3704_v18 }
 0xefb   : > { %6485 = vmatmul.msk.bf16.vlgmr.msra.gmra.mxu2 %vm9508_vm7, %v6865_v16 }
 0xf0b   : > { %6486 = vmatmul.msk.bf16.gmra.mxu2 %vm9508_vm7, %v6866_v0 }
 0xf7e   : > { %v3767_v50 = vpop.f32.mrf.mxu2 }
 0xf7f   : > { %v3768_v38 = vadd.f32 %v3767_v50, %v3725_v21 }
 0xf81   : > { %v3777_v8 = vmax.f32 %v3768_v38, 0.0 }
 0xf86   : > { %v3769_v55 = vpop.f32.mrf.mxu2 }
 0xf87   : > { %v3770_v37 = vadd.f32 %v3769_v55, %v3730_v3 }
 0xf89   : > { %v3778_v13 = vmax.f32 %v3770_v37, 0.0 }
 0xf8b   : > { %v3781_v46 = vpack.c.bf16 %v3778_v13, %v3777_v8 }
 0xf8d   : > { %6487 = vmatmul.msk.bf16.vlgmr.msra.gmra.mxu3 %vm3636_vm13, %v3781_v46 }
 0xf8e   : > { %v3772_v43 = vpop.f32.mrf.mxu2 }
 0xf8f   : > { %v3773_v42 = vadd.f32 %v3772_v43, %v3735_v41 }
 0xf91   : > { %v3779_v32 = vmax.f32 %v3773_v42, 0.0 }
 0xf96   : > { %v3774_v62 = vpop.f32.mrf.mxu2 }
 0xf97   : > { %v3775_v48 = vadd.f32 %v3774_v62, %v3740_v10 }
 0xf99   : > { %v3780_v61 = vmax.f32 %v3775_v48, 0.0 }
 0xf9b   : > { %v3782_v5 = vpack.c.bf16 %v3780_v61, %v3779_v32 }
 0xf9d   : > { %6488 = vmatmul.msk.bf16.gmra.mxu3 %vm3636_vm13, %v3782_v5  ;;  %vm3830_vm13 = vcmask 1044480  }
 0xf9e   : > { %v3832_v54 = vsel %vm3830_vm13, %v3820_v44, 0  ;;  %v3883_v35 = vsel %vm3830_vm13, 4294967295, %v6955_v27  ;;  %vm4025_vm13 = vcmp.eq.s32.totalorder %v7101_v2, %v8663_v23 }
 0xf9f   : > { %3841 = vmatpush.bf16.msrb.mxu0 %v3832_v54  ;;  %v8633_v59 = vsel %vm9507_vm0, %v3883_v35, 0  ;;  %vm8669_vm12 = vmor %vm4023_vm1, %vm4025_vm13 }
 0xfa0   : > { %v3886_v19 = vand.u32 %v8633_v59, %v953_v52  ;;  %v3908_v4 = vand.u32 %v8633_v59, %v1106_v24  ;;  %v4027_v24 = vsel %vm8669_vm12, 1.0, %v9619_v6 }
 0xfa2   : > { %3895 = vmatpush.bf16.msrb.mxu1 %v3886_v19  ;;  %3917 = vmatpush.bf16.msrb.mxu2 %v3908_v4  ;;  %v4028_v19 = vpack.c.bf16 %v4027_v24, %v8573_v39 }
 0xfa4   : > { %v4038_v4 = vand.u32 %v4028_v19, %v8633_v59 }
 0xfa6   : > { %4047 = vmatpush.bf16.msra.mxu0 %v4038_v4 }
0x1010   : > { %v3800_v33 = vpop.f32.mrf.mxu3 }
0x1018   : > { %v3802_v49 = vpop.f32.mrf.mxu3 }
0x1019   : > { %v3821_v22 = vpack.c.bf16 %v3802_v49, %v3800_v33 }
0x101b   : > { %6489 = vmatmul.msk.bf16.vlgmr.msrb.gmra.mxu0 %vm3823_vm6, %v3821_v22 }
0x1020   : > { %v3805_v40 = vpop.f32.mrf.mxu3 }
0x1028   : > { %v3807_v34 = vpop.f32.mrf.mxu3 }
0x1029   : > { %v3822_v36 = vpack.c.bf16 %v3807_v34, %v3805_v40 }
0x102b   : > { %6490 = vmatmul.msk.bf16.gmra.mxu0 %vm3823_vm6, %v3822_v36  ;;  %vm3875_vm6 = vcmask 89088  }
0x1098   : > { %v3843_v31 = vpop.f32.mrf.mxu0 }
0x1099   : > { %v3861_v56 = vpack.c.bf16 %v3843_v31, %v3843_v31 }
0x109b   : > { %v3869_v28 = vunpack.c.l.b16 %v3861_v56  ;;  %v3966_v56 = vpop.permute.xlu1 %3965 }
0x10a0   : > { %v3845_v7 = vpop.f32.mrf.mxu0 }
0x10a1   : > { %v3862_v30 = vpack.c.bf16 %v3845_v7, %v3845_v7 }
0x10a3   : > { %v3870_v25 = vunpack.c.l.b16 %v3862_v30  ;;  %v3971_v30 = vpop.permute.xlu2 %3970 }
0x10a5   : > { %v3873_v60 = vpack.c.b16 %v3870_v25, %v3869_v28 }
0x10a7   : > { %6491 = vmatmul.msk.bf16.vlgmr.msrb.gmra.mxu1 %vm3875_vm6, %v3873_v60  ;;  %6493 = vmatmul.msk.bf16.vlgmr.msrb.gmra.mxu2 %vm3875_vm6, %v3873_v60 }
0x10a8   : > { %v3848_v9 = vpop.f32.mrf.mxu0 }
0x10a9   : > { %v3863_v11 = vpack.c.bf16 %v3848_v9, %v3848_v9 }
0x10ab   : > { %v3871_v0 = vunpack.c.l.b16 %v3863_v11 }
0x10b0   : > { %v3850_v18 = vpop.f32.mrf.mxu0 }
0x10b1   : > { %v3864_v16 = vpack.c.bf16 %v3850_v18, %v3850_v18 }
0x10b3   : > { %v3872_v51 = vunpack.c.l.b16 %v3864_v16  ;;  %v3976_v16 = vpop.permute.xlu0 %3975 }
0x10b5   : > { %v3874_v50 = vpack.c.b16 %v3872_v51, %v3871_v0  ;;  %v3981_v51 = vpop.permute.xlu1 %3980 }
0x10b7   : > { %6492 = vmatmul.msk.bf16.gmra.mxu1 %vm3875_vm6, %v3874_v50  ;;  %6494 = vmatmul.msk.bf16.gmra.mxu2 %vm3875_vm6, %v3874_v50 }
0x10bd   : > { %v4238_v52 = vpop.permute.xlu1 %4237 }
0x1124   : > { %v3897_v38 = vpop.f32.mrf.mxu1 }
0x1125   : > { %v3929_v49 = vpack.c.bf16 %v3897_v38, %v3897_v38 }
0x1127   : > { %v3941_v36 = vunpack.c.l.b16 %v3929_v49 }
0x112a   : > { %v3919_v21 = vpop.f32.mrf.mxu2 }
0x112b   : > { %v3933_v42 = vpack.c.bf16 %v3919_v21, %v3919_v21 }
0x112c   : > { %v3899_v55 = vpop.f32.mrf.mxu1 }
0x112d   : > { %v3955_v61 = vunpack.c.l.b16 %v3933_v42  ;;  %v3930_v54 = vpack.c.bf16 %v3899_v55, %v3899_v55 }
0x112f   : > { %v3942_v40 = vunpack.c.l.b16 %v3930_v54 }
0x1131   : > { %v3945_v35 = vpack.c.b16 %v3942_v40, %v3941_v36 }
0x1132   : > { %v3921_v3 = vpop.f32.mrf.mxu2 }
0x1133   : > { %v3934_v43 = vpack.c.bf16 %v3921_v3, %v3921_v3  ;;  %v9641_v3 = vld [vmem:[#allocation14_spill] sm:$0xff] }
0x1134   : > { %v3902_v13 = vpop.f32.mrf.mxu1  ;;  %vm4063_vm1 = vcmp.eq.s32.totalorder %v9641_v3, 21  ;;  %vm4059_vm13 = vcmp.eq.s32.totalorder %v7101_v2, %v9641_v3 }
0x1135   : > { %v3956_v48 = vunpack.c.l.b16 %v3934_v43  ;;  %v3931_v44 = vpack.c.bf16 %v3902_v13, %v3902_v13  ;;  %vm4066_vm0 = vmand %vm4060_vm5, %vm4063_vm1 }
0x1137   : > { %v3959_v5 = vpack.c.b16 %v3956_v48, %v3955_v61  ;;  %v3943_v22 = vunpack.c.l.b16 %v3931_v44  ;;  %v4144_v61 = vsel %vm3643_vm8, 4294967295, %v6955_v27 }
0x113a   : > { %v3924_v37 = vpop.f32.mrf.mxu2 }
0x113b   : > { %v3935_v8 = vpack.c.bf16 %v3924_v37, %v3924_v37 }
0x113c   : > { %v3904_v57 = vpop.f32.mrf.mxu1 }
0x113d   : > { %v3957_v10 = vunpack.c.l.b16 %v3935_v8  ;;  %v3932_v58 = vpack.c.bf16 %v3904_v57, %v3904_v57 }
0x113f   : > { %v3944_v33 = vunpack.c.l.b16 %v3932_v58 }
0x1141   : > { %v3946_v34 = vpack.c.b16 %v3944_v33, %v3943_v22 }
0x1142   : > { %v3926_v46 = vpop.f32.mrf.mxu2 }
0x1143   : > { %v3936_v41 = vpack.c.bf16 %v3926_v46, %v3926_v46 }
0x1145   : > { %v3958_v62 = vunpack.c.l.b16 %v3936_v41 }
0x1147   : > { %v3960_v32 = vpack.c.b16 %v3958_v62, %v3957_v10  ;;  %v9642_v62 = vld [vmem:[#allocation22_spill] sm:$0xff] }
0x1149   : > { %4001 = vmatpush.bf16.msrb.mxu3 %v3960_v32 }
0x114d   : > { %4002 = vmatpush.bf16.msrb.mxu3 %v3959_v5 }
0x1151   : > { %4003 = vmatpush.bf16.msrb.mxu3 %v3874_v50 }
0x1155   : > { %4004 = vmatpush.bf16.msrb.mxu3 %v3873_v60 }
0x1159   : > { %4005 = vmatpush.bf16.msrb.mxu3 %v3946_v34 }
0x115d   : > { %4006 = vmatpush.bf16.msrb.mxu3 %v3945_v35 }
0x1160   : > { %6503 = vmatmul.msk.bf16.vlgmr.msrb.gmra.mxu3 %vm9508_vm7, %v6867_v45 }
0x1170   : > { %6504 = vmatmul.msk.bf16.gmra.mxu3 %vm9508_vm7, %v6868_v12  ;;  %vm4069_vm7 = vmor %vm4059_vm13, %vm4066_vm0 }
0x1171   : > { %v4072_v55 = vsel %vm4069_vm7, 1.0, %v9619_v6  ;;  %vm9643_vm7 = vcmp.eq.s32.totalorder %v7101_v2, %v9642_v62 }
0x1172   : > { %v4074_v37 = vpack.c.bf16 %v4072_v55, %v4072_v55  ;;  %v939_v1 = vsel %vm9643_vm7, 1.0, %v9619_v6 }
0x1173   : > { %v4126_v32 = vpack.c.bf16 %v939_v1, %v939_v1  ;;  %v6869_v1 = vld [vmem:[%s9647_s7] sm:$0xff] }
0x1174   : > { %v4085_v8 = vsel %vm3643_vm8, %v4074_v37, 0  ;;  %vm9648_vm8 = vcmask 785408  }
0x1175   : > { %4093 = vmatpush.bf16.msra.mxu1 %v4085_v8  ;;  %vm9649_vm0 = vmmov %vm9648_vm8 }
0x1176   : > { %vm9650_vm5 = vmmov %vm9649_vm0 }
0x1177   : > { %vm9651_vm1 = vmmov %vm9649_vm0 }
0x11e3   : > { %v4008_v31 = vpop.f32.mrf.mxu3 }
0x11e4   : > { %v4009_v7 = vadd.f32 %v4008_v31, %v3966_v56 }
0x11e6   : > { %v4018_v60 = vmax.f32 %v4009_v7, 0.0 }
0x11eb   : > { %v4010_v28 = vpop.f32.mrf.mxu3 }
0x11ec   : > { %v4011_v25 = vadd.f32 %v4010_v28, %v3971_v30 }
0x11ee   : > { %v4019_v9 = vmax.f32 %v4011_v25, 0.0 }
0x11f0   : > { %v4029_v11 = vpack.c.bf16 %v4019_v9, %v4018_v60 }
0x11f2   : > { %6505 = vmatmul.msk.bf16.vlgmr.msra.gmra.mxu0 %vm3875_vm6, %v4029_v11 }
0x11f3   : > { %v4013_v18 = vpop.f32.mrf.mxu3 }
0x11f4   : > { %v4014_v0 = vadd.f32 %v4013_v18, %v3976_v16 }
0x11f6   : > { %v4020_v21 = vmax.f32 %v4014_v0, 0.0 }
0x11fb   : > { %v4015_v50 = vpop.f32.mrf.mxu3 }
0x11fc   : > { %v4016_v39 = vadd.f32 %v4015_v50, %v3981_v51 }
0x11fe   : > { %v4021_v59 = vmax.f32 %v4016_v39, 0.0 }
0x1200   : > { %v4030_v38 = vpack.c.bf16 %v4021_v59, %v4020_v21 }
0x1202   : > { %6506 = vmatmul.msk.bf16.gmra.mxu0 %vm3875_vm6, %v4030_v38  ;;  %vm6507_vm6 = vmpackc.low %vm3810_vm2, %vm3577_vm3  ;;  %vm9645_vm3 = vcmp.eq.s32.totalorder %v7101_v2, %v9644_v53  ;;  %vm9646_vm2 = vcmask 1043456   ;;  %v6870_v53 = vld [vmem:[%s9647_s7 + $0x8] sm:$0xff] }
0x1203   : > { %6508 = vmatpush.bf16.msk.msra.mxu1 %vm6507_vm6, %v9598_v26  ;;  %v1092_v48 = vsel %vm9645_vm3, 1.0, %v9619_v6  ;;  %v8704_v57 = vsel %vm9646_vm2, %v4144_v61, 0  ;;  %v8735_v61 = vmul.u32 2, %v9641_v3  ;;  %vm8756_vm3 = vmpackc.low %vm8669_vm12, %vm8566_vm4 }
0x1204   : > { %v4168_v5 = vpack.c.bf16 %v1092_v48, %v1092_v48  ;;  %v4147_v58 = vand.u32 %v8704_v57, %v4126_v32  ;;  %v6871_v48 = vld [vmem:[%s9647_s7 + $0x10] sm:$0xff]  ;;  %v6872_v32 = vld [vmem:[%s9647_s7 + $0x18] sm:$0xff] }
0x1205   : > { %vm4335_vm13 = vcmp.eq.s32.totalorder %v7101_v2, %v8735_v61 }
0x1206   : > { %v4170_v44 = vand.u32 %v4168_v5, %v8704_v57  ;;  %4155 = vmatpush.bf16.msra.mxu2 %v4147_v58  ;;  %v8738_v5 = vadd.s32 1, %v8735_v61  ;;  %v9652_v58 = vmov 0 }
0x1208   : > { %4178 = vmatpush.bf16.msra.mxu3 %v4170_v44  ;;  %vm4337_vm6 = vcmp.eq.s32.totalorder %v7101_v2, %v8738_v5 }
0x1209   : > { %vm8744_vm7 = vmor %vm4335_vm13, %vm4337_vm6 }
0x120a   : > { %6512 = vmatpush.bf16.msk.msra.mxu2 %vm7455_vm15, %v9598_v26  ;;  %v9653_v58 = vsel %vm8744_vm7, 4294967295, %v9652_v58  ;;  %v4339_v44 = vsel %vm8744_vm7, 1.0, %v9619_v6 }
0x120b   : > { %9654 = vst [vmem:[#allocation31_spill] sm:$0xff] %v9653_v58 }
0x120c   : > { %6516 = vmatpush.bf16.msk.msra.mxu3 %vm7467_vm14, %v9598_v26 }
0x126f   : > { %v4049_v13 = vpop.f32.mrf.mxu0 }
0x1277   : > { %v4051_v46 = vpop.f32.mrf.mxu0 }
0x1278   : > { %v4075_v43 = vpack.c.bf16 %v4051_v46, %v4049_v13 }
0x127a   : > { %6509 = vmatmul.msk.bf16.vlgmr.msra.gmra.mxu1 %vm4077_vm9, %v4075_v43 }
0x127f   : > { %v4054_v41 = vpop.f32.mrf.mxu0 }
0x1287   : > { %v4056_v42 = vpop.f32.mrf.mxu0 }
0x1288   : > { %v4076_v10 = vpack.c.bf16 %v4056_v42, %v4054_v41 }
0x128a   : > { %6510 = vmatmul.msk.bf16.gmra.mxu1 %vm4077_vm9, %v4076_v10  ;;  %vm4137_vm9 = vcmask 187392  }
0x12f7   : > { %v4096_v54 = vpop.f32.mrf.mxu1 }
0x12f8   : > { %v4122_v27 = vpack.c.bf16 %v4096_v54, %v4096_v54  ;;  %v4340_v54 = vpack.c.bf16 %v4339_v44, %v4339_v44 }
0x12fa   : > { %v4131_v22 = vunpack.c.l.b16 %v4122_v27  ;;  %v4358_v3 = vand.u32 %v4340_v54, %v8704_v57  ;;  %v9655_v27 = vmov 0 }
0x12fb   : > { %v9656_v27 = vsel %vm8756_vm3, 4294967295, %v9655_v27 }
0x12fc   : > { %4366 = vmatpush.bf16.msrb.mxu1 %v4358_v3  ;;  %9657 = vst [vmem:[#allocation32_spill] sm:$0xff] %v9656_v27 }
0x12ff   : > { %v4098_v33 = vpop.f32.mrf.mxu1 }
0x1300   : > { %v4123_v49 = vpack.c.bf16 %v4098_v33, %v4098_v33  ;;  %6540 = vmatpush.bf16.msk.msrb.mxu1 %vm8756_vm3, %v9598_v26 }
0x1302   : > { %v4132_v40 = vunpack.c.l.b16 %v4123_v49  ;;  %v4228_v49 = vpop.permute.xlu2 %4227 }
0x1304   : > { %v4135_v34 = vpack.c.b16 %v4132_v40, %v4131_v22  ;;  %v4233_v40 = vpop.permute.xlu0 %4232 }
0x1306   : > { %6513 = vmatmul.msk.bf16.vlgmr.msra.gmra.mxu2 %vm4137_vm9, %v4135_v34  ;;  %6517 = vmatmul.msk.bf16.vlgmr.msra.gmra.mxu3 %vm4137_vm9, %v4135_v34 }
0x1307   : > { %v4101_v36 = vpop.f32.mrf.mxu1 }
0x1308   : > { %v4124_v35 = vpack.c.bf16 %v4101_v36, %v4101_v36 }
0x130a   : > { %v4133_v24 = vunpack.c.l.b16 %v4124_v35 }
0x130f   : > { %v4103_v45 = vpop.f32.mrf.mxu1 }
0x1310   : > { %v4125_v12 = vpack.c.bf16 %v4103_v45, %v4103_v45 }
0x1312   : > { %v4134_v19 = vunpack.c.l.b16 %v4125_v12 }
0x1314   : > { %v4136_v4 = vpack.c.b16 %v4134_v19, %v4133_v24  ;;  %v4243_v24 = vpop.permute.xlu2 %4242 }
0x1316   : > { %6514 = vmatmul.msk.bf16.gmra.mxu2 %vm4137_vm9, %v4136_v4  ;;  %6518 = vmatmul.msk.bf16.gmra.mxu3 %vm4137_vm9, %v4136_v4 }
0x1389   : > { %v4181_v31 = vpop.f32.mrf.mxu3  ;;  %v4158_v56 = vpop.f32.mrf.mxu2 }
0x138a   : > { %v4195_v16 = vpack.c.bf16 %v4181_v31, %v4181_v31  ;;  %v4191_v46 = vpack.c.bf16 %v4158_v56, %v4158_v56 }
0x138c   : > { %v4217_v21 = vunpack.c.l.b16 %v4195_v16  ;;  %v4203_v10 = vunpack.c.l.b16 %v4191_v46 }
0x1391   : > { %v4183_v7 = vpop.f32.mrf.mxu3  ;;  %v4160_v30 = vpop.f32.mrf.mxu2 }
0x1392   : > { %v4196_v11 = vpack.c.bf16 %v4183_v7, %v4183_v7  ;;  %v4192_v8 = vpack.c.bf16 %v4160_v30, %v4160_v30 }
0x1394   : > { %v4218_v50 = vunpack.c.l.b16 %v4196_v11  ;;  %v4204_v41 = vunpack.c.l.b16 %v4192_v8 }
0x1396   : > { %v4221_v59 = vpack.c.b16 %v4218_v50, %v4217_v21  ;;  %v4207_v62 = vpack.c.b16 %v4204_v41, %v4203_v10  ;;  %v4258_v50 = vpop.permute.xlu2 %4257 }
0x1399   : > { %v4186_v28 = vpop.f32.mrf.mxu3  ;;  %v4163_v60 = vpop.f32.mrf.mxu2 }
0x139a   : > { %v4197_v25 = vpack.c.bf16 %v4186_v28, %v4186_v28  ;;  %v4193_v37 = vpack.c.bf16 %v4163_v60, %v4163_v60  ;;  %v4248_v28 = vpop.permute.xlu0 %4247  ;;  %v4253_v60 = vpop.permute.xlu1 %4252 }
0x139c   : > { %v4219_v0 = vunpack.c.l.b16 %v4197_v25  ;;  %v4205_v43 = vunpack.c.l.b16 %v4193_v37 }
0x13a1   : > { %v4188_v9 = vpop.f32.mrf.mxu3  ;;  %v4165_v38 = vpop.f32.mrf.mxu2 }
0x13a2   : > { %v4198_v18 = vpack.c.bf16 %v4188_v9, %v4188_v9  ;;  %v4194_v55 = vpack.c.bf16 %v4165_v38, %v4165_v38  ;;  %v4263_v21 = vpop.permute.xlu0 %4262 }
0x13a4   : > { %v4220_v51 = vunpack.c.l.b16 %v4198_v18  ;;  %v4206_v13 = vunpack.c.l.b16 %v4194_v55 }
0x13a6   : > { %v4222_v39 = vpack.c.b16 %v4220_v51, %v4219_v0  ;;  %v4208_v42 = vpack.c.b16 %v4206_v13, %v4205_v43  ;;  %v9658_v13 = vld [vmem:[#allocation18_spill] sm:$0xff]  ;;  %v9660_v43 = vld [vmem:[#allocation19_spill] sm:$0xff] }
0x13a7   : > { %vm9659_vm4 = vcmp.eq.s32.totalorder %v7101_v2, %v9658_v13  ;;  %vm9661_vm12 = vcmp.eq.s32.totalorder %v7101_v2, %v9660_v43 }
0x13a8   : > { %4299 = vmatpush.bf16.msrb.mxu0 %v4222_v39  ;;  %v941_v46 = vsel %vm9659_vm4, 1.0, %v9619_v6  ;;  %v942_v41 = vsel %vm9661_vm12, 1.0, %v9619_v6 }
0x13ac   : > { %4300 = vmatpush.bf16.msrb.mxu0 %v4221_v59 }
0x13b0   : > { %4301 = vmatpush.bf16.msrb.mxu0 %v4136_v4 }
0x13b4   : > { %4302 = vmatpush.bf16.msrb.mxu0 %v4135_v34 }
0x13b8   : > { %4303 = vmatpush.bf16.msrb.mxu0 %v4208_v42  ;;  %v9662_v42 = vld [vmem:[#allocation20_spill] sm:$0xff] }
0x13b9   : > { %vm9663_vm2 = vcmp.eq.s32.totalorder %v7101_v2, %v9662_v42 }
0x13ba   : > { %v1094_v10 = vsel %vm9663_vm2, 1.0, %v9619_v6 }
0x13bc   : > { %4304 = vmatpush.bf16.msrb.mxu0 %v4207_v62  ;;  %v9664_v62 = vld [vmem:[#allocation21_spill] sm:$0xff] }
0x13bf   : > { %6535 = vmatmul.msk.bf16.vlgmr.msrb.gmra.mxu0 %vm9648_vm8, %v6869_v1  ;;  %vm9665_vm8 = vcmp.eq.s32.totalorder %v7101_v2, %v9664_v62 }
0x13c0   : > { %v1095_v1 = vsel %vm9665_vm8, 1.0, %v9619_v6 }
0x13cf   : > { %6536 = vmatmul.msk.bf16.gmra.mxu0 %vm9649_vm0, %v6870_v53  ;;  %v955_v53 = vpack.c.bf16 %v942_v41, %v941_v46  ;;  %vm4449_vm0 = vcmask 375808  }
0x13df   : > { %6537 = vmatmul.msk.bf16.gmra.mxu0 %vm9650_vm5, %v6871_v48  ;;  %v1108_v48 = vpack.c.bf16 %v1095_v1, %v1094_v10  ;;  %vm9667_vm5 = vcmask 523264  }
0x13ef   : > { %6538 = vmatmul.msk.bf16.gmra.mxu0 %vm9651_vm1, %v6872_v32  ;;  %vm9668_vm1 = vmmov %vm9667_vm5 }
0x13f0   : > { %vm9669_vm13 = vmmov %vm9668_vm1 }
0x13f1   : > { %vm9670_vm6 = vmmov %vm9668_vm1 }
0x13f2   : > { %vm9671_vm4 = vmmov %vm9668_vm1 }
0x13f3   : > { %vm9672_vm12 = vmmov %vm9668_vm1 }
0x143c   : > { %v4306_v33 = vpop.f32.mrf.mxu0 }
0x143d   : > { %v4307_v22 = vadd.f32 %v4306_v33, %v4228_v49 }
0x143f   : > { %v4326_v57 = vmax.f32 %v4307_v22, 0.0 }
0x1444   : > { %v4308_v34 = vpop.f32.mrf.mxu0 }
0x1445   : > { %v4309_v36 = vadd.f32 %v4308_v34, %v4233_v40 }
0x1447   : > { %v4327_v35 = vmax.f32 %v4309_v36, 0.0 }
0x1449   : > { %v4341_v45 = vpack.c.bf16 %v4327_v35, %v4326_v57 }
0x144b   : > { %6541 = vmatmul.msk.bf16.vlgmr.msrb.gmra.mxu1 %vm4137_vm9, %v4341_v45 }
0x144c   : > { %v4311_v14 = vpop.f32.mrf.mxu0 }
0x144d   : > { %v4312_v12 = vadd.f32 %v4311_v14, %v4238_v52 }
0x144f   : > { %v4328_v31 = vmax.f32 %v4312_v12, 0.0 }
0x1454   : > { %v4313_v19 = vpop.f32.mrf.mxu0 }
0x1455   : > { %v4314_v4 = vadd.f32 %v4313_v19, %v4243_v24 }
0x1457   : > { %v4329_v56 = vmax.f32 %v4314_v4, 0.0 }
0x1459   : > { %v4342_v7 = vpack.c.bf16 %v4329_v56, %v4328_v31 }
0x145b   : > { %6542 = vmatmul.msk.bf16.gmra.mxu1 %vm4137_vm9, %v4342_v7 }
0x145c   : > { %v4316_v30 = vpop.f32.mrf.mxu0 }
0x145d   : > { %v4317_v25 = vadd.f32 %v4316_v30, %v4248_v28 }
0x145f   : > { %v4330_v18 = vmax.f32 %v4317_v25, 0.0 }
0x1464   : > { %v4318_v9 = vpop.f32.mrf.mxu0 }
0x1465   : > { %v4319_v11 = vadd.f32 %v4318_v9, %v4253_v60 }
0x1467   : > { %v4331_v16 = vmax.f32 %v4319_v11, 0.0 }
0x1469   : > { %v4343_v0 = vpack.c.bf16 %v4331_v16, %v4330_v18 }
0x146b   : > { %6543 = vmatmul.msk.bf16.gmra.mxu1 %vm4137_vm9, %v4343_v0 }
0x146c   : > { %v4321_v51 = vpop.f32.mrf.mxu0 }
0x146d   : > { %v4322_v39 = vadd.f32 %v4321_v51, %v4258_v50 }
0x146f   : > { %v4332_v55 = vmax.f32 %v4322_v39, 0.0 }
0x1474   : > { %v4323_v59 = vpop.f32.mrf.mxu0 }
0x1475   : > { %v4324_v38 = vadd.f32 %v4323_v59, %v4263_v21 }
0x1477   : > { %v4333_v37 = vmax.f32 %v4324_v38, 0.0 }
0x1479   : > { %v4344_v8 = vpack.c.bf16 %v4333_v37, %v4332_v55 }
0x147b   : > { %6544 = vmatmul.msk.bf16.gmra.mxu1 %vm4137_vm9, %v4344_v8  ;;  %vm4462_vm9 = vcmask 1046528  }
0x147c   : > { %v4464_v32 = vsel %vm4462_vm9, %v955_v53, 0  ;;  %v4496_v44 = vsel %vm4462_vm9, %v1108_v48, 0 }
0x147d   : > { %4471 = vmatpush.bf16.msrb.mxu2 %v4464_v32  ;;  %4503 = vmatpush.bf16.msrb.mxu3 %v4496_v44 }
0x1481   : > { %6546 = vmatpush.bf16.msk.msrb.mxu2 %vm7416_vm10, %v9598_v26  ;;  %6554 = vmatpush.bf16.msk.msrb.mxu3 %vm7423_vm11, %v9598_v26 }
0x1485   : > { %6548 = vmatpush.bf16.msk.msrb.mxu2 %vm7455_vm15, %v9598_v26  ;;  %6556 = vmatpush.bf16.msk.msrb.mxu3 %vm7467_vm14, %v9598_v26 }
0x14c8   : > { %v4369_v3 = vpop.f32.mrf.mxu1 }
0x14c9   : > { %v4421_v33 = vpack.c.bf16 %v4369_v3, %v4369_v3 }
0x14cb   : > { %v4437_v40 = vunpack.c.l.b16 %v4421_v33 }
0x14d0   : > { %v4371_v49 = vpop.f32.mrf.mxu1 }
0x14d1   : > { %v4422_v22 = vpack.c.bf16 %v4371_v49, %v4371_v49 }
0x14d3   : > { %v4438_v34 = vunpack.c.l.b16 %v4422_v22 }
0x14d5   : > { %v4445_v36 = vpack.c.b16 %v4438_v34, %v4437_v40 }
0x14d7   : > { %6549 = vmatmul.msk.bf16.vlgmr.msrb.gmra.mxu2 %vm4449_vm0, %v4445_v36  ;;  %6557 = vmatmul.msk.bf16.vlgmr.msrb.gmra.mxu3 %vm4449_vm0, %v4445_v36 }
0x14d8   : > { %v4374_v57 = vpop.f32.mrf.mxu1 }
0x14d9   : > { %v4423_v35 = vpack.c.bf16 %v4374_v57, %v4374_v57 }
0x14db   : > { %v4439_v52 = vunpack.c.l.b16 %v4423_v35 }
0x14e0   : > { %v4376_v45 = vpop.f32.mrf.mxu1 }
0x14e1   : > { %v4424_v14 = vpack.c.bf16 %v4376_v45, %v4376_v45 }
0x14e3   : > { %v4440_v12 = vunpack.c.l.b16 %v4424_v14 }
0x14e5   : > { %v4446_v24 = vpack.c.b16 %v4440_v12, %v4439_v52 }
0x14e7   : > { %6550 = vmatmul.msk.bf16.gmra.mxu2 %vm4449_vm0, %v4446_v24  ;;  %6558 = vmatmul.msk.bf16.gmra.mxu3 %vm4449_vm0, %v4446_v24 }
0x14e8   : > { %v4379_v19 = vpop.f32.mrf.mxu1 }
0x14e9   : > { %v4425_v4 = vpack.c.bf16 %v4379_v19, %v4379_v19 }
0x14eb   : > { %v4441_v7 = vunpack.c.l.b16 %v4425_v4 }
0x14f0   : > { %v4381_v31 = vpop.f32.mrf.mxu1 }
0x14f1   : > { %v4426_v56 = vpack.c.bf16 %v4381_v31, %v4381_v31 }
0x14f3   : > { %v4442_v30 = vunpack.c.l.b16 %v4426_v56 }
0x14f5   : > { %v4447_v28 = vpack.c.b16 %v4442_v30, %v4441_v7 }
0x14f7   : > { %6551 = vmatmul.msk.bf16.gmra.mxu2 %vm4449_vm0, %v4447_v28  ;;  %6559 = vmatmul.msk.bf16.gmra.mxu3 %vm4449_vm0, %v4447_v28 }
0x14f8   : > { %v4384_v25 = vpop.f32.mrf.mxu1 }
0x14f9   : > { %v4427_v60 = vpack.c.bf16 %v4384_v25, %v4384_v25 }
0x14fb   : > { %v4443_v18 = vunpack.c.l.b16 %v4427_v60 }
0x1500   : > { %v4386_v9 = vpop.f32.mrf.mxu1 }
0x1501   : > { %v4428_v11 = vpack.c.bf16 %v4386_v9, %v4386_v9 }
0x1503   : > { %v4444_v16 = vunpack.c.l.b16 %v4428_v11 }
0x1505   : > { %v4448_v0 = vpack.c.b16 %v4444_v16, %v4443_v18 }
0x1507   : > { %6552 = vmatmul.msk.bf16.gmra.mxu2 %vm4449_vm0, %v4448_v0  ;;  %6560 = vmatmul.msk.bf16.gmra.mxu3 %vm4449_vm0, %v4448_v0 }
0x1508   : > { %4771 = vmatpush.bf16.msra.mxu0 %v4448_v0 }
0x150c   : > { %4772 = vmatpush.bf16.msra.mxu0 %v4447_v28 }
0x1510   : > { %4773 = vmatpush.bf16.msra.mxu0 %v4446_v24 }
0x1514   : > { %4774 = vmatpush.bf16.msra.mxu0 %v4445_v36 }
0x155a   : > { %v4475_v51 = vpop.f32.mrf.mxu2  ;;  %v4507_v50 = vpop.f32.mrf.mxu3 }
0x155b   : > { %v4527_v9 = vpack.c.bf16 %v4475_v51, %v4475_v51  ;;  %v4535_v11 = vpack.c.bf16 %v4507_v50, %v4507_v50  ;;  %v6874_v51 = vld [vmem:[%s9426_s11 + $0x4] sm:$0xf0]  ;;  %v6873_v50 = vld [vmem:[%s9426_s11 + $0x4] sm:$0xf] }
0x1562   : > { %v4477_v39 = vpop.f32.mrf.mxu2  ;;  %v4509_v21 = vpop.f32.mrf.mxu3 }
0x1563   : > { %v4528_v56 = vpack.c.bf16 %v4477_v39, %v4477_v39  ;;  %v4536_v7 = vpack.c.bf16 %v4509_v21, %v4509_v21  ;;  %v4551_v39 = vunpack.c.l.b16 %v4527_v9  ;;  %v4579_v21 = vunpack.c.l.b16 %v4535_v11  ;;  %v6886_v9 = vld [vmem:[%s9426_s11 + $0x64] sm:$0xf0]  ;;  %v6885_v11 = vld [vmem:[%s9426_s11 + $0x64] sm:$0xf] }
0x1565   : > { %v4552_v0 = vunpack.c.l.b16 %v4528_v56  ;;  %v6884_v56 = vld [vmem:[%s9426_s11 + $0x54] sm:$0xf0] }
0x156a   : > { %v4480_v59 = vpop.f32.mrf.mxu2  ;;  %v4512_v38 = vpop.f32.mrf.mxu3 }
0x156b   : > { %v4529_v24 = vpack.c.bf16 %v4480_v59, %v4480_v59  ;;  %v4537_v19 = vpack.c.bf16 %v4512_v38, %v4512_v38 }
0x156d   : > { %v4553_v18 = vunpack.c.l.b16 %v4529_v24  ;;  %v4581_v16 = vunpack.c.l.b16 %v4537_v19  ;;  %v6597_v24 = vld [vmem:[%s9426_s11 + $0x48] sm:$0xf0] }
0x1572   : > { %v4482_v55 = vpop.f32.mrf.mxu2  ;;  %v4514_v37 = vpop.f32.mrf.mxu3 }
0x1573   : > { %v4530_v57 = vpack.c.bf16 %v4482_v55, %v4482_v55  ;;  %v4538_v35 = vpack.c.bf16 %v4514_v37, %v4514_v37  ;;  %v4580_v55 = vunpack.c.l.b16 %v4536_v7  ;;  %v6563_v37 = vld [vmem:[%s9426_s11] sm:$0xf]  ;;  %v6883_v7 = vld [vmem:[%s9426_s11 + $0x54] sm:$0xf] }
0x1575   : > { %v4554_v30 = vunpack.c.l.b16 %v4530_v57  ;;  %v4582_v28 = vunpack.c.l.b16 %v4538_v35  ;;  %v6589_v57 = vld [vmem:[%s9426_s11 + $0x38] sm:$0xf0] }
0x1577   : > { %v4560_v59 = vpack.c.b16 %v4554_v30, %v4553_v18  ;;  %v4588_v38 = vpack.c.b16 %v4582_v28, %v4581_v16  ;;  %v6605_v30 = vld [vmem:[%s9426_s11 + $0x58] sm:$0xf0]  ;;  %v6613_v18 = vld [vmem:[%s9426_s11 + $0x68] sm:$0xf0]  ;;  %v9673_v16 = vld [vmem:[#allocation12_spill] sm:$0xff] }
0x157a   : > { %v4485_v8 = vpop.f32.mrf.mxu2  ;;  %v4517_v13 = vpop.f32.mrf.mxu3 }
0x157b   : > { %v4531_v33 = vpack.c.bf16 %v4485_v8, %v4485_v8  ;;  %v4539_v49 = vpack.c.bf16 %v4517_v13, %v4517_v13  ;;  %v6565_v8 = vld [vmem:[%s9426_s11 + $0x8] sm:$0xf0]  ;;  %v4559_v13 = vpack.c.b16 %v4552_v0, %v4551_v39  ;;  %v8896_v0 = vmul.u32 2, %v9673_v16 }
0x157d   : > { %v4555_v4 = vunpack.c.l.b16 %v4531_v33  ;;  %v4583_v31 = vunpack.c.l.b16 %v4539_v49  ;;  %v6581_v33 = vld [vmem:[%s9426_s11 + $0x28] sm:$0xf0]  ;;  %v8902_v39 = vadd.s32 1, %v8896_v0  ;;  %vm4889_vm2 = vcmp.eq.s32.totalorder %v7101_v2, %v8896_v0 }
0x1582   : > { %v4487_v46 = vpop.f32.mrf.mxu2  ;;  %v4519_v43 = vpop.f32.mrf.mxu3 }
0x1583   : > { %v4532_v48 = vpack.c.bf16 %v4487_v46, %v4487_v46  ;;  %v4540_v32 = vpack.c.bf16 %v4519_v43, %v4519_v43  ;;  %v4587_v46 = vpack.c.b16 %v4580_v55, %v4579_v21  ;;  %v6564_v43 = vor.u32 %v6874_v51, %v6563_v37  ;;  %v9674_v55 = vld [vmem:[#allocation13_spill] sm:$0xff]  ;;  %v9716_v51 = vld [vmem:[#allocation31_spill] sm:$0xff] }
0x1584   : > { %v6616_v37 = vor.u32 %v6885_v11, %v6613_v18 }
0x1585   : > { %v4556_v45 = vunpack.c.l.b16 %v4532_v48  ;;  %v4584_v14 = vunpack.c.l.b16 %v4540_v32  ;;  %v6579_v32 = vld [vmem:[%s9426_s11 + $0x20] sm:$0xf] }
0x1587   : > { %v4561_v25 = vpack.c.b16 %v4556_v45, %v4555_v4  ;;  %v4589_v60 = vpack.c.b16 %v4584_v14, %v4583_v31  ;;  %v6595_v14 = vld [vmem:[%s9426_s11 + $0x40] sm:$0xf]  ;;  %v6603_v31 = vld [vmem:[%s9426_s11 + $0x50] sm:$0xf] }
0x1588   : > { %v6604_v28 = vor.u32 %v6884_v56, %v6603_v31  ;;  %v4608_v31 = vpop.permute.xlu0 %4607 }
0x158a   : > { %v4490_v41 = vpop.f32.mrf.mxu2  ;;  %v4522_v42 = vpop.f32.mrf.mxu3 }
0x158b   : > { %v4533_v10 = vpack.c.bf16 %v4490_v41, %v4490_v41  ;;  %v4541_v62 = vpack.c.bf16 %v4522_v42, %v4522_v42  ;;  %v6568_v41 = vor.u32 %v6873_v50, %v6565_v8  ;;  %v6571_v42 = vld [vmem:[%s9426_s11 + $0x10] sm:$0xf]  ;;  %v9719_v50 = vld [vmem:[#allocation29_spill] sm:$0xff] }
0x158d   : > { %v4557_v22 = vunpack.c.l.b16 %v4533_v10  ;;  %v4585_v40 = vunpack.c.l.b16 %v4541_v62  ;;  %v6876_v10 = vld [vmem:[%s9426_s11 + $0x14] sm:$0xf0]  ;;  %v6875_v62 = vld [vmem:[%s9426_s11 + $0x14] sm:$0xf] }
0x1592   : > { %v4492_v1 = vpop.f32.mrf.mxu2  ;;  %v4524_v53 = vpop.f32.mrf.mxu3 }
0x1593   : > { %v4534_v44 = vpack.c.bf16 %v4492_v1, %v4492_v1  ;;  %v4542_v3 = vpack.c.bf16 %v4524_v53, %v4524_v53  ;;  %v6573_v1 = vld [vmem:[%s9426_s11 + $0x18] sm:$0xf0]  ;;  %v6572_v53 = vor.u32 %v6876_v10, %v6571_v42 }
0x1594   : > { %v6576_v48 = vor.u32 %v6875_v62, %v6573_v1  ;;  %v9681_v62 = vmov 0  ;;  %v6619_v1 = vld [vmem:[%s9426_s11 + $0x70] sm:$0xf] }
0x1595   : > { %v4558_v34 = vunpack.c.l.b16 %v4534_v44  ;;  %v4586_v36 = vunpack.c.l.b16 %v4542_v3  ;;  %v6878_v44 = vld [vmem:[%s9426_s11 + $0x24] sm:$0xf0]  ;;  %v6877_v3 = vld [vmem:[%s9426_s11 + $0x24] sm:$0xf] }
0x1596   : > { %v6580_v49 = vor.u32 %v6878_v44, %v6579_v32  ;;  %v6621_v32 = vld [vmem:[%s9426_s11 + $0x78] sm:$0xf0] }
0x1597   : > { %v4590_v52 = vpack.c.b16 %v4586_v36, %v4585_v40  ;;  %v4562_v12 = vpack.c.b16 %v4558_v34, %v4557_v22  ;;  %v6584_v22 = vor.u32 %v6877_v3, %v6581_v33  ;;  %v6587_v40 = vld [vmem:[%s9426_s11 + $0x30] sm:$0xf]  ;;  %v6880_v34 = vld [vmem:[%s9426_s11 + $0x34] sm:$0xf0]  ;;  %v6879_v36 = vld [vmem:[%s9426_s11 + $0x34] sm:$0xf] }
0x1598   : > { %v6588_v35 = vor.u32 %v6880_v34, %v6587_v40  ;;  %v6592_v45 = vor.u32 %v6879_v36, %v6589_v57  ;;  %v4603_v34 = vpop.permute.xlu2 %4602 }
0x1599   : > { %4775 = vmatpush.bf16.msra.mxu0 %v4562_v12  ;;  %4824 = vmatpush.bf16.msra.mxu1 %v4590_v52  ;;  %v6882_v52 = vld [vmem:[%s9426_s11 + $0x44] sm:$0xf0]  ;;  %v6881_v12 = vld [vmem:[%s9426_s11 + $0x44] sm:$0xf] }
0x159a   : > { %v6596_v19 = vor.u32 %v6882_v52, %v6595_v14  ;;  %v6600_v4 = vor.u32 %v6881_v12, %v6597_v24 }
0x159d   : > { %4776 = vmatpush.bf16.msra.mxu0 %v4561_v25  ;;  %4825 = vmatpush.bf16.msra.mxu1 %v4589_v60  ;;  %v6608_v25 = vor.u32 %v6883_v7, %v6605_v30  ;;  %v6611_v60 = vld [vmem:[%s9426_s11 + $0x60] sm:$0xf] }
0x15a1   : > { %4777 = vmatpush.bf16.msra.mxu0 %v4560_v59  ;;  %4826 = vmatpush.bf16.msra.mxu1 %v4588_v38  ;;  %v8899_v59 = vmul.u32 2, %v9674_v55  ;;  %v6612_v38 = vor.u32 %v6886_v9, %v6611_v60 }
0x15a3   : > { %v8905_v21 = vadd.s32 1, %v8899_v59  ;;  %vm4890_vm8 = vcmp.eq.s32.totalorder %v7101_v2, %v8899_v59 }
0x15a5   : > { %4778 = vmatpush.bf16.msra.mxu0 %v4559_v13  ;;  %4827 = vmatpush.bf16.msra.mxu1 %v4587_v46  ;;  %v9680_v46 = vld [vmem:[#allocation16_spill] sm:$0xff] }
0x15a8   : > { %4779 = vmatmul.bf16.vlgmr.msra.gmra.mxu0 %v6564_v43  ;;  %6625 = vmatmul.msk.bf16.vlgmr.msra.gmra.mxu1 %vm9667_vm5, %v6568_v41  ;;  %vm4895_vm5 = vcmp.eq.s32.totalorder %v7101_v2, %v8902_v39  ;;  %v8931_v43 = vmul.u32 2, %v9680_v46 }
0x15aa   : > { %v8934_v42 = vadd.s32 1, %v8931_v43 }
0x15b8   : > { %4784 = vmatmul.bf16.gmra.mxu0 %v6572_v53  ;;  %6626 = vmatmul.msk.bf16.gmra.mxu1 %vm9668_vm1, %v6576_v48  ;;  %vm4896_vm1 = vcmp.eq.s32.totalorder %v7101_v2, %v8905_v21  ;;  %v6888_v53 = vld [vmem:[%s9426_s11 + $0x74] sm:$0xf0]  ;;  %v6887_v48 = vld [vmem:[%s9426_s11 + $0x74] sm:$0xf] }
0x15b9   : > { %v6620_v44 = vor.u32 %v6888_v53, %v6619_v1  ;;  %v6624_v3 = vor.u32 %v6887_v48, %v6621_v32 }
0x15c8   : > { %4789 = vmatmul.bf16.gmra.mxu0 %v6580_v49  ;;  %6627 = vmatmul.msk.bf16.gmra.mxu1 %vm9669_vm13, %v6584_v22  ;;  %vm8915_vm13 = vmor %vm4889_vm2, %vm4895_vm5  ;;  %vm4894_vm2 = vcmp.eq.s32.totalorder %v7101_v2, %v8934_v42  ;;  %v4598_v22 = vpop.permute.xlu1 %4597 }
0x15c9   : > { %v4901_v8 = vsel %vm8915_vm13, 1.0, %v9619_v6 }
0x15d0   : > { %v4613_v7 = vpop.permute.xlu1 %4612 }
0x15d8   : > { %4794 = vmatmul.bf16.gmra.mxu0 %v6588_v35  ;;  %6628 = vmatmul.msk.bf16.gmra.mxu1 %vm9670_vm6, %v6592_v45  ;;  %vm9677_vm6 = vmmov %vm9671_vm4 }
0x15e8   : > { %4799 = vmatmul.bf16.gmra.mxu0 %v6596_v19  ;;  %6629 = vmatmul.msk.bf16.gmra.mxu1 %vm9671_vm4, %v6600_v4  ;;  %vm8920_vm4 = vmor %vm4890_vm8, %vm4896_vm1  ;;  %vm9688_vm1 = vcmask 1045504  }
0x15e9   : > { %v4902_v13 = vsel %vm8920_vm4, 1.0, %v9619_v6 }
0x15ea   : > { %v4904_v41 = vpack.c.bf16 %v4902_v13, %v4901_v8  ;;  %v4623_v13 = vpop.permute.xlu0 %4622 }
0x15ec   : > { %v4938_v10 = vsel %vm4462_vm9, %v4904_v41, 0  ;;  %vm9684_vm9 = vmmov %vm9677_vm6 }
0x15ed   : > { %4945 = vmatpush.bf16.msra.mxu2 %v4938_v10 }
0x15f8   : > { %4804 = vmatmul.bf16.gmra.mxu0 %v6604_v28  ;;  %6630 = vmatmul.msk.bf16.gmra.mxu1 %vm9672_vm12, %v6608_v25  ;;  %vm4888_vm12 = vcmp.eq.s32.totalorder %v7101_v2, %v8931_v43 }
0x15f9   : > { %vm8941_vm8 = vmor %vm4888_vm12, %vm4894_vm2 }
0x15fa   : > { %v9682_v62 = vsel %vm8941_vm8, 4294967295, %v9681_v62  ;;  %vm9523_vm5 = vmpackc.low %vm8941_vm8, %vm8744_vm7 }
0x15fb   : > { %9683 = vst [vmem:[#allocation14_spill] sm:$0xff] %v9682_v62  ;;  %6634 = vmatpush.bf16.msk.msra.mxu2 %vm9523_vm5, %v9598_v26 }
0x15ff   : > { %6636 = vmatpush.bf16.msk.msra.mxu2 %vm8756_vm3, %v9598_v26 }
0x1608   : > { %4809 = vmatmul.bf16.gmra.mxu0 %v6612_v38  ;;  %6631 = vmatmul.msk.bf16.gmra.mxu1 %vm9677_vm6, %v6616_v37  ;;  %v4618_v37 = vpop.permute.xlu2 %4617  ;;  %vm9692_vm6 = vmmov %vm9688_vm1 }
0x1618   : > { %4814 = vmatmul.bf16.gmra.mxu0 %v6620_v44  ;;  %6632 = vmatmul.msk.bf16.gmra.mxu1 %vm9684_vm9, %v6624_v3 }
0x1625   : > { %v4780_v33 = vpop.f32.mrf.mxu0  ;;  %v4829_v49 = vpop.f32.mrf.mxu1 }
0x1626   : > { %v4781_v40 = vadd.f32 %v4780_v33, %v4598_v22 }
0x1628   : > { %v4830_v35 = vadd.f32 %v4829_v49, %v4781_v40  ;;  %v4628_v49 = vpop.permute.xlu1 %4627  ;;  %v4633_v40 = vpop.permute.xlu2 %4632 }
0x162a   : > { %v4869_v52 = vmax.f32 %v4830_v35, 0.0 }
0x162d   : > { %v4782_v36 = vpop.f32.mrf.mxu0  ;;  %v4831_v57 = vpop.f32.mrf.mxu1 }
0x162e   : > { %v4783_v45 = vadd.f32 %v4782_v36, %v4603_v34 }
0x1630   : > { %v4832_v14 = vadd.f32 %v4831_v57, %v4783_v45 }
0x1632   : > { %v4870_v12 = vmax.f32 %v4832_v14, 0.0 }
0x1634   : > { %v4905_v24 = vpack.c.bf16 %v4870_v12, %v4869_v52 }
0x1635   : > { %v4785_v19 = vpop.f32.mrf.mxu0  ;;  %v4834_v4 = vpop.f32.mrf.mxu1 }
0x1636   : > { %6637 = vmatmul.msk.bf16.vlgmr.msra.gmra.mxu2 %vm4449_vm0, %v4905_v24  ;;  %v4786_v56 = vadd.f32 %v4785_v19, %v4608_v31 }
0x1638   : > { %v4835_v25 = vadd.f32 %v4834_v4, %v4786_v56  ;;  %v4638_v4 = vpop.permute.xlu0 %4637  ;;  %v4643_v56 = vpop.permute.xlu1 %4642 }
0x163a   : > { %v4871_v11 = vmax.f32 %v4835_v25, 0.0 }
0x163d   : > { %v4787_v30 = vpop.f32.mrf.mxu0  ;;  %v4836_v28 = vpop.f32.mrf.mxu1 }
0x163e   : > { %v4788_v60 = vadd.f32 %v4787_v30, %v4613_v7 }
0x1640   : > { %v4837_v9 = vadd.f32 %v4836_v28, %v4788_v60 }
0x1642   : > { %v4872_v18 = vmax.f32 %v4837_v9, 0.0 }
0x1644   : > { %v4906_v16 = vpack.c.bf16 %v4872_v18, %v4871_v11 }
0x1645   : > { %v4790_v55 = vpop.f32.mrf.mxu0  ;;  %v4839_v38 = vpop.f32.mrf.mxu1 }
0x1646   : > { %6638 = vmatmul.msk.bf16.gmra.mxu2 %vm4449_vm0, %v4906_v16  ;;  %v4791_v8 = vadd.f32 %v4790_v55, %v4618_v37 }
0x1648   : > { %v4840_v10 = vadd.f32 %v4839_v38, %v4791_v8  ;;  %v4648_v38 = vpop.permute.xlu2 %4647  ;;  %v4653_v8 = vpop.permute.xlu0 %4652 }
0x164a   : > { %v4873_v48 = vmax.f32 %v4840_v10, 0.0 }
0x164d   : > { %v4792_v46 = vpop.f32.mrf.mxu0  ;;  %v4841_v41 = vpop.f32.mrf.mxu1 }
0x164e   : > { %v4793_v1 = vadd.f32 %v4792_v46, %v4623_v13 }
0x1650   : > { %v4842_v53 = vadd.f32 %v4841_v41, %v4793_v1 }
0x1652   : > { %v4874_v32 = vmax.f32 %v4842_v53, 0.0 }
0x1654   : > { %v4907_v44 = vpack.c.bf16 %v4874_v32, %v4873_v48 }
0x1655   : > { %v4795_v3 = vpop.f32.mrf.mxu0  ;;  %v4844_v33 = vpop.f32.mrf.mxu1 }
0x1656   : > { %6639 = vmatmul.msk.bf16.gmra.mxu2 %vm4449_vm0, %v4907_v44  ;;  %v4796_v22 = vadd.f32 %v4795_v3, %v4628_v49  ;;  %v9686_v49 = vld [vmem:[#allocation8_spill] sm:$0xff] }
0x1658   : > { %v4845_v57 = vadd.f32 %v4844_v33, %v4796_v22  ;;  %v9685_v33 = vld [vmem:[#allocation9_spill] sm:$0xff] }
0x1659   : > { %v9687_v22 = vpack.c.bf16 %v9685_v33, %v9686_v49 }
0x165a   : > { %v4875_v14 = vmax.f32 %v4845_v57, 0.0 }
0x165d   : > { %v4797_v34 = vpop.f32.mrf.mxu0  ;;  %v4846_v36 = vpop.f32.mrf.mxu1 }
0x165e   : > { %v4798_v35 = vadd.f32 %v4797_v34, %v4633_v40  ;;  %v5171_v40 = vsel %vm9688_vm1, %v9687_v22, 0  ;;  %v9689_v34 = vld [vmem:[#allocation7_spill] sm:$0xff] }
0x165f   : > { %5175 = vmatpush.bf16.msrb.mxu0 %v5171_v40 }
0x1660   : > { %v4847_v45 = vadd.f32 %v4846_v36, %v4798_v35  ;;  %v9690_v36 = vld [vmem:[#allocation6_spill] sm:$0xff] }
0x1661   : > { %v9691_v57 = vpack.c.bf16 %v9689_v34, %v9690_v36 }
0x1662   : > { %v4876_v52 = vmax.f32 %v4847_v45, 0.0  ;;  %v4658_v45 = vpop.permute.xlu1 %4657 }
0x1663   : > { %v5119_v35 = vsel %vm9692_vm6, %v9691_v57, 0 }
0x1664   : > { %v4908_v12 = vpack.c.bf16 %v4876_v52, %v4875_v14  ;;  %5123 = vmatpush.bf16.msra.mxu3 %v5119_v35  ;;  %v9693_v52 = vld [vmem:[#allocation15_spill] sm:$0xff] }
0x1665   : > { %v4800_v24 = vpop.f32.mrf.mxu0  ;;  %v4849_v19 = vpop.f32.mrf.mxu1  ;;  %vm9694_vm12 = vnez %v9693_v52 }
0x1666   : > { %6640 = vmatmul.msk.bf16.gmra.mxu2 %vm4449_vm0, %v4908_v12  ;;  %v4801_v31 = vadd.f32 %v4800_v24, %v4638_v4  ;;  %v9695_v12 = vld [vmem:[#allocation17_spill] sm:$0xff]  ;;  %v4663_v24 = vpop.permute.xlu2 %4662 }
0x1667   : > { %vm9696_vm2 = vnez %v9695_v12 }
0x1668   : > { %v4850_v28 = vadd.f32 %v4849_v19, %v4801_v31  ;;  %6646 = vmatpush.bf16.msk.msra.mxu3 %vm9694_vm12, %v9598_v26  ;;  %6664 = vmatpush.bf16.msk.msrb.mxu0 %vm9696_vm2, %v9598_v26 }
0x166a   : > { %v4877_v9 = vmax.f32 %v4850_v28, 0.0 }
0x166d   : > { %v4802_v7 = vpop.f32.mrf.mxu0  ;;  %v4851_v30 = vpop.f32.mrf.mxu1 }
0x166e   : > { %v4803_v25 = vadd.f32 %v4802_v7, %v4643_v56  ;;  %v9697_v7 = vld [vmem:[#allocation23_spill] sm:$0xff] }
0x166f   : > { %vm9698_vm9 = vnez %v9697_v7 }
0x1670   : > { %v4852_v60 = vadd.f32 %v4851_v30, %v4803_v25  ;;  %6648 = vmatpush.bf16.msk.msra.mxu3 %vm9698_vm9, %v9598_v26  ;;  %v9699_v30 = vld [vmem:[#allocation24_spill] sm:$0xff] }
0x1671   : > { %vm9700_vm1 = vnez %v9699_v30 }
0x1672   : > { %v4878_v11 = vmax.f32 %v4852_v60, 0.0  ;;  %6666 = vmatpush.bf16.msk.msrb.mxu0 %vm9700_vm1, %v9598_v26 }
0x1674   : > { %v4909_v18 = vpack.c.bf16 %v4878_v11, %v4877_v9  ;;  %v9701_v9 = vld [vmem:[#allocation27_spill] sm:$0xff]  ;;  %v9703_v11 = vld [vmem:[#allocation30_spill] sm:$0xff] }
0x1675   : > { %v4805_v16 = vpop.f32.mrf.mxu0  ;;  %v4854_v55 = vpop.f32.mrf.mxu1  ;;  %vm9702_vm6 = vnez %v9701_v9  ;;  %vm9704_vm12 = vnez %v9703_v11 }
0x1676   : > { %6641 = vmatmul.msk.bf16.gmra.mxu2 %vm4449_vm0, %v4909_v18  ;;  %v4806_v37 = vadd.f32 %v4805_v16, %v4648_v38  ;;  %6650 = vmatpush.bf16.msk.msra.mxu3 %vm9702_vm6, %v9598_v26  ;;  %v4668_v38 = vpop.permute.xlu0 %4667 }
0x1677   : > { %6668 = vmatpush.bf16.msk.msrb.mxu0 %vm9704_vm12, %v9598_v26 }
0x1678   : > { %v4855_v41 = vadd.f32 %v4854_v55, %v4806_v37 }
0x167a   : > { %v4879_v53 = vmax.f32 %v4855_v41, 0.0  ;;  %6652 = vmatpush.bf16.msk.msra.mxu3 %vm7416_vm10, %v9598_v26 }
0x167b   : > { %6670 = vmatpush.bf16.msk.msrb.mxu0 %vm7423_vm11, %v9598_v26 }
0x167d   : > { %v4807_v13 = vpop.f32.mrf.mxu0  ;;  %v4856_v46 = vpop.f32.mrf.mxu1 }
0x167e   : > { %v4808_v10 = vadd.f32 %v4807_v13, %v4653_v8  ;;  %6654 = vmatpush.bf16.msk.msra.mxu3 %vm7455_vm15, %v9598_v26  ;;  %v4673_v8 = vpop.permute.xlu1 %4672  ;;  %vm9522_vm15 = vcmask 752640  }
0x167f   : > { %6672 = vmatpush.bf16.msk.msrb.mxu0 %vm7467_vm14, %v9598_v26 }
0x1680   : > { %v4857_v1 = vadd.f32 %v4856_v46, %v4808_v10 }
0x1682   : > { %v4880_v48 = vmax.f32 %v4857_v1, 0.0 }
0x1684   : > { %v4910_v32 = vpack.c.bf16 %v4880_v48, %v4879_v53 }
0x1685   : > { %v4810_v44 = vpop.f32.mrf.mxu0  ;;  %v4859_v3 = vpop.f32.mrf.mxu1 }
0x1686   : > { %6642 = vmatmul.msk.bf16.gmra.mxu2 %vm4449_vm0, %v4910_v32  ;;  %v4811_v14 = vadd.f32 %v4810_v44, %v4658_v45 }
0x1688   : > { %v4860_v31 = vadd.f32 %v4859_v3, %v4811_v14 }
0x168a   : > { %v4881_v25 = vmax.f32 %v4860_v31, 0.0 }
0x168d   : > { %v4812_v19 = vpop.f32.mrf.mxu0  ;;  %v4861_v4 = vpop.f32.mrf.mxu1 }
0x168e   : > { %v4813_v56 = vadd.f32 %v4812_v19, %v4663_v24 }
0x1690   : > { %v4862_v28 = vadd.f32 %v4861_v4, %v4813_v56 }
0x1692   : > { %v4882_v60 = vmax.f32 %v4862_v28, 0.0 }
0x1694   : > { %v4911_v18 = vpack.c.bf16 %v4882_v60, %v4881_v25 }
0x1695   : > { %v4815_v16 = vpop.f32.mrf.mxu0  ;;  %v4864_v55 = vpop.f32.mrf.mxu1 }
0x1696   : > { %6643 = vmatmul.msk.bf16.gmra.mxu2 %vm4449_vm0, %v4911_v18  ;;  %v4816_v37 = vadd.f32 %v4815_v16, %v4668_v38 }
0x1698   : > { %v4865_v46 = vadd.f32 %v4864_v55, %v4816_v37 }
0x169a   : > { %v4883_v1 = vmax.f32 %v4865_v46, 0.0 }
0x169d   : > { %v4817_v13 = vpop.f32.mrf.mxu0  ;;  %v4866_v29 = vpop.f32.mrf.mxu1 }
0x169e   : > { %v4818_v41 = vadd.f32 %v4817_v13, %v4673_v8 }
0x16a0   : > { %v4867_v10 = vadd.f32 %v4866_v29, %v4818_v41 }
0x16a2   : > { %v4884_v53 = vmax.f32 %v4867_v10, 0.0 }
0x16a4   : > { %v4912_v54 = vpack.c.bf16 %v4884_v53, %v4883_v1 }
0x16a6   : > { %6644 = vmatmul.msk.bf16.gmra.mxu2 %vm4449_vm0, %v4912_v54 }
0x16b9   : > { %v4949_v48 = vpop.f32.mrf.mxu2 }
0x16ba   : > { %v5037_v32 = vpack.c.bf16 %v4949_v48, %v4949_v48 }
0x16bc   : > { %v5069_v3 = vunpack.c.l.b16 %v5037_v32 }
0x16c1   : > { %v4951_v44 = vpop.f32.mrf.mxu2 }
0x16c2   : > { %v5038_v63 = vpack.c.bf16 %v4951_v44, %v4951_v44 }
0x16c4   : > { %v5070_v33 = vunpack.c.l.b16 %v5038_v63 }
0x16c6   : > { %v9017_v15 = vpack.c.b16 %v5070_v33, %v5069_v3 }
0x16c8   : > { %6655 = vmatmul.msk.bf16.vlgmr.msra.gmra.mxu3 %vm9522_vm15, %v9017_v15  ;;  %6673 = vmatmul.msk.bf16.vlgmr.msrb.gmra.mxu0 %vm9522_vm15, %v9017_v15 }
0x16c9   : > { %v4954_v49 = vpop.f32.mrf.mxu2 }
0x16ca   : > { %v5039_v22 = vpack.c.bf16 %v4954_v49, %v4954_v49 }
0x16cc   : > { %v5071_v36 = vunpack.c.l.b16 %v5039_v22 }
0x16d1   : > { %v4956_v40 = vpop.f32.mrf.mxu2 }
0x16d2   : > { %v5040_v34 = vpack.c.bf16 %v4956_v40, %v4956_v40 }
0x16d4   : > { %v5072_v57 = vunpack.c.l.b16 %v5040_v34 }
0x16d6   : > { %v9023_v35 = vpack.c.b16 %v5072_v57, %v5071_v36 }
0x16d8   : > { %6656 = vmatmul.msk.bf16.gmra.mxu3 %vm9522_vm15, %v9023_v35  ;;  %6674 = vmatmul.msk.bf16.gmra.mxu0 %vm9522_vm15, %v9023_v35 }
0x16d9   : > { %v4959_v45 = vpop.f32.mrf.mxu2 }
0x16da   : > { %v5041_v14 = vpack.c.bf16 %v4959_v45, %v4959_v45 }
0x16dc   : > { %v5073_v24 = vunpack.c.l.b16 %v5041_v14 }
0x16e1   : > { %v4961_v52 = vpop.f32.mrf.mxu2 }
0x16e2   : > { %v5042_v12 = vpack.c.bf16 %v4961_v52, %v4961_v52 }
0x16e4   : > { %v5074_v19 = vunpack.c.l.b16 %v5042_v12 }
0x16e6   : > { %v5087_v4 = vpack.c.b16 %v5074_v19, %v5073_v24 }
0x16e8   : > { %6657 = vmatmul.msk.bf16.gmra.mxu3 %vm9522_vm15, %v5087_v4  ;;  %6675 = vmatmul.msk.bf16.gmra.mxu0 %vm9522_vm15, %v5087_v4 }
0x16e9   : > { %v4964_v31 = vpop.f32.mrf.mxu2 }
0x16ea   : > { %v5043_v56 = vpack.c.bf16 %v4964_v31, %v4964_v31 }
0x16ec   : > { %v5075_v28 = vunpack.c.l.b16 %v5043_v56 }
0x16f1   : > { %v4966_v7 = vpop.f32.mrf.mxu2 }
0x16f2   : > { %v5044_v30 = vpack.c.bf16 %v4966_v7, %v4966_v7 }
0x16f4   : > { %v5076_v25 = vunpack.c.l.b16 %v5044_v30 }
0x16f6   : > { %v5088_v60 = vpack.c.b16 %v5076_v25, %v5075_v28 }
0x16f8   : > { %6658 = vmatmul.msk.bf16.gmra.mxu3 %vm9522_vm15, %v5088_v60  ;;  %6676 = vmatmul.msk.bf16.gmra.mxu0 %vm9522_vm15, %v5088_v60 }
0x16f9   : > { %v4969_v9 = vpop.f32.mrf.mxu2 }
0x16fa   : > { %v5045_v11 = vpack.c.bf16 %v4969_v9, %v4969_v9 }
0x16fc   : > { %v5077_v55 = vunpack.c.l.b16 %v5045_v11 }
0x1701   : > { %v4971_v18 = vpop.f32.mrf.mxu2 }
0x1702   : > { %v5046_v16 = vpack.c.bf16 %v4971_v18, %v4971_v18 }
0x1704   : > { %v5078_v38 = vunpack.c.l.b16 %v5046_v16 }
0x1706   : > { %v5089_v37 = vpack.c.b16 %v5078_v38, %v5077_v55 }
0x1708   : > { %6659 = vmatmul.msk.bf16.gmra.mxu3 %vm9522_vm15, %v5089_v37  ;;  %6677 = vmatmul.msk.bf16.gmra.mxu0 %vm9522_vm15, %v5089_v37 }
0x1709   : > { %v4974_v8 = vpop.f32.mrf.mxu2 }
0x170a   : > { %v5047_v13 = vpack.c.bf16 %v4974_v8, %v4974_v8 }
0x170c   : > { %v5079_v29 = vunpack.c.l.b16 %v5047_v13 }
0x1711   : > { %v4976_v46 = vpop.f32.mrf.mxu2 }
0x1712   : > { %v5048_v41 = vpack.c.bf16 %v4976_v46, %v4976_v46 }
0x1714   : > { %v5080_v10 = vunpack.c.l.b16 %v5048_v41 }
0x1716   : > { %v5090_v1 = vpack.c.b16 %v5080_v10, %v5079_v29 }
0x1718   : > { %6660 = vmatmul.msk.bf16.gmra.mxu3 %vm9522_vm15, %v5090_v1  ;;  %6678 = vmatmul.msk.bf16.gmra.mxu0 %vm9522_vm15, %v5090_v1 }
0x1719   : > { %v4979_v53 = vpop.f32.mrf.mxu2 }
0x171a   : > { %v5049_v54 = vpack.c.bf16 %v4979_v53, %v4979_v53  ;;  %v6889_v53 = vld [vmem:[%s9427_s12 + $0x4] sm:$0xf] }
0x171c   : > { %v5081_v44 = vunpack.c.l.b16 %v5049_v54  ;;  %v6685_v54 = vld [vmem:[%s9427_s12 + $0xc] sm:$0xf0] }
0x1721   : > { %v4981_v48 = vpop.f32.mrf.mxu2 }
0x1722   : > { %v5050_v32 = vpack.c.bf16 %v4981_v48, %v4981_v48 }
0x1724   : > { %v5082_v63 = vunpack.c.l.b16 %v5050_v32  ;;  %v6688_v32 = vor.u32 %v6889_v53, %v6685_v54 }
0x1726   : > { %v5091_v3 = vpack.c.b16 %v5082_v63, %v5081_v44 }
0x1728   : > { %6661 = vmatmul.msk.bf16.gmra.mxu3 %vm9522_vm15, %v5091_v3  ;;  %6679 = vmatmul.msk.bf16.gmra.mxu0 %vm9522_vm15, %v5091_v3 }
0x1729   : > { %v4984_v33 = vpop.f32.mrf.mxu2 }
0x172a   : > { %v5051_v49 = vpack.c.bf16 %v4984_v33, %v4984_v33 }
0x172c   : > { %v5083_v34 = vunpack.c.l.b16 %v5051_v49 }
0x1731   : > { %v4986_v22 = vpop.f32.mrf.mxu2 }
0x1732   : > { %v5052_v40 = vpack.c.bf16 %v4986_v22, %v4986_v22 }
0x1734   : > { %v5084_v36 = vunpack.c.l.b16 %v5052_v40 }
0x1736   : > { %v5092_v57 = vpack.c.b16 %v5084_v36, %v5083_v34 }
0x1738   : > { %6662 = vmatmul.msk.bf16.gmra.mxu3 %vm9522_vm15, %v5092_v57  ;;  %6680 = vmatmul.msk.bf16.gmra.mxu0 %vm9522_vm15, %v5092_v57 }
0x1739   : > { %5615 = vmatpush.bf16.msrb.mxu2 %v5092_v57 }
0x173d   : > { %5616 = vmatpush.bf16.msrb.mxu2 %v5091_v3 }
0x1741   : > { %5617 = vmatpush.bf16.msrb.mxu2 %v5090_v1 }
0x1745   : > { %5618 = vmatpush.bf16.msrb.mxu2 %v5089_v37  ;;  %v9041_v45 = vpop.f32.mrf.mxu0 }
0x1749   : > { %5619 = vmatpush.bf16.msrb.mxu2 %v5088_v60 }
0x174b   : > { %v9043_v14 = vpop.f32.mrf.mxu3 }
0x174d   : > { %5620 = vmatpush.bf16.msrb.mxu2 %v5087_v4  ;;  %v9045_v52 = vpop.f32.mrf.mxu0 }
0x1751   : > { %5621 = vmatpush.bf16.msrb.mxu2 %v9023_v35 }
0x1753   : > { %v9048_v12 = vpop.f32.mrf.mxu3 }
0x1755   : > { %5622 = vmatpush.bf16.msrb.mxu2 %v9017_v15  ;;  %v9051_v24 = vpop.f32.mrf.mxu0 }
0x1758   : > { %5623 = vmatmul.bf16.vlgmr.msrb.gmra.mxu2 %v6688_v32 }
0x175b   : > { %v9053_v19 = vpop.f32.mrf.mxu3 }
0x175d   : > { %v9055_v31 = vpop.f32.mrf.mxu0 }
0x1763   : > { %v9057_v56 = vpop.f32.mrf.mxu3 }
0x1765   : > { %v9059_v7 = vpop.f32.mrf.mxu0 }
0x176b   : > { %v9061_v30 = vpop.f32.mrf.mxu3 }
0x176d   : > { %v9063_v4 = vpop.f32.mrf.mxu0 }
0x1773   : > { %v9065_v28 = vpop.f32.mrf.mxu3 }
0x1775   : > { %v9067_v35 = vpop.f32.mrf.mxu0 }
0x177b   : > { %v9069_v25 = vpop.f32.mrf.mxu3 }
0x177d   : > { %v9071_v15 = vpop.f32.mrf.mxu0 }
0x1783   : > { %v9073_v60 = vpop.f32.mrf.mxu3 }
0x1785   : > { %v5202_v9 = vpop.f32.mrf.mxu0 }
0x1786   : > { %v5246_v32 = vpack.c.bf16 %v5202_v9, %v5202_v9 }
0x178b   : > { %v9075_v11 = vpop.f32.mrf.mxu3 }
0x178d   : > { %v5204_v18 = vpop.f32.mrf.mxu0 }
0x178e   : > { %v5247_v17 = vpack.c.bf16 %v5204_v18, %v5204_v18 }
0x1793   : > { %v9077_v16 = vpop.f32.mrf.mxu3 }
0x1795   : > { %v5207_v55 = vpop.f32.mrf.mxu0 }
0x1796   : > { %v5248_v23 = vpack.c.bf16 %v5207_v55, %v5207_v55  ;;  %v5335_v55 = vunpack.c.l.b16 %v5247_v17  ;;  %v5231_v17 = vpack.c.bf16 %v9077_v16, %v9077_v16  ;;  %v5229_v16 = vpack.c.bf16 %v9073_v60, %v9073_v60 }
0x1797   : > { %v5227_v60 = vpack.c.bf16 %v9065_v28, %v9065_v28  ;;  %v5225_v28 = vpack.c.bf16 %v9057_v56, %v9057_v56 }
0x179b   : > { %v5155_v38 = vpop.f32.mrf.mxu3 }
0x179c   : > { %v5232_v18 = vpack.c.bf16 %v5155_v38, %v5155_v38  ;;  %v5230_v38 = vpack.c.bf16 %v9075_v11, %v9075_v11  ;;  %v5228_v11 = vpack.c.bf16 %v9069_v25, %v9069_v25  ;;  %v5226_v25 = vpack.c.bf16 %v9061_v30, %v9061_v30  ;;  %v6709_v30 = vld [vmem:[%s9427_s12 + $0x3c] sm:$0xf0] }
0x179d   : > { %v5209_v37 = vpop.f32.mrf.mxu0 }
0x179e   : > { %v5249_v40 = vpack.c.bf16 %v5209_v37, %v5209_v37 }
0x17a3   : > { %v5157_v8 = vpop.f32.mrf.mxu3 }
0x17a5   : > { %v5212_v13 = vpop.f32.mrf.mxu0 }
0x17a6   : > { %v5250_v33 = vpack.c.bf16 %v5212_v13, %v5212_v13  ;;  %v5336_v13 = vunpack.c.l.b16 %v5248_v23 }
0x17a8   : > { %v5338_v20 = vunpack.c.l.b16 %v5250_v33 }
0x17ab   : > { %v5160_v46 = vpop.f32.mrf.mxu3 }
0x17ac   : > { %v5234_v53 = vpack.c.bf16 %v5160_v46, %v5160_v46 }
0x17ad   : > { %v5214_v41 = vpop.f32.mrf.mxu0 }
0x17ae   : > { %v5251_v63 = vpack.c.bf16 %v5214_v41, %v5214_v41  ;;  %v5282_v9 = vunpack.c.l.b16 %v5234_v53 }
0x17b0   : > { %v5339_v34 = vunpack.c.l.b16 %v5251_v63 }
0x17b2   : > { %v5348_v54 = vpack.c.b16 %v5339_v34, %v5338_v20  ;;  %v6697_v20 = vld [vmem:[%s9427_s12 + $0x24] sm:$0xf0] }
0x17b3   : > { %v5162_v29 = vpop.f32.mrf.mxu3 }
0x17b4   : > { %v5235_v58 = vpack.c.bf16 %v5162_v29, %v5162_v29  ;;  %v5243_v29 = vpack.c.bf16 %v9063_v4, %v9063_v4  ;;  %v5241_v4 = vpack.c.bf16 %v9055_v31, %v9055_v31  ;;  %v5239_v31 = vpack.c.bf16 %v9045_v52, %v9045_v52  ;;  %v6895_v52 = vld [vmem:[%s9427_s12 + $0x34] sm:$0xf] }
0x17b5   : > { %v5217_v10 = vpop.f32.mrf.mxu0 }
0x17b6   : > { %v5252_v48 = vpack.c.bf16 %v5217_v10, %v5217_v10  ;;  %v5337_v10 = vunpack.c.l.b16 %v5249_v40  ;;  %v5279_v40 = vunpack.c.l.b16 %v5231_v17 }
0x17b8   : > { %v5340_v49 = vunpack.c.l.b16 %v5252_v48  ;;  %v5233_v48 = vpack.c.bf16 %v5157_v8, %v5157_v8  ;;  %v5334_v8 = vunpack.c.l.b16 %v5246_v32  ;;  %v5276_v32 = vunpack.c.l.b16 %v5228_v11 }
0x17ba   : > { %v5346_v33 = vpack.c.b16 %v5335_v55, %v5334_v8  ;;  %v5224_v55 = vpack.c.bf16 %v9053_v19, %v9053_v19  ;;  %v5222_v19 = vpack.c.bf16 %v9043_v14, %v9043_v14 }
0x17bb   : > { %v5165_v1 = vpop.f32.mrf.mxu3 }
0x17bc   : > { %v5236_v36 = vpack.c.bf16 %v5165_v1, %v5165_v1  ;;  %v5245_v1 = vpack.c.bf16 %v9071_v15, %v9071_v15  ;;  %v5281_v15 = vunpack.c.l.b16 %v5233_v48  ;;  %v5272_v8 = vunpack.c.l.b16 %v5224_v55 }
0x17bd   : > { %v5219_v44 = vpop.f32.mrf.mxu0 }
0x17be   : > { %v5253_v3 = vpack.c.bf16 %v5219_v44, %v5219_v44  ;;  %v5284_v41 = vunpack.c.l.b16 %v5236_v36  ;;  %v5333_v63 = vunpack.c.l.b16 %v5245_v1  ;;  %v5331_v36 = vunpack.c.l.b16 %v5243_v29 }
0x17bf   : > { %v5327_v1 = vunpack.c.l.b16 %v5239_v31  ;;  %v5270_v29 = vunpack.c.l.b16 %v5222_v19  ;;  %v6896_v31 = vld [vmem:[%s9427_s12 + $0x38] sm:$0xf0]  ;;  %v6751_v19 = vld [vmem:[%s9427_s12 + $0x80] sm:$0xf] }
0x17c0   : > { %v5341_v22 = vunpack.c.l.b16 %v5253_v3  ;;  %v5283_v3 = vunpack.c.l.b16 %v5235_v58  ;;  %v5244_v58 = vpack.c.bf16 %v9067_v35, %v9067_v35  ;;  %v5242_v35 = vpack.c.bf16 %v9059_v7, %v9059_v7 }
0x17c1   : > { %v5240_v7 = vpack.c.bf16 %v9051_v24, %v9051_v24  ;;  %v5238_v24 = vpack.c.bf16 %v9041_v45, %v9041_v45  ;;  %v5274_v45 = vunpack.c.l.b16 %v5226_v25  ;;  %v6904_v25 = vld [vmem:[%s9427_s12 + $0x7c] sm:$0xf] }
0x17c2   : > { %v5349_v57 = vpack.c.b16 %v5341_v22, %v5340_v49  ;;  %v5292_v46 = vpack.c.b16 %v5283_v3, %v5282_v9  ;;  %v5280_v49 = vunpack.c.l.b16 %v5232_v18  ;;  %v5332_v22 = vunpack.c.l.b16 %v5244_v58  ;;  %v6891_v58 = vld [vmem:[%s9427_s12 + $0x10] sm:$0xf0] }
0x17c3   : > { %v5167_v27 = vpop.f32.mrf.mxu3  ;;  %v5330_v53 = vunpack.c.l.b16 %v5242_v35  ;;  %v5328_v48 = vunpack.c.l.b16 %v5240_v7  ;;  %v5275_v3 = vunpack.c.l.b16 %v5227_v60  ;;  %v5326_v56 = vunpack.c.l.b16 %v5238_v24  ;;  %v6721_v35 = vld [vmem:[%s9427_s12 + $0x54] sm:$0xf0]  ;;  %v6897_v60 = vld [vmem:[%s9427_s12 + $0x40] sm:$0xf0]  ;;  %v6727_v24 = vld [vmem:[%s9427_s12 + $0x50] sm:$0xf] }
0x17c4   : > { %v5237_v62 = vpack.c.bf16 %v5167_v27, %v5167_v27  ;;  %5664 = vmatpush.bf16.msrb.mxu3 %v5349_v57  ;;  %v6892_v27 = vld [vmem:[%s9427_s12 + $0x1c] sm:$0xf]  ;;  %v5291_v34 = vpack.c.b16 %v5281_v15, %v5280_v49  ;;  %v5278_v57 = vunpack.c.l.b16 %v5230_v38  ;;  %v5223_v18 = vpack.c.bf16 %v9048_v12, %v9048_v12  ;;  %v6890_v38 = vld [vmem:[%s9427_s12 + $0x8] sm:$0xf0] }
0x17c5   : > { %v6700_v23 = vor.u32 %v6892_v27, %v6697_v20  ;;  %v6712_v20 = vor.u32 %v6895_v52, %v6709_v30  ;;  %v5288_v9 = vpack.c.b16 %v5275_v3, %v5274_v45  ;;  %v5342_v17 = vpack.c.b16 %v5327_v1, %v5326_v56  ;;  %v6898_v49 = vld [vmem:[%s9427_s12 + $0x4c] sm:$0xf]  ;;  %v6719_v3 = vld [vmem:[%s9427_s12 + $0x48] sm:$0xf]  ;;  %v6907_v52 = vld [vmem:[%s9427_s12 + $0x94] sm:$0xf] }
0x17c6   : > { %v5285_v44 = vunpack.c.l.b16 %v5237_v62  ;;  %v5347_v62 = vpack.c.b16 %v5337_v10, %v5336_v13  ;;  %v5345_v10 = vpack.c.b16 %v5333_v63, %v5332_v22  ;;  %v5344_v13 = vpack.c.b16 %v5331_v36, %v5330_v53  ;;  %v6683_v63 = vld [vmem:[%s9427_s12] sm:$0xf]  ;;  %v6893_v36 = vld [vmem:[%s9427_s12 + $0x20] sm:$0xf0]  ;;  %v6715_v53 = vld [vmem:[%s9427_s12 + $0x38] sm:$0xf] }
0x17c7   : > { %5628 = vmatmul.bf16.gmra.mxu2 %v6700_v23  ;;  %v6691_v23 = vld [vmem:[%s9427_s12 + $0x8] sm:$0xf]  ;;  %v5271_v12 = vunpack.c.l.b16 %v5223_v18  ;;  %v6724_v22 = vor.u32 %v6898_v49, %v6721_v35  ;;  %v6757_v30 = vld [vmem:[%s9427_s12 + $0x9c] sm:$0xf0]  ;;  %v6902_v18 = vld [vmem:[%s9427_s12 + $0x68] sm:$0xf0] }
0x17c8   : > { %v5293_v37 = vpack.c.b16 %v5285_v44, %v5284_v41  ;;  %5665 = vmatpush.bf16.msrb.mxu3 %v5348_v54  ;;  %v5277_v54 = vunpack.c.l.b16 %v5229_v16  ;;  %v5290_v41 = vpack.c.b16 %v5279_v40, %v5278_v57  ;;  %v5329_v44 = vunpack.c.l.b16 %v5241_v4  ;;  %v6703_v16 = vld [vmem:[%s9427_s12 + $0x20] sm:$0xf]  ;;  %v6894_v40 = vld [vmem:[%s9427_s12 + $0x28] sm:$0xf0]  ;;  %v6695_v4 = vld [vmem:[%s9427_s12 + $0x18] sm:$0xf] }
0x17c9   : > { %v6692_v15 = vor.u32 %v6891_v58, %v6691_v23  ;;  %v5286_v14 = vpack.c.b16 %v5271_v12, %v5270_v29  ;;  %v6696_v11 = vor.u32 %v6893_v36, %v6695_v4  ;;  %v6901_v57 = vld [vmem:[%s9427_s12 + $0x64] sm:$0xf]  ;;  %v6760_v55 = vor.u32 %v6907_v52, %v6757_v30  ;;  %v6739_v45 = vld [vmem:[%s9427_s12 + $0x68] sm:$0xf]  ;;  %v6731_v56 = vld [vmem:[%s9427_s12 + $0x60] sm:$0xf] }
0x17ca   : > { %5566 = vmatpush.bf16.msrb.mxu1 %v5293_v37  ;;  %v5289_v37 = vpack.c.b16 %v5277_v54, %v5276_v32  ;;  %v5343_v27 = vpack.c.b16 %v5329_v44, %v5328_v48  ;;  %v6716_v54 = vor.u32 %v6897_v60, %v6715_v53  ;;  %v6745_v32 = vld [vmem:[%s9427_s12 + $0x84] sm:$0xf0]  ;;  %v6900_v48 = vld [vmem:[%s9427_s12 + $0x58] sm:$0xf0]  ;;  %v6769_v23 = vld [vmem:[%s9427_s12 + $0xb4] sm:$0x70] }
0x17cb   : > { %v6905_v12 = vld [vmem:[%s9427_s12 + $0x80] sm:$0xf0]  ;;  %v9707_v36 = vld [vmem:[#allocation4_spill] sm:$0xff] }
0x17cc   : > { %5666 = vmatpush.bf16.msrb.mxu3 %v5347_v62  ;;  %v5273_v62 = vunpack.c.l.b16 %v5225_v28  ;;  %v6728_v28 = vor.u32 %v6900_v48, %v6727_v24  ;;  %v9705_v29 = vld [vmem:[#allocation2_spill] sm:$0xff]  ;;  %v6775_v30 = vld [vmem:[%s9427_s12 + $0xb0] sm:$0xf] }
0x17ce   : > { %5567 = vmatpush.bf16.msrb.mxu1 %v5292_v46  ;;  %v5287_v46 = vpack.c.b16 %v5273_v62, %v5272_v8  ;;  %v6732_v62 = vor.u32 %v6902_v18, %v6731_v56  ;;  %v6906_v8 = vld [vmem:[%s9427_s12 + $0x88] sm:$0xf0]  ;;  %v5361_v56 = vpop.permute.xlu2 %5360 }
0x17d0   : > { %5667 = vmatpush.bf16.msrb.mxu3 %v5346_v33  ;;  %v6684_v33 = vor.u32 %v6890_v38, %v6683_v63  ;;  %v5734_v63 = vmul.u32 2, %v9705_v29  ;;  %v9706_v38 = vld [vmem:[#allocation3_spill] sm:$0xff] }
0x17d2   : > { %5568 = vmatpush.bf16.msrb.mxu1 %v5291_v34  ;;  %v6704_v34 = vor.u32 %v6894_v40, %v6703_v16  ;;  %vm5750_vm14 = vcmp.eq.s32.totalorder %v7101_v2, %v5734_v63  ;;  %v5758_v49 = vadd.s32 1, %v5734_v63  ;;  %v6909_v16 = vld [vmem:[%s9427_s12 + $0xa0] sm:$0xf0] }
0x17d4   : > { %5668 = vmatpush.bf16.msrb.mxu3 %v5345_v10  ;;  %v6733_v10 = vld [vmem:[%s9427_s12 + $0x6c] sm:$0xf0]  ;;  %vm5774_vm11 = vcmp.eq.s32.totalorder %v7101_v2, %v5758_v49 }
0x17d5   : > { %v6736_v7 = vor.u32 %v6901_v57, %v6733_v10  ;;  %vm5792_vm1 = vmor %vm5750_vm14, %vm5774_vm11  ;;  %v9708_v57 = vld [vmem:[#allocation5_spill] sm:$0xff] }
0x17d6   : > { %5569 = vmatpush.bf16.msrb.mxu1 %v5290_v41  ;;  %v6707_v41 = vld [vmem:[%s9427_s12 + $0x30] sm:$0xf]  ;;  %v5733_v10 = vmul.u32 2, %v9708_v57 }
0x17d7   : > { %5633 = vmatmul.bf16.gmra.mxu2 %v6712_v20  ;;  %v6708_v44 = vor.u32 %v6896_v31, %v6707_v41 }
0x17d8   : > { %5669 = vmatpush.bf16.msrb.mxu3 %v5344_v13  ;;  %v6748_v13 = vor.u32 %v6904_v25, %v6745_v32  ;;  %vm5748_vm11 = vcmp.eq.s32.totalorder %v7101_v2, %v5733_v10 }
0x17da   : > { %5570 = vmatpush.bf16.msrb.mxu1 %v5289_v37  ;;  %v6899_v37 = vld [vmem:[%s9427_s12 + $0x50] sm:$0xf0] }
0x17db   : > { %v6720_v1 = vor.u32 %v6899_v37, %v6719_v3  ;;  %v5624_v52 = vpop.f32.mrf.mxu2 }
0x17dc   : > { %5670 = vmatpush.bf16.msrb.mxu3 %v5343_v27  ;;  %v6903_v27 = vld [vmem:[%s9427_s12 + $0x70] sm:$0xf0] }
0x17dd   : > { %v6740_v20 = vor.u32 %v6903_v27, %v6739_v45 }
0x17de   : > { %5571 = vmatpush.bf16.msrb.mxu1 %v5288_v9  ;;  %v6910_v9 = vld [vmem:[%s9427_s12 + $0xac] sm:$0xf] }
0x17df   : > { %v6772_v58 = vor.u32 %v6910_v9, %v6769_v23 }
0x17e0   : > { %5671 = vmatpush.bf16.msrb.mxu3 %v5342_v17  ;;  %v6752_v17 = vor.u32 %v6906_v8, %v6751_v19 }
0x17e2   : > { %5572 = vmatpush.bf16.msrb.mxu1 %v5287_v46 }
0x17e3   : > { %5672 = vmatmul.bf16.vlgmr.msrb.gmra.mxu3 %v6692_v15  ;;  %v6743_v15 = vld [vmem:[%s9427_s12 + $0x78] sm:$0xf] }
0x17e4   : > { %v6744_v46 = vor.u32 %v6905_v12, %v6743_v15 }
0x17e6   : > { %5573 = vmatpush.bf16.msrb.mxu1 %v5286_v14  ;;  %v5735_v14 = vmul.u32 2, %v9706_v38 }
0x17e7   : > { %5638 = vmatmul.bf16.gmra.mxu2 %v6724_v22  ;;  %v6763_v22 = vld [vmem:[%s9427_s12 + $0x98] sm:$0xf] }
0x17e8   : > { %v5759_v35 = vadd.s32 1, %v5735_v14  ;;  %vm5752_vm10 = vcmp.eq.s32.totalorder %v7101_v2, %v5735_v14  ;;  %v6764_v40 = vor.u32 %v6909_v16, %v6763_v22 }
0x17e9   : > { %5574 = vmatmul.bf16.vlgmr.msrb.gmra.mxu1 %v6684_v33  ;;  %v9238_v33 = vadd.s32 128, %v7101_v2 }
0x17ea   : > { %vm5776_vm0 = vcmp.eq.s32.totalorder %v7101_v2, %v5759_v35 }
0x17eb   : > { %vm5751_vm2 = vcmp.eq.s32.totalorder %v9238_v33, %v5734_v63  ;;  %vm5775_vm9 = vcmp.eq.s32.totalorder %v9238_v33, %v5758_v49  ;;  %vm5753_vm6 = vcmp.eq.s32.totalorder %v9238_v33, %v5735_v14  ;;  %vm5777_vm12 = vcmp.eq.s32.totalorder %v9238_v33, %v5759_v35  ;;  %vm5794_vm15 = vmor %vm5752_vm10, %vm5776_vm0  ;;  %v5376_v35 = vpop.permute.xlu2 %5375 }
0x17ec   : > { %v5812_v4 = vsel %vm5794_vm15, 1.0, %v9619_v6  ;;  %vm5793_vm5 = vmor %vm5751_vm2, %vm5775_vm9  ;;  %vm9709_vm15 = vcmask 1045504  }
0x17ed   : > { %vm5795_vm14 = vmor %vm5753_vm6, %vm5777_vm12  ;;  %v5811_v60 = vsel %vm5793_vm5, 1.0, %v9619_v6 }
0x17ee   : > { %v5813_v41 = vsel %vm5795_vm14, 1.0, %v9619_v6  ;;  %vm9710_vm2 = vmmov %vm9709_vm15  ;;  %vm5749_vm14 = vcmp.eq.s32.totalorder %v9238_v33, %v5733_v10 }
0x17ef   : > { %v5822_v32 = vpack.c.bf16 %v5813_v41, %v5811_v60 }
0x17f1   : > { %v5859_v24 = vsel %vm9710_vm2, %v5822_v32, 0 }
0x17f2   : > { %5912 = vmatpush.bf16.msra.mxu1 %v5859_v24 }
0x17f3   : > { %5677 = vmatmul.bf16.gmra.mxu3 %v6704_v34  ;;  %v5810_v34 = vsel %vm5792_vm1, 1.0, %v9619_v6  ;;  %v9711_v6 = vld [vmem:[#allocation10_spill] sm:$0xff] }
0x17f4   : > { %v5821_v53 = vpack.c.bf16 %v5812_v4, %v5810_v34  ;;  %v5730_v48 = vmul.u32 2, %v9711_v6 }
0x17f6   : > { %v5856_v25 = vsel %vm9709_vm15, %v5821_v53, 0  ;;  %v5754_v37 = vadd.s32 1, %v5730_v48 }
0x17f7   : > { %5643 = vmatmul.bf16.gmra.mxu2 %v6736_v7  ;;  %v6755_v7 = vld [vmem:[%s9427_s12 + $0x90] sm:$0xf]  ;;  %5863 = vmatpush.bf16.msra.mxu0 %v5856_v25 }
0x17f8   : > { %vm5766_vm2 = vcmp.eq.s32.totalorder %v7101_v2, %v5754_v37 }
0x17f9   : > { %5579 = vmatmul.bf16.gmra.mxu1 %v6696_v11  ;;  %v5732_v11 = vmul.u32 2, %v9707_v36 }
0x17fb   : > { %v5756_v31 = vadd.s32 1, %v5732_v11  ;;  %vm5746_vm10 = vcmp.eq.s32.totalorder %v7101_v2, %v5732_v11  ;;  %vm5747_vm1 = vcmp.eq.s32.totalorder %v9238_v33, %v5732_v11 }
0x17fd   : > { %vm5770_vm0 = vcmp.eq.s32.totalorder %v7101_v2, %v5756_v31  ;;  %vm5771_vm6 = vcmp.eq.s32.totalorder %v9238_v33, %v5756_v31 }
0x17fe   : > { %vm5788_vm9 = vmor %vm5746_vm10, %vm5770_vm0  ;;  %vm5742_vm10 = vcmp.eq.s32.totalorder %v7101_v2, %v5730_v48 }
0x17ff   : > { %vm5789_vm7 = vmor %vm5747_vm1, %vm5771_vm6  ;;  %vm5767_vm1 = vcmp.eq.s32.totalorder %v9238_v33, %v5754_v37 }
0x1803   : > { %5682 = vmatmul.bf16.gmra.mxu3 %v6716_v54  ;;  %v6908_v54 = vld [vmem:[%s9427_s12 + $0x98] sm:$0xf0] }
0x1807   : > { %5648 = vmatmul.bf16.gmra.mxu2 %v6748_v13  ;;  %v6756_v13 = vor.u32 %v6908_v54, %v6755_v7 }
0x1809   : > { %5584 = vmatmul.bf16.gmra.mxu1 %v6708_v44  ;;  %v5757_v44 = vadd.s32 1, %v5733_v10 }
0x180b   : > { %vm5772_vm5 = vcmp.eq.s32.totalorder %v7101_v2, %v5757_v44  ;;  %vm5773_vm15 = vcmp.eq.s32.totalorder %v9238_v33, %v5757_v44 }
0x180c   : > { %vm5790_vm12 = vmor %vm5748_vm11, %vm5772_vm5 }
0x180d   : > { %vm6777_vm3 = vmpackc.low %vm5790_vm12, %vm5788_vm9 }
0x180e   : > { %6778 = vmatpush.bf16.msk.msra.mxu0 %vm6777_vm3, %v9598_v26  ;;  %vm5791_vm0 = vmor %vm5749_vm14, %vm5773_vm15  ;;  %vm5743_vm3 = vcmp.eq.s32.totalorder %v9238_v33, %v5730_v48 }
0x180f   : > { %vm6795_vm5 = vmpackc.low %vm5791_vm0, %vm5789_vm7  ;;  %vm5740_vm0 = vcmp.eq.s32.totalorder %v9238_v33, %v8896_v0  ;;  %v6767_v0 = vld [vmem:[%s9427_s12 + $0xa8] sm:$0xf] }
0x1810   : > { %6796 = vmatpush.bf16.msk.msra.mxu1 %vm6795_vm5, %v9598_v26  ;;  %vm5784_vm9 = vmor %vm5742_vm10, %vm5766_vm2  ;;  %vm5764_vm5 = vcmp.eq.s32.totalorder %v9238_v33, %v8902_v39  ;;  %v6911_v39 = vld [vmem:[%s9427_s12 + $0xb0] sm:$0x70] }
0x1811   : > { %vm5785_vm15 = vmor %vm5743_vm3, %vm5767_vm1  ;;  %vm5738_vm1 = vcmp.eq.s32.totalorder %v9238_v33, %v8735_v61  ;;  %v9713_v61 = vld [vmem:[#allocation28_spill] sm:$0xff] }
0x1812   : > { %vm5782_vm3 = vmor %vm5740_vm0, %vm5764_vm5  ;;  %vm9717_vm5 = vnez %v9716_v51 }
0x1813   : > { %5687 = vmatmul.bf16.gmra.mxu3 %v6728_v28  ;;  %v9712_v28 = vld [vmem:[#allocation11_spill] sm:$0xff] }
0x1814   : > { %v5731_v3 = vmul.u32 2, %v9712_v28 }
0x1816   : > { %vm5744_vm11 = vcmp.eq.s32.totalorder %v7101_v2, %v5731_v3  ;;  %vm5745_vm6 = vcmp.eq.s32.totalorder %v9238_v33, %v5731_v3 }
0x1817   : > { %5653 = vmatmul.bf16.gmra.mxu2 %v6760_v55  ;;  %v6912_v55 = vld [vmem:[%s9427_s12 + $0xb8] sm:$0x70] }
0x1819   : > { %5589 = vmatmul.bf16.gmra.mxu1 %v6720_v1  ;;  %v5755_v1 = vadd.s32 1, %v5731_v3 }
0x181b   : > { %vm5768_vm8 = vcmp.eq.s32.totalorder %v7101_v2, %v5755_v1  ;;  %vm5769_vm12 = vcmp.eq.s32.totalorder %v9238_v33, %v5755_v1  ;;  %v6776_v2 = vor.u32 %v6912_v55, %v6775_v30 }
0x181c   : > { %vm5786_vm7 = vmor %vm5744_vm11, %vm5768_vm8  ;;  %vm5741_vm8 = vcmp.eq.s32.totalorder %v9238_v33, %v8899_v59  ;;  %vm5765_vm11 = vcmp.eq.s32.totalorder %v9238_v33, %v8905_v21  ;;  %v5626_v59 = vpop.f32.mrf.mxu2  ;;  %v6768_v21 = vor.u32 %v6911_v39, %v6767_v0 }
0x181d   : > { %vm6779_vm14 = vmpackc.low %vm5786_vm7, %vm5784_vm9  ;;  %vm5762_vm7 = vcmp.eq.s32.totalorder %v9238_v33, %v8738_v5  ;;  %v9714_v5 = vld [vmem:[#allocation14_spill] sm:$0xff] }
0x181e   : > { %6780 = vmatpush.bf16.msk.msra.mxu0 %vm6779_vm14, %v9598_v26  ;;  %vm5787_vm10 = vmor %vm5745_vm6, %vm5769_vm12  ;;  %vm9715_vm0 = vnez %v9714_v5 }
0x181f   : > { %vm6797_vm2 = vmpackc.low %vm5787_vm10, %vm5785_vm15  ;;  %vm5736_vm15 = vcmp.eq.s32.totalorder %v9238_v33, %v8557_v47  ;;  %vm5760_vm10 = vcmp.eq.s32.totalorder %v9238_v33, %v9713_v61  ;;  %v9721_v47 = vld [vmem:[#allocation32_spill] sm:$0xff] }
0x1820   : > { %6798 = vmatpush.bf16.msk.msra.mxu1 %vm6797_vm2, %v9598_v26  ;;  %vm6781_vm9 = vmpackc.low %vm8920_vm4, %vm8915_vm13  ;;  %vm5739_vm13 = vcmp.eq.s32.totalorder %v9238_v33, %v8931_v43  ;;  %vm5763_vm4 = vcmp.eq.s32.totalorder %v9238_v33, %v8934_v42  ;;  %v9720_v43 = vld [vmem:[#allocation25_spill] sm:$0xff] }
0x1821   : > { %vm5783_vm6 = vmor %vm5741_vm8, %vm5765_vm11  ;;  %vm5737_vm11 = vcmp.eq.s32.totalorder %v9238_v33, %v9719_v50 }
0x1822   : > { %6782 = vmatpush.bf16.msk.msra.mxu0 %vm6781_vm9, %v9598_v26  ;;  %vm6799_vm12 = vmpackc.low %vm5783_vm6, %vm5782_vm3  ;;  %vm5761_vm9 = vcmp.eq.s32.totalorder %v9238_v33, %v9720_v43  ;;  %vm9722_vm6 = vnez %v9721_v47 }
0x1823   : > { %5692 = vmatmul.bf16.gmra.mxu3 %v6740_v20  ;;  %vm5780_vm14 = vmor %vm5738_vm1, %vm5762_vm7 }
0x1824   : > { %6800 = vmatpush.bf16.msk.msra.mxu1 %vm6799_vm12, %v9598_v26  ;;  %vm9718_vm2 = vmpackc.low %vm9715_vm0, %vm9717_vm5 }
0x1825   : > { %vm5781_vm8 = vmor %vm5739_vm13, %vm5763_vm4  ;;  %vm9723_vm13 = vcmask 752640  }
0x1826   : > { %6784 = vmatpush.bf16.msk.msra.mxu0 %vm9718_vm2, %v9598_v26  ;;  %vm6801_vm3 = vmpackc.low %vm5781_vm8, %vm5780_vm14 }
0x1827   : > { %5658 = vmatmul.bf16.gmra.mxu2 %v6772_v58  ;;  %vm5778_vm1 = vmor %vm5736_vm15, %vm5760_vm10 }
0x1828   : > { %vm5779_vm7 = vmor %vm5737_vm11, %vm5761_vm9  ;;  %6802 = vmatpush.bf16.msk.msra.mxu1 %vm6801_vm3, %v9598_v26 }
0x1829   : > { %5594 = vmatmul.bf16.gmra.mxu1 %v6732_v62  ;;  %vm6803_vm12 = vmpackc.low %vm5779_vm7, %vm5778_vm1  ;;  %v5366_v62 = vpop.permute.xlu0 %5365 }
0x182a   : > { %6786 = vmatpush.bf16.msk.msra.mxu0 %vm9722_vm6, %v9598_v26  ;;  %vm9724_vm4 = vmmov %vm9723_vm13 }
0x182b   : > { %vm9725_vm14 = vmmov %vm9724_vm4 }
0x182c   : > { %6804 = vmatpush.bf16.msk.msra.mxu1 %vm6803_vm12, %v9598_v26  ;;  %v5371_v26 = vpop.permute.xlu1 %5370  ;;  %vm9726_vm15 = vmmov %vm9724_vm4 }
0x182d   : > { %vm9727_vm10 = vmmov %vm9724_vm4 }
0x182e   : > { %vm9728_vm0 = vmmov %vm9724_vm4 }
0x182f   : > { %vm9729_vm5 = vmmov %vm9728_vm0 }
0x1830   : > { %vm9730_vm2 = vmmov %vm9728_vm0 }
0x1831   : > { %v5381_v41 = vpop.permute.xlu0 %5380  ;;  %vm9731_vm8 = vmmov %vm9728_vm0 }
0x1832   : > { %vm9732_vm11 = vmmov %vm9728_vm0 }
0x1833   : > { %5697 = vmatmul.bf16.gmra.mxu3 %v6752_v17  ;;  %vm9733_vm9 = vmmov %vm9728_vm0 }
0x1834   : > { %v5386_v44 = vpop.permute.xlu1 %5385  ;;  %vm9734_vm3 = vmmov %vm9728_vm0 }
0x1835   : > { %vm9735_vm1 = vmmov %vm9728_vm0 }
0x1836   : > { %vm9736_vm7 = vmmov %vm9728_vm0 }
0x1837   : > { %vm9737_vm6 = vmmov %vm9728_vm0 }
0x1838   : > { %vm9738_vm12 = vmmov %vm9728_vm0 }
0x1839   : > { %5599 = vmatmul.bf16.gmra.mxu1 %v6744_v46 }
0x1843   : > { %5702 = vmatmul.bf16.gmra.mxu3 %v6764_v40 }
0x1849   : > { %5604 = vmatmul.bf16.gmra.mxu1 %v6756_v13 }
0x184a   : > { %v5629_v42 = vpop.f32.mrf.mxu2 }
0x1852   : > { %v5631_v20 = vpop.f32.mrf.mxu2 }
0x1853   : > { %5707 = vmatmul.bf16.gmra.mxu3 %v6776_v2  ;;  %v5391_v2 = vpop.permute.xlu2 %5390 }
0x1859   : > { %5609 = vmatmul.bf16.gmra.mxu1 %v6768_v21 }
0x185a   : > { %v5634_v15 = vpop.f32.mrf.mxu2 }
0x1862   : > { %v5636_v49 = vpop.f32.mrf.mxu2 }
0x1866   : > { %v5575_v45 = vpop.f32.mrf.mxu1  ;;  %v5673_v27 = vpop.f32.mrf.mxu3 }
0x1867   : > { %v5576_v18 = vadd.f32 %v5575_v45, %v5361_v56 }
0x1869   : > { %v5625_v9 = vadd.f32 %v5624_v52, %v5576_v18 }
0x186a   : > { %v5639_v7 = vpop.f32.mrf.mxu2 }
0x186b   : > { %v5674_v8 = vadd.f32 %v5673_v27, %v5625_v9 }
0x186d   : > { %v5713_v46 = vmax.f32 %v5674_v8, 0.0 }
0x186e   : > { %v5577_v23 = vpop.f32.mrf.mxu1  ;;  %v5675_v58 = vpop.f32.mrf.mxu3 }
0x186f   : > { %v5578_v19 = vadd.f32 %v5577_v23, %v5366_v62  ;;  %v5401_v62 = vpop.permute.xlu1 %5400  ;;  %v5406_v23 = vpop.permute.xlu2 %5405 }
0x1871   : > { %v5627_v17 = vadd.f32 %v5626_v59, %v5578_v19  ;;  %v5396_v59 = vpop.permute.xlu0 %5395 }
0x1872   : > { %v5641_v6 = vpop.f32.mrf.mxu2 }
0x1873   : > { %v5676_v12 = vadd.f32 %v5675_v58, %v5627_v17 }
0x1875   : > { %v5714_v29 = vmax.f32 %v5676_v12, 0.0 }
0x1876   : > { %v5580_v63 = vpop.f32.mrf.mxu1  ;;  %v5678_v38 = vpop.f32.mrf.mxu3 }
0x1877   : > { %v5823_v14 = vpack.c.bf16 %v5714_v29, %v5713_v46  ;;  %v5581_v33 = vadd.f32 %v5580_v63, %v5371_v26 }
0x1879   : > { %6787 = vmatmul.msk.bf16.vlgmr.msra.gmra.mxu0 %vm9723_vm13, %v5823_v14  ;;  %6805 = vmatmul.msk.bf16.vlgmr.msra.gmra.mxu1 %vm9724_vm4, %v5823_v14  ;;  %v5630_v22 = vadd.f32 %v5629_v42, %v5581_v33  ;;  %vm5960_vm13 = vcmask 457728   ;;  %vm5991_vm4 = vcmask 454656  }
0x187a   : > { %v5644_v39 = vpop.f32.mrf.mxu2 }
0x187b   : > { %v5679_v4 = vadd.f32 %v5678_v38, %v5630_v22 }
0x187d   : > { %v5715_v57 = vmax.f32 %v5679_v4, 0.0 }
0x187e   : > { %v5582_v16 = vpop.f32.mrf.mxu1  ;;  %v5680_v40 = vpop.f32.mrf.mxu3 }
0x187f   : > { %v5583_v34 = vadd.f32 %v5582_v16, %v5376_v35  ;;  %v5416_v16 = vpop.permute.xlu1 %5415 }
0x1881   : > { %v5632_v36 = vadd.f32 %v5631_v20, %v5583_v34 }
0x1882   : > { %v5646_v42 = vpop.f32.mrf.mxu2 }
0x1883   : > { %v5681_v11 = vadd.f32 %v5680_v40, %v5632_v36 }
0x1885   : > { %v5716_v10 = vmax.f32 %v5681_v11, 0.0 }
0x1886   : > { %v5585_v53 = vpop.f32.mrf.mxu1  ;;  %v5683_v60 = vpop.f32.mrf.mxu3 }
0x1887   : > { %v5824_v54 = vpack.c.bf16 %v5716_v10, %v5715_v57  ;;  %v5586_v31 = vadd.f32 %v5585_v53, %v5381_v41 }
0x1889   : > { %6788 = vmatmul.msk.bf16.gmra.mxu0 %vm9725_vm14, %v5824_v54  ;;  %6806 = vmatmul.msk.bf16.gmra.mxu1 %vm9726_vm15, %v5824_v54  ;;  %v5635_v25 = vadd.f32 %v5634_v15, %v5586_v31 }
0x188a   : > { %v5649_v19 = vpop.f32.mrf.mxu2 }
0x188b   : > { %v5684_v48 = vadd.f32 %v5683_v60, %v5635_v25 }
0x188d   : > { %v5717_v37 = vmax.f32 %v5684_v48, 0.0 }
0x188e   : > { %v5587_v32 = vpop.f32.mrf.mxu1  ;;  %v5685_v13 = vpop.f32.mrf.mxu3 }
0x188f   : > { %v5588_v24 = vadd.f32 %v5587_v32, %v5386_v44  ;;  %v5421_v44 = vpop.permute.xlu2 %5420 }
0x1891   : > { %v5637_v28 = vadd.f32 %v5636_v49, %v5588_v24  ;;  %v5411_v49 = vpop.permute.xlu0 %5410 }
0x1892   : > { %v5651_v35 = vpop.f32.mrf.mxu2 }
0x1893   : > { %v5686_v3 = vadd.f32 %v5685_v13, %v5637_v28 }
0x1895   : > { %v5718_v1 = vmax.f32 %v5686_v3, 0.0 }
0x1896   : > { %v5590_v52 = vpop.f32.mrf.mxu1  ;;  %v5688_v30 = vpop.f32.mrf.mxu3 }
0x1897   : > { %v5825_v55 = vpack.c.bf16 %v5718_v1, %v5717_v37  ;;  %v5591_v0 = vadd.f32 %v5590_v52, %v5391_v2 }
0x1899   : > { %6789 = vmatmul.msk.bf16.gmra.mxu0 %vm9727_vm10, %v5825_v55  ;;  %6807 = vmatmul.msk.bf16.gmra.mxu1 %vm9728_vm0, %v5825_v55  ;;  %v5640_v21 = vadd.f32 %v5639_v7, %v5591_v0  ;;  %v5426_v13 = vpop.permute.xlu0 %5425 }
0x189a   : > { %v5654_v10 = vpop.f32.mrf.mxu2 }
0x189b   : > { %v5689_v50 = vadd.f32 %v5688_v30, %v5640_v21 }
0x189d   : > { %v5719_v45 = vmax.f32 %v5689_v50, 0.0 }
0x189e   : > { %v5592_v61 = vpop.f32.mrf.mxu1  ;;  %v5690_v5 = vpop.f32.mrf.mxu3 }
0x189f   : > { %v5593_v51 = vadd.f32 %v5592_v61, %v5396_v59 }
0x18a1   : > { %v5642_v43 = vadd.f32 %v5641_v6, %v5593_v51 }
0x18a2   : > { %v5656_v32 = vpop.f32.mrf.mxu2 }
0x18a3   : > { %v5691_v47 = vadd.f32 %v5690_v5, %v5642_v43  ;;  %v5436_v5 = vpop.permute.xlu2 %5435 }
0x18a5   : > { %v5720_v27 = vmax.f32 %v5691_v47, 0.0 }
0x18a6   : > { %v5595_v20 = vpop.f32.mrf.mxu1  ;;  %v5693_v56 = vpop.f32.mrf.mxu3 }
0x18a7   : > { %v5826_v18 = vpack.c.bf16 %v5720_v27, %v5719_v45  ;;  %v5596_v9 = vadd.f32 %v5595_v20, %v5401_v62 }
0x18a9   : > { %6790 = vmatmul.msk.bf16.gmra.mxu0 %vm9729_vm5, %v5826_v18  ;;  %6808 = vmatmul.msk.bf16.gmra.mxu1 %vm9730_vm2, %v5826_v18  ;;  %v5645_v58 = vadd.f32 %v5644_v39, %v5596_v9  ;;  %v5431_v39 = vpop.permute.xlu1 %5430 }
0x18aa   : > { %v5659_v2 = vpop.f32.mrf.mxu2 }
0x18ab   : > { %v5694_v12 = vadd.f32 %v5693_v56, %v5645_v58 }
0x18ad   : > { %v5721_v63 = vmax.f32 %v5694_v12, 0.0 }
0x18ae   : > { %v5597_v8 = vpop.f32.mrf.mxu1  ;;  %v5695_v17 = vpop.f32.mrf.mxu3 }
0x18af   : > { %v5598_v15 = vadd.f32 %v5597_v8, %v5406_v23 }
0x18b1   : > { %v5647_v46 = vadd.f32 %v5646_v42, %v5598_v15 }
0x18b2   : > { %v5661_v43 = vpop.f32.mrf.mxu2 }
0x18b3   : > { %v5696_v29 = vadd.f32 %v5695_v17, %v5647_v46 }
0x18b5   : > { %v5722_v38 = vmax.f32 %v5696_v29, 0.0 }
0x18b6   : > { %v5600_v14 = vpop.f32.mrf.mxu1  ;;  %v5698_v26 = vpop.f32.mrf.mxu3 }
0x18b7   : > { %v5827_v33 = vpack.c.bf16 %v5722_v38, %v5721_v63  ;;  %v5601_v22 = vadd.f32 %v5600_v14, %v5411_v49 }
0x18b9   : > { %6791 = vmatmul.msk.bf16.gmra.mxu0 %vm9731_vm8, %v5827_v33  ;;  %6809 = vmatmul.msk.bf16.gmra.mxu1 %vm9732_vm11, %v5827_v33  ;;  %v5650_v40 = vadd.f32 %v5649_v19, %v5601_v22 }
0x18bb   : > { %v5699_v11 = vadd.f32 %v5698_v26, %v5650_v40 }
0x18bd   : > { %v5723_v53 = vmax.f32 %v5699_v11, 0.0 }
0x18be   : > { %v5602_v34 = vpop.f32.mrf.mxu1  ;;  %v5700_v4 = vpop.f32.mrf.mxu3 }
0x18bf   : > { %v5603_v36 = vadd.f32 %v5602_v34, %v5416_v16 }
0x18c1   : > { %v5652_v57 = vadd.f32 %v5651_v35, %v5603_v36 }
0x18c3   : > { %v5701_v7 = vadd.f32 %v5700_v4, %v5652_v57 }
0x18c5   : > { %v5724_v60 = vmax.f32 %v5701_v7, 0.0 }
0x18c6   : > { %v5605_v54 = vpop.f32.mrf.mxu1  ;;  %v5703_v41 = vpop.f32.mrf.mxu3 }
0x18c7   : > { %v5828_v31 = vpack.c.bf16 %v5724_v60, %v5723_v53  ;;  %v5606_v25 = vadd.f32 %v5605_v54, %v5421_v44 }
0x18c9   : > { %6792 = vmatmul.msk.bf16.gmra.mxu0 %vm9733_vm9, %v5828_v31  ;;  %6810 = vmatmul.msk.bf16.gmra.mxu1 %vm9734_vm3, %v5828_v31  ;;  %v5655_v24 = vadd.f32 %v5654_v10, %v5606_v25 }
0x18cb   : > { %v5704_v3 = vadd.f32 %v5703_v41, %v5655_v24 }
0x18cd   : > { %v5725_v52 = vmax.f32 %v5704_v3, 0.0 }
0x18ce   : > { %v5607_v6 = vpop.f32.mrf.mxu1  ;;  %v5705_v48 = vpop.f32.mrf.mxu3 }
0x18cf   : > { %v5608_v28 = vadd.f32 %v5607_v6, %v5426_v13 }
0x18d1   : > { %v5657_v37 = vadd.f32 %v5656_v32, %v5608_v28 }
0x18d3   : > { %v5706_v1 = vadd.f32 %v5705_v48, %v5657_v37 }
0x18d5   : > { %v5726_v30 = vmax.f32 %v5706_v1, 0.0 }
0x18d6   : > { %v5610_v55 = vpop.f32.mrf.mxu1  ;;  %v5708_v59 = vpop.f32.mrf.mxu3 }
0x18d7   : > { %v5829_v0 = vpack.c.bf16 %v5726_v30, %v5725_v52  ;;  %v5611_v21 = vadd.f32 %v5610_v55, %v5431_v39 }
0x18d9   : > { %6793 = vmatmul.msk.bf16.gmra.mxu0 %vm9735_vm1, %v5829_v0  ;;  %6811 = vmatmul.msk.bf16.gmra.mxu1 %vm9736_vm7, %v5829_v0  ;;  %v5660_v61 = vadd.f32 %v5659_v2, %v5611_v21 }
0x18db   : > { %v5709_v47 = vadd.f32 %v5708_v59, %v5660_v61 }
0x18dd   : > { %v5727_v20 = vmax.f32 %v5709_v47, 0.0 }
0x18de   : > { %v5612_v51 = vpop.f32.mrf.mxu1  ;;  %v5710_v45 = vpop.f32.mrf.mxu3 }
0x18df   : > { %v5613_v50 = vadd.f32 %v5612_v51, %v5436_v5 }
0x18e1   : > { %v5662_v42 = vadd.f32 %v5661_v43, %v5613_v50 }
0x18e3   : > { %v5711_v27 = vadd.f32 %v5710_v45, %v5662_v42 }
0x18e5   : > { %v5728_v56 = vmax.f32 %v5711_v27, 0.0 }
0x18e7   : > { %v5830_v18 = vpack.c.bf16 %v5728_v56, %v5727_v20 }
0x18e9   : > { %6794 = vmatmul.msk.bf16.gmra.mxu0 %vm9737_vm6, %v5830_v18  ;;  %6812 = vmatmul.msk.bf16.gmra.mxu1 %vm9738_vm12, %v5830_v18 }
0x18f6   : > { %v5870_v62 = vpop.f32.mrf.mxu0  ;;  %v5919_v9 = vpop.f32.mrf.mxu1 }
0x18f7   : > { %5959 = vst [vmem:[%s9363_s0] sm:$0xff] %v5870_v62 }
0x18f8   : > { %5961 = vst.msk [vmem:[%s9363_s0 + $0x8] sm:$0xff] %vm5960_vm13, %v5919_v9 }
0x18fe   : > { %v5872_v23 = vpop.f32.mrf.mxu0  ;;  %v5921_v58 = vpop.f32.mrf.mxu1 }
0x18ff   : > { %5962 = vst [vmem:[%s9363_s0 + $0x10] sm:$0xff] %v5872_v23 }
0x1900   : > { %5963 = vst.msk [vmem:[%s9363_s0 + $0x18] sm:$0xff] %vm5960_vm13, %v5921_v58 }
0x1906   : > { %v5875_v19 = vpop.f32.mrf.mxu0  ;;  %v5924_v8 = vpop.f32.mrf.mxu1 }
0x1907   : > { %5964 = vst [vmem:[%s9363_s0 + $0x20] sm:$0xff] %v5875_v19 }
0x1908   : > { %5965 = vst.msk [vmem:[%s9363_s0 + $0x28] sm:$0xff] %vm5960_vm13, %v5924_v8 }
0x190e   : > { %v5877_v17 = vpop.f32.mrf.mxu0  ;;  %v5926_v15 = vpop.f32.mrf.mxu1 }
0x190f   : > { %5966 = vst [vmem:[%s9363_s0 + $0x30] sm:$0xff] %v5877_v17 }
0x1910   : > { %5967 = vst.msk [vmem:[%s9363_s0 + $0x38] sm:$0xff] %vm5960_vm13, %v5926_v15 }
0x1916   : > { %v5880_v12 = vpop.f32.mrf.mxu0  ;;  %v5929_v46 = vpop.f32.mrf.mxu1 }
0x1917   : > { %5968 = vst [vmem:[%s9363_s0 + $0x40] sm:$0xff] %v5880_v12 }
0x1918   : > { %5969 = vst.msk [vmem:[%s9363_s0 + $0x48] sm:$0xff] %vm5960_vm13, %v5929_v46 }
0x191e   : > { %v5882_v29 = vpop.f32.mrf.mxu0  ;;  %v5931_v63 = vpop.f32.mrf.mxu1 }
0x191f   : > { %5970 = vst [vmem:[%s9363_s0 + $0x50] sm:$0xff] %v5882_v29 }
0x1920   : > { %5971 = vst.msk [vmem:[%s9363_s0 + $0x58] sm:$0xff] %vm5960_vm13, %v5931_v63 }
0x1926   : > { %v5885_v38 = vpop.f32.mrf.mxu0  ;;  %v5934_v14 = vpop.f32.mrf.mxu1 }
0x1927   : > { %5972 = vst [vmem:[%s9363_s0 + $0x60] sm:$0xff] %v5885_v38 }
0x1928   : > { %5973 = vst.msk [vmem:[%s9363_s0 + $0x68] sm:$0xff] %vm5960_vm13, %v5934_v14 }
0x192e   : > { %v5887_v26 = vpop.f32.mrf.mxu0  ;;  %v5936_v33 = vpop.f32.mrf.mxu1 }
0x192f   : > { %5974 = vst [vmem:[%s9363_s0 + $0x70] sm:$0xff] %v5887_v26 }
0x1930   : > { %5975 = vst.msk [vmem:[%s9363_s0 + $0x78] sm:$0xff] %vm5960_vm13, %v5936_v33 }
0x1936   : > { %v5890_v49 = vpop.f32.mrf.mxu0  ;;  %v5939_v35 = vpop.f32.mrf.mxu1 }
0x1937   : > { %5976 = vst [vmem:[%s9363_s0 + $0x80] sm:$0xff] %v5890_v49 }
0x1938   : > { %5977 = vst.msk [vmem:[%s9363_s0 + $0x88] sm:$0xff] %vm5960_vm13, %v5939_v35 }
0x193e   : > { %v5892_v22 = vpop.f32.mrf.mxu0  ;;  %v5941_v16 = vpop.f32.mrf.mxu1 }
0x193f   : > { %5978 = vst [vmem:[%s9363_s0 + $0x90] sm:$0xff] %v5892_v22 }
0x1940   : > { %5979 = vst.msk [vmem:[%s9363_s0 + $0x98] sm:$0xff] %vm5960_vm13, %v5941_v16 }
0x1946   : > { %v5895_v40 = vpop.f32.mrf.mxu0  ;;  %v5944_v34 = vpop.f32.mrf.mxu1 }
0x1947   : > { %5980 = vst [vmem:[%s9363_s0 + $0xa0] sm:$0xff] %v5895_v40 }
0x1948   : > { %5981 = vst.msk [vmem:[%s9363_s0 + $0xa8] sm:$0xff] %vm5960_vm13, %v5944_v34 }
0x194e   : > { %v5897_v4 = vpop.f32.mrf.mxu0  ;;  %v5946_v36 = vpop.f32.mrf.mxu1 }
0x194f   : > { %5982 = vst [vmem:[%s9363_s0 + $0xb0] sm:$0xff] %v5897_v4 }
0x1950   : > { %5983 = vst.msk [vmem:[%s9363_s0 + $0xb8] sm:$0xff] %vm5960_vm13, %v5946_v36 }
0x1956   : > { %v5900_v11 = vpop.f32.mrf.mxu0  ;;  %v5949_v57 = vpop.f32.mrf.mxu1 }
0x1957   : > { %5984 = vst [vmem:[%s9363_s0 + $0xc0] sm:$0xff] %v5900_v11 }
0x1958   : > { %5985 = vst.msk [vmem:[%s9363_s0 + $0xc8] sm:$0xff] %vm5960_vm13, %v5949_v57 }
0x195e   : > { %v5902_v10 = vpop.f32.mrf.mxu0  ;;  %v5951_v7 = vpop.f32.mrf.mxu1 }
0x195f   : > { %5986 = vst [vmem:[%s9363_s0 + $0xd0] sm:$0xff] %v5902_v10 }
0x1960   : > { %5987 = vst.msk [vmem:[%s9363_s0 + $0xd8] sm:$0xff] %vm5960_vm13, %v5951_v7 }
0x1966   : > { %v5905_v53 = vpop.f32.mrf.mxu0  ;;  %v5954_v60 = vpop.f32.mrf.mxu1 }
0x1967   : > { %5988 = vst [vmem:[%s9363_s0 + $0xe0] sm:$0xff] %v5905_v53 }
0x1968   : > { %5989 = vst.msk [vmem:[%s9363_s0 + $0xe8] sm:$0xff] %vm5960_vm13, %v5954_v60 }
0x196e   : > { %v5907_v54 = vpop.f32.mrf.mxu0  ;;  %v5956_v41 = vpop.f32.mrf.mxu1 }
0x196f   : > { %5990 = vst [vmem:[%s9363_s0 + $0xf0] sm:$0x1f] %v5907_v54 }
0x1970   : > { %5992 = vst.msk [vmem:[%s9363_s0 + $0xf8] sm:$0x1f] %vm5991_vm4, %v5956_v41 }
0x1971 PF: > { %s37_s27 = sadd.s32 1, %s6950_s27  }
0x1972   : > { %p34_p4 = scmp.ge.s32.totalorder %s37_s27, 4  }
0x1974   :  { %36 = sbr.rel (!%p34_p4) target bundleno = 12 (0xc), region = 162 }

</bundles_post_ra>
